<compile_context>
chip_gen: v7x
topology: tpu7x:2x2x1
jax: 0.10.0
libtpu: 0.0.40
codegen_flags: <defaults>
</compile_context>

<pallas_src>
import functools

import jax
import jax.numpy as jnp
from jax.experimental import pallas as pl
from jax.experimental.pallas import tpu as pltpu


def _round_up(a, b):
    return (a + b - 1) // b * b


def _conv_stats_kernel(xf_ref, w_ref, b_ref, y_ref, st_ref, *,
                       block_rows, wp, w_valid, rows_valid):
    """One M-tile of the 3x3 conv + bias, plus per-tile BN sum / sum-of-squares.

    xf_ref : (Lpad, Cin)    f32   flattened zero-padded image (resident per image)
    w_ref  : (9, Cin, Cout) bf16  conv weights, tap-major
    b_ref  : (1, Cout)      f32   conv bias
    y_ref  : (TM, Cout)     f32   conv output tile (pre-BN)
    st_ref : (2, Cout)      f32   [sum ; sum-of-squares] over valid rows of tile
    """
    t = pl.program_id(1)
    q0 = pl.multiple_of(t * block_rows, block_rows)
    cout = y_ref.shape[-1]

    # Conv bias folded into the accumulator init (no extra full-tile add later).
    acc = jnp.broadcast_to(b_ref[...], (block_rows, cout)).astype(jnp.float32)

    # The 9 taps are plain row-shifted dynamic slices of the flattened padded
    # image, unrolled in-kernel.  Operands go to the MXU as bf16, accum in f32.
    for kh in range(3):
        for kw in range(3):
            tap = xf_ref[pl.ds(q0 + kh * wp + kw, block_rows), :]
            acc = acc + jnp.dot(tap.astype(jnp.bfloat16),
                                w_ref[kh * 3 + kw],
                                preferred_element_type=jnp.float32)

    # Single-pass BN statistics over valid output positions only (padded width
    # columns and rows beyond the image are masked out of the sums).
    q = q0 + jax.lax.broadcasted_iota(jnp.int32, (block_rows, 1), 0)
    col = q % wp
    valid = (q < rows_valid) & (col >= 1) & (col <= w_valid)
    yv = jnp.where(valid, acc, 0.0)
    st_ref[0:1, :] = jnp.sum(yv, axis=0, keepdims=True)
    st_ref[1:2, :] = jnp.sum(yv * yv, axis=0, keepdims=True)

    y_ref[...] = acc


def _bn_relu_kernel(y_ref, sc_ref, sh_ref, o_ref):
    """Fused BatchNorm affine + ReLU over one (TM, Cout) tile (all f32 VPU math)."""
    o_ref[...] = jnp.maximum(y_ref[...] * sc_ref[...] + sh_ref[...], 0.0
                             ).astype(o_ref.dtype)


def conv3x3_bn_relu(x_nhwc, w, b, gamma, beta, *, eps=1e-5, block_rows=256):
    """3x3 same-padded stride-1 conv + BatchNorm(batch stats) + ReLU (NHWC)."""
    N, H, W, Cin = x_nhwc.shape
    Cout = w.shape[-1]
    Wp = W + 2                      # padded width
    Lp = (H + 2) * Wp               # flattened padded image length
    L_out = H * Wp                  # output rows per image (incl. 2 pad columns)

    TM = min(_round_up(block_rows, 8), _round_up(L_out, 8))
    T = pl.cdiv(L_out, TM)
    Lpad = T * TM + 2 * Wp + 2      # covers every tap slice of every tile

    # Glue (plain JAX): spatial zero-pad ONCE, flatten (H+2, W+2) per image and
    # add a 1-row front offset + tail zeros so every tap slice stays in bounds.
    # (No 9x shifted-copy im2col is written to HBM.)
    xp = jnp.pad(x_nhwc.astype(jnp.float32), ((0, 0), (1, 1), (1, 1), (0, 0)))
    xf = jnp.pad(xp.reshape(N, Lp, Cin), ((0, 0), (1, Lpad - Lp - 1), (0, 0)))
    # TODO(synk): for very large images switch the resident-per-image input
    # block to memory_space=pl.ANY + manual halo DMA so VMEM stays bounded.

    wt = w.reshape(9, Cin, Cout).astype(jnp.bfloat16)   # tap-major bf16 weights
    bb = b.reshape(1, Cout).astype(jnp.float32)

    grid = (N, T)
    kernel = functools.partial(_conv_stats_kernel, block_rows=TM, wp=Wp,
                               w_valid=W, rows_valid=L_out)
    flops = 2 * N * T * TM * 9 * Cin * Cout
    bytes_accessed = (xf.size * 4 + wt.size * 2 + bb.size * 4
                      + N * T * TM * Cout * 4 + N * T * 2 * Cout * 4)

    y, stats = pl.pallas_call(
        kernel,
        out_shape=(jax.ShapeDtypeStruct((N, T * TM, Cout), jnp.float32),
                   jax.ShapeDtypeStruct((N, T, 2, Cout), jnp.float32)),
        grid=grid,
        in_specs=[
            # whole flattened padded image stays resident across its M-tiles
            pl.BlockSpec((pl.Squeezed(), Lpad, Cin), lambda n, t: (n, 0, 0)),
            pl.BlockSpec((9, Cin, Cout), lambda n, t: (0, 0, 0)),
            pl.BlockSpec((1, Cout), lambda n, t: (0, 0)),
        ],
        out_specs=(
            pl.BlockSpec((pl.Squeezed(), TM, Cout), lambda n, t: (n, t, 0)),
            pl.BlockSpec((pl.Squeezed(), pl.Squeezed(), 2, Cout),
                         lambda n, t: (n, t, 0, 0)),
        ),
        compiler_params=pltpu.CompilerParams(
            dimension_semantics=("parallel", "parallel"),
            vmem_limit_bytes=32 * 1024 * 1024),
        cost_estimate=pl.CostEstimate(flops=flops, transcendentals=0,
                                      bytes_accessed=bytes_accessed),
    )(xf, wt, bb)

    # Tiny cross-tile reduction + BN coefficients in plain JAX (O(Cout) work).
    cnt = float(N * H * W)
    mean = jnp.sum(stats[:, :, 0, :], axis=(0, 1)) / cnt
    var = jnp.maximum(jnp.sum(stats[:, :, 1, :], axis=(0, 1)) / cnt
                      - mean * mean, 0.0)
    inv = jax.lax.rsqrt(var + eps)
    g32 = gamma.astype(jnp.float32)
    scale = (g32 * inv).reshape(1, Cout)
    shift = (beta.astype(jnp.float32) - mean * g32 * inv).reshape(1, Cout)

    out = pl.pallas_call(
        _bn_relu_kernel,
        out_shape=jax.ShapeDtypeStruct((N, T * TM, Cout), jnp.float32),
        grid=grid,
        in_specs=[
            pl.BlockSpec((pl.Squeezed(), TM, Cout), lambda n, t: (n, t, 0)),
            pl.BlockSpec((1, Cout), lambda n, t: (0, 0)),
            pl.BlockSpec((1, Cout), lambda n, t: (0, 0)),
        ],
        out_specs=pl.BlockSpec((pl.Squeezed(), TM, Cout), lambda n, t: (n, t, 0)),
        compiler_params=pltpu.CompilerParams(
            dimension_semantics=("parallel", "parallel"),
            vmem_limit_bytes=32 * 1024 * 1024),
    )(y, scale, shift)

    # Drop the junk tail rows and the two padded-width columns.
    out = out[:, :L_out, :].reshape(N, H, Wp, Cout)[:, :, 1:W + 1, :]
    return out


def double_conv_forward(x_nchw, params):
    """Forward of DoubleConv.  Input / output are NCHW like the PyTorch module."""
    x = jnp.transpose(x_nchw, (0, 2, 3, 1)).astype(jnp.float32)   # NCHW -> NHWC
    y = conv3x3_bn_relu(x, params["w1"], params["b1"],
                        params["g1"], params["bn_b1"])
    y = conv3x3_bn_relu(y, params["w2"], params["b2"],
                        params["g2"], params["bn_b2"])
    # TODO(synk): BatchNorm running_mean/running_var buffer updates are a
    # training-time side effect and are not materialized here (output matches
    # the PyTorch train-mode forward, which uses batch statistics).
    return jnp.transpose(y, (0, 3, 1, 2))                         # NHWC -> NCHW


def init_params(key, in_channels, out_channels):
    """Deterministic synthetic init (PyTorch-style uniform bounds)."""
    k1, k2, k3, k4 = jax.random.split(key, 4)
    bound = 1.0 / (in_channels * 9) ** 0.5
    w1 = jax.random.uniform(k1, (3, 3, in_channels, in_channels),
                            jnp.float32, -bound, bound)
    b1 = jax.random.uniform(k2, (in_channels,), jnp.float32, -bound, bound)
    w2 = jax.random.uniform(k3, (3, 3, in_channels, out_channels),
                            jnp.float32, -bound, bound)
    b2 = jax.random.uniform(k4, (out_channels,), jnp.float32, -bound, bound)
    return dict(
        w1=w1, b1=b1,
        g1=jnp.ones((in_channels,), jnp.float32),
        bn_b1=jnp.zeros((in_channels,), jnp.float32),
        w2=w2, b2=b2,
        g2=jnp.ones((out_channels,), jnp.float32),
        bn_b2=jnp.zeros((out_channels,), jnp.float32),
    )


def _reference_double_conv(x_nchw, params, eps=1e-5):
    """Pure-JAX (XLA) reference of the PyTorch train-mode forward."""
    def layer(x, w, b, g, bb):
        y = jax.lax.conv_general_dilated(
            x, w, window_strides=(1, 1), padding=((1, 1), (1, 1)),
            dimension_numbers=("NHWC", "HWIO", "NHWC"),
            precision=jax.lax.Precision.HIGHEST) + b
        m = jnp.mean(y, axis=(0, 1, 2))
        v = jnp.mean((y - m) ** 2, axis=(0, 1, 2))
        return jnp.maximum((y - m) * jax.lax.rsqrt(v + eps) * g + bb, 0.0)

    x = jnp.transpose(x_nchw, (0, 2, 3, 1)).astype(jnp.float32)
    y = layer(x, params["w1"], params["b1"], params["g1"], params["bn_b1"])
    y = layer(y, params["w2"], params["b2"], params["g2"], params["bn_b2"])
    return jnp.transpose(y, (0, 3, 1, 2))


if __name__ == "__main__":
    key = jax.random.PRNGKey(0)
    kx, kp = jax.random.split(key)

    N, Cin, Cout, H, W = 2, 4, 8, 16, 16
    x = jax.random.normal(kx, (N, Cin, H, W), jnp.float32)   # NCHW like PyTorch
    params = init_params(kp, Cin, Cout)

    out = jax.jit(double_conv_forward)(x, params)
    out = jax.block_until_ready(out)

    assert out.shape == (N, Cout, H, W)
    assert bool(jnp.all(jnp.isfinite(out)))
    assert bool(jnp.all(out >= 0.0))                          # ReLU output
    ref = _reference_double_conv(x, params)
    # bf16 MXU operands -> loose tolerance vs the f32 XLA reference.
    assert bool(jnp.allclose(out, ref, atol=1e-1, rtol=1e-1))
    print("KERNEL_OK")
</pallas_src>

<mosaic_0001>
module attributes {stable_mosaic.version = 11 : i64} {
  func.func @_conv_stats_kernel(%arg0: i32, %arg1: i32, %arg2: memref<1x550x4xf32, #tpu.memory_space<vmem>>, %arg3: memref<9x4x4xbf16, #tpu.memory_space<vmem>>, %arg4: memref<1x4xf32, #tpu.memory_space<vmem>>, %arg5: memref<1x256x4xf32, #tpu.memory_space<vmem>>, %arg6: memref<1x1x2x4xf32, #tpu.memory_space<vmem>>) attributes {dimension_semantics = [#tpu.dimension_semantics<parallel>, #tpu.dimension_semantics<parallel>], iteration_bounds = array<i64: 2, 2>, scalar_prefetch = 0 : i64, scratch_operands = 0 : i64, tpu.core_type = #tpu.core_type<tc>, window_params = [{transform_indices = @transform_0, window_bounds = array<i64: 1, 550, 4>}, {pipeline_mode = #tpu.pipeline_mode<synchronous>, transform_indices = @transform_1, window_bounds = array<i64: 9, 4, 4>}, {pipeline_mode = #tpu.pipeline_mode<synchronous>, transform_indices = @transform_2, window_bounds = array<i64: 1, 4>}, {transform_indices = @transform_3, window_bounds = array<i64: 1, 256, 4>}, {transform_indices = @transform_4, window_bounds = array<i64: 1, 1, 2, 4>}]} {
    %c256_i32 = arith.constant 256 : i32
    %0 = arith.muli %arg1, %c256_i32 : i32
    %1 = tpu.assume_multiple %0, 256 : i32
    %c0 = arith.constant 0 : index
    %c0_0 = arith.constant 0 : index
    %2 = vector.load %arg4[%c0, %c0_0] : memref<1x4xf32, #tpu.memory_space<vmem>>, vector<1x4xf32>
    %3 = vector.shape_cast %2 : vector<1x4xf32> to vector<1x4xf32>
    %4 = vector.broadcast %3 : vector<1x4xf32> to vector<256x4xf32>
    %c0_i32 = arith.constant 0 : i32
    %5 = arith.addi %1, %c0_i32 : i32
    %c0_i32_1 = arith.constant 0 : i32
    %6 = arith.addi %5, %c0_i32_1 : i32
    %c0_2 = arith.constant 0 : index
    %7 = arith.index_cast %6 : i32 to index
    %c0_3 = arith.constant 0 : index
    %8 = vector.load %arg2[%c0_2, %7, %c0_3] : memref<1x550x4xf32, #tpu.memory_space<vmem>>, vector<1x256x4xf32>
    %9 = vector.shape_cast %8 : vector<1x256x4xf32> to vector<256x4xf32>
    %10 = arith.truncf %9 : vector<256x4xf32> to vector<256x4xbf16>
    %c0_4 = arith.constant 0 : index
    %c0_5 = arith.constant 0 : index
    %c0_6 = arith.constant 0 : index
    %11 = vector.load %arg3[%c0_4, %c0_5, %c0_6] : memref<9x4x4xbf16, #tpu.memory_space<vmem>>, vector<1x4x4xbf16>
    %12 = vector.shape_cast %11 : vector<1x4x4xbf16> to vector<4x4xbf16>
    %cst = arith.constant dense<0.000000e+00> : vector<256x4xf32>
    %13 = tpu.matmul %10, %12, %cst {dimension_numbers = #tpu.dot_dimension_numbers<[1], [0], [0], [1], [0, 0, 1, 1], [], []>} : vector<256x4xbf16>, vector<4x4xbf16>, vector<256x4xf32> -> vector<256x4xf32>
    %14 = arith.addf %4, %13 : vector<256x4xf32>
    %c0_i32_7 = arith.constant 0 : i32
    %15 = arith.addi %1, %c0_i32_7 : i32
    %c1_i32 = arith.constant 1 : i32
    %16 = arith.addi %15, %c1_i32 : i32
    %c0_8 = arith.constant 0 : index
    %17 = arith.index_cast %16 : i32 to index
    %c0_9 = arith.constant 0 : index
    %18 = vector.load %arg2[%c0_8, %17, %c0_9] : memref<1x550x4xf32, #tpu.memory_space<vmem>>, vector<1x256x4xf32>
    %19 = vector.shape_cast %18 : vector<1x256x4xf32> to vector<256x4xf32>
    %20 = arith.truncf %19 : vector<256x4xf32> to vector<256x4xbf16>
    %c1 = arith.constant 1 : index
    %c0_10 = arith.constant 0 : index
    %c0_11 = arith.constant 0 : index
    %21 = vector.load %arg3[%c1, %c0_10, %c0_11] : memref<9x4x4xbf16, #tpu.memory_space<vmem>>, vector<1x4x4xbf16>
    %22 = vector.shape_cast %21 : vector<1x4x4xbf16> to vector<4x4xbf16>
    %cst_12 = arith.constant dense<0.000000e+00> : vector<256x4xf32>
    %23 = tpu.matmul %20, %22, %cst_12 {dimension_numbers = #tpu.dot_dimension_numbers<[1], [0], [0], [1], [0, 0, 1, 1], [], []>} : vector<256x4xbf16>, vector<4x4xbf16>, vector<256x4xf32> -> vector<256x4xf32>
    %24 = arith.addf %14, %23 : vector<256x4xf32>
    %c0_i32_13 = arith.constant 0 : i32
    %25 = arith.addi %1, %c0_i32_13 : i32
    %c2_i32 = arith.constant 2 : i32
    %26 = arith.addi %25, %c2_i32 : i32
    %c0_14 = arith.constant 0 : index
    %27 = arith.index_cast %26 : i32 to index
    %c0_15 = arith.constant 0 : index
    %28 = vector.load %arg2[%c0_14, %27, %c0_15] : memref<1x550x4xf32, #tpu.memory_space<vmem>>, vector<1x256x4xf32>
    %29 = vector.shape_cast %28 : vector<1x256x4xf32> to vector<256x4xf32>
    %30 = arith.truncf %29 : vector<256x4xf32> to vector<256x4xbf16>
    %c2 = arith.constant 2 : index
    %c0_16 = arith.constant 0 : index
    %c0_17 = arith.constant 0 : index
    %31 = vector.load %arg3[%c2, %c0_16, %c0_17] : memref<9x4x4xbf16, #tpu.memory_space<vmem>>, vector<1x4x4xbf16>
    %32 = vector.shape_cast %31 : vector<1x4x4xbf16> to vector<4x4xbf16>
    %cst_18 = arith.constant dense<0.000000e+00> : vector<256x4xf32>
    %33 = tpu.matmul %30, %32, %cst_18 {dimension_numbers = #tpu.dot_dimension_numbers<[1], [0], [0], [1], [0, 0, 1, 1], [], []>} : vector<256x4xbf16>, vector<4x4xbf16>, vector<256x4xf32> -> vector<256x4xf32>
    %34 = arith.addf %24, %33 : vector<256x4xf32>
    %c18_i32 = arith.constant 18 : i32
    %35 = arith.addi %1, %c18_i32 : i32
    %c0_i32_19 = arith.constant 0 : i32
    %36 = arith.addi %35, %c0_i32_19 : i32
    %c0_20 = arith.constant 0 : index
    %37 = arith.index_cast %36 : i32 to index
    %c0_21 = arith.constant 0 : index
    %38 = vector.load %arg2[%c0_20, %37, %c0_21] : memref<1x550x4xf32, #tpu.memory_space<vmem>>, vector<1x256x4xf32>
    %39 = vector.shape_cast %38 : vector<1x256x4xf32> to vector<256x4xf32>
    %40 = arith.truncf %39 : vector<256x4xf32> to vector<256x4xbf16>
    %c3 = arith.constant 3 : index
    %c0_22 = arith.constant 0 : index
    %c0_23 = arith.constant 0 : index
    %41 = vector.load %arg3[%c3, %c0_22, %c0_23] : memref<9x4x4xbf16, #tpu.memory_space<vmem>>, vector<1x4x4xbf16>
    %42 = vector.shape_cast %41 : vector<1x4x4xbf16> to vector<4x4xbf16>
    %cst_24 = arith.constant dense<0.000000e+00> : vector<256x4xf32>
    %43 = tpu.matmul %40, %42, %cst_24 {dimension_numbers = #tpu.dot_dimension_numbers<[1], [0], [0], [1], [0, 0, 1, 1], [], []>} : vector<256x4xbf16>, vector<4x4xbf16>, vector<256x4xf32> -> vector<256x4xf32>
    %44 = arith.addf %34, %43 : vector<256x4xf32>
    %c18_i32_25 = arith.constant 18 : i32
    %45 = arith.addi %1, %c18_i32_25 : i32
    %c1_i32_26 = arith.constant 1 : i32
    %46 = arith.addi %45, %c1_i32_26 : i32
    %c0_27 = arith.constant 0 : index
    %47 = arith.index_cast %46 : i32 to index
    %c0_28 = arith.constant 0 : index
    %48 = vector.load %arg2[%c0_27, %47, %c0_28] : memref<1x550x4xf32, #tpu.memory_space<vmem>>, vector<1x256x4xf32>
    %49 = vector.shape_cast %48 : vector<1x256x4xf32> to vector<256x4xf32>
    %50 = arith.truncf %49 : vector<256x4xf32> to vector<256x4xbf16>
    %c4 = arith.constant 4 : index
    %c0_29 = arith.constant 0 : index
    %c0_30 = arith.constant 0 : index
    %51 = vector.load %arg3[%c4, %c0_29, %c0_30] : memref<9x4x4xbf16, #tpu.memory_space<vmem>>, vector<1x4x4xbf16>
    %52 = vector.shape_cast %51 : vector<1x4x4xbf16> to vector<4x4xbf16>
    %cst_31 = arith.constant dense<0.000000e+00> : vector<256x4xf32>
    %53 = tpu.matmul %50, %52, %cst_31 {dimension_numbers = #tpu.dot_dimension_numbers<[1], [0], [0], [1], [0, 0, 1, 1], [], []>} : vector<256x4xbf16>, vector<4x4xbf16>, vector<256x4xf32> -> vector<256x4xf32>
    %54 = arith.addf %44, %53 : vector<256x4xf32>
    %c18_i32_32 = arith.constant 18 : i32
    %55 = arith.addi %1, %c18_i32_32 : i32
    %c2_i32_33 = arith.constant 2 : i32
    %56 = arith.addi %55, %c2_i32_33 : i32
    %c0_34 = arith.constant 0 : index
    %57 = arith.index_cast %56 : i32 to index
    %c0_35 = arith.constant 0 : index
    %58 = vector.load %arg2[%c0_34, %57, %c0_35] : memref<1x550x4xf32, #tpu.memory_space<vmem>>, vector<1x256x4xf32>
    %59 = vector.shape_cast %58 : vector<1x256x4xf32> to vector<256x4xf32>
    %60 = arith.truncf %59 : vector<256x4xf32> to vector<256x4xbf16>
    %c5 = arith.constant 5 : index
    %c0_36 = arith.constant 0 : index
    %c0_37 = arith.constant 0 : index
    %61 = vector.load %arg3[%c5, %c0_36, %c0_37] : memref<9x4x4xbf16, #tpu.memory_space<vmem>>, vector<1x4x4xbf16>
    %62 = vector.shape_cast %61 : vector<1x4x4xbf16> to vector<4x4xbf16>
    %cst_38 = arith.constant dense<0.000000e+00> : vector<256x4xf32>
    %63 = tpu.matmul %60, %62, %cst_38 {dimension_numbers = #tpu.dot_dimension_numbers<[1], [0], [0], [1], [0, 0, 1, 1], [], []>} : vector<256x4xbf16>, vector<4x4xbf16>, vector<256x4xf32> -> vector<256x4xf32>
    %64 = arith.addf %54, %63 : vector<256x4xf32>
    %c36_i32 = arith.constant 36 : i32
    %65 = arith.addi %1, %c36_i32 : i32
    %c0_i32_39 = arith.constant 0 : i32
    %66 = arith.addi %65, %c0_i32_39 : i32
    %c0_40 = arith.constant 0 : index
    %67 = arith.index_cast %66 : i32 to index
    %c0_41 = arith.constant 0 : index
    %68 = vector.load %arg2[%c0_40, %67, %c0_41] : memref<1x550x4xf32, #tpu.memory_space<vmem>>, vector<1x256x4xf32>
    %69 = vector.shape_cast %68 : vector<1x256x4xf32> to vector<256x4xf32>
    %70 = arith.truncf %69 : vector<256x4xf32> to vector<256x4xbf16>
    %c6 = arith.constant 6 : index
    %c0_42 = arith.constant 0 : index
    %c0_43 = arith.constant 0 : index
    %71 = vector.load %arg3[%c6, %c0_42, %c0_43] : memref<9x4x4xbf16, #tpu.memory_space<vmem>>, vector<1x4x4xbf16>
    %72 = vector.shape_cast %71 : vector<1x4x4xbf16> to vector<4x4xbf16>
    %cst_44 = arith.constant dense<0.000000e+00> : vector<256x4xf32>
    %73 = tpu.matmul %70, %72, %cst_44 {dimension_numbers = #tpu.dot_dimension_numbers<[1], [0], [0], [1], [0, 0, 1, 1], [], []>} : vector<256x4xbf16>, vector<4x4xbf16>, vector<256x4xf32> -> vector<256x4xf32>
    %74 = arith.addf %64, %73 : vector<256x4xf32>
    %c36_i32_45 = arith.constant 36 : i32
    %75 = arith.addi %1, %c36_i32_45 : i32
    %c1_i32_46 = arith.constant 1 : i32
    %76 = arith.addi %75, %c1_i32_46 : i32
    %c0_47 = arith.constant 0 : index
    %77 = arith.index_cast %76 : i32 to index
    %c0_48 = arith.constant 0 : index
    %78 = vector.load %arg2[%c0_47, %77, %c0_48] : memref<1x550x4xf32, #tpu.memory_space<vmem>>, vector<1x256x4xf32>
    %79 = vector.shape_cast %78 : vector<1x256x4xf32> to vector<256x4xf32>
    %80 = arith.truncf %79 : vector<256x4xf32> to vector<256x4xbf16>
    %c7 = arith.constant 7 : index
    %c0_49 = arith.constant 0 : index
    %c0_50 = arith.constant 0 : index
    %81 = vector.load %arg3[%c7, %c0_49, %c0_50] : memref<9x4x4xbf16, #tpu.memory_space<vmem>>, vector<1x4x4xbf16>
    %82 = vector.shape_cast %81 : vector<1x4x4xbf16> to vector<4x4xbf16>
    %cst_51 = arith.constant dense<0.000000e+00> : vector<256x4xf32>
    %83 = tpu.matmul %80, %82, %cst_51 {dimension_numbers = #tpu.dot_dimension_numbers<[1], [0], [0], [1], [0, 0, 1, 1], [], []>} : vector<256x4xbf16>, vector<4x4xbf16>, vector<256x4xf32> -> vector<256x4xf32>
    %84 = arith.addf %74, %83 : vector<256x4xf32>
    %c36_i32_52 = arith.constant 36 : i32
    %85 = arith.addi %1, %c36_i32_52 : i32
    %c2_i32_53 = arith.constant 2 : i32
    %86 = arith.addi %85, %c2_i32_53 : i32
    %c0_54 = arith.constant 0 : index
    %87 = arith.index_cast %86 : i32 to index
    %c0_55 = arith.constant 0 : index
    %88 = vector.load %arg2[%c0_54, %87, %c0_55] : memref<1x550x4xf32, #tpu.memory_space<vmem>>, vector<1x256x4xf32>
    %89 = vector.shape_cast %88 : vector<1x256x4xf32> to vector<256x4xf32>
    %90 = arith.truncf %89 : vector<256x4xf32> to vector<256x4xbf16>
    %c8 = arith.constant 8 : index
    %c0_56 = arith.constant 0 : index
    %c0_57 = arith.constant 0 : index
    %91 = vector.load %arg3[%c8, %c0_56, %c0_57] : memref<9x4x4xbf16, #tpu.memory_space<vmem>>, vector<1x4x4xbf16>
    %92 = vector.shape_cast %91 : vector<1x4x4xbf16> to vector<4x4xbf16>
    %cst_58 = arith.constant dense<0.000000e+00> : vector<256x4xf32>
    %93 = tpu.matmul %90, %92, %cst_58 {dimension_numbers = #tpu.dot_dimension_numbers<[1], [0], [0], [1], [0, 0, 1, 1], [], []>} : vector<256x4xbf16>, vector<4x4xbf16>, vector<256x4xf32> -> vector<256x4xf32>
    %94 = arith.addf %84, %93 : vector<256x4xf32>
    %95 = tpu.iota {dimensions = array<i32: 0>} : vector<256x1xi32>
    %96 = vector.broadcast %1 : i32 to vector<256x1xi32>
    %97 = arith.addi %96, %95 : vector<256x1xi32>
    %c18_i32_59 = arith.constant 18 : i32
    %c0_i32_60 = arith.constant 0 : i32
    %98 = arith.cmpi eq, %c18_i32_59, %c0_i32_60 : i32
    %c1_i32_61 = arith.constant 1 : i32
    %99 = arith.select %98, %c1_i32_61, %c18_i32_59 : i32
    %100 = vector.broadcast %99 : i32 to vector<256x1xi32>
    %101 = arith.remsi %97, %100 : vector<256x1xi32>
    %c0_i32_62 = arith.constant 0 : i32
    %102 = vector.broadcast %c0_i32_62 : i32 to vector<256x1xi32>
    %103 = arith.cmpi ne, %101, %102 : vector<256x1xi32>
    %c0_i32_63 = arith.constant 0 : i32
    %104 = vector.broadcast %c0_i32_63 : i32 to vector<256x1xi32>
    %105 = arith.cmpi slt, %101, %104 : vector<256x1xi32>
    %c0_i32_64 = arith.constant 0 : i32
    %106 = arith.cmpi slt, %99, %c0_i32_64 : i32
    %107 = vector.broadcast %106 : i1 to vector<256x1xi1>
    %108 = vector.broadcast %107 : vector<256x1xi1> to vector<256x1xi1>
    %109 = arith.xori %105, %108 : vector<256x1xi1>
    %110 = arith.andi %109, %103 : vector<256x1xi1>
    %111 = vector.broadcast %99 : i32 to vector<256x1xi32>
    %112 = arith.addi %101, %111 : vector<256x1xi32>
    %113 = arith.select %110, %112, %101 : vector<256x1xi1>, vector<256x1xi32>
    %c288_i32 = arith.constant 288 : i32
    %114 = vector.broadcast %c288_i32 : i32 to vector<256x1xi32>
    %115 = arith.cmpi slt, %97, %114 : vector<256x1xi32>
    %c1_i32_65 = arith.constant 1 : i32
    %116 = vector.broadcast %c1_i32_65 : i32 to vector<256x1xi32>
    %117 = arith.cmpi sge, %113, %116 : vector<256x1xi32>
    %118 = arith.andi %115, %117 : vector<256x1xi1>
    %c16_i32 = arith.constant 16 : i32
    %119 = vector.broadcast %c16_i32 : i32 to vector<256x1xi32>
    %120 = arith.cmpi sle, %113, %119 : vector<256x1xi32>
    %121 = arith.andi %118, %120 : vector<256x1xi1>
    %cst_66 = arith.constant 0.000000e+00 : f32
    %122 = vector.shape_cast %121 : vector<256x1xi1> to vector<256x1xi1>
    %123 = vector.broadcast %122 : vector<256x1xi1> to vector<256x4xi1>
    %124 = vector.broadcast %cst_66 : f32 to vector<256x4xf32>
    %125 = arith.select %123, %94, %124 : vector<256x4xi1>, vector<256x4xf32>
    %cst_67 = arith.constant dense<0.000000e+00> : vector<4xf32>
    %126 = vector.multi_reduction <add>, %125, %cst_67 [0] : vector<256x4xf32> to vector<4xf32>
    %127 = vector.shape_cast %126 : vector<4xf32> to vector<1x4xf32>
    %c0_68 = arith.constant 0 : index
    %c0_69 = arith.constant 0 : index
    %c0_70 = arith.constant 0 : index
    %c0_71 = arith.constant 0 : index
    %128 = vector.load %arg6[%c0_68, %c0_69, %c0_70, %c0_71] : memref<1x1x2x4xf32, #tpu.memory_space<vmem>>, vector<1x1x1x4xf32>
    %129 = vector.shape_cast %128 : vector<1x1x1x4xf32> to vector<1x4xf32>
    %130 = vector.shape_cast %127 : vector<1x4xf32> to vector<1x1x1x4xf32>
    tpu.vector_store %arg6[%c0_68, %c0_69, %c0_70, %c0_71], %130 {strides = array<i32>} : memref<1x1x2x4xf32, #tpu.memory_space<vmem>>, vector<1x1x1x4xf32>,
    %131 = arith.mulf %125, %125 : vector<256x4xf32>
    %cst_72 = arith.constant dense<0.000000e+00> : vector<4xf32>
    %132 = vector.multi_reduction <add>, %131, %cst_72 [0] : vector<256x4xf32> to vector<4xf32>
    %133 = vector.shape_cast %132 : vector<4xf32> to vector<1x4xf32>
    %c0_73 = arith.constant 0 : index
    %c0_74 = arith.constant 0 : index
    %c1_75 = arith.constant 1 : index
    %c0_76 = arith.constant 0 : index
    %134 = vector.load %arg6[%c0_73, %c0_74, %c1_75, %c0_76] : memref<1x1x2x4xf32, #tpu.memory_space<vmem>>, vector<1x1x1x4xf32>
    %135 = vector.shape_cast %134 : vector<1x1x1x4xf32> to vector<1x4xf32>
    %136 = vector.shape_cast %133 : vector<1x4xf32> to vector<1x1x1x4xf32>
    tpu.vector_store %arg6[%c0_73, %c0_74, %c1_75, %c0_76], %136 {strides = array<i32>} : memref<1x1x2x4xf32, #tpu.memory_space<vmem>>, vector<1x1x1x4xf32>,
    %c0_77 = arith.constant 0 : index
    %c0_78 = arith.constant 0 : index
    %c0_79 = arith.constant 0 : index
    %137 = vector.load %arg5[%c0_77, %c0_78, %c0_79] : memref<1x256x4xf32, #tpu.memory_space<vmem>>, vector<1x256x4xf32>
    %138 = vector.shape_cast %137 : vector<1x256x4xf32> to vector<256x4xf32>
    %139 = vector.shape_cast %94 : vector<256x4xf32> to vector<1x256x4xf32>
    tpu.vector_store %arg5[%c0_77, %c0_78, %c0_79], %139 {strides = array<i32>} : memref<1x256x4xf32, #tpu.memory_space<vmem>>, vector<1x256x4xf32>,
    return
  }
  func.func @transform_0(%arg0: i32, %arg1: i32) -> (i32, i32, i32) {
    %c0_i32 = arith.constant 0 : i32
    %c0_i32_0 = arith.constant 0 : i32
    %c0_i32_1 = arith.constant 0 : i32
    return %arg0, %c0_i32, %c0_i32_0 : i32, i32, i32
  }
  func.func @transform_1(%arg0: i32, %arg1: i32) -> (i32, i32, i32) {
    %c0_i32 = arith.constant 0 : i32
    %c0_i32_0 = arith.constant 0 : i32
    %c0_i32_1 = arith.constant 0 : i32
    %c0_i32_2 = arith.constant 0 : i32
    return %c0_i32, %c0_i32_0, %c0_i32_1 : i32, i32, i32
  }
  func.func @transform_2(%arg0: i32, %arg1: i32) -> (i32, i32) {
    %c0_i32 = arith.constant 0 : i32
    %c0_i32_0 = arith.constant 0 : i32
    %c0_i32_1 = arith.constant 0 : i32
    return %c0_i32, %c0_i32_0 : i32, i32
  }
  func.func @transform_3(%arg0: i32, %arg1: i32) -> (i32, i32, i32) {
    %c0_i32 = arith.constant 0 : i32
    %c0_i32_0 = arith.constant 0 : i32
    return %arg0, %arg1, %c0_i32 : i32, i32, i32
  }
  func.func @transform_4(%arg0: i32, %arg1: i32) -> (i32, i32, i32, i32) {
    %c0_i32 = arith.constant 0 : i32
    %c0_i32_0 = arith.constant 0 : i32
    %c0_i32_1 = arith.constant 0 : i32
    return %arg0, %arg1, %c0_i32, %c0_i32_0 : i32, i32, i32, i32
  }
}

module attributes {stable_mosaic.version = 11 : i64} {
  func.func @_bn_relu_kernel(%arg0: i32, %arg1: i32, %arg2: memref<1x256x4xf32, #tpu.memory_space<vmem>>, %arg3: memref<1x4xf32, #tpu.memory_space<vmem>>, %arg4: memref<1x4xf32, #tpu.memory_space<vmem>>, %arg5: memref<1x256x4xf32, #tpu.memory_space<vmem>>) attributes {dimension_semantics = [#tpu.dimension_semantics<parallel>, #tpu.dimension_semantics<parallel>], iteration_bounds = array<i64: 2, 2>, scalar_prefetch = 0 : i64, scratch_operands = 0 : i64, tpu.core_type = #tpu.core_type<tc>, window_params = [{transform_indices = @transform_0, window_bounds = array<i64: 1, 256, 4>}, {pipeline_mode = #tpu.pipeline_mode<synchronous>, transform_indices = @transform_1, window_bounds = array<i64: 1, 4>}, {pipeline_mode = #tpu.pipeline_mode<synchronous>, transform_indices = @transform_2, window_bounds = array<i64: 1, 4>}, {transform_indices = @transform_3, window_bounds = array<i64: 1, 256, 4>}]} {
    %c0 = arith.constant 0 : index
    %c0_0 = arith.constant 0 : index
    %c0_1 = arith.constant 0 : index
    %0 = vector.load %arg2[%c0, %c0_0, %c0_1] : memref<1x256x4xf32, #tpu.memory_space<vmem>>, vector<1x256x4xf32>
    %1 = vector.shape_cast %0 : vector<1x256x4xf32> to vector<256x4xf32>
    %c0_2 = arith.constant 0 : index
    %c0_3 = arith.constant 0 : index
    %2 = vector.load %arg3[%c0_2, %c0_3] : memref<1x4xf32, #tpu.memory_space<vmem>>, vector<1x4xf32>
    %3 = vector.broadcast %2 : vector<1x4xf32> to vector<256x4xf32>
    %4 = arith.mulf %1, %3 : vector<256x4xf32>
    %c0_4 = arith.constant 0 : index
    %c0_5 = arith.constant 0 : index
    %5 = vector.load %arg4[%c0_4, %c0_5] : memref<1x4xf32, #tpu.memory_space<vmem>>, vector<1x4xf32>
    %6 = vector.broadcast %5 : vector<1x4xf32> to vector<256x4xf32>
    %7 = arith.addf %4, %6 : vector<256x4xf32>
    %cst = arith.constant 0.000000e+00 : f32
    %8 = vector.broadcast %cst : f32 to vector<256x4xf32>
    %9 = arith.maximumf %7, %8 : vector<256x4xf32>
    %c0_6 = arith.constant 0 : index
    %c0_7 = arith.constant 0 : index
    %c0_8 = arith.constant 0 : index
    %10 = vector.load %arg5[%c0_6, %c0_7, %c0_8] : memref<1x256x4xf32, #tpu.memory_space<vmem>>, vector<1x256x4xf32>
    %11 = vector.shape_cast %10 : vector<1x256x4xf32> to vector<256x4xf32>
    %12 = vector.shape_cast %9 : vector<256x4xf32> to vector<1x256x4xf32>
    tpu.vector_store %arg5[%c0_6, %c0_7, %c0_8], %12 {strides = array<i32>} : memref<1x256x4xf32, #tpu.memory_space<vmem>>, vector<1x256x4xf32>,
    return
  }
  func.func @transform_0(%arg0: i32, %arg1: i32) -> (i32, i32, i32) {
    %c0_i32 = arith.constant 0 : i32
    %c0_i32_0 = arith.constant 0 : i32
    return %arg0, %arg1, %c0_i32 : i32, i32, i32
  }
  func.func @transform_1(%arg0: i32, %arg1: i32) -> (i32, i32) {
    %c0_i32 = arith.constant 0 : i32
    %c0_i32_0 = arith.constant 0 : i32
    %c0_i32_1 = arith.constant 0 : i32
    return %c0_i32, %c0_i32_0 : i32, i32
  }
  func.func @transform_2(%arg0: i32, %arg1: i32) -> (i32, i32) {
    %c0_i32 = arith.constant 0 : i32
    %c0_i32_0 = arith.constant 0 : i32
    %c0_i32_1 = arith.constant 0 : i32
    return %c0_i32, %c0_i32_0 : i32, i32
  }
  func.func @transform_3(%arg0: i32, %arg1: i32) -> (i32, i32, i32) {
    %c0_i32 = arith.constant 0 : i32
    %c0_i32_0 = arith.constant 0 : i32
    return %arg0, %arg1, %c0_i32 : i32, i32, i32
  }
}

module attributes {stable_mosaic.version = 11 : i64} {
  func.func @_conv_stats_kernel(%arg0: i32, %arg1: i32, %arg2: memref<1x550x4xf32, #tpu.memory_space<vmem>>, %arg3: memref<9x4x8xbf16, #tpu.memory_space<vmem>>, %arg4: memref<1x8xf32, #tpu.memory_space<vmem>>, %arg5: memref<1x256x8xf32, #tpu.memory_space<vmem>>, %arg6: memref<1x1x2x8xf32, #tpu.memory_space<vmem>>) attributes {dimension_semantics = [#tpu.dimension_semantics<parallel>, #tpu.dimension_semantics<parallel>], iteration_bounds = array<i64: 2, 2>, scalar_prefetch = 0 : i64, scratch_operands = 0 : i64, tpu.core_type = #tpu.core_type<tc>, window_params = [{transform_indices = @transform_0, window_bounds = array<i64: 1, 550, 4>}, {pipeline_mode = #tpu.pipeline_mode<synchronous>, transform_indices = @transform_1, window_bounds = array<i64: 9, 4, 8>}, {pipeline_mode = #tpu.pipeline_mode<synchronous>, transform_indices = @transform_2, window_bounds = array<i64: 1, 8>}, {transform_indices = @transform_3, window_bounds = array<i64: 1, 256, 8>}, {transform_indices = @transform_4, window_bounds = array<i64: 1, 1, 2, 8>}]} {
    %c256_i32 = arith.constant 256 : i32
    %0 = arith.muli %arg1, %c256_i32 : i32
    %1 = tpu.assume_multiple %0, 256 : i32
    %c0 = arith.constant 0 : index
    %c0_0 = arith.constant 0 : index
    %2 = vector.load %arg4[%c0, %c0_0] : memref<1x8xf32, #tpu.memory_space<vmem>>, vector<1x8xf32>
    %3 = vector.shape_cast %2 : vector<1x8xf32> to vector<1x8xf32>
    %4 = vector.broadcast %3 : vector<1x8xf32> to vector<256x8xf32>
    %c0_i32 = arith.constant 0 : i32
    %5 = arith.addi %1, %c0_i32 : i32
    %c0_i32_1 = arith.constant 0 : i32
    %6 = arith.addi %5, %c0_i32_1 : i32
    %c0_2 = arith.constant 0 : index
    %7 = arith.index_cast %6 : i32 to index
    %c0_3 = arith.constant 0 : index
    %8 = vector.load %arg2[%c0_2, %7, %c0_3] : memref<1x550x4xf32, #tpu.memory_space<vmem>>, vector<1x256x4xf32>
    %9 = vector.shape_cast %8 : vector<1x256x4xf32> to vector<256x4xf32>
    %10 = arith.truncf %9 : vector<256x4xf32> to vector<256x4xbf16>
    %c0_4 = arith.constant 0 : index
    %c0_5 = arith.constant 0 : index
    %c0_6 = arith.constant 0 : index
    %11 = vector.load %arg3[%c0_4, %c0_5, %c0_6] : memref<9x4x8xbf16, #tpu.memory_space<vmem>>, vector<1x4x8xbf16>
    %12 = vector.shape_cast %11 : vector<1x4x8xbf16> to vector<4x8xbf16>
    %cst = arith.constant dense<0.000000e+00> : vector<256x8xf32>
    %13 = tpu.matmul %10, %12, %cst {dimension_numbers = #tpu.dot_dimension_numbers<[1], [0], [0], [1], [0, 0, 1, 1], [], []>} : vector<256x4xbf16>, vector<4x8xbf16>, vector<256x8xf32> -> vector<256x8xf32>
    %14 = arith.addf %4, %13 : vector<256x8xf32>
    %c0_i32_7 = arith.constant 0 : i32
    %15 = arith.addi %1, %c0_i32_7 : i32
    %c1_i32 = arith.constant 1 : i32
    %16 = arith.addi %15, %c1_i32 : i32
    %c0_8 = arith.constant 0 : index
    %17 = arith.index_cast %16 : i32 to index
    %c0_9 = arith.constant 0 : index
    %18 = vector.load %arg2[%c0_8, %17, %c0_9] : memref<1x550x4xf32, #tpu.memory_space<vmem>>, vector<1x256x4xf32>
    %19 = vector.shape_cast %18 : vector<1x256x4xf32> to vector<256x4xf32>
    %20 = arith.truncf %19 : vector<256x4xf32> to vector<256x4xbf16>
    %c1 = arith.constant 1 : index
    %c0_10 = arith.constant 0 : index
    %c0_11 = arith.constant 0 : index
    %21 = vector.load %arg3[%c1, %c0_10, %c0_11] : memref<9x4x8xbf16, #tpu.memory_space<vmem>>, vector<1x4x8xbf16>
    %22 = vector.shape_cast %21 : vector<1x4x8xbf16> to vector<4x8xbf16>
    %cst_12 = arith.constant dense<0.000000e+00> : vector<256x8xf32>
    %23 = tpu.matmul %20, %22, %cst_12 {dimension_numbers = #tpu.dot_dimension_numbers<[1], [0], [0], [1], [0, 0, 1, 1], [], []>} : vector<256x4xbf16>, vector<4x8xbf16>, vector<256x8xf32> -> vector<256x8xf32>
    %24 = arith.addf %14, %23 : vector<256x8xf32>
    %c0_i32_13 = arith.constant 0 : i32
    %25 = arith.addi %1, %c0_i32_13 : i32
    %c2_i32 = arith.constant 2 : i32
    %26 = arith.addi %25, %c2_i32 : i32
    %c0_14 = arith.constant 0 : index
    %27 = arith.index_cast %26 : i32 to index
    %c0_15 = arith.constant 0 : index
    %28 = vector.load %arg2[%c0_14, %27, %c0_15] : memref<1x550x4xf32, #tpu.memory_space<vmem>>, vector<1x256x4xf32>
    %29 = vector.shape_cast %28 : vector<1x256x4xf32> to vector<256x4xf32>
    %30 = arith.truncf %29 : vector<256x4xf32> to vector<256x4xbf16>
    %c2 = arith.constant 2 : index
    %c0_16 = arith.constant 0 : index
    %c0_17 = arith.constant 0 : index
    %31 = vector.load %arg3[%c2, %c0_16, %c0_17] : memref<9x4x8xbf16, #tpu.memory_space<vmem>>, vector<1x4x8xbf16>
    %32 = vector.shape_cast %31 : vector<1x4x8xbf16> to vector<4x8xbf16>
    %cst_18 = arith.constant dense<0.000000e+00> : vector<256x8xf32>
    %33 = tpu.matmul %30, %32, %cst_18 {dimension_numbers = #tpu.dot_dimension_numbers<[1], [0], [0], [1], [0, 0, 1, 1], [], []>} : vector<256x4xbf16>, vector<4x8xbf16>, vector<256x8xf32> -> vector<256x8xf32>
    %34 = arith.addf %24, %33 : vector<256x8xf32>
    %c18_i32 = arith.constant 18 : i32
    %35 = arith.addi %1, %c18_i32 : i32
    %c0_i32_19 = arith.constant 0 : i32
    %36 = arith.addi %35, %c0_i32_19 : i32
    %c0_20 = arith.constant 0 : index
    %37 = arith.index_cast %36 : i32 to index
    %c0_21 = arith.constant 0 : index
    %38 = vector.load %arg2[%c0_20, %37, %c0_21] : memref<1x550x4xf32, #tpu.memory_space<vmem>>, vector<1x256x4xf32>
    %39 = vector.shape_cast %38 : vector<1x256x4xf32> to vector<256x4xf32>
    %40 = arith.truncf %39 : vector<256x4xf32> to vector<256x4xbf16>
    %c3 = arith.constant 3 : index
    %c0_22 = arith.constant 0 : index
    %c0_23 = arith.constant 0 : index
    %41 = vector.load %arg3[%c3, %c0_22, %c0_23] : memref<9x4x8xbf16, #tpu.memory_space<vmem>>, vector<1x4x8xbf16>
    %42 = vector.shape_cast %41 : vector<1x4x8xbf16> to vector<4x8xbf16>
    %cst_24 = arith.constant dense<0.000000e+00> : vector<256x8xf32>
    %43 = tpu.matmul %40, %42, %cst_24 {dimension_numbers = #tpu.dot_dimension_numbers<[1], [0], [0], [1], [0, 0, 1, 1], [], []>} : vector<256x4xbf16>, vector<4x8xbf16>, vector<256x8xf32> -> vector<256x8xf32>
    %44 = arith.addf %34, %43 : vector<256x8xf32>
    %c18_i32_25 = arith.constant 18 : i32
    %45 = arith.addi %1, %c18_i32_25 : i32
    %c1_i32_26 = arith.constant 1 : i32
    %46 = arith.addi %45, %c1_i32_26 : i32
    %c0_27 = arith.constant 0 : index
    %47 = arith.index_cast %46 : i32 to index
    %c0_28 = arith.constant 0 : index
    %48 = vector.load %arg2[%c0_27, %47, %c0_28] : memref<1x550x4xf32, #tpu.memory_space<vmem>>, vector<1x256x4xf32>
    %49 = vector.shape_cast %48 : vector<1x256x4xf32> to vector<256x4xf32>
    %50 = arith.truncf %49 : vector<256x4xf32> to vector<256x4xbf16>
    %c4 = arith.constant 4 : index
    %c0_29 = arith.constant 0 : index
    %c0_30 = arith.constant 0 : index
    %51 = vector.load %arg3[%c4, %c0_29, %c0_30] : memref<9x4x8xbf16, #tpu.memory_space<vmem>>, vector<1x4x8xbf16>
    %52 = vector.shape_cast %51 : vector<1x4x8xbf16> to vector<4x8xbf16>
    %cst_31 = arith.constant dense<0.000000e+00> : vector<256x8xf32>
    %53 = tpu.matmul %50, %52, %cst_31 {dimension_numbers = #tpu.dot_dimension_numbers<[1], [0], [0], [1], [0, 0, 1, 1], [], []>} : vector<256x4xbf16>, vector<4x8xbf16>, vector<256x8xf32> -> vector<256x8xf32>
    %54 = arith.addf %44, %53 : vector<256x8xf32>
    %c18_i32_32 = arith.constant 18 : i32
    %55 = arith.addi %1, %c18_i32_32 : i32
    %c2_i32_33 = arith.constant 2 : i32
    %56 = arith.addi %55, %c2_i32_33 : i32
    %c0_34 = arith.constant 0 : index
    %57 = arith.index_cast %56 : i32 to index
    %c0_35 = arith.constant 0 : index
    %58 = vector.load %arg2[%c0_34, %57, %c0_35] : memref<1x550x4xf32, #tpu.memory_space<vmem>>, vector<1x256x4xf32>
    %59 = vector.shape_cast %58 : vector<1x256x4xf32> to vector<256x4xf32>
    %60 = arith.truncf %59 : vector<256x4xf32> to vector<256x4xbf16>
    %c5 = arith.constant 5 : index
    %c0_36 = arith.constant 0 : index
    %c0_37 = arith.constant 0 : index
    %61 = vector.load %arg3[%c5, %c0_36, %c0_37] : memref<9x4x8xbf16, #tpu.memory_space<vmem>>, vector<1x4x8xbf16>
    %62 = vector.shape_cast %61 : vector<1x4x8xbf16> to vector<4x8xbf16>
    %cst_38 = arith.constant dense<0.000000e+00> : vector<256x8xf32>
    %63 = tpu.matmul %60, %62, %cst_38 {dimension_numbers = #tpu.dot_dimension_numbers<[1], [0], [0], [1], [0, 0, 1, 1], [], []>} : vector<256x4xbf16>, vector<4x8xbf16>, vector<256x8xf32> -> vector<256x8xf32>
    %64 = arith.addf %54, %63 : vector<256x8xf32>
    %c36_i32 = arith.constant 36 : i32
    %65 = arith.addi %1, %c36_i32 : i32
    %c0_i32_39 = arith.constant 0 : i32
    %66 = arith.addi %65, %c0_i32_39 : i32
    %c0_40 = arith.constant 0 : index
    %67 = arith.index_cast %66 : i32 to index
    %c0_41 = arith.constant 0 : index
    %68 = vector.load %arg2[%c0_40, %67, %c0_41] : memref<1x550x4xf32, #tpu.memory_space<vmem>>, vector<1x256x4xf32>
    %69 = vector.shape_cast %68 : vector<1x256x4xf32> to vector<256x4xf32>
    %70 = arith.truncf %69 : vector<256x4xf32> to vector<256x4xbf16>
    %c6 = arith.constant 6 : index
    %c0_42 = arith.constant 0 : index
    %c0_43 = arith.constant 0 : index
    %71 = vector.load %arg3[%c6, %c0_42, %c0_43] : memref<9x4x8xbf16, #tpu.memory_space<vmem>>, vector<1x4x8xbf16>
    %72 = vector.shape_cast %71 : vector<1x4x8xbf16> to vector<4x8xbf16>
    %cst_44 = arith.constant dense<0.000000e+00> : vector<256x8xf32>
    %73 = tpu.matmul %70, %72, %cst_44 {dimension_numbers = #tpu.dot_dimension_numbers<[1], [0], [0], [1], [0, 0, 1, 1], [], []>} : vector<256x4xbf16>, vector<4x8xbf16>, vector<256x8xf32> -> vector<256x8xf32>
    %74 = arith.addf %64, %73 : vector<256x8xf32>
    %c36_i32_45 = arith.constant 36 : i32
    %75 = arith.addi %1, %c36_i32_45 : i32
    %c1_i32_46 = arith.constant 1 : i32
    %76 = arith.addi %75, %c1_i32_46 : i32
    %c0_47 = arith.constant 0 : index
    %77 = arith.index_cast %76 : i32 to index
    %c0_48 = arith.constant 0 : index
    %78 = vector.load %arg2[%c0_47, %77, %c0_48] : memref<1x550x4xf32, #tpu.memory_space<vmem>>, vector<1x256x4xf32>
    %79 = vector.shape_cast %78 : vector<1x256x4xf32> to vector<256x4xf32>
    %80 = arith.truncf %79 : vector<256x4xf32> to vector<256x4xbf16>
    %c7 = arith.constant 7 : index
    %c0_49 = arith.constant 0 : index
    %c0_50 = arith.constant 0 : index
    %81 = vector.load %arg3[%c7, %c0_49, %c0_50] : memref<9x4x8xbf16, #tpu.memory_space<vmem>>, vector<1x4x8xbf16>
    %82 = vector.shape_cast %81 : vector<1x4x8xbf16> to vector<4x8xbf16>
    %cst_51 = arith.constant dense<0.000000e+00> : vector<256x8xf32>
    %83 = tpu.matmul %80, %82, %cst_51 {dimension_numbers = #tpu.dot_dimension_numbers<[1], [0], [0], [1], [0, 0, 1, 1], [], []>} : vector<256x4xbf16>, vector<4x8xbf16>, vector<256x8xf32> -> vector<256x8xf32>
    %84 = arith.addf %74, %83 : vector<256x8xf32>
    %c36_i32_52 = arith.constant 36 : i32
    %85 = arith.addi %1, %c36_i32_52 : i32
    %c2_i32_53 = arith.constant 2 : i32
    %86 = arith.addi %85, %c2_i32_53 : i32
    %c0_54 = arith.constant 0 : index
    %87 = arith.index_cast %86 : i32 to index
    %c0_55 = arith.constant 0 : index
    %88 = vector.load %arg2[%c0_54, %87, %c0_55] : memref<1x550x4xf32, #tpu.memory_space<vmem>>, vector<1x256x4xf32>
    %89 = vector.shape_cast %88 : vector<1x256x4xf32> to vector<256x4xf32>
    %90 = arith.truncf %89 : vector<256x4xf32> to vector<256x4xbf16>
    %c8 = arith.constant 8 : index
    %c0_56 = arith.constant 0 : index
    %c0_57 = arith.constant 0 : index
    %91 = vector.load %arg3[%c8, %c0_56, %c0_57] : memref<9x4x8xbf16, #tpu.memory_space<vmem>>, vector<1x4x8xbf16>
    %92 = vector.shape_cast %91 : vector<1x4x8xbf16> to vector<4x8xbf16>
    %cst_58 = arith.constant dense<0.000000e+00> : vector<256x8xf32>
    %93 = tpu.matmul %90, %92, %cst_58 {dimension_numbers = #tpu.dot_dimension_numbers<[1], [0], [0], [1], [0, 0, 1, 1], [], []>} : vector<256x4xbf16>, vector<4x8xbf16>, vector<256x8xf32> -> vector<256x8xf32>
    %94 = arith.addf %84, %93 : vector<256x8xf32>
    %95 = tpu.iota {dimensions = array<i32: 0>} : vector<256x1xi32>
    %96 = vector.broadcast %1 : i32 to vector<256x1xi32>
    %97 = arith.addi %96, %95 : vector<256x1xi32>
    %c18_i32_59 = arith.constant 18 : i32
    %c0_i32_60 = arith.constant 0 : i32
    %98 = arith.cmpi eq, %c18_i32_59, %c0_i32_60 : i32
    %c1_i32_61 = arith.constant 1 : i32
    %99 = arith.select %98, %c1_i32_61, %c18_i32_59 : i32
    %100 = vector.broadcast %99 : i32 to vector<256x1xi32>
    %101 = arith.remsi %97, %100 : vector<256x1xi32>
    %c0_i32_62 = arith.constant 0 : i32
    %102 = vector.broadcast %c0_i32_62 : i32 to vector<256x1xi32>
    %103 = arith.cmpi ne, %101, %102 : vector<256x1xi32>
    %c0_i32_63 = arith.constant 0 : i32
    %104 = vector.broadcast %c0_i32_63 : i32 to vector<256x1xi32>
    %105 = arith.cmpi slt, %101, %104 : vector<256x1xi32>
    %c0_i32_64 = arith.constant 0 : i32
    %106 = arith.cmpi slt, %99, %c0_i32_64 : i32
    %107 = vector.broadcast %106 : i1 to vector<256x1xi1>
    %108 = vector.broadcast %107 : vector<256x1xi1> to vector<256x1xi1>
    %109 = arith.xori %105, %108 : vector<256x1xi1>
    %110 = arith.andi %109, %103 : vector<256x1xi1>
    %111 = vector.broadcast %99 : i32 to vector<256x1xi32>
    %112 = arith.addi %101, %111 : vector<256x1xi32>
    %113 = arith.select %110, %112, %101 : vector<256x1xi1>, vector<256x1xi32>
    %c288_i32 = arith.constant 288 : i32
    %114 = vector.broadcast %c288_i32 : i32 to vector<256x1xi32>
    %115 = arith.cmpi slt, %97, %114 : vector<256x1xi32>
    %c1_i32_65 = arith.constant 1 : i32
    %116 = vector.broadcast %c1_i32_65 : i32 to vector<256x1xi32>
    %117 = arith.cmpi sge, %113, %116 : vector<256x1xi32>
    %118 = arith.andi %115, %117 : vector<256x1xi1>
    %c16_i32 = arith.constant 16 : i32
    %119 = vector.broadcast %c16_i32 : i32 to vector<256x1xi32>
    %120 = arith.cmpi sle, %113, %119 : vector<256x1xi32>
    %121 = arith.andi %118, %120 : vector<256x1xi1>
    %cst_66 = arith.constant 0.000000e+00 : f32
    %122 = vector.shape_cast %121 : vector<256x1xi1> to vector<256x1xi1>
    %123 = vector.broadcast %122 : vector<256x1xi1> to vector<256x8xi1>
    %124 = vector.broadcast %cst_66 : f32 to vector<256x8xf32>
    %125 = arith.select %123, %94, %124 : vector<256x8xi1>, vector<256x8xf32>
    %cst_67 = arith.constant dense<0.000000e+00> : vector<8xf32>
    %126 = vector.multi_reduction <add>, %125, %cst_67 [0] : vector<256x8xf32> to vector<8xf32>
    %127 = vector.shape_cast %126 : vector<8xf32> to vector<1x8xf32>
    %c0_68 = arith.constant 0 : index
    %c0_69 = arith.constant 0 : index
    %c0_70 = arith.constant 0 : index
    %c0_71 = arith.constant 0 : index
    %128 = vector.load %arg6[%c0_68, %c0_69, %c0_70, %c0_71] : memref<1x1x2x8xf32, #tpu.memory_space<vmem>>, vector<1x1x1x8xf32>
    %129 = vector.shape_cast %128 : vector<1x1x1x8xf32> to vector<1x8xf32>
    %130 = vector.shape_cast %127 : vector<1x8xf32> to vector<1x1x1x8xf32>
    tpu.vector_store %arg6[%c0_68, %c0_69, %c0_70, %c0_71], %130 {strides = array<i32>} : memref<1x1x2x8xf32, #tpu.memory_space<vmem>>, vector<1x1x1x8xf32>,
    %131 = arith.mulf %125, %125 : vector<256x8xf32>
    %cst_72 = arith.constant dense<0.000000e+00> : vector<8xf32>
    %132 = vector.multi_reduction <add>, %131, %cst_72 [0] : vector<256x8xf32> to vector<8xf32>
    %133 = vector.shape_cast %132 : vector<8xf32> to vector<1x8xf32>
    %c0_73 = arith.constant 0 : index
    %c0_74 = arith.constant 0 : index
    %c1_75 = arith.constant 1 : index
    %c0_76 = arith.constant 0 : index
    %134 = vector.load %arg6[%c0_73, %c0_74, %c1_75, %c0_76] : memref<1x1x2x8xf32, #tpu.memory_space<vmem>>, vector<1x1x1x8xf32>
    %135 = vector.shape_cast %134 : vector<1x1x1x8xf32> to vector<1x8xf32>
    %136 = vector.shape_cast %133 : vector<1x8xf32> to vector<1x1x1x8xf32>
    tpu.vector_store %arg6[%c0_73, %c0_74, %c1_75, %c0_76], %136 {strides = array<i32>} : memref<1x1x2x8xf32, #tpu.memory_space<vmem>>, vector<1x1x1x8xf32>,
    %c0_77 = arith.constant 0 : index
    %c0_78 = arith.constant 0 : index
    %c0_79 = arith.constant 0 : index
    %137 = vector.load %arg5[%c0_77, %c0_78, %c0_79] : memref<1x256x8xf32, #tpu.memory_space<vmem>>, vector<1x256x8xf32>
    %138 = vector.shape_cast %137 : vector<1x256x8xf32> to vector<256x8xf32>
    %139 = vector.shape_cast %94 : vector<256x8xf32> to vector<1x256x8xf32>
    tpu.vector_store %arg5[%c0_77, %c0_78, %c0_79], %139 {strides = array<i32>} : memref<1x256x8xf32, #tpu.memory_space<vmem>>, vector<1x256x8xf32>,
    return
  }
  func.func @transform_0(%arg0: i32, %arg1: i32) -> (i32, i32, i32) {
    %c0_i32 = arith.constant 0 : i32
    %c0_i32_0 = arith.constant 0 : i32
    %c0_i32_1 = arith.constant 0 : i32
    return %arg0, %c0_i32, %c0_i32_0 : i32, i32, i32
  }
  func.func @transform_1(%arg0: i32, %arg1: i32) -> (i32, i32, i32) {
    %c0_i32 = arith.constant 0 : i32
    %c0_i32_0 = arith.constant 0 : i32
    %c0_i32_1 = arith.constant 0 : i32
    %c0_i32_2 = arith.constant 0 : i32
    return %c0_i32, %c0_i32_0, %c0_i32_1 : i32, i32, i32
  }
  func.func @transform_2(%arg0: i32, %arg1: i32) -> (i32, i32) {
    %c0_i32 = arith.constant 0 : i32
    %c0_i32_0 = arith.constant 0 : i32
    %c0_i32_1 = arith.constant 0 : i32
    return %c0_i32, %c0_i32_0 : i32, i32
  }
  func.func @transform_3(%arg0: i32, %arg1: i32) -> (i32, i32, i32) {
    %c0_i32 = arith.constant 0 : i32
    %c0_i32_0 = arith.constant 0 : i32
    return %arg0, %arg1, %c0_i32 : i32, i32, i32
  }
  func.func @transform_4(%arg0: i32, %arg1: i32) -> (i32, i32, i32, i32) {
    %c0_i32 = arith.constant 0 : i32
    %c0_i32_0 = arith.constant 0 : i32
    %c0_i32_1 = arith.constant 0 : i32
    return %arg0, %arg1, %c0_i32, %c0_i32_0 : i32, i32, i32, i32
  }
}

module attributes {stable_mosaic.version = 11 : i64} {
  func.func @_bn_relu_kernel(%arg0: i32, %arg1: i32, %arg2: memref<1x256x8xf32, #tpu.memory_space<vmem>>, %arg3: memref<1x8xf32, #tpu.memory_space<vmem>>, %arg4: memref<1x8xf32, #tpu.memory_space<vmem>>, %arg5: memref<1x256x8xf32, #tpu.memory_space<vmem>>) attributes {dimension_semantics = [#tpu.dimension_semantics<parallel>, #tpu.dimension_semantics<parallel>], iteration_bounds = array<i64: 2, 2>, scalar_prefetch = 0 : i64, scratch_operands = 0 : i64, tpu.core_type = #tpu.core_type<tc>, window_params = [{transform_indices = @transform_0, window_bounds = array<i64: 1, 256, 8>}, {pipeline_mode = #tpu.pipeline_mode<synchronous>, transform_indices = @transform_1, window_bounds = array<i64: 1, 8>}, {pipeline_mode = #tpu.pipeline_mode<synchronous>, transform_indices = @transform_2, window_bounds = array<i64: 1, 8>}, {transform_indices = @transform_3, window_bounds = array<i64: 1, 256, 8>}]} {
    %c0 = arith.constant 0 : index
    %c0_0 = arith.constant 0 : index
    %c0_1 = arith.constant 0 : index
    %0 = vector.load %arg2[%c0, %c0_0, %c0_1] : memref<1x256x8xf32, #tpu.memory_space<vmem>>, vector<1x256x8xf32>
    %1 = vector.shape_cast %0 : vector<1x256x8xf32> to vector<256x8xf32>
    %c0_2 = arith.constant 0 : index
    %c0_3 = arith.constant 0 : index
    %2 = vector.load %arg3[%c0_2, %c0_3] : memref<1x8xf32, #tpu.memory_space<vmem>>, vector<1x8xf32>
    %3 = vector.broadcast %2 : vector<1x8xf32> to vector<256x8xf32>
    %4 = arith.mulf %1, %3 : vector<256x8xf32>
    %c0_4 = arith.constant 0 : index
    %c0_5 = arith.constant 0 : index
    %5 = vector.load %arg4[%c0_4, %c0_5] : memref<1x8xf32, #tpu.memory_space<vmem>>, vector<1x8xf32>
    %6 = vector.broadcast %5 : vector<1x8xf32> to vector<256x8xf32>
    %7 = arith.addf %4, %6 : vector<256x8xf32>
    %cst = arith.constant 0.000000e+00 : f32
    %8 = vector.broadcast %cst : f32 to vector<256x8xf32>
    %9 = arith.maximumf %7, %8 : vector<256x8xf32>
    %c0_6 = arith.constant 0 : index
    %c0_7 = arith.constant 0 : index
    %c0_8 = arith.constant 0 : index
    %10 = vector.load %arg5[%c0_6, %c0_7, %c0_8] : memref<1x256x8xf32, #tpu.memory_space<vmem>>, vector<1x256x8xf32>
    %11 = vector.shape_cast %10 : vector<1x256x8xf32> to vector<256x8xf32>
    %12 = vector.shape_cast %9 : vector<256x8xf32> to vector<1x256x8xf32>
    tpu.vector_store %arg5[%c0_6, %c0_7, %c0_8], %12 {strides = array<i32>} : memref<1x256x8xf32, #tpu.memory_space<vmem>>, vector<1x256x8xf32>,
    return
  }
  func.func @transform_0(%arg0: i32, %arg1: i32) -> (i32, i32, i32) {
    %c0_i32 = arith.constant 0 : i32
    %c0_i32_0 = arith.constant 0 : i32
    return %arg0, %arg1, %c0_i32 : i32, i32, i32
  }
  func.func @transform_1(%arg0: i32, %arg1: i32) -> (i32, i32) {
    %c0_i32 = arith.constant 0 : i32
    %c0_i32_0 = arith.constant 0 : i32
    %c0_i32_1 = arith.constant 0 : i32
    return %c0_i32, %c0_i32_0 : i32, i32
  }
  func.func @transform_2(%arg0: i32, %arg1: i32) -> (i32, i32) {
    %c0_i32 = arith.constant 0 : i32
    %c0_i32_0 = arith.constant 0 : i32
    %c0_i32_1 = arith.constant 0 : i32
    return %c0_i32, %c0_i32_0 : i32, i32
  }
  func.func @transform_3(%arg0: i32, %arg1: i32) -> (i32, i32, i32) {
    %c0_i32 = arith.constant 0 : i32
    %c0_i32_0 = arith.constant 0 : i32
    return %arg0, %arg1, %c0_i32 : i32, i32, i32
  }
}

</mosaic_0001>

<bundles_post_ra>
// kernel: double_conv_forward.5
= control target key start
LH: loop header
LB: loop body
LE: loop exit
PB: predicated region body
PF: predicated region fallthrough
CT: control target
= control target key end

     0   :  { %s590_s12 = smov 0   ;;  %s592_s13 = smov 0   ;;  %s815_s0 = inlined_call_operand.vmem [shape: f32[2,512,4], index: 0, kind: input, shape index: {}]   ;;  %s816_s1 = inlined_call_operand.vmem [shape: f32[1,4], index: 1, kind: input, shape index: {}]   ;;  %s817_s2 = inlined_call_operand.vmem [shape: f32[1,4], index: 2, kind: input, shape index: {}]   ;;  %s818_s3 = inlined_call_operand.vmem [shape: f32[2,512,4], index: 3, kind: output, shape index: {}]  }
   0x1   :  { %s594_s14 = smov 0   ;;  %s596_s15 = smov 0  }
   0x2   :  { %s598_s16 = smov 0  }
   0x3 LB: > { %s22_s17 = sadd.s32 1, %s560_s14  ;;  %s25_s18 = sadd.s32 1, %s564_s15  ;;  %s568_s16 = sphi %s598_s16, %s13_s16   ;;  %s564_s15 = sphi %s596_s15, %s822_s15   ;;  %s560_s14 = sphi %s594_s14, %s821_s14   ;;  %s556_s13 = sphi %s592_s13, %s820_s13   ;;  %s552_s12 = sphi %s590_s12, %s819_s12  }
   0x4   : > { %p23_p0 = scmp.ge.s32.totalorder %s22_s17, 2  ;;  %p479_p1 = scmp.ge.s32.totalorder %s568_s16, 1 }
   0x5   : > { %p158_p2 = scmp.lt.s32.totalorder %s568_s16, 5 }
   0x6   : > { %s824_s17 = smov (%p23_p0, %s22_s17), 0  ;;  %s826_s18 = smov (!%p23_p0, %s25_s18), %s564_s15 }
   0x7   : > { %p159_p3 = pnand %p479_p1, %p158_p2  ;;  %p27_p4 = scmp.ge.s32.totalorder %s826_s18, 2 }
   0x8   : > { %s480_s19 = sshll.u32 (!%p159_p3), %s552_s12, 5  ;;  %p191_p5 = scmp.lt.s32.totalorder (!%p159_p3), %s556_s13, 1  ;;  %v623_v0 = vld [vmem:[%s816_s1] ss:$0 sm:$0xff] (!%p159_p3)  ;;  %vm352_vm0 = vcmask (!%p159_p3), 31744  }
   0x9   : > { %s828_s18 = smov (%p27_p4, %s826_s18), 0  ;;  %162 = sbr.rel (%p159_p3) target bundleno = 51 (0x33), region = 32 }
   0xa   : > { %p193_p6 = scmp.lt.s32.totalorder (!%p159_p3), %s480_s19, 63  ;;  %v633_v1 = vld [vmem:[%s817_s2] ss:$0 sm:$0xff] (!%p159_p3) }
  0x10   : > { %s830_s13 = smov (!%p191_p5, %s556_s13), 1  ;;  %s832_s19 = smov (!%p193_p6, %s480_s19), 63 }
  0x11   : > { %s481_s20 = sshll.u32 %s830_s13, 6 }
  0x12   : > { %s196_s21 = sadd.s32 %s481_s20, %s832_s19 }
  0x13   : > { %s482_s22 = sshll.u32 %s196_s21, 3 }
  0x14   : > { %s628_s27 = scalar_lea.vmem %s815_s0, %s482_s22  ;;  %s656_s5 = scalar_lea.vmem %s818_s3, %s482_s22 }
  0x15   : > { %v210_v2 = vld [vmem:[%s628_s27] sm:$0xff]  ;;  %v211_v3 = vld [vmem:[%s628_s27 + $0x8] sm:$0xff]  ;;  %v212_v4 = vld [vmem:[%s628_s27 + $0x10] sm:$0xff] }
  0x16   : > { %v249_v5 = vmul.f32 %v623_v0, %v210_v2  ;;  %v250_v6 = vmul.f32 %v623_v0, %v211_v3  ;;  %v251_v7 = vmul.f32 %v623_v0, %v212_v4  ;;  %v213_v8 = vld [vmem:[%s628_s27 + $0x18] sm:$0xff]  ;;  %v214_v9 = vld [vmem:[%s628_s27 + $0x20] sm:$0xff]  ;;  %v215_v10 = vld [vmem:[%s628_s27 + $0x28] sm:$0xff] }
  0x17   : > { %v252_v11 = vmul.f32 %v623_v0, %v213_v8  ;;  %v253_v12 = vmul.f32 %v623_v0, %v214_v9  ;;  %v254_v13 = vmul.f32 %v623_v0, %v215_v10  ;;  %v216_v14 = vld [vmem:[%s628_s27 + $0x30] sm:$0xff]  ;;  %v217_v15 = vld [vmem:[%s628_s27 + $0x38] sm:$0xff]  ;;  %v218_v24 = vld [vmem:[%s628_s27 + $0x40] sm:$0xff] }
  0x18   : > { %v288_v16 = vadd.f32 %v633_v1, %v249_v5  ;;  %v289_v17 = vadd.f32 %v633_v1, %v250_v6  ;;  %v290_v18 = vadd.f32 %v633_v1, %v251_v7  ;;  %v255_v19 = vmul.f32 %v623_v0, %v216_v14  ;;  %v219_v25 = vld [vmem:[%s628_s27 + $0x48] sm:$0xff]  ;;  %v220_v26 = vld [vmem:[%s628_s27 + $0x50] sm:$0xff]  ;;  %v221_v31 = vld [vmem:[%s628_s27 + $0x58] sm:$0xff] }
  0x19   : > { %v291_v20 = vadd.f32 %v633_v1, %v252_v11  ;;  %v292_v21 = vadd.f32 %v633_v1, %v253_v12  ;;  %v293_v22 = vadd.f32 %v633_v1, %v254_v13  ;;  %v256_v23 = vmul.f32 %v623_v0, %v217_v15  ;;  %v222_v32 = vld [vmem:[%s628_s27 + $0x60] sm:$0xff]  ;;  %v223_v33 = vld [vmem:[%s628_s27 + $0x68] sm:$0xff]  ;;  %v224_v38 = vld [vmem:[%s628_s27 + $0x70] sm:$0xff] }
  0x1a   : > { %v320_v27 = vmax.f32 %v288_v16, 0.0  ;;  %v321_v28 = vmax.f32 %v289_v17, 0.0  ;;  %v322_v29 = vmax.f32 %v290_v18, 0.0  ;;  %v294_v30 = vadd.f32 %v633_v1, %v255_v19  ;;  %v225_v43 = vld [vmem:[%s628_s27 + $0x78] sm:$0xff]  ;;  %v226_v56 = vld [vmem:[%s628_s27 + $0x80] sm:$0xff]  ;;  %v227_v57 = vld [vmem:[%s628_s27 + $0x88] sm:$0xff] }
  0x1b   : > { %v323_v34 = vmax.f32 %v291_v20, 0.0  ;;  %v324_v35 = vmax.f32 %v292_v21, 0.0  ;;  %v325_v36 = vmax.f32 %v293_v22, 0.0  ;;  %v295_v37 = vadd.f32 %v633_v1, %v256_v23  ;;  %v228_v58 = vld [vmem:[%s628_s27 + $0x90] sm:$0xff]  ;;  %v229_v63 = vld [vmem:[%s628_s27 + $0x98] sm:$0xff]  ;;  %v230_v2 = vld [vmem:[%s628_s27 + $0xa0] sm:$0xff] }
  0x1c   : > { %353 = vst.msk [vmem:[%s656_s5] sm:$0xff] %vm352_vm0, %v320_v27  ;;  %354 = vst.msk [vmem:[%s656_s5 + $0x8] sm:$0xff] %vm352_vm0, %v321_v28  ;;  %v326_v39 = vmax.f32 %v294_v30, 0.0  ;;  %v257_v40 = vmul.f32 %v623_v0, %v218_v24  ;;  %v258_v41 = vmul.f32 %v623_v0, %v219_v25  ;;  %v259_v42 = vmul.f32 %v623_v0, %v220_v26  ;;  %v231_v3 = vld [vmem:[%s628_s27 + $0xa8] sm:$0xff]  ;;  %v232_v8 = vld [vmem:[%s628_s27 + $0xb0] sm:$0xff] }
  0x1d   : > { %355 = vst.msk [vmem:[%s656_s5 + $0x10] sm:$0xff] %vm352_vm0, %v322_v29  ;;  %356 = vst.msk [vmem:[%s656_s5 + $0x18] sm:$0xff] %vm352_vm0, %v323_v34  ;;  %v327_v44 = vmax.f32 %v295_v37, 0.0  ;;  %v260_v45 = vmul.f32 %v623_v0, %v221_v31  ;;  %v261_v46 = vmul.f32 %v623_v0, %v222_v32  ;;  %v262_v47 = vmul.f32 %v623_v0, %v223_v33  ;;  %v233_v13 = vld [vmem:[%s628_s27 + $0xb8] sm:$0xff]  ;;  %v234_v26 = vld [vmem:[%s628_s27 + $0xc0] sm:$0xff] }
  0x1e   : > { %357 = vst.msk [vmem:[%s656_s5 + $0x20] sm:$0xff] %vm352_vm0, %v324_v35  ;;  %358 = vst.msk [vmem:[%s656_s5 + $0x28] sm:$0xff] %vm352_vm0, %v325_v36  ;;  %v296_v48 = vadd.f32 %v633_v1, %v257_v40  ;;  %v297_v49 = vadd.f32 %v633_v1, %v258_v41  ;;  %v298_v50 = vadd.f32 %v633_v1, %v259_v42  ;;  %v235_v27 = vld [vmem:[%s628_s27 + $0xc8] sm:$0xff]  ;;  %v236_v28 = vld [vmem:[%s628_s27 + $0xd0] sm:$0xff] }
  0x1f   : > { %359 = vst.msk [vmem:[%s656_s5 + $0x30] sm:$0xff] %vm352_vm0, %v326_v39  ;;  %v263_v51 = vmul.f32 %v623_v0, %v224_v38  ;;  %360 = vst.msk [vmem:[%s656_s5 + $0x38] sm:$0xff] %vm352_vm0, %v327_v44  ;;  %v299_v52 = vadd.f32 %v633_v1, %v260_v45  ;;  %v300_v53 = vadd.f32 %v633_v1, %v261_v46  ;;  %v237_v33 = vld [vmem:[%s628_s27 + $0xd8] sm:$0xff]  ;;  %v238_v34 = vld [vmem:[%s628_s27 + $0xe0] sm:$0xff] }
  0x20   : > { %v301_v54 = vadd.f32 %v633_v1, %v262_v47  ;;  %v264_v55 = vmul.f32 %v623_v0, %v225_v43  ;;  %v328_v59 = vmax.f32 %v296_v48, 0.0  ;;  %v329_v60 = vmax.f32 %v297_v49, 0.0  ;;  %v239_v35 = vld [vmem:[%s628_s27 + $0xe8] sm:$0xff]  ;;  %v240_v40 = vld [vmem:[%s628_s27 + $0xf0] sm:$0xff]  ;;  %v241_v45 = vld [vmem:[%s628_s27 + $0xf8] sm:$0xff] }
  0x21   : > { %v330_v61 = vmax.f32 %v298_v50, 0.0  ;;  %v302_v62 = vadd.f32 %v633_v1, %v263_v51  ;;  %v331_v4 = vmax.f32 %v299_v52, 0.0  ;;  %v332_v5 = vmax.f32 %v300_v53, 0.0 }
  0x22   : > { %v333_v6 = vmax.f32 %v301_v54, 0.0  ;;  %v303_v7 = vadd.f32 %v633_v1, %v264_v55  ;;  %361 = vst.msk [vmem:[%s656_s5 + $0x40] sm:$0xff] %vm352_vm0, %v328_v59  ;;  %362 = vst.msk [vmem:[%s656_s5 + $0x48] sm:$0xff] %vm352_vm0, %v329_v60  ;;  %v265_v10 = vmul.f32 %v623_v0, %v226_v56  ;;  %v266_v11 = vmul.f32 %v623_v0, %v227_v57 }
  0x23   : > { %363 = vst.msk [vmem:[%s656_s5 + $0x50] sm:$0xff] %vm352_vm0, %v330_v61  ;;  %v334_v9 = vmax.f32 %v302_v62, 0.0  ;;  %v267_v12 = vmul.f32 %v623_v0, %v228_v58  ;;  %364 = vst.msk [vmem:[%s656_s5 + $0x58] sm:$0xff] %vm352_vm0, %v331_v4  ;;  %v268_v15 = vmul.f32 %v623_v0, %v229_v63  ;;  %v269_v16 = vmul.f32 %v623_v0, %v230_v2 }
  0x24   : > { %365 = vst.msk [vmem:[%s656_s5 + $0x60] sm:$0xff] %vm352_vm0, %v332_v5  ;;  %366 = vst.msk [vmem:[%s656_s5 + $0x68] sm:$0xff] %vm352_vm0, %v333_v6  ;;  %v335_v14 = vmax.f32 %v303_v7, 0.0  ;;  %v270_v17 = vmul.f32 %v623_v0, %v231_v3  ;;  %v304_v18 = vadd.f32 %v633_v1, %v265_v10  ;;  %v305_v19 = vadd.f32 %v633_v1, %v266_v11 }
  0x25   : > { %367 = vst.msk [vmem:[%s656_s5 + $0x70] sm:$0xff] %vm352_vm0, %v334_v9  ;;  %v306_v20 = vadd.f32 %v633_v1, %v267_v12  ;;  %v271_v21 = vmul.f32 %v623_v0, %v232_v8  ;;  %v307_v22 = vadd.f32 %v633_v1, %v268_v15  ;;  %v308_v23 = vadd.f32 %v633_v1, %v269_v16 }
  0x26   : > { %368 = vst.msk [vmem:[%s656_s5 + $0x78] sm:$0xff] %vm352_vm0, %v335_v14  ;;  %v309_v24 = vadd.f32 %v633_v1, %v270_v17  ;;  %v272_v25 = vmul.f32 %v623_v0, %v233_v13  ;;  %v336_v29 = vmax.f32 %v304_v18, 0.0  ;;  %v337_v30 = vmax.f32 %v305_v19, 0.0 }
  0x27   : > { %v338_v31 = vmax.f32 %v306_v20, 0.0  ;;  %v310_v32 = vadd.f32 %v633_v1, %v271_v21  ;;  %v339_v36 = vmax.f32 %v307_v22, 0.0  ;;  %v340_v37 = vmax.f32 %v308_v23, 0.0 }
  0x28   : > { %v341_v38 = vmax.f32 %v309_v24, 0.0  ;;  %v311_v39 = vadd.f32 %v633_v1, %v272_v25  ;;  %369 = vst.msk [vmem:[%s656_s5 + $0x80] sm:$0xff] %vm352_vm0, %v336_v29  ;;  %370 = vst.msk [vmem:[%s656_s5 + $0x88] sm:$0xff] %vm352_vm0, %v337_v30  ;;  %v273_v42 = vmul.f32 %v623_v0, %v234_v26  ;;  %v274_v43 = vmul.f32 %v623_v0, %v235_v27 }
  0x29   : > { %371 = vst.msk [vmem:[%s656_s5 + $0x90] sm:$0xff] %vm352_vm0, %v338_v31  ;;  %v342_v41 = vmax.f32 %v310_v32, 0.0  ;;  %v275_v44 = vmul.f32 %v623_v0, %v236_v28  ;;  %372 = vst.msk [vmem:[%s656_s5 + $0x98] sm:$0xff] %vm352_vm0, %v339_v36  ;;  %v276_v47 = vmul.f32 %v623_v0, %v237_v33  ;;  %v277_v48 = vmul.f32 %v623_v0, %v238_v34 }
  0x2a   : > { %373 = vst.msk [vmem:[%s656_s5 + $0xa0] sm:$0xff] %vm352_vm0, %v340_v37  ;;  %374 = vst.msk [vmem:[%s656_s5 + $0xa8] sm:$0xff] %vm352_vm0, %v341_v38  ;;  %v343_v46 = vmax.f32 %v311_v39, 0.0  ;;  %v278_v49 = vmul.f32 %v623_v0, %v239_v35  ;;  %v312_v50 = vadd.f32 %v633_v1, %v273_v42  ;;  %v313_v51 = vadd.f32 %v633_v1, %v274_v43 }
  0x2b   : > { %375 = vst.msk [vmem:[%s656_s5 + $0xb0] sm:$0xff] %vm352_vm0, %v342_v41  ;;  %v314_v52 = vadd.f32 %v633_v1, %v275_v44  ;;  %v279_v53 = vmul.f32 %v623_v0, %v240_v40  ;;  %v315_v54 = vadd.f32 %v633_v1, %v276_v47  ;;  %v316_v55 = vadd.f32 %v633_v1, %v277_v48 }
  0x2c   : > { %376 = vst.msk [vmem:[%s656_s5 + $0xb8] sm:$0xff] %vm352_vm0, %v343_v46  ;;  %v317_v56 = vadd.f32 %v633_v1, %v278_v49  ;;  %v280_v57 = vmul.f32 %v623_v0, %v241_v45  ;;  %v344_v58 = vmax.f32 %v312_v50, 0.0  ;;  %v345_v59 = vmax.f32 %v313_v51, 0.0 }
  0x2d   : > { %v346_v60 = vmax.f32 %v314_v52, 0.0  ;;  %v318_v61 = vadd.f32 %v633_v1, %v279_v53  ;;  %v347_v62 = vmax.f32 %v315_v54, 0.0  ;;  %v348_v63 = vmax.f32 %v316_v55, 0.0 }
  0x2e   : > { %v349_v2 = vmax.f32 %v317_v56, 0.0  ;;  %v319_v3 = vadd.f32 %v633_v1, %v280_v57  ;;  %377 = vst.msk [vmem:[%s656_s5 + $0xc0] sm:$0xff] %vm352_vm0, %v344_v58  ;;  %378 = vst.msk [vmem:[%s656_s5 + $0xc8] sm:$0xff] %vm352_vm0, %v345_v59 }
  0x2f   : > { %379 = vst.msk [vmem:[%s656_s5 + $0xd0] sm:$0xff] %vm352_vm0, %v346_v60  ;;  %v350_v4 = vmax.f32 %v318_v61, 0.0  ;;  %380 = vst.msk [vmem:[%s656_s5 + $0xd8] sm:$0xff] %vm352_vm0, %v347_v62 }
  0x30   : > { %381 = vst.msk [vmem:[%s656_s5 + $0xe0] sm:$0xff] %vm352_vm0, %v348_v63  ;;  %382 = vst.msk [vmem:[%s656_s5 + $0xe8] sm:$0xff] %vm352_vm0, %v349_v2  ;;  %v351_v0 = vmax.f32 %v319_v3, 0.0 }
  0x31   : > { %383 = vst.msk [vmem:[%s656_s5 + $0xf0] sm:$0xff] %vm352_vm0, %v350_v4 }
  0x32   : > { %384 = vst.msk [vmem:[%s656_s5 + $0xf8] sm:$0xff] %vm352_vm0, %v351_v0 }
  0x33 PF: > { %s13_s16 = sadd.s32 1, %s568_s16   ;;  %s819_s12 = smov %s560_s14 }
  0x34   : > { %p10_p7 = scmp.ge.s32.totalorder %s13_s16, 6   ;;  %s820_s13 = smov %s564_s15 }
  0x35   : > { %s821_s14 = smov %s824_s17  ;;  %s822_s15 = smov %s828_s18 }
  0x36   :  { %12 = sbr.rel (!%p10_p7) target bundleno = 3 (0x3), region = 62 }

// kernel: double_conv_forward.7
= control target key start
LH: loop header
LB: loop body
LE: loop exit
PB: predicated region body
PF: predicated region fallthrough
CT: control target
= control target key end

     0   :  { %s590_s12 = smov 0   ;;  %s592_s13 = smov 0   ;;  %s815_s0 = inlined_call_operand.vmem [shape: f32[2,512,8], index: 0, kind: input, shape index: {}]   ;;  %s816_s1 = inlined_call_operand.vmem [shape: f32[1,8], index: 1, kind: input, shape index: {}]   ;;  %s817_s2 = inlined_call_operand.vmem [shape: f32[1,8], index: 2, kind: input, shape index: {}]   ;;  %s818_s3 = inlined_call_operand.vmem [shape: f32[2,512,8], index: 3, kind: output, shape index: {}]  }
   0x1   :  { %s594_s14 = smov 0   ;;  %s596_s15 = smov 0  }
   0x2   :  { %s598_s16 = smov 0  }
   0x3 LB: > { %s22_s17 = sadd.s32 1, %s560_s14  ;;  %s25_s18 = sadd.s32 1, %s564_s15  ;;  %s568_s16 = sphi %s598_s16, %s13_s16   ;;  %s564_s15 = sphi %s596_s15, %s822_s15   ;;  %s560_s14 = sphi %s594_s14, %s821_s14   ;;  %s556_s13 = sphi %s592_s13, %s820_s13   ;;  %s552_s12 = sphi %s590_s12, %s819_s12  }
   0x4   : > { %p23_p0 = scmp.ge.s32.totalorder %s22_s17, 2  ;;  %p479_p1 = scmp.ge.s32.totalorder %s568_s16, 1 }
   0x5   : > { %p158_p2 = scmp.lt.s32.totalorder %s568_s16, 5 }
   0x6   : > { %s824_s17 = smov (%p23_p0, %s22_s17), 0  ;;  %s826_s18 = smov (!%p23_p0, %s25_s18), %s564_s15 }
   0x7   : > { %p159_p3 = pnand %p479_p1, %p158_p2  ;;  %p27_p4 = scmp.ge.s32.totalorder %s826_s18, 2 }
   0x8   : > { %s480_s19 = sshll.u32 (!%p159_p3), %s552_s12, 5  ;;  %p191_p5 = scmp.lt.s32.totalorder (!%p159_p3), %s556_s13, 1  ;;  %v623_v0 = vld [vmem:[%s816_s1] ss:$0 sm:$0xff] (!%p159_p3)  ;;  %vm352_vm0 = vcmask (!%p159_p3), 64512  }
   0x9   : > { %s828_s18 = smov (%p27_p4, %s826_s18), 0  ;;  %162 = sbr.rel (%p159_p3) target bundleno = 51 (0x33), region = 32 }
   0xa   : > { %p193_p6 = scmp.lt.s32.totalorder (!%p159_p3), %s480_s19, 63  ;;  %v633_v1 = vld [vmem:[%s817_s2] ss:$0 sm:$0xff] (!%p159_p3) }
  0x10   : > { %s830_s13 = smov (!%p191_p5, %s556_s13), 1  ;;  %s832_s19 = smov (!%p193_p6, %s480_s19), 63 }
  0x11   : > { %s481_s20 = sshll.u32 %s830_s13, 6 }
  0x12   : > { %s196_s21 = sadd.s32 %s481_s20, %s832_s19 }
  0x13   : > { %s482_s22 = sshll.u32 %s196_s21, 3 }
  0x14   : > { %s628_s27 = scalar_lea.vmem %s815_s0, %s482_s22  ;;  %s656_s5 = scalar_lea.vmem %s818_s3, %s482_s22 }
  0x15   : > { %v210_v2 = vld [vmem:[%s628_s27] sm:$0xff]  ;;  %v211_v3 = vld [vmem:[%s628_s27 + $0x8] sm:$0xff]  ;;  %v212_v4 = vld [vmem:[%s628_s27 + $0x10] sm:$0xff] }
  0x16   : > { %v249_v5 = vmul.f32 %v623_v0, %v210_v2  ;;  %v250_v6 = vmul.f32 %v623_v0, %v211_v3  ;;  %v251_v7 = vmul.f32 %v623_v0, %v212_v4  ;;  %v213_v8 = vld [vmem:[%s628_s27 + $0x18] sm:$0xff]  ;;  %v214_v9 = vld [vmem:[%s628_s27 + $0x20] sm:$0xff]  ;;  %v215_v10 = vld [vmem:[%s628_s27 + $0x28] sm:$0xff] }
  0x17   : > { %v252_v11 = vmul.f32 %v623_v0, %v213_v8  ;;  %v253_v12 = vmul.f32 %v623_v0, %v214_v9  ;;  %v254_v13 = vmul.f32 %v623_v0, %v215_v10  ;;  %v216_v14 = vld [vmem:[%s628_s27 + $0x30] sm:$0xff]  ;;  %v217_v15 = vld [vmem:[%s628_s27 + $0x38] sm:$0xff]  ;;  %v218_v24 = vld [vmem:[%s628_s27 + $0x40] sm:$0xff] }
  0x18   : > { %v288_v16 = vadd.f32 %v633_v1, %v249_v5  ;;  %v289_v17 = vadd.f32 %v633_v1, %v250_v6  ;;  %v290_v18 = vadd.f32 %v633_v1, %v251_v7  ;;  %v255_v19 = vmul.f32 %v623_v0, %v216_v14  ;;  %v219_v25 = vld [vmem:[%s628_s27 + $0x48] sm:$0xff]  ;;  %v220_v26 = vld [vmem:[%s628_s27 + $0x50] sm:$0xff]  ;;  %v221_v31 = vld [vmem:[%s628_s27 + $0x58] sm:$0xff] }
  0x19   : > { %v291_v20 = vadd.f32 %v633_v1, %v252_v11  ;;  %v292_v21 = vadd.f32 %v633_v1, %v253_v12  ;;  %v293_v22 = vadd.f32 %v633_v1, %v254_v13  ;;  %v256_v23 = vmul.f32 %v623_v0, %v217_v15  ;;  %v222_v32 = vld [vmem:[%s628_s27 + $0x60] sm:$0xff]  ;;  %v223_v33 = vld [vmem:[%s628_s27 + $0x68] sm:$0xff]  ;;  %v224_v38 = vld [vmem:[%s628_s27 + $0x70] sm:$0xff] }
  0x1a   : > { %v320_v27 = vmax.f32 %v288_v16, 0.0  ;;  %v321_v28 = vmax.f32 %v289_v17, 0.0  ;;  %v322_v29 = vmax.f32 %v290_v18, 0.0  ;;  %v294_v30 = vadd.f32 %v633_v1, %v255_v19  ;;  %v225_v43 = vld [vmem:[%s628_s27 + $0x78] sm:$0xff]  ;;  %v226_v56 = vld [vmem:[%s628_s27 + $0x80] sm:$0xff]  ;;  %v227_v57 = vld [vmem:[%s628_s27 + $0x88] sm:$0xff] }
  0x1b   : > { %v323_v34 = vmax.f32 %v291_v20, 0.0  ;;  %v324_v35 = vmax.f32 %v292_v21, 0.0  ;;  %v325_v36 = vmax.f32 %v293_v22, 0.0  ;;  %v295_v37 = vadd.f32 %v633_v1, %v256_v23  ;;  %v228_v58 = vld [vmem:[%s628_s27 + $0x90] sm:$0xff]  ;;  %v229_v63 = vld [vmem:[%s628_s27 + $0x98] sm:$0xff]  ;;  %v230_v2 = vld [vmem:[%s628_s27 + $0xa0] sm:$0xff] }
  0x1c   : > { %353 = vst.msk [vmem:[%s656_s5] sm:$0xff] %vm352_vm0, %v320_v27  ;;  %354 = vst.msk [vmem:[%s656_s5 + $0x8] sm:$0xff] %vm352_vm0, %v321_v28  ;;  %v326_v39 = vmax.f32 %v294_v30, 0.0  ;;  %v257_v40 = vmul.f32 %v623_v0, %v218_v24  ;;  %v258_v41 = vmul.f32 %v623_v0, %v219_v25  ;;  %v259_v42 = vmul.f32 %v623_v0, %v220_v26  ;;  %v231_v3 = vld [vmem:[%s628_s27 + $0xa8] sm:$0xff]  ;;  %v232_v8 = vld [vmem:[%s628_s27 + $0xb0] sm:$0xff] }
  0x1d   : > { %355 = vst.msk [vmem:[%s656_s5 + $0x10] sm:$0xff] %vm352_vm0, %v322_v29  ;;  %356 = vst.msk [vmem:[%s656_s5 + $0x18] sm:$0xff] %vm352_vm0, %v323_v34  ;;  %v327_v44 = vmax.f32 %v295_v37, 0.0  ;;  %v260_v45 = vmul.f32 %v623_v0, %v221_v31  ;;  %v261_v46 = vmul.f32 %v623_v0, %v222_v32  ;;  %v262_v47 = vmul.f32 %v623_v0, %v223_v33  ;;  %v233_v13 = vld [vmem:[%s628_s27 + $0xb8] sm:$0xff]  ;;  %v234_v26 = vld [vmem:[%s628_s27 + $0xc0] sm:$0xff] }
  0x1e   : > { %357 = vst.msk [vmem:[%s656_s5 + $0x20] sm:$0xff] %vm352_vm0, %v324_v35  ;;  %358 = vst.msk [vmem:[%s656_s5 + $0x28] sm:$0xff] %vm352_vm0, %v325_v36  ;;  %v296_v48 = vadd.f32 %v633_v1, %v257_v40  ;;  %v297_v49 = vadd.f32 %v633_v1, %v258_v41  ;;  %v298_v50 = vadd.f32 %v633_v1, %v259_v42  ;;  %v235_v27 = vld [vmem:[%s628_s27 + $0xc8] sm:$0xff]  ;;  %v236_v28 = vld [vmem:[%s628_s27 + $0xd0] sm:$0xff] }
  0x1f   : > { %359 = vst.msk [vmem:[%s656_s5 + $0x30] sm:$0xff] %vm352_vm0, %v326_v39  ;;  %v263_v51 = vmul.f32 %v623_v0, %v224_v38  ;;  %360 = vst.msk [vmem:[%s656_s5 + $0x38] sm:$0xff] %vm352_vm0, %v327_v44  ;;  %v299_v52 = vadd.f32 %v633_v1, %v260_v45  ;;  %v300_v53 = vadd.f32 %v633_v1, %v261_v46  ;;  %v237_v33 = vld [vmem:[%s628_s27 + $0xd8] sm:$0xff]  ;;  %v238_v34 = vld [vmem:[%s628_s27 + $0xe0] sm:$0xff] }
  0x20   : > { %v301_v54 = vadd.f32 %v633_v1, %v262_v47  ;;  %v264_v55 = vmul.f32 %v623_v0, %v225_v43  ;;  %v328_v59 = vmax.f32 %v296_v48, 0.0  ;;  %v329_v60 = vmax.f32 %v297_v49, 0.0  ;;  %v239_v35 = vld [vmem:[%s628_s27 + $0xe8] sm:$0xff]  ;;  %v240_v40 = vld [vmem:[%s628_s27 + $0xf0] sm:$0xff]  ;;  %v241_v45 = vld [vmem:[%s628_s27 + $0xf8] sm:$0xff] }
  0x21   : > { %v330_v61 = vmax.f32 %v298_v50, 0.0  ;;  %v302_v62 = vadd.f32 %v633_v1, %v263_v51  ;;  %v331_v4 = vmax.f32 %v299_v52, 0.0  ;;  %v332_v5 = vmax.f32 %v300_v53, 0.0 }
  0x22   : > { %v333_v6 = vmax.f32 %v301_v54, 0.0  ;;  %v303_v7 = vadd.f32 %v633_v1, %v264_v55  ;;  %361 = vst.msk [vmem:[%s656_s5 + $0x40] sm:$0xff] %vm352_vm0, %v328_v59  ;;  %362 = vst.msk [vmem:[%s656_s5 + $0x48] sm:$0xff] %vm352_vm0, %v329_v60  ;;  %v265_v10 = vmul.f32 %v623_v0, %v226_v56  ;;  %v266_v11 = vmul.f32 %v623_v0, %v227_v57 }
  0x23   : > { %363 = vst.msk [vmem:[%s656_s5 + $0x50] sm:$0xff] %vm352_vm0, %v330_v61  ;;  %v334_v9 = vmax.f32 %v302_v62, 0.0  ;;  %v267_v12 = vmul.f32 %v623_v0, %v228_v58  ;;  %364 = vst.msk [vmem:[%s656_s5 + $0x58] sm:$0xff] %vm352_vm0, %v331_v4  ;;  %v268_v15 = vmul.f32 %v623_v0, %v229_v63  ;;  %v269_v16 = vmul.f32 %v623_v0, %v230_v2 }
  0x24   : > { %365 = vst.msk [vmem:[%s656_s5 + $0x60] sm:$0xff] %vm352_vm0, %v332_v5  ;;  %366 = vst.msk [vmem:[%s656_s5 + $0x68] sm:$0xff] %vm352_vm0, %v333_v6  ;;  %v335_v14 = vmax.f32 %v303_v7, 0.0  ;;  %v270_v17 = vmul.f32 %v623_v0, %v231_v3  ;;  %v304_v18 = vadd.f32 %v633_v1, %v265_v10  ;;  %v305_v19 = vadd.f32 %v633_v1, %v266_v11 }
  0x25   : > { %367 = vst.msk [vmem:[%s656_s5 + $0x70] sm:$0xff] %vm352_vm0, %v334_v9  ;;  %v306_v20 = vadd.f32 %v633_v1, %v267_v12  ;;  %v271_v21 = vmul.f32 %v623_v0, %v232_v8  ;;  %v307_v22 = vadd.f32 %v633_v1, %v268_v15  ;;  %v308_v23 = vadd.f32 %v633_v1, %v269_v16 }
  0x26   : > { %368 = vst.msk [vmem:[%s656_s5 + $0x78] sm:$0xff] %vm352_vm0, %v335_v14  ;;  %v309_v24 = vadd.f32 %v633_v1, %v270_v17  ;;  %v272_v25 = vmul.f32 %v623_v0, %v233_v13  ;;  %v336_v29 = vmax.f32 %v304_v18, 0.0  ;;  %v337_v30 = vmax.f32 %v305_v19, 0.0 }
  0x27   : > { %v338_v31 = vmax.f32 %v306_v20, 0.0  ;;  %v310_v32 = vadd.f32 %v633_v1, %v271_v21  ;;  %v339_v36 = vmax.f32 %v307_v22, 0.0  ;;  %v340_v37 = vmax.f32 %v308_v23, 0.0 }
  0x28   : > { %v341_v38 = vmax.f32 %v309_v24, 0.0  ;;  %v311_v39 = vadd.f32 %v633_v1, %v272_v25  ;;  %369 = vst.msk [vmem:[%s656_s5 + $0x80] sm:$0xff] %vm352_vm0, %v336_v29  ;;  %370 = vst.msk [vmem:[%s656_s5 + $0x88] sm:$0xff] %vm352_vm0, %v337_v30  ;;  %v273_v42 = vmul.f32 %v623_v0, %v234_v26  ;;  %v274_v43 = vmul.f32 %v623_v0, %v235_v27 }
  0x29   : > { %371 = vst.msk [vmem:[%s656_s5 + $0x90] sm:$0xff] %vm352_vm0, %v338_v31  ;;  %v342_v41 = vmax.f32 %v310_v32, 0.0  ;;  %v275_v44 = vmul.f32 %v623_v0, %v236_v28  ;;  %372 = vst.msk [vmem:[%s656_s5 + $0x98] sm:$0xff] %vm352_vm0, %v339_v36  ;;  %v276_v47 = vmul.f32 %v623_v0, %v237_v33  ;;  %v277_v48 = vmul.f32 %v623_v0, %v238_v34 }
  0x2a   : > { %373 = vst.msk [vmem:[%s656_s5 + $0xa0] sm:$0xff] %vm352_vm0, %v340_v37  ;;  %374 = vst.msk [vmem:[%s656_s5 + $0xa8] sm:$0xff] %vm352_vm0, %v341_v38  ;;  %v343_v46 = vmax.f32 %v311_v39, 0.0  ;;  %v278_v49 = vmul.f32 %v623_v0, %v239_v35  ;;  %v312_v50 = vadd.f32 %v633_v1, %v273_v42  ;;  %v313_v51 = vadd.f32 %v633_v1, %v274_v43 }
  0x2b   : > { %375 = vst.msk [vmem:[%s656_s5 + $0xb0] sm:$0xff] %vm352_vm0, %v342_v41  ;;  %v314_v52 = vadd.f32 %v633_v1, %v275_v44  ;;  %v279_v53 = vmul.f32 %v623_v0, %v240_v40  ;;  %v315_v54 = vadd.f32 %v633_v1, %v276_v47  ;;  %v316_v55 = vadd.f32 %v633_v1, %v277_v48 }
  0x2c   : > { %376 = vst.msk [vmem:[%s656_s5 + $0xb8] sm:$0xff] %vm352_vm0, %v343_v46  ;;  %v317_v56 = vadd.f32 %v633_v1, %v278_v49  ;;  %v280_v57 = vmul.f32 %v623_v0, %v241_v45  ;;  %v344_v58 = vmax.f32 %v312_v50, 0.0  ;;  %v345_v59 = vmax.f32 %v313_v51, 0.0 }
  0x2d   : > { %v346_v60 = vmax.f32 %v314_v52, 0.0  ;;  %v318_v61 = vadd.f32 %v633_v1, %v279_v53  ;;  %v347_v62 = vmax.f32 %v315_v54, 0.0  ;;  %v348_v63 = vmax.f32 %v316_v55, 0.0 }
  0x2e   : > { %v349_v2 = vmax.f32 %v317_v56, 0.0  ;;  %v319_v3 = vadd.f32 %v633_v1, %v280_v57  ;;  %377 = vst.msk [vmem:[%s656_s5 + $0xc0] sm:$0xff] %vm352_vm0, %v344_v58  ;;  %378 = vst.msk [vmem:[%s656_s5 + $0xc8] sm:$0xff] %vm352_vm0, %v345_v59 }
  0x2f   : > { %379 = vst.msk [vmem:[%s656_s5 + $0xd0] sm:$0xff] %vm352_vm0, %v346_v60  ;;  %v350_v4 = vmax.f32 %v318_v61, 0.0  ;;  %380 = vst.msk [vmem:[%s656_s5 + $0xd8] sm:$0xff] %vm352_vm0, %v347_v62 }
  0x30   : > { %381 = vst.msk [vmem:[%s656_s5 + $0xe0] sm:$0xff] %vm352_vm0, %v348_v63  ;;  %382 = vst.msk [vmem:[%s656_s5 + $0xe8] sm:$0xff] %vm352_vm0, %v349_v2  ;;  %v351_v0 = vmax.f32 %v319_v3, 0.0 }
  0x31   : > { %383 = vst.msk [vmem:[%s656_s5 + $0xf0] sm:$0xff] %vm352_vm0, %v350_v4 }
  0x32   : > { %384 = vst.msk [vmem:[%s656_s5 + $0xf8] sm:$0xff] %vm352_vm0, %v351_v0 }
  0x33 PF: > { %s13_s16 = sadd.s32 1, %s568_s16   ;;  %s819_s12 = smov %s560_s14 }
  0x34   : > { %p10_p7 = scmp.ge.s32.totalorder %s13_s16, 6   ;;  %s820_s13 = smov %s564_s15 }
  0x35   : > { %s821_s14 = smov %s824_s17  ;;  %s822_s15 = smov %s828_s18 }
  0x36   :  { %12 = sbr.rel (!%p10_p7) target bundleno = 3 (0x3), region = 62 }

// kernel: double_conv_forward.4
= control target key start
LH: loop header
LB: loop body
LE: loop exit
PB: predicated region body
PF: predicated region fallthrough
CT: control target
= control target key end

     0   :  { %s5504_s15 = smov 0   ;;  %s5506_s16 = smov 0   ;;  %s7890_s0 = inlined_call_operand.vmem [shape: f32[2,550,4], index: 0, kind: input, shape index: {}]   ;;  %s7891_s1 = inlined_call_operand.vmem [shape: bf16[9,4,4], index: 1, kind: input, shape index: {}]   ;;  %s7892_s2 = inlined_call_operand.vmem [shape: f32[1,4], index: 2, kind: input, shape index: {}]   ;;  %s7893_s3 = inlined_call_operand.vmem [shape: f32[2,512,4], index: 3, kind: output, shape index: {0}]   ;;  %s7894_s4 = inlined_call_operand.vmem [shape: f32[2,2,2,4], index: 4, kind: output, shape index: {1}]  }
   0x1   :  { %s5508_s17 = smov 0   ;;  %s5510_s18 = smov 0  }
   0x2   :  { %s5512_s19 = smov 0  }
   0x3 LB: > { %s24_s20 = sadd.s32 1, %s5469_s17  ;;  %s27_s21 = sadd.s32 1, %s5473_s18  ;;  %s5477_s19 = sphi %s5512_s19, %s15_s19   ;;  %s5473_s18 = sphi %s5510_s18, %s8308_s18   ;;  %s5469_s17 = sphi %s5508_s17, %s8307_s17   ;;  %s5465_s16 = sphi %s5506_s16, %s8306_s16   ;;  %s5461_s15 = sphi %s5504_s15, %s8305_s15  }
   0x4   : > { %p25_p0 = scmp.ge.s32.totalorder %s24_s20, 2  ;;  %p4115_p1 = scmp.ge.s32.totalorder %s5477_s19, 1 }
   0x5   : > { %p181_p2 = scmp.lt.s32.totalorder %s5477_s19, 5 }
   0x6   : > { %s8310_s20 = smov (%p25_p0, %s24_s20), 0  ;;  %s8312_s21 = smov (!%p25_p0, %s27_s21), %s5473_s18 }
   0x7   : > { %p182_p3 = pnand %p4115_p1, %p181_p2  ;;  %p29_p4 = scmp.ge.s32.totalorder %s8312_s21, 2 }
   0x9   : > { %s8314_s21 = smov (%p29_p4, %s8312_s21), 0  ;;  %185 = sbr.rel (%p182_p3) target bundleno = 623 (0x26f), region = 32 }
  0x10   : > { %v300_v0 = vld [vmem:[%s7891_s1] sm:$0x3]  ;;  %vm350_vm0 = vcmask 1041408   ;;  %v5542_v1 = vld [vmem:[%s7891_s1 + $0x8] sm:$0x3]  ;;  %p219_p5 = scmp.lt.s32.totalorder %s5465_s16, 1 }
  0x11   : > { %5323 = vmatprep.subr.msk.bf16.mxu1 %vm350_vm0, %v300_v0  ;;  %v352_v2 = vsel %vm350_vm0, %v300_v0, 0  ;;  %5327 = vmatprep.subr.msk.bf16.mxu0 %vm350_vm0, %v5542_v1  ;;  %v5550_v3 = vsel %vm350_vm0, %v5542_v1, 0  ;;  %v4173_v4 = vld [vmem:[%s7891_s1 + $0x2] sm:$0x3]  ;;  %v4373_v5 = vld [vmem:[%s7891_s1 + $0xa] sm:$0x3] }
  0x12   : > { %4728 = vmatpush3.bf16.msra.mxu1 %v352_v2  ;;  %4864 = vmatpush3.bf16.msra.mxu0 %v5550_v3  ;;  %s8316_s16 = smov (!%p219_p5, %s5465_s16), 1  ;;  %s4122_s5 = sshll.u32 %s5461_s15, 8  ;;  %vm7930_vm1 = vcmask 31744   ;;  %v648_v15 = vsel %vm350_vm0, %v4173_v4, 0  ;;  %v1832_v20 = vsel %vm350_vm0, %v4373_v5, 0 }
  0x13   : > { %5324 = vmatprep.subr.msk.bf16.mxu1 %vm350_vm0, %v4173_v4  ;;  %5329 = vmatprep.subr.msk.bf16.mxu0 %vm350_vm0, %v4373_v5  ;;  %s5333_s30 = smul.u32 552, %s8316_s16  ;;  %v5592_v26 = vld [vmem:[%s7891_s1 + $0xc] sm:$0x3]  ;;  %v5597_v27 = vld [vmem:[%s7891_s1 + $0x4] sm:$0x3]  ;;  %s4117_s27 = sshll.u32 %s5461_s15, 5 }
  0x14   : > { %p6748_p6 = scmp.lt.s32.totalorder %s4117_s27, 63  ;;  %p236_p7 = scmp.lt.s32.totalorder %s5461_s15, 1 }
  0x15   : > { %s223_s8 = scalar_lea.vmem %s7890_s0, %s5333_s30  ;;  %s4120_s13 = sshll.u32 %s8316_s16, 1 }
  0x16   : > { %s5570_s9 = scalar_lea.vmem %s223_s8, %s4122_s5  ;;  %s8318_s27 = smov (!%p6748_p6, %s4117_s27), 63 }
  0x17   : > { %v252_v6 = vld [vmem:[%s5570_s9] sm:$0xff]  ;;  %v253_v7 = vld [vmem:[%s5570_s9 + $0x8] sm:$0xff]  ;;  %v4291_v8 = vld [vmem:[%s5570_s9 + $0x13] sm:$0xff]  ;;  %s8320_s15 = smov (!%p236_p7, %s5461_s15), 1 }
  0x18   : > { %v284_v9 = vpack.c.bf16 %v253_v7, %v252_v6  ;;  %v4292_v10 = vld [vmem:[%s5570_s9 + $0x1b] sm:$0xff]  ;;  %v254_v11 = vld [vmem:[%s5570_s9 + $0x10] sm:$0xff]  ;;  %v4293_v16 = vld [vmem:[%s5570_s9 + $0x23] sm:$0xff]  ;;  %s239_s14 = sadd.s32 %s4120_s13, %s8320_s15 }
  0x19   : > { %v255_v12 = vld [vmem:[%s5570_s9 + $0x18] sm:$0xff]  ;;  %v1469_v13 = vpack.c.bf16 %v4292_v10, %v4291_v8  ;;  %v4294_v17 = vld [vmem:[%s5570_s9 + $0x2b] sm:$0xff]  ;;  %v256_v18 = vld [vmem:[%s5570_s9 + $0x20] sm:$0xff]  ;;  %s4121_s22 = sshll.u32 %s239_s14, 1 }
  0x1a   : > { %v285_v14 = vpack.c.bf16 %v255_v12, %v254_v11  ;;  %4729 = vmatprep.mubr.msk.bf16.mxu1 %vm7930_vm1, %v284_v9  ;;  %v1470_v19 = vpack.c.bf16 %v4294_v17, %v4293_v16  ;;  %v257_v21 = vld [vmem:[%s5570_s9 + $0x28] sm:$0xff]  ;;  %v4295_v22 = vld [vmem:[%s5570_s9 + $0x33] sm:$0xff]  ;;  %v4296_v23 = vld [vmem:[%s5570_s9 + $0x3b] sm:$0xff]  ;;  %s241_s25 = scalar_lea.vmem %s7894_s4, %s4121_s22 }
  0x1b   : > { %4865 = vmatprep.mubr.msk.bf16.mxu0 %vm7930_vm1, %v1469_v13  ;;  %v286_v24 = vpack.c.bf16 %v257_v21, %v256_v18  ;;  %v1471_v25 = vpack.c.bf16 %v4296_v23, %v4295_v22  ;;  %v258_v28 = vld [vmem:[%s5570_s9 + $0x30] sm:$0xff]  ;;  %v259_v29 = vld [vmem:[%s5570_s9 + $0x38] sm:$0xff]  ;;  %v4297_v30 = vld [vmem:[%s5570_s9 + $0x43] sm:$0xff] }
  0x1c   : > { %4730 = vmatmul.mubr.msk.bf16.vlgmr.msra.gmra.mrb[0].mxu1 %vm7930_vm1, %v285_v14  ;;  %4866 = vmatmul.mubr.msk.bf16.vlgmr.msra.gmra.mrb[0].mxu0 %vm7930_vm1, %v1470_v19  ;;  %v4298_v31 = vld [vmem:[%s5570_s9 + $0x4b] sm:$0xff]  ;;  %v260_v32 = vld [vmem:[%s5570_s9 + $0x40] sm:$0xff]  ;;  %v4299_v34 = vld [vmem:[%s5570_s9 + $0x53] sm:$0xff]  ;;  %v287_v36 = vpack.c.bf16 %v259_v29, %v258_v28  ;;  %v2128_v14 = vsel %vm350_vm0, %v5592_v26, 0 }
  0x1d   : > { %4762 = vmatpush3.bf16.msra.mxu1 %v648_v15  ;;  %4898 = vmatpush3.bf16.msra.mxu0 %v1832_v20  ;;  %v261_v33 = vld [vmem:[%s5570_s9 + $0x48] sm:$0xff]  ;;  %v4300_v35 = vld [vmem:[%s5570_s9 + $0x5b] sm:$0xff]  ;;  %v1472_v37 = vpack.c.bf16 %v4298_v31, %v4297_v30  ;;  %v262_v40 = vld [vmem:[%s5570_s9 + $0x50] sm:$0xff] }
  0x1e   : > { %4733 = vmatprep.mubr.msk.bf16.mxu1 %vm7930_vm1, %v286_v24  ;;  %4869 = vmatprep.mubr.msk.bf16.mxu0 %vm7930_vm1, %v1471_v25  ;;  %v288_v38 = vpack.c.bf16 %v261_v33, %v260_v32  ;;  %v1473_v39 = vpack.c.bf16 %v4300_v35, %v4299_v34  ;;  %v263_v41 = vld [vmem:[%s5570_s9 + $0x58] sm:$0xff]  ;;  %v4301_v42 = vld [vmem:[%s5570_s9 + $0x63] sm:$0xff]  ;;  %v4302_v43 = vld [vmem:[%s5570_s9 + $0x6b] sm:$0xff] }
  0x1f   : > { %5330 = vmatprep.subr.msk.bf16.mxu0 %vm350_vm0, %v5592_v26  ;;  %5325 = vmatprep.subr.msk.bf16.mxu1 %vm350_vm0, %v5597_v27  ;;  %v264_v44 = vld [vmem:[%s5570_s9 + $0x60] sm:$0xff]  ;;  %v265_v45 = vld [vmem:[%s5570_s9 + $0x68] sm:$0xff]  ;;  %v4303_v46 = vld [vmem:[%s5570_s9 + $0x73] sm:$0xff]  ;;  %v289_v48 = vpack.c.bf16 %v263_v41, %v262_v40  ;;  %v1474_v49 = vpack.c.bf16 %v4302_v43, %v4301_v42 }
  0x20   : > { %v4304_v47 = vld [vmem:[%s5570_s9 + $0x7b] sm:$0xff]  ;;  %v290_v50 = vpack.c.bf16 %v265_v45, %v264_v44  ;;  %v266_v52 = vld [vmem:[%s5570_s9 + $0x70] sm:$0xff]  ;;  %v4305_v54 = vld [vmem:[%s5570_s9 + $0x83] sm:$0xff] }
  0x21   : > { %v1475_v51 = vpack.c.bf16 %v4304_v47, %v4303_v46  ;;  %v267_v53 = vld [vmem:[%s5570_s9 + $0x78] sm:$0xff]  ;;  %v4306_v55 = vld [vmem:[%s5570_s9 + $0x8b] sm:$0xff]  ;;  %v268_v56 = vld [vmem:[%s5570_s9 + $0x80] sm:$0xff] }
  0x22   : > { %v269_v57 = vld [vmem:[%s5570_s9 + $0x88] sm:$0xff]  ;;  %v4341_v58 = vld [vmem:[%s5570_s9 + $0x14] sm:$0xff]  ;;  %v4342_v59 = vld [vmem:[%s5570_s9 + $0x1c] sm:$0xff]  ;;  %v291_v60 = vpack.c.bf16 %v267_v53, %v266_v52  ;;  %v1476_v61 = vpack.c.bf16 %v4306_v55, %v4305_v54 }
  0x23   : > { %v292_v62 = vpack.c.bf16 %v269_v57, %v268_v56  ;;  %v1765_v63 = vpack.c.bf16 %v4342_v59, %v4341_v58  ;;  %v270_v0 = vld [vmem:[%s5570_s9 + $0x90] sm:$0xff]  ;;  %v271_v2 = vld [vmem:[%s5570_s9 + $0x98] sm:$0xff]  ;;  %v4343_v4 = vld [vmem:[%s5570_s9 + $0x24] sm:$0xff] }
  0x24   : > { %4734 = vmatmul.mubr.msk.bf16.gmra.mrb[4].mxu1 %vm7930_vm1, %v287_v36  ;;  %4870 = vmatmul.mubr.msk.bf16.gmra.mrb[4].mxu0 %vm7930_vm1, %v1472_v37  ;;  %v4344_v5 = vld [vmem:[%s5570_s9 + $0x2c] sm:$0xff]  ;;  %v272_v6 = vld [vmem:[%s5570_s9 + $0xa0] sm:$0xff]  ;;  %v4345_v8 = vld [vmem:[%s5570_s9 + $0x34] sm:$0xff]  ;;  %v293_v10 = vpack.c.bf16 %v271_v2, %v270_v0 }
  0x25   : > { %4737 = vmatprep.mubr.msk.bf16.mxu1 %vm7930_vm1, %v288_v38  ;;  %4873 = vmatprep.mubr.msk.bf16.mxu0 %vm7930_vm1, %v1473_v39  ;;  %v273_v7 = vld [vmem:[%s5570_s9 + $0xa8] sm:$0xff]  ;;  %v4346_v9 = vld [vmem:[%s5570_s9 + $0x3c] sm:$0xff]  ;;  %v5650_v11 = vpack.c.bf16 %v4344_v5, %v4343_v4  ;;  %v274_v16 = vld [vmem:[%s5570_s9 + $0xb0] sm:$0xff] }
  0x26   : > { %v294_v12 = vpack.c.bf16 %v273_v7, %v272_v6  ;;  %v5652_v13 = vpack.c.bf16 %v4346_v9, %v4345_v8  ;;  %v5660_v15 = vld [vmem:[%s7891_s1 + $0xe] sm:$0x3]  ;;  %v275_v17 = vld [vmem:[%s5570_s9 + $0xb8] sm:$0xff]  ;;  %v4347_v18 = vld [vmem:[%s5570_s9 + $0x44] sm:$0xff] }
  0x27   : > { %v4348_v19 = vld [vmem:[%s5570_s9 + $0x4c] sm:$0xff]  ;;  %v276_v20 = vld [vmem:[%s5570_s9 + $0xc0] sm:$0xff]  ;;  %v4349_v22 = vld [vmem:[%s5570_s9 + $0x54] sm:$0xff]  ;;  %v295_v24 = vpack.c.bf16 %v275_v17, %v274_v16 }
  0x28   : > { %v277_v21 = vld [vmem:[%s5570_s9 + $0xc8] sm:$0xff]  ;;  %v4350_v23 = vld [vmem:[%s5570_s9 + $0x5c] sm:$0xff]  ;;  %v5677_v25 = vpack.c.bf16 %v4348_v19, %v4347_v18  ;;  %v278_v29 = vld [vmem:[%s5570_s9 + $0xd0] sm:$0xff] }
  0x29   : > { %v296_v26 = vpack.c.bf16 %v277_v21, %v276_v20  ;;  %v5679_v28 = vpack.c.bf16 %v4350_v23, %v4349_v22  ;;  %v279_v30 = vld [vmem:[%s5570_s9 + $0xd8] sm:$0xff]  ;;  %v4351_v31 = vld [vmem:[%s5570_s9 + $0x64] sm:$0xff]  ;;  %v4352_v32 = vld [vmem:[%s5570_s9 + $0x6c] sm:$0xff] }
  0x2a   : > { %v280_v33 = vld [vmem:[%s5570_s9 + $0xe0] sm:$0xff]  ;;  %v281_v34 = vld [vmem:[%s5570_s9 + $0xe8] sm:$0xff]  ;;  %v4353_v35 = vld [vmem:[%s5570_s9 + $0x74] sm:$0xff]  ;;  %v297_v37 = vpack.c.bf16 %v279_v30, %v278_v29  ;;  %v5695_v38 = vpack.c.bf16 %v4352_v32, %v4351_v31 }
  0x2b   : > { %v4354_v36 = vld [vmem:[%s5570_s9 + $0x7c] sm:$0xff]  ;;  %v298_v39 = vpack.c.bf16 %v281_v34, %v280_v33  ;;  %v282_v41 = vld [vmem:[%s5570_s9 + $0xf0] sm:$0xff]  ;;  %v4355_v43 = vld [vmem:[%s5570_s9 + $0x84] sm:$0xff] }
  0x2c   : > { %4738 = vmatmul.mubr.msk.bf16.gmra.mrb[8].mxu1 %vm7930_vm1, %v289_v48  ;;  %4874 = vmatmul.mubr.msk.bf16.gmra.mrb[8].mxu0 %vm7930_vm1, %v1474_v49  ;;  %v5697_v40 = vpack.c.bf16 %v4354_v36, %v4353_v35  ;;  %v283_v42 = vld [vmem:[%s5570_s9 + $0xf8] sm:$0xff]  ;;  %v4356_v44 = vld [vmem:[%s5570_s9 + $0x8c] sm:$0xff]  ;;  %v4141_v45 = vld [vmem:[%s5570_s9 + $0x1] sm:$0xff] }
  0x2d   : > { %4741 = vmatprep.mubr.msk.bf16.mxu1 %vm7930_vm1, %v290_v50  ;;  %4877 = vmatprep.mubr.msk.bf16.mxu0 %vm7930_vm1, %v1475_v51  ;;  %v4142_v46 = vld [vmem:[%s5570_s9 + $0x9] sm:$0xff]  ;;  %v4357_v47 = vld [vmem:[%s5570_s9 + $0x94] sm:$0xff]  ;;  %v4358_v48 = vld [vmem:[%s5570_s9 + $0x9c] sm:$0xff]  ;;  %v299_v49 = vpack.c.bf16 %v283_v42, %v282_v41  ;;  %v5713_v50 = vpack.c.bf16 %v4356_v44, %v4355_v43 }
  0x2e   : > { %v581_v51 = vpack.c.bf16 %v4142_v46, %v4141_v45  ;;  %v5715_v52 = vpack.c.bf16 %v4358_v48, %v4357_v47  ;;  %v4143_v53 = vld [vmem:[%s5570_s9 + $0x11] sm:$0xff]  ;;  %v4144_v54 = vld [vmem:[%s5570_s9 + $0x19] sm:$0xff]  ;;  %v4359_v55 = vld [vmem:[%s5570_s9 + $0xa4] sm:$0xff] }
  0x2f   : > { %v4360_v56 = vld [vmem:[%s5570_s9 + $0xac] sm:$0xff]  ;;  %v4145_v57 = vld [vmem:[%s5570_s9 + $0x21] sm:$0xff]  ;;  %v4361_v59 = vld [vmem:[%s5570_s9 + $0xb4] sm:$0xff] }
  0x30   : > { %v4146_v58 = vld [vmem:[%s5570_s9 + $0x29] sm:$0xff]  ;;  %v5741_v4 = vld [vmem:[%s7891_s1 + $0x6] sm:$0x3]  ;;  %v4147_v5 = vld [vmem:[%s5570_s9 + $0x31] sm:$0xff] }
  0x31   : > { %v583_v0 = vpack.c.bf16 %v4146_v58, %v4145_v57  ;;  %v4148_v6 = vld [vmem:[%s5570_s9 + $0x39] sm:$0xff]  ;;  %v4363_v7 = vld [vmem:[%s5570_s9 + $0xc4] sm:$0xff]  ;;  %v4151_v19 = vld [vmem:[%s5570_s9 + $0x51] sm:$0xff] }
  0x32   : > { %v4149_v8 = vld [vmem:[%s5570_s9 + $0x41] sm:$0xff]  ;;  %v4150_v9 = vld [vmem:[%s5570_s9 + $0x49] sm:$0xff]  ;;  %v4152_v20 = vld [vmem:[%s5570_s9 + $0x59] sm:$0xff] }
  0x33   : > { %v585_v17 = vpack.c.bf16 %v4150_v9, %v4149_v8  ;;  %v4367_v21 = vld [vmem:[%s5570_s9 + $0xe4] sm:$0xff]  ;;  %v4368_v22 = vld [vmem:[%s5570_s9 + $0xec] sm:$0xff]  ;;  %v4370_v29 = vld [vmem:[%s5570_s9 + $0xfc] sm:$0xff]  ;;  %v586_v30 = vpack.c.bf16 %v4152_v20, %v4151_v19 }
  0x34   : > { %4742 = vmatmul.mubr.msk.bf16.gmra.mrb[12].mxu1 %vm7930_vm1, %v291_v60  ;;  %4878 = vmatmul.mubr.msk.bf16.gmra.mrb[12].mxu0 %vm7930_vm1, %v1476_v61  ;;  %v4362_v60 = vld [vmem:[%s5570_s9 + $0xbc] sm:$0xff]  ;;  %v582_v61 = vpack.c.bf16 %v4144_v54, %v4143_v53  ;;  %v5776_v31 = vpack.c.bf16 %v4368_v22, %v4367_v21  ;;  %v4155_v34 = vld [vmem:[%s5570_s9 + $0x71] sm:$0xff]  ;;  %v4371_v36 = vld [vmem:[%s5570_s9 + $0x104] sm:$0xff]  ;;  %v2424_v53 = vsel %vm350_vm0, %v5660_v15, 0 }
  0x35   : > { %4745 = vmatprep.mubr.msk.bf16.mxu1 %vm7930_vm1, %v292_v62  ;;  %4899 = vmatprep.mubr.msk.bf16.mxu0 %vm7930_vm1, %v1765_v63  ;;  %v5731_v62 = vpack.c.bf16 %v4360_v56, %v4359_v55  ;;  %v944_v63 = vsel %vm350_vm0, %v5597_v27, 0  ;;  %v5735_v2 = vpack.c.bf16 %v4362_v60, %v4361_v59  ;;  %v4364_v27 = vld [vmem:[%s5570_s9 + $0xcc] sm:$0xff]  ;;  %v4153_v23 = vld [vmem:[%s5570_s9 + $0x61] sm:$0xff]  ;;  %v4156_v35 = vld [vmem:[%s5570_s9 + $0x79] sm:$0xff] }
  0x36   : > { %v5758_v16 = vpack.c.bf16 %v4364_v27, %v4363_v7  ;;  %v4158_v41 = vld [vmem:[%s5570_s9 + $0x89] sm:$0xff]  ;;  %v588_v42 = vpack.c.bf16 %v4156_v35, %v4155_v34  ;;  %v4159_v45 = vld [vmem:[%s5570_s9 + $0x91] sm:$0xff]  ;;  %v4160_v46 = vld [vmem:[%s5570_s9 + $0x99] sm:$0xff] }
  0x37   : > { %v4161_v47 = vld [vmem:[%s5570_s9 + $0xa1] sm:$0xff]  ;;  %v4162_v48 = vld [vmem:[%s5570_s9 + $0xa9] sm:$0xff]  ;;  %v4164_v55 = vld [vmem:[%s5570_s9 + $0xb9] sm:$0xff] }
  0x38   : > { %v5810_v54 = vld [vmem:[%s7891_s1 + $0x10] sm:$0x3]  ;;  %v4169_v59 = vld [vmem:[%s5570_s9 + $0xe1] sm:$0xff] }
  0x39   : > { %v4166_v56 = vld [vmem:[%s5570_s9 + $0xc9] sm:$0xff]  ;;  %v4194_v27 = vld [vmem:[%s5570_s9 + $0x1a] sm:$0xff] }
  0x3a   : > { %v4170_v60 = vld [vmem:[%s5570_s9 + $0xe9] sm:$0xff] }
  0x3b   : > { %v4196_v8 = vld [vmem:[%s5570_s9 + $0x2a] sm:$0xff]  ;;  %v4203_v19 = vld [vmem:[%s5570_s9 + $0x62] sm:$0xff] }
  0x3c   : > { %4746 = vmatmul.mubr.msk.bf16.gmra.mrb[16].mxu1 %vm7930_vm1, %v293_v10  ;;  %4900 = vmatmul.mubr.msk.bf16.vlgmr.msra.gmra.mrb[0].mxu0 %vm7930_vm1, %v5650_v11  ;;  %v4365_v10 = vld [vmem:[%s5570_s9 + $0xd4] sm:$0xff]  ;;  %v4204_v20 = vld [vmem:[%s5570_s9 + $0x6a] sm:$0xff] }
  0x3d   : > { %4749 = vmatprep.mubr.msk.bf16.mxu1 %vm7930_vm1, %v294_v12  ;;  %4932 = vmatpush3.bf16.msra.mxu0 %v2128_v14  ;;  %v4366_v12 = vld [vmem:[%s5570_s9 + $0xdc] sm:$0xff]  ;;  %v584_v14 = vpack.c.bf16 %v4148_v6, %v4147_v5  ;;  %v4192_v5 = vld [vmem:[%s5570_s9 + $0xa] sm:$0xff]  ;;  %v5891_v22 = vpack.c.bf16 %v4204_v20, %v4203_v19 }
  0x3e   : > { %4903 = vmatprep.mubr.msk.bf16.mxu0 %vm7930_vm1, %v5652_v13  ;;  %5331 = vmatprep.subr.msk.bf16.mxu0 %vm350_vm0, %v5660_v15  ;;  %v5760_v18 = vpack.c.bf16 %v4366_v12, %v4365_v10  ;;  %v4165_v15 = vld [vmem:[%s5570_s9 + $0xc1] sm:$0xff]  ;;  %v1240_v10 = vsel %vm350_vm0, %v5741_v4, 0 }
  0x3f   : > { %v593_v58 = vpack.c.bf16 %v4166_v56, %v4165_v15  ;;  %v4447_v15 = vld [vmem:[%s5570_s9 + $0x55] sm:$0xff]  ;;  %v4448_v56 = vld [vmem:[%s5570_s9 + $0x5d] sm:$0xff] }
  0x44   : > { %4750 = vmatmul.mubr.msk.bf16.gmra.mrb[20].mxu1 %vm7930_vm1, %v295_v24  ;;  %4904 = vmatmul.mubr.msk.bf16.gmra.mrb[4].mxu0 %vm7930_vm1, %v5677_v25  ;;  %v4154_v24 = vld [vmem:[%s5570_s9 + $0x69] sm:$0xff] }
  0x45   : > { %4753 = vmatprep.mubr.msk.bf16.mxu1 %vm7930_vm1, %v296_v26  ;;  %4907 = vmatprep.mubr.msk.bf16.mxu0 %vm7930_vm1, %v5679_v28  ;;  %v4369_v26 = vld [vmem:[%s5570_s9 + $0xf4] sm:$0xff]  ;;  %v587_v32 = vpack.c.bf16 %v4154_v24, %v4153_v23 }
  0x46   : > { %v5778_v33 = vpack.c.bf16 %v4370_v29, %v4369_v26  ;;  %v4206_v23 = vld [vmem:[%s5570_s9 + $0x7a] sm:$0xff]  ;;  %v4207_v29 = vld [vmem:[%s5570_s9 + $0x82] sm:$0xff] }
  0x47   : > { %v4421_v24 = vld [vmem:[%s5570_s9 + $0x114] sm:$0xff]  ;;  %v4422_v26 = vld [vmem:[%s5570_s9 + $0x11c] sm:$0xff] }
  0x48   : > { %v2076_v34 = vpack.c.bf16 %v4422_v26, %v4421_v24  ;;  %v4460_v24 = vld [vmem:[%s5570_s9 + $0xbd] sm:$0xff]  ;;  %v4461_v26 = vld [vmem:[%s5570_s9 + $0xc5] sm:$0xff] }
  0x4c   : > { %4754 = vmatmul.mubr.msk.bf16.gmra.mrb[24].mxu1 %vm7930_vm1, %v297_v37  ;;  %4908 = vmatmul.mubr.msk.bf16.gmra.mrb[8].mxu0 %vm7930_vm1, %v5695_v38  ;;  %v4372_v37 = vld [vmem:[%s5570_s9 + $0x10c] sm:$0xff] }
  0x4d   : > { %4757 = vmatprep.mubr.msk.bf16.mxu1 %vm7930_vm1, %v298_v39  ;;  %4911 = vmatprep.mubr.msk.bf16.mxu0 %vm7930_vm1, %v5697_v40  ;;  %v4157_v39 = vld [vmem:[%s5570_s9 + $0x81] sm:$0xff]  ;;  %v5792_v43 = vpack.c.bf16 %v4372_v37, %v4371_v36  ;;  %v4209_v37 = vld [vmem:[%s5570_s9 + $0x92] sm:$0xff] }
  0x4e   : > { %v589_v44 = vpack.c.bf16 %v4158_v41, %v4157_v39  ;;  %v4210_v39 = vld [vmem:[%s5570_s9 + $0x9a] sm:$0xff] }
  0x4f   : > { %v4443_v41 = vld [vmem:[%s5570_s9 + $0x35] sm:$0xff] }
  0x54   : > { %4758 = vmatmul.mubr.msk.bf16.gmra.mrb[28].mxu1 %vm7930_vm1, %v299_v49  ;;  %4912 = vmatmul.mubr.msk.bf16.gmra.mrb[12].mxu0 %vm7930_vm1, %v5713_v50  ;;  %v590_v49 = vpack.c.bf16 %v4160_v46, %v4159_v45  ;;  %v4445_v45 = vld [vmem:[%s5570_s9 + $0x45] sm:$0xff]  ;;  %v4446_v46 = vld [vmem:[%s5570_s9 + $0x4d] sm:$0xff] }
  0x55   : > { %4763 = vmatprep.mubr.msk.bf16.mxu1 %vm7930_vm1, %v581_v51  ;;  %4915 = vmatprep.mubr.msk.bf16.mxu0 %vm7930_vm1, %v5715_v52  ;;  %v591_v51 = vpack.c.bf16 %v4162_v48, %v4161_v47  ;;  %v5927_v47 = vpack.c.bf16 %v4210_v39, %v4209_v37 }
  0x5c   : > { %4764 = vmatmul.mubr.msk.bf16.vlgmr.msra.gmra.mrb[0].mxu1 %vm7930_vm1, %v582_v61  ;;  %4916 = vmatmul.mubr.msk.bf16.gmra.mrb[16].mxu0 %vm7930_vm1, %v5731_v62 }
  0x5d   : > { %4796 = vmatpush3.bf16.msra.mxu1 %v944_v63  ;;  %4767 = vmatprep.mubr.msk.bf16.mxu1 %vm7930_vm1, %v583_v0  ;;  %v595_v63 = vpack.c.bf16 %v4170_v60, %v4169_v59  ;;  %v4172_v0 = vld [vmem:[%s5570_s9 + $0xf9] sm:$0xff]  ;;  %v2360_v59 = vpack.c.bf16 %v4448_v56, %v4447_v15  ;;  %v4499_v15 = vld [vmem:[%s5570_s9 + $0x66] sm:$0xff]  ;;  %v4500_v56 = vld [vmem:[%s5570_s9 + $0x6e] sm:$0xff] }
  0x5e   : > { %4919 = vmatprep.mubr.msk.bf16.mxu0 %vm7930_vm1, %v5735_v2  ;;  %5326 = vmatprep.subr.msk.bf16.mxu1 %vm350_vm0, %v5741_v4  ;;  %v4199_v4 = vld [vmem:[%s5570_s9 + $0x42] sm:$0xff] }
  0x64   : > { %4768 = vmatmul.mubr.msk.bf16.gmra.mrb[4].mxu1 %vm7930_vm1, %v584_v14  ;;  %4920 = vmatmul.mubr.msk.bf16.gmra.mrb[20].mxu0 %vm7930_vm1, %v5758_v16  ;;  %v4200_v14 = vld [vmem:[%s5570_s9 + $0x4a] sm:$0xff] }
  0x65   : > { %4771 = vmatprep.mubr.msk.bf16.mxu1 %vm7930_vm1, %v585_v17  ;;  %4923 = vmatprep.mubr.msk.bf16.mxu0 %vm7930_vm1, %v5760_v18 }
  0x6c   : > { %4772 = vmatmul.mubr.msk.bf16.gmra.mrb[8].mxu1 %vm7930_vm1, %v586_v30  ;;  %4924 = vmatmul.mubr.msk.bf16.gmra.mrb[24].mxu0 %vm7930_vm1, %v5776_v31  ;;  %v4208_v30 = vld [vmem:[%s5570_s9 + $0x8a] sm:$0xff] }
  0x6d   : > { %4775 = vmatprep.mubr.msk.bf16.mxu1 %vm7930_vm1, %v587_v32  ;;  %4927 = vmatprep.mubr.msk.bf16.mxu0 %vm7930_vm1, %v5778_v33  ;;  %v4442_v32 = vld [vmem:[%s5570_s9 + $0x2d] sm:$0xff]  ;;  %v5911_v35 = vpack.c.bf16 %v4208_v30, %v4207_v29 }
  0x6e   : > { %v4462_v29 = vld [vmem:[%s5570_s9 + $0xcd] sm:$0xff] }
  0x74   : > { %4776 = vmatmul.mubr.msk.bf16.gmra.mrb[12].mxu1 %vm7930_vm1, %v588_v42  ;;  %4928 = vmatmul.mubr.msk.bf16.gmra.mrb[28].mxu0 %vm7930_vm1, %v5792_v43  ;;  %v4444_v42 = vld [vmem:[%s5570_s9 + $0x3d] sm:$0xff] }
  0x75   : > { %4779 = vmatprep.mubr.msk.bf16.mxu1 %vm7930_vm1, %v589_v44  ;;  %4933 = vmatprep.mubr.msk.bf16.mxu0 %vm7930_vm1, %v5650_v11  ;;  %v4163_v11 = vld [vmem:[%s5570_s9 + $0xb1] sm:$0xff]  ;;  %v2358_v48 = vpack.c.bf16 %v4444_v42, %v4443_v41 }
  0x76   : > { %v592_v57 = vpack.c.bf16 %v4164_v55, %v4163_v11  ;;  %v4212_v44 = vld [vmem:[%s5570_s9 + $0xaa] sm:$0xff]  ;;  %v4213_v11 = vld [vmem:[%s5570_s9 + $0xb2] sm:$0xff]  ;;  %v4214_v55 = vld [vmem:[%s5570_s9 + $0xba] sm:$0xff] }
  0x77   : > { %v4470_v41 = vld [vmem:[%s5570_s9 + $0x10d] sm:$0xff] }
  0x7c   : > { %4780 = vmatmul.mubr.msk.bf16.gmra.mrb[16].mxu1 %vm7930_vm1, %v590_v49  ;;  %4934 = vmatmul.mubr.msk.bf16.vlgmr.msra.gmra.mrb[0].mxu0 %vm7930_vm1, %v5652_v13  ;;  %v4167_v13 = vld [vmem:[%s5570_s9 + $0xd1] sm:$0xff] }
  0x7d   : > { %4783 = vmatprep.mubr.msk.bf16.mxu1 %vm7930_vm1, %v591_v51  ;;  %4966 = vmatpush3.bf16.msra.mxu0 %v2424_v53  ;;  %v2359_v51 = vpack.c.bf16 %v4446_v46, %v4445_v45  ;;  %v2720_v53 = vsel %vm350_vm0, %v5810_v54, 0  ;;  %v4492_v45 = vld [vmem:[%s5570_s9 + $0x2e] sm:$0xff] }
  0x7e   : > { %4937 = vmatprep.mubr.msk.bf16.mxu0 %vm7930_vm1, %v5677_v25  ;;  %5332 = vmatprep.subr.msk.bf16.mxu0 %vm350_vm0, %v5810_v54  ;;  %v4168_v25 = vld [vmem:[%s5570_s9 + $0xd9] sm:$0xff]  ;;  %v4215_v54 = vld [vmem:[%s5570_s9 + $0xc2] sm:$0xff] }
  0x7f   : > { %v594_v61 = vpack.c.bf16 %v4168_v25, %v4167_v13  ;;  %v4450_v13 = vld [vmem:[%s5570_s9 + $0x6d] sm:$0xff]  ;;  %v5947_v25 = vpack.c.bf16 %v4214_v55, %v4213_v11 }
  0x84   : > { %4784 = vmatmul.mubr.msk.bf16.gmra.mrb[20].mxu1 %vm7930_vm1, %v592_v57  ;;  %4938 = vmatmul.mubr.msk.bf16.gmra.mrb[4].mxu0 %vm7930_vm1, %v5679_v28  ;;  %v4171_v28 = vld [vmem:[%s5570_s9 + $0xf1] sm:$0xff] }
  0x85   : > { %4787 = vmatprep.mubr.msk.bf16.mxu1 %vm7930_vm1, %v593_v58  ;;  %4941 = vmatprep.mubr.msk.bf16.mxu0 %vm7930_vm1, %v5695_v38  ;;  %v4191_v38 = vld [vmem:[%s5570_s9 + $0x2] sm:$0xff]  ;;  %v596_v6 = vpack.c.bf16 %v4172_v0, %v4171_v28  ;;  %v4216_v57 = vld [vmem:[%s5570_s9 + $0xca] sm:$0xff]  ;;  %v4218_v28 = vld [vmem:[%s5570_s9 + $0xda] sm:$0xff] }
  0x86   : > { %v877_v7 = vpack.c.bf16 %v4192_v5, %v4191_v38  ;;  %v4449_v58 = vld [vmem:[%s5570_s9 + $0x65] sm:$0xff]  ;;  %v5949_v60 = vpack.c.bf16 %v4216_v57, %v4215_v54  ;;  %v4451_v0 = vld [vmem:[%s5570_s9 + $0x75] sm:$0xff]  ;;  %v4452_v38 = vld [vmem:[%s5570_s9 + $0x7d] sm:$0xff]  ;;  %v2657_v57 = vpack.c.bf16 %v4500_v56, %v4499_v15  ;;  %v2915_v15 = vlaneseq }
  0x87   : > { %v4219_v5 = vld [vmem:[%s5570_s9 + $0xe2] sm:$0xff] }
  0x88   : > { %v6114_v56 = vshrl.u32 %v2915_v15, 7 }
  0x8c   : > { %4788 = vmatmul.mubr.msk.bf16.gmra.mrb[24].mxu1 %vm7930_vm1, %v594_v61  ;;  %4942 = vmatmul.mubr.msk.bf16.gmra.mrb[8].mxu0 %vm7930_vm1, %v5697_v40  ;;  %v4193_v40 = vld [vmem:[%s5570_s9 + $0x12] sm:$0xff]  ;;  %v2361_v61 = vpack.c.bf16 %v4450_v13, %v4449_v58  ;;  %v4502_v58 = vld [vmem:[%s5570_s9 + $0x7e] sm:$0xff]  ;;  %v4503_v13 = vld [vmem:[%s5570_s9 + $0x86] sm:$0xff] }
  0x8d   : > { %4791 = vmatprep.mubr.msk.bf16.mxu1 %vm7930_vm1, %v595_v63  ;;  %4945 = vmatprep.mubr.msk.bf16.mxu0 %vm7930_vm1, %v5713_v50  ;;  %v4195_v50 = vld [vmem:[%s5570_s9 + $0x22] sm:$0xff]  ;;  %v5853_v9 = vpack.c.bf16 %v4194_v27, %v4193_v40  ;;  %v4217_v63 = vld [vmem:[%s5570_s9 + $0xd2] sm:$0xff] }
  0x8e   : > { %v5857_v12 = vpack.c.bf16 %v4196_v8, %v4195_v50  ;;  %v4454_v40 = vld [vmem:[%s5570_s9 + $0x8d] sm:$0xff]  ;;  %v5965_v27 = vpack.c.bf16 %v4218_v28, %v4217_v63  ;;  %v2362_v50 = vpack.c.bf16 %v4452_v38, %v4451_v0  ;;  %v4505_v28 = vld [vmem:[%s5570_s9 + $0x96] sm:$0xff]  ;;  %v4506_v0 = vld [vmem:[%s5570_s9 + $0x9e] sm:$0xff] }
  0x8f   : > { %v4272_v63 = vld [vmem:[%s5570_s9 + $0x10a] sm:$0xff]  ;;  %v4307_v38 = vld [vmem:[%s5570_s9 + $0x93] sm:$0xff] }
  0x94   : > { %4792 = vmatmul.mubr.msk.bf16.gmra.mrb[28].mxu1 %vm7930_vm1, %v596_v6  ;;  %4946 = vmatmul.mubr.msk.bf16.gmra.mrb[12].mxu0 %vm7930_vm1, %v5715_v52  ;;  %v4197_v52 = vld [vmem:[%s5570_s9 + $0x32] sm:$0xff]  ;;  %v4220_v6 = vld [vmem:[%s5570_s9 + $0xea] sm:$0xff] }
  0x95   : > { %4797 = vmatprep.mubr.msk.bf16.mxu1 %vm7930_vm1, %v877_v7  ;;  %4949 = vmatprep.mubr.msk.bf16.mxu0 %vm7930_vm1, %v5731_v62  ;;  %v4198_v62 = vld [vmem:[%s5570_s9 + $0x3a] sm:$0xff]  ;;  %v4453_v7 = vld [vmem:[%s5570_s9 + $0x85] sm:$0xff]  ;;  %v5967_v8 = vpack.c.bf16 %v4220_v6, %v4219_v5 }
  0x96   : > { %v5873_v17 = vpack.c.bf16 %v4198_v62, %v4197_v52  ;;  %v4221_v52 = vld [vmem:[%s5570_s9 + $0xf2] sm:$0xff]  ;;  %v4222_v62 = vld [vmem:[%s5570_s9 + $0xfa] sm:$0xff]  ;;  %v4507_v6 = vld [vmem:[%s5570_s9 + $0xa6] sm:$0xff] }
  0x97   : > { %v5981_v19 = vpack.c.bf16 %v4222_v62, %v4221_v52  ;;  %v4308_v5 = vld [vmem:[%s5570_s9 + $0x9b] sm:$0xff]  ;;  %v4310_v52 = vld [vmem:[%s5570_s9 + $0xab] sm:$0xff] }
  0x98   : > { %v4509_v62 = vld [vmem:[%s5570_s9 + $0xb6] sm:$0xff] }
  0x9c   : > { %4798 = vmatmul.mubr.msk.bf16.vlgmr.msra.gmra.mrb[0].mxu1 %vm7930_vm1, %v5853_v9  ;;  %4950 = vmatmul.mubr.msk.bf16.gmra.mrb[16].mxu0 %vm7930_vm1, %v5735_v2  ;;  %v5875_v2 = vpack.c.bf16 %v4200_v14, %v4199_v4  ;;  %v4455_v4 = vld [vmem:[%s5570_s9 + $0x95] sm:$0xff]  ;;  %v4456_v14 = vld [vmem:[%s5570_s9 + $0x9d] sm:$0xff] }
  0x9d   : > { %4830 = vmatpush3.bf16.msra.mxu1 %v1240_v10  ;;  %4801 = vmatprep.mubr.msk.bf16.mxu1 %vm7930_vm1, %v5857_v12  ;;  %v2363_v10 = vpack.c.bf16 %v4454_v40, %v4453_v7  ;;  %v2364_v20 = vpack.c.bf16 %v4456_v14, %v4455_v4  ;;  %v4508_v7 = vld [vmem:[%s5570_s9 + $0xae] sm:$0xff]  ;;  %v4510_v4 = vld [vmem:[%s5570_s9 + $0xbe] sm:$0xff] }
  0x9e   : > { %4953 = vmatprep.mubr.msk.bf16.mxu0 %vm7930_vm1, %v5758_v16  ;;  %5328 = vmatprep.subr.msk.bf16.mxu1 %vm350_vm0, %v5542_v1  ;;  %v4201_v16 = vld [vmem:[%s5570_s9 + $0x52] sm:$0xff]  ;;  %v4202_v1 = vld [vmem:[%s5570_s9 + $0x5a] sm:$0xff] }
  0x9f   : > { %v5889_v21 = vpack.c.bf16 %v4202_v1, %v4201_v16  ;;  %v4457_v16 = vld [vmem:[%s5570_s9 + $0xa5] sm:$0xff]  ;;  %v4458_v1 = vld [vmem:[%s5570_s9 + $0xad] sm:$0xff] }
  0xa0   : > { %v4311_v14 = vld [vmem:[%s5570_s9 + $0xb3] sm:$0xff] }
  0xa4   : > { %4802 = vmatmul.mubr.msk.bf16.gmra.mrb[4].mxu1 %vm7930_vm1, %v5873_v17  ;;  %4954 = vmatmul.mubr.msk.bf16.gmra.mrb[20].mxu0 %vm7930_vm1, %v5760_v18  ;;  %v4205_v18 = vld [vmem:[%s5570_s9 + $0x72] sm:$0xff] }
  0xa5   : > { %4805 = vmatprep.mubr.msk.bf16.mxu1 %vm7930_vm1, %v5875_v2  ;;  %4957 = vmatprep.mubr.msk.bf16.mxu0 %vm7930_vm1, %v5776_v31  ;;  %v4441_v31 = vld [vmem:[%s5570_s9 + $0x25] sm:$0xff] }
  0xa6   : > { %v2357_v36 = vpack.c.bf16 %v4442_v32, %v4441_v31  ;;  %v2367_v31 = vpack.c.bf16 %v4462_v29, %v4461_v26  ;;  %v4464_v32 = vld [vmem:[%s5570_s9 + $0xdd] sm:$0xff]  ;;  %v4314_v29 = vld [vmem:[%s5570_s9 + $0xcb] sm:$0xff] }
  0xa7   : > { %v4313_v26 = vld [vmem:[%s5570_s9 + $0xc3] sm:$0xff] }
  0xac   : > { %4806 = vmatmul.mubr.msk.bf16.gmra.mrb[8].mxu1 %vm7930_vm1, %v5889_v21  ;;  %4958 = vmatmul.mubr.msk.bf16.gmra.mrb[24].mxu0 %vm7930_vm1, %v5778_v33  ;;  %v5909_v33 = vpack.c.bf16 %v4206_v23, %v4205_v18  ;;  %v2365_v18 = vpack.c.bf16 %v4458_v1, %v4457_v16  ;;  %v4459_v23 = vld [vmem:[%s5570_s9 + $0xb5] sm:$0xff]  ;;  %v4511_v1 = vld [vmem:[%s5570_s9 + $0xc6] sm:$0xff] }
  0xad   : > { %4809 = vmatprep.mubr.msk.bf16.mxu1 %vm7930_vm1, %v5891_v22  ;;  %4961 = vmatprep.mubr.msk.bf16.mxu0 %vm7930_vm1, %v5792_v43  ;;  %v4211_v43 = vld [vmem:[%s5570_s9 + $0xa2] sm:$0xff]  ;;  %v2366_v30 = vpack.c.bf16 %v4460_v24, %v4459_v23 }
  0xae   : > { %v5929_v49 = vpack.c.bf16 %v4212_v44, %v4211_v43  ;;  %v4491_v44 = vld [vmem:[%s5570_s9 + $0x26] sm:$0xff]  ;;  %v4312_v16 = vld [vmem:[%s5570_s9 + $0xbb] sm:$0xff] }
  0xaf   : > { %v1479_v23 = vpack.c.bf16 %v4312_v16, %v4311_v14 }
  0xb4   : > { %4810 = vmatmul.mubr.msk.bf16.gmra.mrb[12].mxu1 %vm7930_vm1, %v5909_v33  ;;  %4962 = vmatmul.mubr.msk.bf16.gmra.mrb[28].mxu0 %vm7930_vm1, %v2076_v34  ;;  %v4465_v34 = vld [vmem:[%s5570_s9 + $0xe5] sm:$0xff] }
  0xb5   : > { %4813 = vmatprep.mubr.msk.bf16.mxu1 %vm7930_vm1, %v5911_v35  ;;  %4967 = vmatprep.mubr.msk.bf16.mxu0 %vm7930_vm1, %v2357_v36  ;;  %v4466_v36 = vld [vmem:[%s5570_s9 + $0xed] sm:$0xff] }
  0xb6   : > { %v2369_v39 = vpack.c.bf16 %v4466_v36, %v4465_v34  ;;  %v4515_v34 = vld [vmem:[%s5570_s9 + $0xe6] sm:$0xff]  ;;  %v4516_v36 = vld [vmem:[%s5570_s9 + $0xee] sm:$0xff] }
  0xbc   : > { %4814 = vmatmul.mubr.msk.bf16.gmra.mrb[16].mxu1 %vm7930_vm1, %v5927_v47  ;;  %4968 = vmatmul.mubr.msk.bf16.vlgmr.msra.gmra.mrb[0].mxu0 %vm7930_vm1, %v2358_v48  ;;  %v2653_v48 = vpack.c.bf16 %v4492_v45, %v4491_v44  ;;  %v4519_v44 = vld [vmem:[%s5570_s9 + $0x106] sm:$0xff]  ;;  %v4520_v45 = vld [vmem:[%s5570_s9 + $0x10e] sm:$0xff] }
  0xbd   : > { %4817 = vmatprep.mubr.msk.bf16.mxu1 %vm7930_vm1, %v5929_v49  ;;  %5000 = vmatpush3.bf16.msra.mxu0 %v2720_v53  ;;  %v4496_v53 = vld [vmem:[%s5570_s9 + $0x4e] sm:$0xff] }
  0xbe   : > { %4971 = vmatprep.mubr.msk.bf16.mxu0 %vm7930_vm1, %v2359_v51  ;;  %v4495_v51 = vld [vmem:[%s5570_s9 + $0x46] sm:$0xff] }
  0xbf   : > { %v2655_v55 = vpack.c.bf16 %v4496_v53, %v4495_v51  ;;  %v4321_v51 = vld [vmem:[%s5570_s9 + $0x103] sm:$0xff]  ;;  %v4322_v53 = vld [vmem:[%s5570_s9 + $0x10b] sm:$0xff] }
  0xc4   : > { %4818 = vmatmul.mubr.msk.bf16.gmra.mrb[20].mxu1 %vm7930_vm1, %v5947_v25  ;;  %4972 = vmatmul.mubr.msk.bf16.gmra.mrb[4].mxu0 %vm7930_vm1, %v2360_v59 }
  0xc5   : > { %4821 = vmatprep.mubr.msk.bf16.mxu1 %vm7930_vm1, %v5949_v60  ;;  %4975 = vmatprep.mubr.msk.bf16.mxu0 %vm7930_vm1, %v2361_v61 }
  0xcc   : > { %4822 = vmatmul.mubr.msk.bf16.gmra.mrb[24].mxu1 %vm7930_vm1, %v5965_v27  ;;  %4976 = vmatmul.mubr.msk.bf16.gmra.mrb[8].mxu0 %vm7930_vm1, %v2362_v50  ;;  %v1477_v50 = vpack.c.bf16 %v4308_v5, %v4307_v38 }
  0xcd   : > { %4825 = vmatprep.mubr.msk.bf16.mxu1 %vm7930_vm1, %v5967_v8  ;;  %4979 = vmatprep.mubr.msk.bf16.mxu0 %vm7930_vm1, %v2363_v10  ;;  %v4309_v10 = vld [vmem:[%s5570_s9 + $0xa3] sm:$0xff] }
  0xd4   : > { %4826 = vmatmul.mubr.msk.bf16.gmra.mrb[28].mxu1 %vm7930_vm1, %v5981_v19  ;;  %4980 = vmatmul.mubr.msk.bf16.gmra.mrb[12].mxu0 %vm7930_vm1, %v2364_v20  ;;  %v1478_v20 = vpack.c.bf16 %v4310_v52, %v4309_v10 }
  0xd5   : > { %4831 = vmatprep.mubr.msk.bf16.mxu1 %vm7930_vm1, %v5853_v9  ;;  %4983 = vmatprep.mubr.msk.bf16.mxu0 %vm7930_vm1, %v2365_v18  ;;  %v4463_v9 = vld [vmem:[%s5570_s9 + $0xd5] sm:$0xff]  ;;  %v2662_v18 = vpack.c.bf16 %v4510_v4, %v4509_v62 }
  0xd6   : > { %v2368_v37 = vpack.c.bf16 %v4464_v32, %v4463_v9  ;;  %v4315_v9 = vld [vmem:[%s5570_s9 + $0xd3] sm:$0xff]  ;;  %v4316_v32 = vld [vmem:[%s5570_s9 + $0xdb] sm:$0xff] }
  0xdc   : > { %4832 = vmatmul.mubr.msk.bf16.vlgmr.msra.gmra.mrb[0].mxu1 %vm7930_vm1, %v5857_v12  ;;  %4984 = vmatmul.mubr.msk.bf16.gmra.mrb[16].mxu0 %vm7930_vm1, %v2366_v30  ;;  %v4468_v12 = vld [vmem:[%s5570_s9 + $0xfd] sm:$0xff] }
  0xdd   : > { %5034 = vmatpush3.bf16.msra.mxu1 %v5550_v3  ;;  %4835 = vmatprep.mubr.msk.bf16.mxu1 %vm7930_vm1, %v5873_v17  ;;  %v4467_v3 = vld [vmem:[%s5570_s9 + $0xf5] sm:$0xff]  ;;  %v4469_v17 = vld [vmem:[%s5570_s9 + $0x105] sm:$0xff] }
  0xde   : > { %4987 = vmatprep.mubr.msk.bf16.mxu0 %vm7930_vm1, %v2367_v31  ;;  %v2370_v42 = vpack.c.bf16 %v4468_v12, %v4467_v3  ;;  %v2371_v43 = vpack.c.bf16 %v4470_v41, %v4469_v17  ;;  %v4513_v30 = vld [vmem:[%s5570_s9 + $0xd6] sm:$0xff]  ;;  %v4514_v31 = vld [vmem:[%s5570_s9 + $0xde] sm:$0xff]  ;;  %v1481_v3 = vpack.c.bf16 %v4316_v32, %v4315_v9  ;;  %v2665_v12 = vpack.c.bf16 %v4516_v36, %v4515_v34  ;;  %v4318_v41 = vld [vmem:[%s5570_s9 + $0xeb] sm:$0xff] }
  0xdf   : > { %v4317_v17 = vld [vmem:[%s5570_s9 + $0xe3] sm:$0xff] }
  0xe4   : > { %4836 = vmatmul.mubr.msk.bf16.gmra.mrb[4].mxu1 %vm7930_vm1, %v5875_v2  ;;  %4988 = vmatmul.mubr.msk.bf16.gmra.mrb[20].mxu0 %vm7930_vm1, %v2368_v37  ;;  %v4471_v2 = vld [vmem:[%s5570_s9 + $0x115] sm:$0xff]  ;;  %v1480_v37 = vpack.c.bf16 %v4314_v29, %v4313_v26  ;;  %v2923_v26 = vadd.s32 56, %v6114_v56  ;;  %v2921_v29 = vadd.s32 40, %v6114_v56 }
  0xe5   : > { %4839 = vmatprep.mubr.msk.bf16.mxu1 %vm7930_vm1, %v5889_v21  ;;  %4991 = vmatprep.mubr.msk.bf16.mxu0 %vm7930_vm1, %v2369_v39  ;;  %v4472_v21 = vld [vmem:[%s5570_s9 + $0x11d] sm:$0xff]  ;;  %v2664_v39 = vpack.c.bf16 %v4514_v31, %v4513_v30 }
  0xe6   : > { %v2372_v46 = vpack.c.bf16 %v4472_v21, %v4471_v2  ;;  %v4319_v2 = vld [vmem:[%s5570_s9 + $0xf3] sm:$0xff]  ;;  %v4320_v21 = vld [vmem:[%s5570_s9 + $0xfb] sm:$0xff] }
  0xec   : > { %4840 = vmatmul.mubr.msk.bf16.gmra.mrb[8].mxu1 %vm7930_vm1, %v5891_v22  ;;  %4992 = vmatmul.mubr.msk.bf16.gmra.mrb[24].mxu0 %vm7930_vm1, %v2370_v42  ;;  %v4493_v22 = vld [vmem:[%s5570_s9 + $0x36] sm:$0xff] }
  0xed   : > { %4843 = vmatprep.mubr.msk.bf16.mxu1 %vm7930_vm1, %v5909_v33  ;;  %4995 = vmatprep.mubr.msk.bf16.mxu0 %vm7930_vm1, %v2371_v43  ;;  %v4494_v33 = vld [vmem:[%s5570_s9 + $0x3e] sm:$0xff]  ;;  %v4517_v42 = vld [vmem:[%s5570_s9 + $0xf6] sm:$0xff] }
  0xee   : > { %v2654_v11 = vpack.c.bf16 %v4494_v33, %v4493_v22  ;;  %v4518_v43 = vld [vmem:[%s5570_s9 + $0xfe] sm:$0xff]  ;;  %v1483_v22 = vpack.c.bf16 %v4320_v21, %v4319_v2  ;;  %v2667_v33 = vpack.c.bf16 %v4520_v45, %v4519_v44 }
  0xf4   : > { %4844 = vmatmul.mubr.msk.bf16.gmra.mrb[12].mxu1 %vm7930_vm1, %v5911_v35  ;;  %4996 = vmatmul.mubr.msk.bf16.gmra.mrb[28].mxu0 %vm7930_vm1, %v2372_v46  ;;  %v4497_v35 = vld [vmem:[%s5570_s9 + $0x56] sm:$0xff]  ;;  %v1482_v46 = vpack.c.bf16 %v4318_v41, %v4317_v17 }
  0xf5   : > { %4847 = vmatprep.mubr.msk.bf16.mxu1 %vm7930_vm1, %v5927_v47  ;;  %5001 = vmatprep.mubr.msk.bf16.mxu0 %vm7930_vm1, %v2653_v48  ;;  %v4498_v47 = vld [vmem:[%s5570_s9 + $0x5e] sm:$0xff]  ;;  %v2666_v48 = vpack.c.bf16 %v4518_v43, %v4517_v42  ;;  %v2924_v43 = vadd.s32 64, %v6114_v56 }
  0xf6   : > { %v2656_v54 = vpack.c.bf16 %v4498_v47, %v4497_v35  ;;  %v1484_v35 = vpack.c.bf16 %v4322_v53, %v4321_v51 }
  0xfc   : > { %4848 = vmatmul.mubr.msk.bf16.gmra.mrb[16].mxu1 %vm7930_vm1, %v5929_v49  ;;  %5002 = vmatmul.mubr.msk.bf16.vlgmr.msra.gmra.mrb[0].mxu0 %vm7930_vm1, %v2654_v11  ;;  %v4501_v49 = vld [vmem:[%s5570_s9 + $0x76] sm:$0xff] }
  0xfd   : > { %4851 = vmatprep.mubr.msk.bf16.mxu1 %vm7930_vm1, %v5947_v25  ;;  %5005 = vmatprep.mubr.msk.bf16.mxu0 %vm7930_vm1, %v2655_v55  ;;  %v4504_v25 = vld [vmem:[%s5570_s9 + $0x8e] sm:$0xff]  ;;  %v2658_v59 = vpack.c.bf16 %v4502_v58, %v4501_v49  ;;  %v4521_v11 = vld [vmem:[%s5570_s9 + $0x116] sm:$0xff]  ;;  %v4522_v55 = vld [vmem:[%s5570_s9 + $0x11e] sm:$0xff] }
  0xfe   : > { %v2659_v61 = vpack.c.bf16 %v4504_v25, %v4503_v13  ;;  %v2668_v47 = vpack.c.bf16 %v4522_v55, %v4521_v11  ;;  %v2919_v13 = vadd.s32 24, %v6114_v56  ;;  %v2917_v25 = vadd.s32 8, %v6114_v56 }
 0x104   : > { %4852 = vmatmul.mubr.msk.bf16.gmra.mrb[20].mxu1 %vm7930_vm1, %v5949_v60  ;;  %5006 = vmatmul.mubr.msk.bf16.gmra.mrb[4].mxu0 %vm7930_vm1, %v2656_v54  ;;  %v4271_v60 = vld [vmem:[%s5570_s9 + $0x102] sm:$0xff]  ;;  %v2918_v54 = vadd.s32 16, %v6114_v56 }
 0x105   : > { %4855 = vmatprep.mubr.msk.bf16.mxu1 %vm7930_vm1, %v5965_v27  ;;  %5009 = vmatprep.mubr.msk.bf16.mxu0 %vm7930_vm1, %v2657_v57  ;;  %v1188_v40 = vpack.c.bf16 %v4272_v63, %v4271_v60  ;;  %v2660_v27 = vpack.c.bf16 %v4506_v0, %v4505_v28  ;;  %v6119_v57 = vstv %s4122_s5  ;;  %s4118_s5 = sshll.u32 %s8316_s16, 6 }
 0x106   : > { %v6122_v49 = vadd.s32 %v6119_v57, %v2918_v54  ;;  %v6126_v58 = vadd.s32 %v6119_v57, %v6114_v56  ;;  %v6133_v60 = vadd.s32 %v6119_v57, %v2919_v13  ;;  %v6136_v63 = vadd.s32 %v6119_v57, %v2917_v25  ;;  %s6880_s6 = sadd.s32 %s4118_s5, %s8318_s27 }
 0x107   : > { %v6175_v34 = vadd.s32 %v6119_v57, %v2923_v26  ;;  %v6178_v36 = vadd.s32 %v6119_v57, %v2921_v29  ;;  %v6197_v53 = vadd.s32 %v6119_v57, %v2924_v43  ;;  %s4119_s7 = sshll.u32 %s6880_s6, 3 }
 0x108   : > { %v3015_v38 = vsub.s32 0, %v6133_v60  ;;  %v2993_v5 = vsub.s32 0, %v6136_v63  ;;  %vm3003_vm2 = vcmp.lt.s32.totalorder %v6122_v49, 0  ;;  %vm2981_vm3 = vcmp.lt.s32.totalorder %v6126_v58, 0  ;;  %s7001_s10 = scalar_lea.vmem %s7893_s3, %s4119_s7 }
 0x109   : > { %v3059_v44 = vsub.s32 0, %v6175_v34  ;;  %v3037_v45 = vsub.s32 0, %v6178_v36  ;;  %7945 = vst [vmem:[#allocation2_spill] sm:$0xff] %v6197_v53  ;;  %vm3014_vm7 = vcmp.lt.s32.totalorder %v6133_v60, 0  ;;  %vm2992_vm9 = vcmp.lt.s32.totalorder %v6136_v63, 0 }
 0x10a   : > { %v4543_v10 = vmin.u32 %v3015_v38, %v6133_v60  ;;  %v4541_v62 = vmin.u32 %v2993_v5, %v6136_v63  ;;  %v2927_v38 = vadd.s32 88, %v6114_v56 }
 0x10b   : > { %v6202_v11 = vmin.u32 %v3059_v44, %v6175_v34  ;;  %v6205_v55 = vmin.u32 %v3037_v45, %v6178_v36 }
 0x10c   : > { %4856 = vmatmul.mubr.msk.bf16.gmra.mrb[24].mxu1 %vm7930_vm1, %v5967_v8  ;;  %5010 = vmatmul.mubr.msk.bf16.gmra.mrb[8].mxu0 %vm7930_vm1, %v2658_v59  ;;  %v2661_v8 = vpack.c.bf16 %v4508_v7, %v4507_v6  ;;  %v3004_v59 = vsub.s32 0, %v6122_v49  ;;  %v2922_v6 = vadd.s32 48, %v6114_v56 }
 0x10d   : > { %4859 = vmatprep.mubr.msk.bf16.mxu1 %vm7930_vm1, %v5981_v19  ;;  %5013 = vmatprep.mubr.msk.bf16.mxu0 %vm7930_vm1, %v2659_v61  ;;  %v4512_v19 = vld [vmem:[%s5570_s9 + $0xce] sm:$0xff]  ;;  %v2982_v61 = vsub.s32 0, %v6126_v58  ;;  %v6158_v14 = vmul.u32.u64.low 3817748708, %v4543_v10  ;;  %v6159_v16 = vmul.u32.u64.high 3817748708, %v4543_v10, %v6158_v14 }
 0x10e   : > { %v2663_v24 = vpack.c.bf16 %v4512_v19, %v4511_v1  ;;  %v4542_v28 = vmin.u32 %v3004_v59, %v6122_v49  ;;  %v6152_v52 = vadd.s32 %v6119_v57, %v2922_v6  ;;  %v3070_v59 = vsub.s32 0, %v6197_v53 }
 0x10f   : > { %v4540_v0 = vmin.u32 %v2982_v61, %v6126_v58  ;;  %v6217_v5 = vmul.u32.u64.low 3817748708, %v6205_v55  ;;  %v6218_v6 = vmul.u32.u64.high 3817748708, %v6205_v55, %v6217_v5 }
 0x110   : > { %v3048_v1 = vsub.s32 0, %v6152_v52  ;;  %vm3047_vm15 = vcmp.lt.s32.totalorder %v6152_v52, 0 }
 0x112   : > { %v4546_v30 = vmin.u32 %v3048_v1, %v6152_v52  ;;  %v2925_v1 = vadd.s32 72, %v6114_v56 }
 0x114   : > { %4860 = vmatmul.mubr.msk.bf16.gmra.mrb[28].mxu1 %vm7930_vm1, %v1188_v40  ;;  %5014 = vmatmul.mubr.msk.bf16.gmra.mrb[12].mxu0 %vm7930_vm1, %v2660_v27  ;;  %v6143_v7 = vmul.u32.u64.low 3817748708, %v4542_v28  ;;  %v6144_v40 = vmul.u32.u64.high 3817748708, %v4542_v28, %v6143_v7 }
 0x115   : > { %4881 = vmatprep.mubr.msk.bf16.mxu1 %vm7930_vm1, %v1477_v50  ;;  %5017 = vmatprep.mubr.msk.bf16.mxu0 %vm7930_vm1, %v2661_v8  ;;  %v6146_v27 = vmul.u32.u64.low 3817748708, %v4540_v0  ;;  %v6147_v50 = vmul.u32.u64.high 3817748708, %v4540_v0, %v6146_v27  ;;  %v2920_v8 = vadd.s32 32, %v6114_v56 }
 0x116   : > { %v3009_v19 = vshrl.u32 %v6144_v40, 4 }
 0x117   : > { %v6156_v4 = vadd.s32 %v6119_v57, %v2920_v8 }
 0x118   : > { %v3010_v31 = vmul.u32 18, %v3009_v19 }
 0x11a   : > { %v3011_v17 = vsub.s32 %v4542_v28, %v3010_v31 }
 0x11c   : > { %4882 = vmatmul.mubr.msk.bf16.vlgmr.msra.gmra.mrb[16].mxu1 %vm7930_vm1, %v1478_v20  ;;  %5018 = vmatmul.mubr.msk.bf16.gmra.mrb[16].mxu0 %vm7930_vm1, %v2662_v18  ;;  %v2987_v20 = vshrl.u32 %v6147_v50, 4  ;;  %v6225_v50 = vmin.u32 %v3070_v59, %v6197_v53 }
 0x11d   : > { %4885 = vmatprep.mubr.msk.bf16.mxu1 %vm7930_vm1, %v1479_v23  ;;  %5021 = vmatprep.mubr.msk.bf16.mxu0 %vm7930_vm1, %v2663_v24  ;;  %v6164_v18 = vmul.u32.u64.low 3817748708, %v4541_v62  ;;  %v6165_v23 = vmul.u32.u64.high 3817748708, %v4541_v62, %v6164_v18  ;;  %v3026_v24 = vsub.s32 0, %v6156_v4 }
 0x11e   : > { %v2988_v9 = vmul.u32 18, %v2987_v20  ;;  %v6240_v26 = vmul.u32.u64.low 3817748708, %v6225_v50  ;;  %v6241_v29 = vmul.u32.u64.high 3817748708, %v6225_v50, %v6240_v26 }
 0x11f   : > { %v6172_v32 = vmin.u32 %v3026_v24, %v6156_v4  ;;  %v2998_v42 = vshrl.u32 %v6165_v23, 4  ;;  %v2930_v23 = vadd.s32 112, %v6114_v56 }
 0x120   : > { %v2989_v41 = vsub.s32 %v4540_v0, %v2988_v9  ;;  %v6212_v28 = vmul.u32.u64.low 3817748708, %v6202_v11  ;;  %v6213_v0 = vmul.u32.u64.high 3817748708, %v6202_v11, %v6212_v28 }
 0x121   : > { %v6188_v2 = vmul.u32.u64.low 3817748708, %v6172_v32  ;;  %v6189_v21 = vmul.u32.u64.high 3817748708, %v6172_v32, %v6188_v2  ;;  %v2999_v51 = vmul.u32 18, %v2998_v42  ;;  %v2928_v42 = vadd.s32 96, %v6114_v56 }
 0x123   : > { %v3000_v25 = vsub.s32 %v4541_v62, %v2999_v51  ;;  %v3031_v61 = vshrl.u32 %v6189_v21, 4  ;;  %v6228_v62 = vadd.s32 %v6119_v57, %v2927_v38 }
 0x124   : > { %4886 = vmatmul.mubr.msk.bf16.gmra.mrb[20].mxu1 %vm7930_vm1, %v1480_v37  ;;  %5022 = vmatmul.mubr.msk.bf16.gmra.mrb[20].mxu0 %vm7930_vm1, %v2664_v39  ;;  %v2926_v37 = vadd.s32 80, %v6114_v56  ;;  %v3020_v39 = vshrl.u32 %v6159_v16, 4 }
 0x125   : > { %4889 = vmatprep.mubr.msk.bf16.mxu1 %vm7930_vm1, %v1481_v3  ;;  %5025 = vmatprep.mubr.msk.bf16.mxu0 %vm7930_vm1, %v2665_v12  ;;  %v6182_v3 = vmul.u32.u64.low 3817748708, %v4546_v30  ;;  %v6183_v12 = vmul.u32.u64.high 3817748708, %v4546_v30, %v6182_v3  ;;  %v3001_v8 = vsub.s32 0, %v3000_v25  ;;  %7946 = vst [vmem:[#allocation3_spill] sm:$0xff] %v6228_v62 }
 0x126   : > { %v6252_v3 = vadd.s32 %v6119_v57, %v2925_v1 }
 0x127   : > { %v3053_v15 = vshrl.u32 %v6183_v12, 4  ;;  %v6245_v31 = vsel %vm2992_vm9, %v3001_v8, %v3000_v25  ;;  %v2929_v8 = vadd.s32 104, %v6114_v56 }
 0x128   : > { %7947 = vst [vmem:[#allocation4_spill] sm:$0xff] %v6252_v3  ;;  %vm3334_vm14 = vcmp.ne.s32.totalorder %v6245_v31, 0 }
 0x129   : > { %v3054_v27 = vmul.u32 18, %v3053_v15 }
 0x12b   : > { %v3055_v18 = vsub.s32 %v4546_v30, %v3054_v27  ;;  %v3103_v30 = vsub.s32 0, %v6228_v62 }
 0x12c   : > { %4890 = vmatmul.mubr.msk.bf16.gmra.mrb[24].mxu1 %vm7930_vm1, %v1482_v46  ;;  %5026 = vmatmul.mubr.msk.bf16.gmra.mrb[24].mxu0 %vm7930_vm1, %v2666_v48  ;;  %v6194_v46 = vadd.s32 %v6119_v57, %v2926_v37  ;;  %v3021_v48 = vmul.u32 18, %v3020_v39  ;;  %v3064_v37 = vshrl.u32 %v6213_v0, 4  ;;  %v3042_v39 = vshrl.u32 %v6218_v6, 4 }
 0x12d   : > { %4893 = vmatprep.mubr.msk.bf16.mxu1 %vm7930_vm1, %v1483_v22  ;;  %5029 = vmatprep.mubr.msk.bf16.mxu0 %vm7930_vm1, %v2667_v33  ;;  %v3012_v22 = vsub.s32 0, %v3011_v17  ;;  %v2990_v33 = vsub.s32 0, %v2989_v41  ;;  %v6266_v44 = vmin.u32 %v3103_v30, %v6228_v62 }
 0x12e   : > { %v3065_v21 = vmul.u32 18, %v3064_v37  ;;  %v3043_v45 = vmul.u32 18, %v3042_v39  ;;  %v6323_v37 = vadd.s32 %v6119_v57, %v2929_v8  ;;  %v2935_v8 = vadd.s32 152, %v6114_v56 }
 0x12f   : > { %v3013_v54 = vsel %vm3003_vm2, %v3012_v22, %v3011_v17  ;;  %v2991_v13 = vsel %vm2981_vm3, %v2990_v33, %v2989_v41  ;;  %v3056_v17 = vsub.s32 0, %v3055_v18  ;;  %v6257_v41 = vadd.s32 %v6119_v57, %v2930_v23 }
 0x130   : > { %vm3335_vm4 = vcmp.ne.s32.totalorder %v3013_v54, 0  ;;  %vm3367_vm5 = vcmp.lt.s32.totalorder %v3013_v54, 0  ;;  %vm3333_vm6 = vcmp.ne.s32.totalorder %v2991_v13, 0  ;;  %vm3365_vm8 = vcmp.lt.s32.totalorder %v2991_v13, 0  ;;  %7951 = vst [vmem:[#allocation8_spill] sm:$0xff] %v6323_v37 }
 0x131   : > { %v3431_v19 = vadd.s32 18, %v3013_v54  ;;  %vm3399_vm10 = vmand %vm3367_vm5, %vm3335_vm4  ;;  %v3429_v24 = vadd.s32 18, %v2991_v13  ;;  %7948 = vst [vmem:[#allocation5_spill] sm:$0xff] %v6257_v41  ;;  %vm3366_vm2 = vcmp.lt.s32.totalorder %v6245_v31, 0  ;;  %vm3025_vm3 = vcmp.lt.s32.totalorder %v6156_v4, 0 }
 0x132   : > { %vm3397_vm11 = vmand %vm3365_vm8, %vm3333_vm6  ;;  %v3081_v22 = vsub.s32 0, %v6252_v3  ;;  %v3057_v33 = vsel %vm3047_vm15, %v3056_v17, %v3055_v18  ;;  %v3136_v51 = vsub.s32 0, %v6257_v41  ;;  %vm3058_vm4 = vcmp.lt.s32.totalorder %v6175_v34, 0 }
 0x133   : > { %v6254_v12 = vsel %vm3399_vm10, %v3431_v19, %v3013_v54  ;;  %v3430_v54 = vadd.s32 18, %v6245_v31  ;;  %v3066_v59 = vsub.s32 %v6202_v11, %v3065_v21  ;;  %vm3339_vm5 = vcmp.ne.s32.totalorder %v3057_v33, 0  ;;  %vm3398_vm9 = vmand %vm3366_vm2, %vm3334_vm14 }
 0x134   : > { %4894 = vmatmul.mubr.msk.bf16.gmra.mrb[28].mxu1 %vm7930_vm1, %v1484_v35  ;;  %5030 = vmatmul.mubr.msk.bf16.gmra.mrb[28].mxu0 %vm7930_vm1, %v2668_v47  ;;  %v3092_v35 = vsub.s32 0, %v6194_v46  ;;  %v3022_v47 = vsub.s32 %v4543_v10, %v3021_v48  ;;  %v3032_v10 = vmul.u32 18, %v3031_v61  ;;  %v3044_v0 = vsub.s32 %v6205_v55, %v3043_v45 }
 0x135   : > { %v6283_v61 = vmul.u32.u64.low 3817748708, %v6266_v44  ;;  %v6284_v28 = vmul.u32.u64.high 3817748708, %v6266_v44, %v6283_v61  ;;  %v6288_v5 = vmin.u32 %v3081_v22, %v6252_v3  ;;  %vm3371_vm6 = vcmp.lt.s32.totalorder %v3057_v33, 0 }
 0x136   : > { %v6221_v7 = vmin.u32 %v3092_v35, %v6194_v46  ;;  %v3023_v40 = vsub.s32 0, %v3022_v47  ;;  %v3033_v9 = vsub.s32 %v6172_v32, %v3032_v10  ;;  %v6260_v32 = vsel %vm3397_vm11, %v3429_v24, %v2991_v13  ;;  %vm3403_vm10 = vmand %vm3371_vm6, %vm3339_vm5 }
 0x137   : > { %v6273_v35 = vadd.s32 %v6119_v57, %v2928_v42  ;;  %v3075_v13 = vshrl.u32 %v6241_v29, 4  ;;  %v6291_v6 = vmin.u32 %v3136_v51, %v6257_v41  ;;  %v3435_v55 = vadd.s32 18, %v3057_v33 }
 0x138   : > { %v6232_v14 = vmul.u32.u64.low 3817748708, %v6221_v7  ;;  %v6233_v16 = vmul.u32.u64.high 3817748708, %v6221_v7, %v6232_v14  ;;  %v3024_v20 = vsel %vm3014_vm7, %v3023_v40, %v3022_v47  ;;  %v3034_v2 = vsub.s32 0, %v3033_v9 }
 0x139   : > { %vm3336_vm12 = vcmp.ne.s32.totalorder %v3024_v20, 0  ;;  %vm3368_vm13 = vcmp.lt.s32.totalorder %v3024_v20, 0  ;;  %v3432_v43 = vadd.s32 18, %v3024_v20  ;;  %7949 = vst [vmem:[#allocation6_spill] sm:$0xff] %v6273_v35  ;;  %v2931_v47 = vadd.s32 120, %v6114_v56 }
 0x13a   : > { %vm3400_vm0 = vmand %vm3368_vm13, %vm3336_vm12  ;;  %v3097_v48 = vshrl.u32 %v6233_v16, 4  ;;  %v3035_v25 = vsel %vm3025_vm3, %v3034_v2, %v3033_v9  ;;  %v3114_v40 = vsub.s32 0, %v6273_v35  ;;  %v3076_v11 = vmul.u32 18, %v3075_v13 }
 0x13b   : > { %v6276_v15 = vsel %vm3400_vm0, %v3432_v43, %v3024_v20  ;;  %v6295_v27 = vadd.s32 %v6119_v57, %v2931_v47  ;;  %vm3337_vm7 = vcmp.ne.s32.totalorder %v3035_v25, 0  ;;  %vm3369_vm8 = vcmp.lt.s32.totalorder %v3035_v25, 0 }
 0x13c   : > { %v3098_v38 = vmul.u32 18, %v3097_v48  ;;  %v3433_v10 = vadd.s32 18, %v3035_v25  ;;  %v3067_v14 = vsub.s32 0, %v3066_v59  ;;  %v2934_v16 = vadd.s32 144, %v6114_v56  ;;  %vm3401_vm11 = vmand %vm3369_vm8, %vm3337_vm7 }
 0x13d   : > { %7950 = vst [vmem:[#allocation7_spill] sm:$0xff] %v6295_v27  ;;  %v3045_v1 = vsub.s32 0, %v3044_v0  ;;  %v6306_v20 = vmul.u32.u64.low 3817748708, %v6288_v5  ;;  %v6307_v18 = vmul.u32.u64.high 3817748708, %v6288_v5, %v6306_v20  ;;  %v6314_v26 = vmin.u32 %v3114_v40, %v6273_v35 }
 0x13e   : > { %v3099_v19 = vsub.s32 %v6221_v7, %v3098_v38  ;;  %v6310_v23 = vmul.u32.u64.low 3817748708, %v6291_v6  ;;  %v6311_v24 = vmul.u32.u64.high 3817748708, %v6291_v6, %v6310_v23  ;;  %v3147_v29 = vsub.s32 0, %v6295_v27 }
 0x13f   : > { %v6318_v9 = vsel %vm3398_vm9, %v3430_v54, %v6245_v31  ;;  %vm3036_vm12 = vcmp.lt.s32.totalorder %v6178_v36, 0  ;;  %v3077_v7 = vsub.s32 %v6225_v50, %v3076_v11  ;;  %v6325_v30 = vsel %vm3403_vm10, %v3435_v55, %v3057_v33 }
 0x140   : > { %v3068_v39 = vsel %vm3058_vm4, %v3067_v14, %v3066_v59  ;;  %v3108_v17 = vshrl.u32 %v6284_v28, 4  ;;  %v6331_v42 = vadd.s32 %v6119_v57, %v2934_v16  ;;  %v6333_v43 = vsel %vm3401_vm11, %v3433_v10, %v3035_v25 }
 0x141   : > { %vm3091_vm13 = vcmp.lt.s32.totalorder %v6194_v46, 0  ;;  %v3100_v31 = vsub.s32 0, %v3099_v19  ;;  %v2932_v50 = vadd.s32 128, %v6114_v56  ;;  %v3046_v2 = vsel %vm3036_vm12, %v3045_v1, %v3044_v0 }
 0x142   : > { %7952 = vst [vmem:[#allocation9_spill] sm:$0xff] %v6331_v42  ;;  %v6338_v21 = vmul.u32.u64.low 3817748708, %v6314_v26  ;;  %v6339_v45 = vmul.u32.u64.high 3817748708, %v6314_v26, %v6338_v21  ;;  %v6342_v48 = vmin.u32 %v3147_v29, %v6295_v27  ;;  %vm3340_vm14 = vcmp.ne.s32.totalorder %v3068_v39, 0 }
 0x143   : > { %vm3069_vm15 = vcmp.lt.s32.totalorder %v6197_v53, 0  ;;  %v3078_v22 = vsub.s32 0, %v3077_v7  ;;  %v3125_v33 = vsub.s32 0, %v6323_v37  ;;  %vm3372_vm0 = vcmp.lt.s32.totalorder %v3068_v39, 0 }
 0x144   : > { %v3436_v51 = vadd.s32 18, %v3068_v39  ;;  %v3109_v47 = vmul.u32 18, %v3108_v17  ;;  %v3180_v54 = vsub.s32 0, %v6331_v42  ;;  %vm3338_vm2 = vcmp.ne.s32.totalorder %v3046_v2, 0  ;;  %vm3404_vm7 = vmand %vm3372_vm0, %vm3340_vm14 }
 0x145   : > { %v3101_v13 = vsel %vm3091_vm13, %v3100_v31, %v3099_v19  ;;  %vm3102_vm3 = vcmp.lt.s32.totalorder %v6228_v62, 0  ;;  %v3086_v25 = vshrl.u32 %v6307_v18, 4  ;;  %v6352_v59 = vadd.s32 %v6119_v57, %v2932_v50 }
 0x146   : > { %vm3370_vm4 = vcmp.lt.s32.totalorder %v3046_v2, 0  ;;  %v3141_v61 = vshrl.u32 %v6311_v24, 4  ;;  %v6356_v28 = vmul.u32.u64.low 3817748708, %v6342_v48  ;;  %v6357_v0 = vmul.u32.u64.high 3817748708, %v6342_v48, %v6356_v28 }
 0x147   : > { %7953 = vst [vmem:[#allocation10_spill] sm:$0xff] %v6352_v59  ;;  %v3434_v38 = vadd.s32 18, %v3046_v2  ;;  %v3079_v40 = vsel %vm3069_vm15, %v3078_v22, %v3077_v7  ;;  %v6362_v11 = vmin.u32 %v3125_v33, %v6323_v37  ;;  %vm3343_vm5 = vcmp.ne.s32.totalorder %v3101_v13, 0  ;;  %vm3402_vm10 = vmand %vm3370_vm4, %vm3338_vm2 }
 0x148   : > { %v3110_v55 = vsub.s32 %v6266_v44, %v3109_v47  ;;  %v6367_v10 = vmin.u32 %v3180_v54, %v6331_v42  ;;  %v2933_v14 = vadd.s32 136, %v6114_v56  ;;  %vm3375_vm6 = vcmp.lt.s32.totalorder %v3101_v13, 0 }
 0x149   : > { %v3087_v16 = vmul.u32 18, %v3086_v25  ;;  %v3158_v1 = vsub.s32 0, %v6352_v59  ;;  %v2938_v19 = vadd.s32 176, %v6114_v56  ;;  %v3439_v20 = vadd.s32 18, %v3101_v13  ;;  %vm3407_vm11 = vmand %vm3375_vm6, %vm3343_vm5 }
 0x14a   : > { %vm3341_vm8 = vcmp.ne.s32.totalorder %v3079_v40, 0  ;;  %v3142_v18 = vmul.u32 18, %v3141_v61  ;;  %v3119_v23 = vshrl.u32 %v6339_v45, 4  ;;  %vm3373_vm9 = vcmp.lt.s32.totalorder %v3079_v40, 0 }
 0x14b   : > { %v6376_v44 = vmul.u32.u64.low 3817748708, %v6362_v11  ;;  %v6377_v24 = vmul.u32.u64.high 3817748708, %v6362_v11, %v6376_v44  ;;  %v6380_v29 = vadd.s32 %v6119_v57, %v2935_v8  ;;  %v3111_v7 = vsub.s32 0, %v3110_v55  ;;  %vm3405_vm12 = vmand %vm3373_vm9, %vm3341_vm8 }
 0x14c   : > { %v6385_v17 = vmul.u32.u64.low 3817748708, %v6367_v10  ;;  %v6386_v31 = vmul.u32.u64.high 3817748708, %v6367_v10, %v6385_v17  ;;  %v6389_v50 = vadd.s32 %v6119_v57, %v2933_v14  ;;  %v6391_v21 = vsel %vm3404_vm7, %v3436_v51, %v3068_v39 }
 0x14d   : > { %7954 = vst [vmem:[#allocation11_spill] sm:$0xff] %v6380_v29  ;;  %v3088_v45 = vsub.s32 %v6288_v5, %v3087_v16  ;;  %v6397_v22 = vmin.u32 %v3158_v1, %v6352_v59  ;;  %v6400_v33 = vadd.s32 %v6119_v57, %v2938_v19  ;;  %v3437_v47 = vadd.s32 18, %v3079_v40 }
 0x14e   : > { %7955 = vst [vmem:[#allocation12_spill] sm:$0xff] %v6389_v50  ;;  %v3143_v54 = vsub.s32 %v6291_v6, %v3142_v18  ;;  %v3120_v25 = vmul.u32 18, %v3119_v23  ;;  %v3152_v61 = vshrl.u32 %v6357_v0, 4  ;;  %v6404_v28 = vsel %vm3402_vm10, %v3434_v38, %v3046_v2 }
 0x14f   : > { %7956 = vst [vmem:[#allocation13_spill] sm:$0xff] %v6400_v33  ;;  %vm3080_vm13 = vcmp.lt.s32.totalorder %v6252_v3, 0  ;;  %vm3135_vm14 = vcmp.lt.s32.totalorder %v6257_v41, 0  ;;  %v3191_v5 = vsub.s32 0, %v6380_v29  ;;  %v6411_v39 = vsel %vm3407_vm11, %v3439_v20, %v3101_v13 }
 0x150   : > { %v3112_v51 = vsel %vm3102_vm3, %v3111_v7, %v3110_v55  ;;  %vm3113_vm15 = vcmp.lt.s32.totalorder %v6273_v35, 0  ;;  %v3169_v6 = vsub.s32 0, %v6389_v50  ;;  %v3089_v2 = vsub.s32 0, %v3088_v45 }
 0x151   : > { %v6418_v0 = vmul.u32.u64.low 3817748708, %v6397_v22  ;;  %v6419_v38 = vmul.u32.u64.high 3817748708, %v6397_v22, %v6418_v0  ;;  %v3224_v8 = vsub.s32 0, %v6400_v33  ;;  %v6422_v14 = vsel %vm3405_vm12, %v3437_v47, %v3079_v40 }
 0x152   : > { %7957 = vst [vmem:[#allocation14_spill] sm:$0xff] %v6422_v14  ;;  %v3144_v16 = vsub.s32 0, %v3143_v54  ;;  %v3121_v13 = vsub.s32 %v6314_v26, %v3120_v25  ;;  %v3153_v1 = vmul.u32 18, %v3152_v61  ;;  %vm3344_vm0 = vcmp.ne.s32.totalorder %v3112_v51, 0 }
 0x153   : > { %vm3376_vm2 = vcmp.lt.s32.totalorder %v3112_v51, 0  ;;  %v3130_v55 = vshrl.u32 %v6377_v24, 4  ;;  %v6427_v19 = vmin.u32 %v3191_v5, %v6380_v29  ;;  %v3440_v20 = vadd.s32 18, %v3112_v51 }
 0x154   : > { %v3185_v18 = vshrl.u32 %v6386_v31, 4  ;;  %v6431_v23 = vmin.u32 %v3169_v6, %v6389_v50  ;;  %v2936_v40 = vadd.s32 160, %v6114_v56  ;;  %v3090_v44 = vsel %vm3080_vm13, %v3089_v2, %v3088_v45  ;;  %vm3408_vm4 = vmand %vm3376_vm2, %vm3344_vm0 }
 0x155   : > { %vm3146_vm3 = vcmp.lt.s32.totalorder %v6295_v27, 0  ;;  %v6438_v26 = vmin.u32 %v3224_v8, %v6400_v33  ;;  %v2939_v24 = vadd.s32 184, %v6114_v56  ;;  %v3145_v7 = vsel %vm3135_vm14, %v3144_v16, %v3143_v54 }
 0x156   : > { %v3122_v17 = vsub.s32 0, %v3121_v13  ;;  %v3154_v31 = vsub.s32 %v6342_v48, %v3153_v1  ;;  %v6445_v47 = vadd.s32 %v6119_v57, %v2936_v40  ;;  %v3131_v45 = vmul.u32 18, %v3130_v55 }
 0x157   : > { %v6450_v25 = vmul.u32.u64.low 3817748708, %v6427_v19  ;;  %v6451_v61 = vmul.u32.u64.high 3817748708, %v6427_v19, %v6450_v25  ;;  %v2937_v5 = vadd.s32 168, %v6114_v56  ;;  %v3186_v6 = vmul.u32 18, %v3185_v18 }
 0x158   : > { %7958 = vst [vmem:[#allocation15_spill] sm:$0xff] %v6445_v47  ;;  %v6455_v2 = vmul.u32.u64.low 3817748708, %v6431_v23  ;;  %v6456_v54 = vmul.u32.u64.high 3817748708, %v6431_v23, %v6455_v2  ;;  %v3202_v48 = vsub.s32 0, %v6445_v47  ;;  %v3163_v0 = vshrl.u32 %v6419_v38, 4 }
 0x159   : > { %v6461_v8 = vmul.u32.u64.low 3817748708, %v6438_v26  ;;  %v6462_v16 = vmul.u32.u64.high 3817748708, %v6438_v26, %v6461_v8  ;;  %v6465_v1 = vadd.s32 %v6119_v57, %v2939_v24  ;;  %v6467_v55 = vsel %vm3408_vm4, %v3440_v20, %v3112_v51 }
 0x15a   : > { %7960 = vst [vmem:[#allocation17_spill] sm:$0xff] %v6467_v55  ;;  %vm3342_vm5 = vcmp.ne.s32.totalorder %v3090_v44, 0  ;;  %vm3374_vm6 = vcmp.lt.s32.totalorder %v3090_v44, 0  ;;  %vm3347_vm7 = vcmp.ne.s32.totalorder %v3145_v7, 0  ;;  %v3123_v18 = vsel %vm3113_vm15, %v3122_v17, %v3121_v13 }
 0x15b   : > { %7959 = vst [vmem:[#allocation16_spill] sm:$0xff] %v6465_v1  ;;  %v6472_v40 = vmin.u32 %v3202_v48, %v6445_v47  ;;  %v3235_v38 = vsub.s32 0, %v6465_v1  ;;  %v6476_v25 = vadd.s32 %v6119_v57, %v2937_v5  ;;  %vm3379_vm8 = vcmp.lt.s32.totalorder %v3145_v7, 0  ;;  %vm6483_vm9 = vmand %vm3374_vm6, %vm3342_vm5 }
 0x15c   : > { %v3155_v2 = vsub.s32 0, %v3154_v31  ;;  %v3132_v24 = vsub.s32 %v6362_v11, %v3131_v45  ;;  %v2942_v51 = vadd.s32 208, %v6114_v56  ;;  %v3438_v20 = vadd.s32 18, %v3090_v44  ;;  %vm3411_vm12 = vmand %vm3379_vm8, %vm3347_vm7 }
 0x15d   : > { %7961 = vst [vmem:[#allocation18_spill] sm:$0xff] %v6476_v25  ;;  %v3443_v8 = vadd.s32 18, %v3145_v7  ;;  %v3187_v41 = vsub.s32 %v6367_v10, %v3186_v6  ;;  %v3164_v35 = vmul.u32 18, %v3163_v0  ;;  %vm3345_vm10 = vcmp.ne.s32.totalorder %v3123_v18, 0 }
 0x15e   : > { %vm3377_vm11 = vcmp.lt.s32.totalorder %v3123_v18, 0  ;;  %v6488_v17 = vmul.u32.u64.low 3817748708, %v6472_v40  ;;  %v6489_v5 = vmul.u32.u64.high 3817748708, %v6472_v40, %v6488_v17  ;;  %v3441_v11 = vadd.s32 18, %v3123_v18 }
 0x15f   : > { %vm3124_vm13 = vcmp.lt.s32.totalorder %v6323_v37, 0  ;;  %v6495_v10 = vmin.u32 %v3235_v38, %v6465_v1  ;;  %v3213_v45 = vsub.s32 0, %v6476_v25  ;;  %v3156_v6 = vsel %vm3146_vm3, %v3155_v2, %v3154_v31  ;;  %vm3409_vm14 = vmand %vm3377_vm11, %vm3345_vm10 }
 0x160   : > { %v3133_v48 = vsub.s32 0, %v3132_v24  ;;  %v3196_v0 = vshrl.u32 %v6451_v61, 4  ;;  %v6502_v3 = vadd.s32 %v6119_v57, %v2942_v51  ;;  %v3188_v17 = vsub.s32 0, %v3187_v41 }
 0x161   : > { %v3165_v55 = vsub.s32 %v6397_v22, %v3164_v35  ;;  %v3174_v62 = vshrl.u32 %v6456_v54, 4  ;;  %v3229_v38 = vshrl.u32 %v6462_v16, 4  ;;  %v6509_v14 = vsel %vm6483_vm9, %v3438_v20, %v3090_v44 }
 0x162   : > { %7964 = vst [vmem:[#allocation19_spill] sm:$0xff] %v6502_v3  ;;  %7965 = vst [vmem:[#allocation20_spill] sm:$0xff] %v6509_v14  ;;  %v6511_v27 = vsel %vm3411_vm12, %v3443_v8, %v3145_v7  ;;  %vm3179_vm15 = vcmp.lt.s32.totalorder %v6331_v42, 0  ;;  %v6515_v31 = vmin.u32 %v3213_v45, %v6476_v25  ;;  %vm3157_vm0 = vcmp.lt.s32.totalorder %v6352_v59, 0 }
 0x163   : > { %7966 = vst [vmem:[#allocation21_spill] sm:$0xff] %v6511_v27  ;;  %v6519_v61 = vmul.u32.u64.low 3817748708, %v6495_v10  ;;  %v6520_v35 = vmul.u32.u64.high 3817748708, %v6495_v10, %v6519_v61  ;;  %v3268_v22 = vsub.s32 0, %v6502_v3  ;;  %v6523_v54 = vsel %vm3409_vm14, %v3441_v11, %v3123_v18 }
 0x164   : > { %7967 = vst [vmem:[#allocation22_spill] sm:$0xff] %v6523_v54  ;;  %vm3348_vm2 = vcmp.ne.s32.totalorder %v3156_v6, 0  ;;  %v3134_v44 = vsel %vm3124_vm13, %v3133_v48, %v3132_v24  ;;  %v3197_v7 = vmul.u32 18, %v3196_v0  ;;  %v3189_v16 = vsel %vm3179_vm15, %v3188_v17, %v3187_v41 }
 0x165   : > { %v3166_v2 = vsub.s32 0, %v3165_v55  ;;  %v3175_v51 = vmul.u32 18, %v3174_v62  ;;  %v3230_v20 = vmul.u32 18, %v3229_v38  ;;  %vm3380_vm3 = vcmp.lt.s32.totalorder %v3156_v6, 0 }
 0x166   : > { %v3207_v8 = vshrl.u32 %v6489_v5, 4  ;;  %v6529_v13 = vmul.u32.u64.low 3817748708, %v6515_v31  ;;  %v6530_v45 = vmul.u32.u64.high 3817748708, %v6515_v31, %v6529_v13  ;;  %v3444_v61 = vadd.s32 18, %v3156_v6  ;;  %vm3412_vm8 = vmand %vm3380_vm3, %vm3348_vm2 }
 0x167   : > { %vm3346_vm4 = vcmp.ne.s32.totalorder %v3134_v44, 0  ;;  %v6533_v18 = vmin.u32 %v3268_v22, %v6502_v3  ;;  %v2940_v11 = vadd.s32 192, %v6114_v56  ;;  %vm3378_vm5 = vcmp.lt.s32.totalorder %v3134_v44, 0 }
 0x168   : > { %vm3351_vm6 = vcmp.ne.s32.totalorder %v3189_v16, 0  ;;  %vm3383_vm7 = vcmp.lt.s32.totalorder %v3189_v16, 0  ;;  %v3198_v62 = vsub.s32 %v6427_v19, %v3197_v7  ;;  %v3167_v41 = vsel %vm3157_vm0, %v3166_v2, %v3165_v55  ;;  %vm6557_vm11 = vmand %vm3378_vm5, %vm3346_vm4 }
 0x169   : > { %v3176_v24 = vsub.s32 %v6431_v23, %v3175_v51  ;;  %v3231_v5 = vsub.s32 %v6438_v26, %v3230_v20  ;;  %v6543_v48 = vadd.s32 %v6119_v57, %v2940_v11  ;;  %v3208_v0 = vmul.u32 18, %v3207_v8  ;;  %vm6566_vm12 = vmand %vm3383_vm7, %vm3351_vm6 }
 0x16a   : > { %v6546_v17 = vmul.u32.u64.low 3817748708, %v6533_v18  ;;  %v6547_v38 = vmul.u32.u64.high 3817748708, %v6533_v18, %v6546_v17  ;;  %v2943_v22 = vadd.s32 216, %v6114_v56  ;;  %v3442_v19 = vadd.s32 18, %v3134_v44 }
 0x16b   : > { %7968 = vst [vmem:[#allocation23_spill] sm:$0xff] %v6543_v48  ;;  %vm3190_vm9 = vcmp.lt.s32.totalorder %v6380_v29, 0  ;;  %vm3168_vm10 = vcmp.lt.s32.totalorder %v6389_v50, 0  ;;  %v3240_v55 = vshrl.u32 %v6520_v35, 4  ;;  %v6553_v23 = vsel %vm3412_vm8, %v3444_v61, %v3156_v6 }
 0x16c   : > { %7969 = vst [vmem:[#allocation24_spill] sm:$0xff] %v6553_v23  ;;  %v3447_v7 = vadd.s32 18, %v3189_v16  ;;  %v3199_v2 = vsub.s32 0, %v3198_v62  ;;  %v3246_v51 = vsub.s32 0, %v6543_v48  ;;  %vm3349_vm13 = vcmp.ne.s32.totalorder %v3167_v41, 0 }
 0x16d   : > { %vm3381_vm14 = vcmp.lt.s32.totalorder %v3167_v41, 0  ;;  %v3177_v6 = vsub.s32 0, %v3176_v24  ;;  %v3232_v35 = vsub.s32 0, %v3231_v5  ;;  %vm3223_vm15 = vcmp.lt.s32.totalorder %v6400_v33, 0 }
 0x16e   : > { %v3209_v61 = vsub.s32 %v6472_v40, %v3208_v0  ;;  %v3218_v11 = vshrl.u32 %v6530_v45, 4  ;;  %v6576_v17 = vadd.s32 %v6119_v57, %v2943_v22  ;;  %v6582_v42 = vsel %vm6557_vm11, %v3442_v19, %v3134_v44  ;;  %vm3413_vm0 = vmand %vm3381_vm14, %vm3349_vm13 }
 0x16f   : > { %7975 = vst [vmem:[#allocation26_spill] sm:$0xff] %v6582_v42  ;;  %v3445_v37 = vadd.s32 18, %v3167_v41  ;;  %v3241_v23 = vmul.u32 18, %v3240_v55  ;;  %v6585_v54 = vmin.u32 %v3246_v51, %v6543_v48  ;;  %v6591_v40 = vsel %vm6566_vm12, %v3447_v7, %v3189_v16 }
 0x170   : > { %7974 = vst [vmem:[#allocation25_spill] sm:$0xff] %v6576_v17  ;;  %7976 = vst [vmem:[#allocation27_spill] sm:$0xff] %v6591_v40  ;;  %v3200_v45 = vsel %vm3190_vm9, %v3199_v2, %v3198_v62  ;;  %vm3201_vm2 = vcmp.lt.s32.totalorder %v6445_v47, 0  ;;  %v2941_v44 = vadd.s32 200, %v6114_v56  ;;  %v6601_v0 = vsel %vm3168_vm10, %v3177_v6, %v3176_v24 }
 0x171   : > { %v6605_v22 = vsel %vm3223_vm15, %v3232_v35, %v3231_v5  ;;  %v6608_v16 = vmul.u32.u64.low 3817748708, %v6585_v54  ;;  %v6609_v19 = vmul.u32.u64.high 3817748708, %v6585_v54, %v6608_v16  ;;  %v3210_v55 = vsub.s32 0, %v3209_v61 }
 0x172   : > { %v3219_v26 = vmul.u32 18, %v3218_v11  ;;  %v3273_v62 = vshrl.u32 %v6547_v38, 4  ;;  %v3279_v7 = vsub.s32 0, %v6576_v17  ;;  %v6613_v2 = vsel %vm3413_vm0, %v3445_v37, %v3167_v41 }
 0x173   : > { %7977 = vst [vmem:[#allocation28_spill] sm:$0xff] %v6613_v2  ;;  %vm3352_vm3 = vcmp.ne.s32.totalorder %v3200_v45, 0  ;;  %vm3234_vm4 = vcmp.lt.s32.totalorder %v6465_v1, 0  ;;  %v3242_v24 = vsub.s32 %v6495_v10, %v3241_v23  ;;  %vm3384_vm5 = vcmp.lt.s32.totalorder %v3200_v45, 0 }
 0x174   : > { %v3448_v5 = vadd.s32 18, %v3200_v45  ;;  %vm3350_vm6 = vcmp.ne.s32.totalorder %v6601_v0, 0  ;;  %v6619_v51 = vadd.s32 %v6119_v57, %v2941_v44  ;;  %vm3382_vm7 = vcmp.lt.s32.totalorder %v6601_v0, 0  ;;  %vm6644_vm10 = vmand %vm3384_vm5, %vm3352_vm3 }
 0x175   : > { %vm3355_vm8 = vcmp.ne.s32.totalorder %v6605_v22, 0  ;;  %v3251_v37 = vshrl.u32 %v6609_v19, 4  ;;  %v6627_v41 = vmin.u32 %v3279_v7, %v6576_v17  ;;  %v3211_v10 = vsel %vm3201_vm2, %v3210_v55, %v3209_v61  ;;  %vm6657_vm14 = vmand %vm3382_vm7, %vm3350_vm6 }
 0x176   : > { %v3220_v23 = vsub.s32 %v6515_v31, %v3219_v26  ;;  %v3274_v6 = vmul.u32 18, %v3273_v62  ;;  %v2946_v35 = vadd.s32 240, %v6114_v56  ;;  %vm3387_vm9 = vcmp.lt.s32.totalorder %v6605_v22, 0 }
 0x177   : > { %v3243_v44 = vsub.s32 0, %v3242_v24  ;;  %v3257_v16 = vsub.s32 0, %v6619_v51  ;;  %v2944_v19 = vadd.s32 224, %v6114_v56  ;;  %v3446_v31 = vadd.s32 18, %v6601_v0  ;;  %vm6671_vm5 = vmand %vm3387_vm9, %vm3355_vm8 }
 0x178   : > { %v3451_v55 = vadd.s32 18, %v6605_v22  ;;  %vm3212_vm11 = vcmp.lt.s32.totalorder %v6476_v25, 0  ;;  %v3252_v26 = vmul.u32 18, %v3251_v37  ;;  %vm3495_vm12 = vcmp.lt.s32.totalorder %v6122_v49, 288 }
 0x179   : > { %vm3527_vm13 = vcmp.ge.s32.totalorder %v6254_v12, 1  ;;  %vm3353_vm15 = vcmp.ne.s32.totalorder %v3211_v10, 0  ;;  %vm3385_vm0 = vcmp.lt.s32.totalorder %v3211_v10, 0  ;;  %vm3493_vm2 = vcmp.lt.s32.totalorder %v6126_v58, 288 }
 0x17a   : > { %v6662_v47 = vmul.u32.u64.low 3817748708, %v6627_v41  ;;  %v6663_v33 = vmul.u32.u64.high 3817748708, %v6627_v41, %v6662_v47  ;;  %vm3525_vm3 = vcmp.ge.s32.totalorder %v6260_v32, 1  ;;  %v3221_v50 = vsub.s32 0, %v3220_v23 }
 0x17b   : > { %v3275_v29 = vsub.s32 %v6533_v18, %v3274_v6  ;;  %v6677_v2 = vmin.u32 %v3257_v16, %v6619_v51  ;;  %v6680_v47 = vadd.s32 %v6119_v57, %v2946_v35  ;;  %v6684_v40 = vsel %vm6644_vm10, %v3448_v5, %v3200_v45 }
 0x17c   : > { %v3449_v42 = vadd.s32 18, %v3211_v10  ;;  %v6688_v14 = vsel %vm3234_vm4, %v3243_v44, %v3242_v24  ;;  %v6691_v53 = vadd.s32 %v6119_v57, %v2944_v19  ;;  %vm3591_vm6 = vcmp.le.s32.totalorder %v6254_v12, 16  ;;  %vm6716_vm4 = vmand %vm3385_vm0, %vm3353_vm15  ;;  %v8035_v12 = vld [vmem:[#allocation3_spill] sm:$0xff] }
 0x17d   : > { %v3253_v18 = vsub.s32 %v6585_v54, %v3252_v26  ;;  %v6696_v6 = vmul.u32.u64.low 3817748708, %v6677_v2  ;;  %v6697_v35 = vmul.u32.u64.high 3817748708, %v6677_v2, %v6696_v6  ;;  %v3312_v16 = vsub.s32 0, %v6680_v47 }
 0x17e   : > { %vm3589_vm7 = vcmp.le.s32.totalorder %v6260_v32, 16  ;;  %v6707_v24 = vsel %vm6657_vm14, %v3446_v31, %v6601_v0  ;;  %v6712_v54 = vsel %vm6671_vm5, %v3451_v55, %v6605_v22  ;;  %vm3267_vm8 = vcmp.lt.s32.totalorder %v6502_v3, 0  ;;  %v6725_v0 = vld [vmem:[%s7892_s2] ss:$0 sm:$0xff] }
 0x17f   : > { %v3284_v44 = vshrl.u32 %v6663_v33, 4  ;;  %vm3356_vm9 = vcmp.ne.s32.totalorder %v6688_v14, 0  ;;  %vm3388_vm10 = vcmp.lt.s32.totalorder %v6688_v14, 0  ;;  %v6733_v22 = vsel %vm3212_vm11, %v3221_v50, %v3220_v23 }
 0x180   : > { %v3276_v61 = vsub.s32 0, %v3275_v29  ;;  %vm3528_vm15 = vcmp.ge.s32.totalorder %v6276_v15, 1  ;;  %v6740_v55 = vmin.u32 %v3312_v16, %v6680_v47  ;;  %v3290_v26 = vsub.s32 0, %v6691_v53  ;;  %vm6776_vm14 = vmand %vm3388_vm10, %vm3356_vm9 }
 0x181   : > { %v3285_v33 = vmul.u32 18, %v3284_v44  ;;  %v2947_v62 = vadd.s32 248, %v6114_v56  ;;  %v6754_v50 = vsel %vm6716_vm4, %v3449_v42, %v3211_v10  ;;  %vm3245_vm11 = vcmp.lt.s32.totalorder %v6543_v48, 0  ;;  %vm6806_vm9 = vmand %vm3495_vm12, %vm3527_vm13 }
 0x182   : > { %v3254_v23 = vsub.s32 0, %v3253_v18  ;;  %v3262_v6 = vshrl.u32 %v6697_v35, 4  ;;  %vm3526_vm5 = vcmp.ge.s32.totalorder %v6318_v9, 1  ;;  %v3452_v42 = vadd.s32 18, %v6688_v14  ;;  %vm6831_vm12 = vmand %vm3493_vm2, %vm3525_vm3 }
 0x183   : > { %v3286_v10 = vsub.s32 %v6627_v41, %v3285_v33  ;;  %vm3531_vm1 = vcmp.ge.s32.totalorder %v6325_v30, 1  ;;  %vm3354_vm0 = vcmp.ne.s32.totalorder %v6733_v22, 0  ;;  %v6786_v41 = vmin.u32 %v3290_v26, %v6691_v53  ;;  %vm6867_vm2 = vmand %vm6806_vm9, %vm3591_vm6 }
 0x184   : > { %vm3386_vm4 = vcmp.lt.s32.totalorder %v6733_v22, 0  ;;  %v6791_v5 = vsel %vm3267_vm8, %v3276_v61, %v3275_v29  ;;  %v3263_v33 = vmul.u32 18, %v3262_v6  ;;  %v6794_v25 = vadd.s32 %v6119_v57, %v2947_v62  ;;  %vm6886_vm6 = vmand %vm6831_vm12, %vm3589_vm7 }
 0x185   : > { %vm3529_vm8 = vcmp.ge.s32.totalorder %v6333_v43, 1  ;;  %v6814_v29 = vsel %vm3245_vm11, %v3254_v23, %v3253_v18  ;;  %v3287_v61 = vsub.s32 0, %v3286_v10  ;;  %v6839_v18 = vsel %vm6776_vm14, %v3452_v42, %v6688_v14  ;;  %vm6854_vm3 = vmand %vm3386_vm4, %vm3354_vm0 }
 0x186   : > { %v6817_v62 = vmul.u32.u64.low 3817748708, %v6786_v41  ;;  %v6818_v6 = vmul.u32.u64.high 3817748708, %v6786_v41, %v6817_v62  ;;  %7993 = vst [vmem:[#allocation29_spill] sm:$0xff] %v6839_v18  ;;  %vm3278_vm11 = vcmp.lt.s32.totalorder %v6576_v17, 0  ;;  %vm3359_vm14 = vcmp.ne.s32.totalorder %v6791_v5, 0 }
 0x187   : > { %vm3391_vm13 = vcmp.lt.s32.totalorder %v6791_v5, 0  ;;  %v3455_v62 = vadd.s32 18, %v6791_v5  ;;  %vm3357_vm10 = vcmp.ne.s32.totalorder %v6814_v29, 0  ;;  %v3264_v3 = vsub.s32 %v6677_v2, %v3263_v33 }
 0x188   : > { %vm3389_vm0 = vcmp.lt.s32.totalorder %v6814_v29, 0  ;;  %v6895_v2 = vsel %vm3278_vm11, %v3287_v61, %v3286_v10  ;;  %v2945_v32 = vadd.s32 232, %v6114_v56  ;;  %vm6918_vm11 = vmand %vm3391_vm13, %vm3359_vm14  ;;  %vm3256_vm9 = vcmp.lt.s32.totalorder %v6619_v51, 0 }
 0x189   : > { %vm8002_vm7 = vcmp.lt.s32.totalorder %v6133_v60, 288  ;;  %vm6951_vm14 = vmand %vm3389_vm0, %vm3357_vm10  ;;  %vm3392_vm12 = vcmp.lt.s32.totalorder %v6895_v2, 0  ;;  %vm8007_vm13 = vcmp.lt.s32.totalorder %v6136_v63, 288  ;;  %vm3599_vm0 = vcmp.le.s32.totalorder %v6411_v39, 16 }
 0x18a   : > { %vm6961_vm4 = vmand %vm8007_vm13, %vm3526_vm5  ;;  %vm8011_vm5 = vcmp.lt.s32.totalorder %v6152_v52, 288 }
 0x18b   : > { %vm6987_vm10 = vmand %vm8011_vm5, %vm3531_vm1 }
 0x1af   : > { %v6562_v20 = vpop.f32.mrb[0].mxu1 }
 0x1b0   : > { %v6570_v13 = vpop.f32.mrb[1].mxu1  ;;  %v6760_v16 = vadd.f32 %v6562_v20, %v6725_v0  ;;  %v8084_v20 = vld [vmem:[#allocation8_spill] sm:$0xff] }
 0x1b1   : > { %v6578_v59 = vpop.f32.mrb[2].mxu1  ;;  %v6764_v44 = vadd.f32 %v6725_v0, %v6570_v13  ;;  %v6782_v13 = vmul.u32.u64.low 3817748708, %v6740_v55  ;;  %v6783_v35 = vmul.u32.u64.high 3817748708, %v6740_v55, %v6782_v13 }
 0x1b2   : > { %v6587_v27 = vpop.f32.mrb[3].mxu1  ;;  %v6822_v49 = vadd.f32 %v6578_v59, %v6725_v0  ;;  %v3450_v59 = vadd.s32 18, %v6733_v22 }
 0x1b3   : > { %v6845_v23 = vadd.f32 %v6725_v0, %v6587_v27  ;;  %v3323_v27 = vsub.s32 0, %v6794_v25  ;;  %v3317_v18 = vshrl.u32 %v6783_v35, 4  ;;  %v3295_v35 = vshrl.u32 %v6818_v6, 4 }
 0x1b4   : > { %v6912_v10 = vsel %vm6854_vm3, %v3450_v59, %v6733_v22  ;;  %vm6931_vm3 = vmand %vm8002_vm7, %vm3528_vm15  ;;  %v3453_v22 = vadd.s32 18, %v6814_v29  ;;  %vm3360_vm7 = vcmp.ne.s32.totalorder %v6895_v2, 0  ;;  %v3265_v6 = vsub.s32 0, %v3264_v3 }
 0x1b5   : > { %v3318_v26 = vmul.u32 18, %v3317_v18  ;;  %v6939_v61 = vmin.u32 %v3323_v27, %v6794_v25  ;;  %vm3594_vm15 = vcmp.le.s32.totalorder %v6404_v28, 16  ;;  %v6969_v18 = vsel %vm6918_vm11, %v3455_v62, %v6791_v5  ;;  %vm7014_vm5 = vmand %vm3392_vm12, %vm3360_vm7 }
 0x1b6   : > { %v3296_v14 = vmul.u32 18, %v3295_v35  ;;  %v6973_v27 = vadd.s32 %v6119_v57, %v2945_v32  ;;  %v3456_v57 = vadd.s32 18, %v6895_v2  ;;  %vm3311_vm11 = vcmp.lt.s32.totalorder %v6680_v47, 0 }
 0x1b7   : > { %v6621_v8 = vpop.f32.mrb[4].mxu1  ;;  %v3319_v59 = vsub.s32 %v6740_v55, %v3318_v26  ;;  %v8015_v55 = vld [vmem:[#allocation14_spill] sm:$0xff]  ;;  %v7008_v62 = vsel %vm6951_vm14, %v3453_v22, %v6814_v29  ;;  %v7019_v35 = vmul.u32.u64.low 3817748708, %v6939_v61  ;;  %v7020_v32 = vmul.u32.u64.high 3817748708, %v6939_v61, %v7019_v35 }
 0x1b8   : > { %v6629_v38 = vpop.f32.mrb[5].mxu1  ;;  %v6901_v48 = vadd.f32 %v6621_v8, %v6725_v0  ;;  %8010 = vst [vmem:[#allocation30_spill] sm:$0xff] %v6973_v27  ;;  %vm8018_vm14 = vcmp.lt.s32.totalorder %v6156_v4, 288  ;;  %v7037_v60 = vsel %vm3256_vm9, %v3265_v6, %v3264_v3  ;;  %vm8021_vm7 = vcmp.le.s32.totalorder %v6276_v15, 16 }
 0x1b9   : > { %v6635_v11 = vpop.f32.mrb[6].mxu1  ;;  %v6905_v33 = vadd.f32 %v6725_v0, %v6629_v38  ;;  %vm7031_vm12 = vmand %vm8018_vm14, %vm3529_vm8  ;;  %v3320_v35 = vsub.s32 0, %v3319_v59  ;;  %v7053_v3 = vsub.s32 %v6786_v41, %v3296_v14  ;;  %v3301_v6 = vsub.s32 0, %v6973_v27  ;;  %v8043_v14 = vld [vmem:[#allocation20_spill] sm:$0xff] }
 0x1ba   : > { %v6640_v7 = vpop.f32.mrb[7].mxu1  ;;  %v6925_v8 = vadd.f32 %v6635_v11, %v6725_v0  ;;  %vm7048_vm8 = vmand %vm6931_vm3, %vm8021_vm7  ;;  %vm8024_vm9 = vcmask 31744   ;;  %vm8025_vm3 = vcmp.le.s32.totalorder %v6318_v9, 16  ;;  %v7122_v5 = vadd.s32 18, %v7037_v60 }
 0x1bb   : > { %v6943_v11 = vadd.f32 %v6725_v0, %v6640_v7  ;;  %vm7071_vm14 = vmand %vm6961_vm4, %vm8025_vm3  ;;  %vm8029_vm4 = vcmp.le.s32.totalorder %v6325_v30, 16  ;;  %v8042_v7 = vld [vmem:[#allocation4_spill] sm:$0xff]  ;;  %v3298_v26 = vsub.s32 0, %v7053_v3 }
 0x1bc   : > { %vm8028_vm1 = vmmov %vm8024_vm9 }
 0x1bd   : > { %vm7093_vm3 = vmand %vm6987_vm10, %vm8029_vm4  ;;  %vm8038_vm10 = vcmp.ge.s32.totalorder %v6391_v21, 1  ;;  %vm8039_vm4 = vcmp.lt.s32.totalorder %v6175_v34, 288 }
 0x1be   : > { %vm8037_vm7 = vmmov %vm8028_vm1 }
 0x1bf   : > { %v6700_v45 = vpop.f32.mrb[8].mxu1  ;;  %vm7114_vm13 = vmand %vm8039_vm4, %vm8038_vm10  ;;  %vm8045_vm10 = vcmp.ge.s32.totalorder %v6404_v28, 1  ;;  %vm8046_vm4 = vcmp.lt.s32.totalorder %v6178_v36, 288 }
 0x1c0   : > { %v6727_v19 = vpop.f32.mrb[9].mxu1  ;;  %v6977_v63 = vadd.f32 %v6700_v45, %v6725_v0 }
 0x1c1   : > { %v6735_v31 = vpop.f32.mrb[10].mxu1  ;;  %v6981_v17 = vadd.f32 %v6725_v0, %v6727_v19  ;;  %v8014_v19 = vld [vmem:[#allocation2_spill] sm:$0xff] }
 0x1c2   : > { %v6744_v37 = vpop.f32.mrb[11].mxu1  ;;  %v6996_v45 = vadd.f32 %v6735_v31, %v6725_v0 }
 0x1c3   : > { %v7024_v56 = vadd.f32 %v6725_v0, %v6744_v37 }
 0x1c7   : > { %v6824_v13 = vpop.f32.mrb[12].mxu1 }
 0x1c8   : > { %v6847_v58 = vpop.f32.mrb[13].mxu1  ;;  %v7041_v37 = vadd.f32 %v6824_v13, %v6725_v0 }
 0x1c9   : > { %v6861_v42 = vpop.f32.mrb[14].mxu1  ;;  %v7058_v13 = vadd.f32 %v6725_v0, %v6847_v58  ;;  %v7079_v58 = vsel %vm7014_vm5, %v3456_v57, %v6895_v2  ;;  %vm8032_vm5 = vcmp.le.s32.totalorder %v6333_v43, 16  ;;  %v7126_v57 = vsel %vm3311_vm11, %v3320_v35, %v3319_v59  ;;  %v8050_v59 = vld [vmem:[#allocation21_spill] sm:$0xff]  ;;  %vm8058_vm11 = vmmov %vm8028_vm1 }
 0x1ca   : > { %v6877_v1 = vpop.f32.mrb[15].mxu1  ;;  %v7146_v35 = vmin.u32 %v3301_v6, %v6973_v27 }
 0x1cc   : > { %8051 = vst [vmem:[#allocation2_spill] sm:$0xff] %v7146_v35 }
 0x1cf   : > { %v5003_v52 = vpop.f32.mrb[0].mxu0 }
 0x1d0   : > { %v5036_v29 = vadd.f32 %v6760_v16, %v5003_v52  ;;  %v2756_v22 = vpop.f32.mrb[1].mxu0 }
 0x1d1   : > { %v5038_v16 = vadd.f32 %v6764_v44, %v2756_v22  ;;  %v5004_v52 = vpop.f32.mrb[2].mxu0  ;;  %v7062_v44 = vadd.f32 %v6861_v42, %v6725_v0  ;;  %v8049_v22 = vld [vmem:[#allocation5_spill] sm:$0xff] }
 0x1d2   : > { %3924 = vst.msk [vmem:[%s7001_s10 + $0x10] sm:$0xff] %vm8024_vm9, %v5036_v29  ;;  %v5040_v15 = vadd.f32 %v6822_v49, %v5004_v52  ;;  %v2759_v38 = vpop.f32.mrb[3].mxu0  ;;  %v3719_v49 = vsel %vm6867_vm2, %v5036_v29, 0.0  ;;  %vm7101_vm2 = vmand %vm7031_vm12, %vm8032_vm5  ;;  %vm3358_vm9 = vcmp.ne.s32.totalorder %v7037_v60, 0  ;;  %v8069_v29 = vld [vmem:[#allocation22_spill] sm:$0xff]  ;;  %vm8072_vm5 = vcmp.ge.s32.totalorder %v8015_v55, 1 }
 0x1d3   : > { %v3717_v9 = vsel %vm6886_vm6, %v5038_v16, 0.0  ;;  %3922 = vst.msk [vmem:[%s7001_s10] sm:$0xff] %vm8028_vm1, %v5038_v16  ;;  %v5042_v42 = vadd.f32 %v6845_v23, %v2759_v38  ;;  %v8036_v23 = vld [vmem:[#allocation17_spill] sm:$0xff]  ;;  %vm3390_vm6 = vcmp.lt.s32.totalorder %v7037_v60, 0  ;;  %vm7138_vm12 = vmand %vm8046_vm4, %vm8045_vm10  ;;  %v3822_v16 = vmul.f32 %v3719_v49, %v3719_v49 }
 0x1d4   : > { %v3820_v30 = vmul.f32 %v3717_v9, %v3717_v9  ;;  %3925 = vst.msk [vmem:[%s7001_s10 + $0x18] sm:$0xff] %vm8037_vm7, %v5040_v15  ;;  %v3720_v34 = vsel %vm7048_vm8, %v5040_v15, 0.0  ;;  %vm8044_vm7 = vmmov %vm8028_vm1  ;;  %vm8055_vm10 = vcmp.lt.s32.totalorder %v6194_v46, 288  ;;  %v3752_v38 = vsel %vm8058_vm11, %v3719_v49, 0.0 }
 0x1d5   : > { %v3718_v31 = vsel %vm7071_vm14, %v5042_v42, 0.0  ;;  %3923 = vst.msk [vmem:[%s7001_s10 + $0x8] sm:$0xff] %vm8044_vm7, %v5042_v42  ;;  %vm8052_vm8 = vmmov %vm8028_vm1  ;;  %vm8054_vm7 = vcmp.ge.s32.totalorder %v6411_v39, 1  ;;  %v3328_v46 = vshrl.u32 %v7020_v32, 4  ;;  %v3823_v49 = vmul.f32 %v3720_v34, %v3720_v34 }
 0x1d6   : > { %v3749_v52 = vsel %vm8052_vm8, %v3717_v9, 0.0  ;;  %vm8053_vm14 = vmmov %vm8028_vm1  ;;  %v3821_v15 = vmul.f32 %v3718_v31, %v3718_v31  ;;  %vm8059_vm1 = vcmp.le.s32.totalorder %v6391_v21, 16 }
 0x1d7   : > { %v3750_v4 = vsel %vm8053_vm14, %v3718_v31, 0.0  ;;  %vm7154_vm4 = vmand %vm8055_vm10, %vm8054_vm7  ;;  %v5007_v41 = vpop.f32.mrb[4].mxu0  ;;  %vm3363_vm7 = vcmp.ne.s32.totalorder %v7126_v57, 0 }
 0x1d8   : > { %v3751_v6 = vadd.f32 %v3750_v4, %v3749_v52  ;;  %vm7164_vm8 = vmand %vm7114_vm13, %vm8059_vm1  ;;  %v5044_v21 = vadd.f32 %v6901_v48, %v5007_v41  ;;  %v2772_v52 = vpop.f32.mrb[5].mxu0  ;;  %v8068_v48 = vld [vmem:[#allocation6_spill] sm:$0xff] }
 0x1d9   : > { %vm8062_vm10 = vmmov %vm8058_vm11  ;;  %v5008_v27 = vpop.f32.mrb[6].mxu0 }
 0x1da   : > { %v3852_v42 = vsel %vm8062_vm10, %v3820_v30, 0.0  ;;  %vm8063_vm11 = vmmov %vm8062_vm10  ;;  %v3753_v32 = vadd.f32 %v3752_v38, %v3751_v6  ;;  %v5046_v30 = vadd.f32 %v6905_v33, %v2772_v52  ;;  %v5048_v33 = vadd.f32 %v6925_v8, %v5008_v27  ;;  %v2775_v39 = vpop.f32.mrb[7].mxu0  ;;  %v8076_v38 = vld [vmem:[#allocation7_spill] sm:$0xff]  ;;  %v8077_v6 = vld [vmem:[#allocation24_spill] sm:$0xff] }
 0x1db   : > { %v3853_v31 = vsel %vm8063_vm11, %v3821_v15, 0.0  ;;  %vm7178_vm13 = vmand %vm7138_vm12, %vm3594_vm15  ;;  %vm3395_vm11 = vcmp.lt.s32.totalorder %v7126_v57, 0  ;;  %vm3540_vm12 = vcmp.ge.s32.totalorder %v8077_v6, 1  ;;  %v5050_v36 = vadd.f32 %v6943_v11, %v2775_v39  ;;  %v8132_v11 = vld [vmem:[#allocation11_spill] sm:$0xff] }
 0x1dc   : > { %v3854_v4 = vadd.f32 %v3853_v31, %v3852_v42  ;;  %vm7188_vm10 = vmand %vm7154_vm4, %vm3599_vm0  ;;  %vm8073_vm0 = vcmp.lt.s32.totalorder %v8014_v19, 288  ;;  %v3721_v42 = vsel %vm7101_vm2, %v5046_v30, 0.0  ;;  %v3459_v31 = vadd.s32 18, %v7126_v57 }
 0x1dd   : > { %vm8070_vm1 = vmmov %vm8053_vm14  ;;  %v3724_v2 = vsel %vm7164_vm8, %v5048_v33, 0.0  ;;  %vm8101_vm8 = vcmask 31744   ;;  %vm8114_vm2 = vcmp.le.s32.totalorder %v8043_v14, 16 }
 0x1de   : > { %v3855_v15 = vsel %vm8070_vm1, %v3822_v16, 0.0  ;;  %vm8071_vm14 = vmmov %vm8070_vm1  ;;  %v7210_v16 = vmul.u32.u64.low 3817748708, %v7146_v35  ;;  %v7211_v41 = vmul.u32.u64.high 3817748708, %v7146_v35, %v7210_v16  ;;  %3926 = vst.msk [vmem:[%s7001_s10 + $0x20] sm:$0xff] %vm8070_vm1, %v5046_v30  ;;  %v8085_v30 = vld [vmem:[#allocation26_spill] sm:$0xff]  ;;  %v3329_v35 = vmul.u32 18, %v3328_v46 }
 0x1df   : > { %3928 = vst.msk [vmem:[%s7001_s10 + $0x30] sm:$0xff] %vm8071_vm14, %v5044_v21  ;;  %vm7203_vm4 = vmand %vm8073_vm0, %vm8072_vm5  ;;  %v3856_v27 = vadd.f32 %v3855_v15, %v3854_v4  ;;  %v3824_v4 = vmul.f32 %v3721_v42, %v3721_v42 }
 0x1e0   : > { %vm8078_vm14 = vmmov %vm8070_vm1  ;;  %3927 = vst.msk [vmem:[%s7001_s10 + $0x28] sm:$0xff] %vm8101_vm8, %v5050_v36 }
 0x1e1   : > { %v3754_v8 = vsel %vm8078_vm14, %v3720_v34, 0.0  ;;  %vm7223_vm5 = vmand %vm3390_vm6, %vm3358_vm9  ;;  %vm8088_vm6 = vcmp.le.s32.totalorder %v8015_v55, 16 }
 0x1e2   : > { %vm8081_vm0 = vmmov %vm8070_vm1  ;;  %v3755_v16 = vadd.f32 %v3754_v8, %v3753_v32  ;;  %vm3538_vm1 = vcmp.ge.s32.totalorder %v8085_v30, 1 }
 0x1e3   : > { %v3857_v52 = vsel %vm8081_vm0, %v3823_v49, 0.0  ;;  %vm8082_vm14 = vmmov %vm8081_vm0  ;;  %v7244_v49 = vadd.f32 %v6725_v0, %v6877_v1  ;;  %v3723_v1 = vsel %vm7093_vm3, %v5044_v21, 0.0  ;;  %vm8097_vm3 = vcmp.ge.s32.totalorder %v8043_v14, 1 }
 0x1e4   : > { %v3756_v34 = vsel %vm8082_vm14, %v3721_v42, 0.0  ;;  %vm8083_vm15 = vmmov %vm8081_vm0  ;;  %v3858_v32 = vadd.f32 %v3857_v52, %v3856_v27  ;;  %vm8094_vm14 = vcmp.lt.s32.totalorder %v8035_v12, 288  ;;  %v7288_v12 = vsel %vm7223_vm5, %v7122_v5, %v7037_v60  ;;  %v8106_v5 = vld [vmem:[#allocation9_spill] sm:$0xff] }
 0x1e5   : > { %3929 = vst.msk [vmem:[%s7001_s10 + $0x38] sm:$0xff] %vm8083_vm15, %v5048_v33  ;;  %vm7238_vm9 = vmand %vm3395_vm11, %vm3363_vm7  ;;  %vm8091_vm7 = vcmp.lt.s32.totalorder %v6691_v53, 0  ;;  %v3757_v27 = vadd.f32 %v3756_v34, %v3755_v16  ;;  %v3826_v43 = vmul.f32 %v3723_v1, %v3723_v1  ;;  %v8113_v16 = vld [vmem:[#allocation28_spill] sm:$0xff]  ;;  %v3827_v34 = vmul.f32 %v3724_v2, %v3724_v2 }
 0x1e6   : > { %vm7250_vm15 = vmand %vm7203_vm4, %vm8088_vm6  ;;  %v7258_v42 = vsel %vm8091_vm7, %v3298_v26, %v7053_v3  ;;  %vm8093_vm4 = vcmp.ge.s32.totalorder %v8036_v23, 1  ;;  %v5011_v26 = vpop.f32.mrb[8].mxu0  ;;  %v7293_v9 = vsel %vm7238_vm9, %v3459_v31, %v7126_v57  ;;  %v8107_v57 = vld [vmem:[#allocation27_spill] sm:$0xff]  ;;  %v8112_v31 = vld [vmem:[#allocation10_spill] sm:$0xff]  ;;  %vm8119_vm5 = vcmp.le.s32.totalorder %v8050_v59, 16 }
 0x1e7   : > { %vm8092_vm11 = vmmov %vm8081_vm0  ;;  %v5052_v46 = vadd.f32 %v6977_v63, %v5011_v26  ;;  %v2788_v21 = vpop.f32.mrb[9].mxu0  ;;  %vm3393_vm8 = vcmp.lt.s32.totalorder %v7258_v42, 0 }
 0x1e8   : > { %v3859_v55 = vsel %vm8092_vm11, %v3824_v4, 0.0  ;;  %vm7268_vm6 = vmand %vm8094_vm14, %vm8093_vm4  ;;  %vm8098_vm11 = vcmp.lt.s32.totalorder %v8042_v7, 288  ;;  %v3722_v7 = vsel %vm7178_vm13, %v5050_v36, 0.0  ;;  %vm8102_vm14 = vcmp.ge.s32.totalorder %v8050_v59, 1 }
 0x1e9   : > { %v3860_v3 = vadd.f32 %v3859_v55, %v3858_v32  ;;  %vm7279_vm0 = vmand %vm8098_vm11, %vm8097_vm3  ;;  %vm8103_vm3 = vcmp.lt.s32.totalorder %v8049_v22, 288  ;;  %vm3361_vm13 = vcmp.ne.s32.totalorder %v7258_v42, 0  ;;  %vm8108_vm4 = vcmask 31744   ;;  %v5012_v22 = vpop.f32.mrb[10].mxu0 }
 0x1ea   : > { %vm7304_vm11 = vmand %vm8103_vm3, %vm8102_vm14  ;;  %v3758_v63 = vsel %vm8108_vm4, %v3722_v7, 0.0  ;;  %v3825_v33 = vmul.f32 %v3722_v7, %v3722_v7  ;;  %v5054_v39 = vadd.f32 %v6981_v17, %v2788_v21  ;;  %vm8109_vm14 = vcmp.le.s32.totalorder %v8036_v23, 16  ;;  %3932 = vst.msk [vmem:[%s7001_s10 + $0x50] sm:$0xff] %vm8108_vm4, %v5052_v46  ;;  %v2791_v23 = vpop.f32.mrb[11].mxu0  ;;  %v8134_v21 = vld [vmem:[#allocation12_spill] sm:$0xff] }
 0x1eb   : > { %vm7318_vm3 = vmand %vm7268_vm6, %vm8109_vm14  ;;  %v3759_v4 = vadd.f32 %v3758_v63, %v3757_v27  ;;  %v5056_v17 = vadd.f32 %v6996_v45, %v5012_v22  ;;  %v7337_v32 = vsub.s32 %v6939_v61, %v3329_v35  ;;  %v3457_v61 = vadd.s32 18, %v7258_v42 }
 0x1ec   : > { %vm7332_vm6 = vmand %vm7279_vm0, %vm8114_vm2  ;;  %v3725_v36 = vsel %vm7250_vm15, %v5054_v39, 0.0  ;;  %3930 = vst.msk [vmem:[%s7001_s10 + $0x40] sm:$0xff] %vm8108_vm4, %v5054_v39  ;;  %v3727_v8 = vsel %vm7188_vm10, %v5052_v46, 0.0  ;;  %v3863_v52 = vsel %vm8108_vm4, %v3826_v43, 0.0  ;;  %v5058_v26 = vadd.f32 %v7024_v56, %v2791_v23  ;;  %v5015_v39 = vpop.f32.mrb[12].mxu0 }
 0x1ed   : > { %vm8117_vm14 = vmmov %vm8108_vm4  ;;  %vm8129_vm10 = vcmp.lt.s32.totalorder %v8076_v38, 288  ;;  %v3331_v38 = vsub.s32 0, %v7337_v32  ;;  %v3830_v60 = vmul.f32 %v3727_v8, %v3727_v8  ;;  %v3728_v63 = vsel %vm7318_vm3, %v5056_v17, 0.0  ;;  %v2804_v15 = vpop.f32.mrb[13].mxu0 }
 0x1ee   : > { %v3760_v55 = vsel %vm8117_vm14, %v3723_v1, 0.0  ;;  %vm8118_vm7 = vmmov %vm8108_vm4  ;;  %v3828_v1 = vmul.f32 %v3725_v36, %v3725_v36  ;;  %vm8124_vm14 = vcmp.lt.s32.totalorder %v8068_v48, 288 }
 0x1ef   : > { %v3861_v27 = vsel %vm8118_vm7, %v3825_v33, 0.0  ;;  %vm7349_vm2 = vmand %vm7304_vm11, %vm8119_vm5  ;;  %v3761_v14 = vadd.f32 %v3760_v55, %v3759_v4  ;;  %vm8123_vm7 = vcmp.ge.s32.totalorder %v8069_v29, 1  ;;  %vm3605_vm5 = vcmp.le.s32.totalorder %v8113_v16, 16 }
 0x1f0   : > { %v3862_v35 = vadd.f32 %v3861_v27, %v3860_v3  ;;  %vm8122_vm15 = vmmov %vm8108_vm4  ;;  %v3726_v33 = vsel %vm7332_vm6, %v5058_v26, 0.0  ;;  %vm8144_vm6 = vcmp.le.s32.totalorder %v8069_v29, 16  ;;  %v5060_v55 = vadd.f32 %v7041_v37, %v5015_v39 }
 0x1f1   : > { %3933 = vst.msk [vmem:[%s7001_s10 + $0x58] sm:$0xff] %vm8122_vm15, %v5056_v17  ;;  %vm7363_vm11 = vmand %vm8124_vm14, %vm8123_vm7  ;;  %vm3512_vm7 = vcmp.lt.s32.totalorder %v8132_v11, 288  ;;  %vm3544_vm14 = vcmp.ge.s32.totalorder %v6684_v40, 1  ;;  %v3829_v23 = vmul.f32 %v3726_v33, %v3726_v33  ;;  %v5062_v27 = vadd.f32 %v7058_v13, %v2804_v15 }
 0x1f2   : > { %vm8127_vm0 = vmmov %vm8108_vm4  ;;  %v3306_v37 = vshrl.u32 %v7211_v41, 4  ;;  %v3731_v39 = vsel %vm7349_vm2, %v5060_v55, 0.0 }
 0x1f3   : > { %v3762_v3 = vsel %vm8127_vm0, %v3724_v2, 0.0  ;;  %vm8128_vm9 = vmmov %vm8127_vm0  ;;  %v3864_v2 = vadd.f32 %v3863_v52, %v3862_v35 }
 0x1f4   : > { %v3764_v28 = vsel %vm8128_vm9, %v3725_v36, 0.0  ;;  %vm7376_vm15 = vmand %vm8129_vm10, %vm3540_vm12  ;;  %v3763_v46 = vadd.f32 %v3762_v3, %v3761_v14  ;;  %v5016_v36 = vpop.f32.mrb[14].mxu0  ;;  %vm8157_vm9 = vcmp.ge.s32.totalorder %v8107_v57, 1 }
 0x1f5   : > { %vm8133_vm4 = vmmov %vm8127_vm0  ;;  %v2807_v59 = vpop.f32.mrb[15].mxu0 }
 0x1f6   : > { %v3865_v7 = vsel %vm8133_vm4, %v3827_v34, 0.0  ;;  %vm7389_vm12 = vmand %vm3393_vm8, %vm3361_vm13  ;;  %vm8139_vm13 = vcmp.lt.s32.totalorder %v8084_v20, 288  ;;  %v8142_v34 = vld [vmem:[#allocation13_spill] sm:$0xff]  ;;  %v3765_v19 = vadd.f32 %v3764_v28, %v3763_v46 }
 0x1f7   : > { %vm8137_vm10 = vmmov %vm8127_vm0  ;;  %v3866_v4 = vadd.f32 %v3865_v7, %v3864_v2  ;;  %v7435_v14 = vsel %vm7389_vm12, %v3457_v61, %v7258_v42  ;;  %v3831_v61 = vmul.f32 %v3728_v63, %v3728_v63  ;;  %v8169_v7 = vld [vmem:[#allocation29_spill] sm:$0xff] }
 0x1f8   : > { %v3867_v43 = vsel %vm8137_vm10, %v3828_v1, 0.0  ;;  %vm8138_vm4 = vmmov %vm8127_vm0  ;;  %v5064_v1 = vadd.f32 %v7062_v44, %v5016_v36  ;;  %vm8165_vm10 = vcmp.lt.s32.totalorder %v8112_v31, 288 }
 0x1f9   : > { %3931 = vst.msk [vmem:[%s7001_s10 + $0x48] sm:$0xff] %vm8138_vm4, %v5058_v26  ;;  %vm7405_vm8 = vmand %vm8139_vm13, %vm3538_vm1  ;;  %vm8147_vm13 = vcmp.le.s32.totalorder %v8077_v6, 16  ;;  %v3868_v13 = vadd.f32 %v3867_v43, %v3866_v4  ;;  %v8173_v43 = vld [vmem:[#allocation18_spill] sm:$0xff] }
 0x1fa   : > { %vm8143_vm3 = vmmov %vm8127_vm0 }
 0x1fb   : > { %v3766_v17 = vsel %vm8143_vm3, %v3726_v33, 0.0  ;;  %vm7416_vm4 = vmand %vm7363_vm11, %vm8144_vm6 }
 0x1fc   : > { %vm7427_vm3 = vmand %vm7376_vm15, %vm8147_vm13  ;;  %v3767_v35 = vadd.f32 %v3766_v17, %v3765_v19  ;;  %vm8151_vm15 = vcmp.le.s32.totalorder %v8085_v30, 16  ;;  %v3729_v44 = vsel %vm7416_vm4, %v5062_v27, 0.0  ;;  %v5066_v30 = vadd.f32 %v7244_v49, %v2807_v59 }
 0x1fd   : > { %vm8150_vm6 = vmmov %vm8127_vm0 }
 0x1fe   : > { %v3869_v6 = vsel %vm8150_vm6, %v3829_v23, 0.0  ;;  %vm7444_vm13 = vmand %vm7405_vm8, %vm8151_vm15  ;;  %vm8158_vm8 = vcmp.lt.s32.totalorder %v8106_v5, 288  ;;  %v8168_v5 = vld [vmem:[#allocation16_spill] sm:$0xff]  ;;  %v5019_v23 = vpop.f32.mrb[16].mxu0 }
 0x1ff   : > { %vm8154_vm11 = vmmov %vm8127_vm0  ;;  %v3870_v48 = vadd.f32 %v3869_v6, %v3868_v13  ;;  %v3730_v31 = vsel %vm7444_vm13, %v5066_v30, 0.0  ;;  %v2820_v29 = vpop.f32.mrb[17].mxu0 }
 0x200   : > { %v3768_v42 = vsel %vm8154_vm11, %v3727_v8, 0.0  ;;  %vm8155_vm1 = vmmov %vm8127_vm0  ;;  %v8161_v8 = vld [vmem:[#allocation15_spill] sm:$0xff]  ;;  %vm8170_vm11 = vcmp.lt.s32.totalorder %v6794_v25, 0  ;;  %v3833_v17 = vmul.f32 %v3730_v31, %v3730_v31  ;;  %v5020_v52 = vpop.f32.mrb[18].mxu0 }
 0x201   : > { %3936 = vst.msk [vmem:[%s7001_s10 + $0x70] sm:$0xff] %vm8155_vm1, %v5060_v55  ;;  %vm8156_vm6 = vmmov %vm8127_vm0  ;;  %vm3545_vm1 = vcmp.ge.s32.totalorder %v6754_v50, 1  ;;  %v3769_v26 = vadd.f32 %v3768_v42, %v3767_v35  ;;  %v7483_v2 = vsel %vm8170_vm11, %v3331_v38, %v7337_v32  ;;  %v3732_v38 = vsel %vm7427_vm3, %v5064_v1, 0.0 }
 0x202   : > { %3934 = vst.msk [vmem:[%s7001_s10 + $0x60] sm:$0xff] %vm8156_vm6, %v5062_v27  ;;  %vm7461_vm15 = vmand %vm8158_vm8, %vm8157_vm9  ;;  %vm8164_vm6 = vcmp.ge.s32.totalorder %v8113_v16, 1  ;;  %vm3548_vm8 = vcmp.ge.s32.totalorder %v8169_v7, 1  ;;  %vm3546_vm9 = vcmp.ge.s32.totalorder %v6912_v10, 1  ;;  %vm8174_vm11 = vcmp.le.s32.totalorder %v8107_v57, 16 }
 0x203   : > { %vm8162_vm12 = vmmov %vm8127_vm0  ;;  %v3834_v35 = vmul.f32 %v3731_v39, %v3731_v39  ;;  %v3835_v6 = vmul.f32 %v3732_v38, %v3732_v38 }
 0x204   : > { %v3871_v28 = vsel %vm8162_vm12, %v3830_v60, 0.0  ;;  %vm8163_vm4 = vmmov %vm8127_vm0  ;;  %v3832_v60 = vmul.f32 %v3729_v44, %v3729_v44 }
 0x205   : > { %3937 = vst.msk [vmem:[%s7001_s10 + $0x78] sm:$0xff] %vm8163_vm4, %v5064_v1  ;;  %vm7474_vm0 = vmand %vm8165_vm10, %vm8164_vm6  ;;  %v3772_v56 = vsel %vm8163_vm4, %v3729_v44, 0.0  ;;  %vm3514_vm6 = vcmp.lt.s32.totalorder %v8173_v43, 288  ;;  %v3872_v33 = vadd.f32 %v3871_v28, %v3870_v48  ;;  %v3873_v19 = vsel %vm8163_vm4, %v3831_v61, 0.0  ;;  %v8188_v61 = vld [vmem:[#allocation19_spill] sm:$0xff] }
 0x206   : > { %vm8171_vm12 = vmmov %vm8163_vm4  ;;  %v8193_v48 = vld [vmem:[#allocation23_spill] sm:$0xff] }
 0x207   : > { %v3770_v46 = vsel %vm8171_vm12, %v3728_v63, 0.0  ;;  %vm8172_vm10 = vmmov %vm8163_vm4  ;;  %v4883_v63 = vpop.f32.mrb[16].mxu1  ;;  %v3874_v55 = vadd.f32 %v3873_v19, %v3872_v33 }
 0x208   : > { %3935 = vst.msk [vmem:[%s7001_s10 + $0x68] sm:$0xff] %vm8172_vm10, %v5066_v30  ;;  %v3771_v32 = vadd.f32 %v3770_v46, %v3769_v26  ;;  %vm7501_vm13 = vmand %vm7461_vm15, %vm8174_vm11  ;;  %v1636_v15 = vpop.f32.mrb[17].mxu1  ;;  %v5067_v27 = vadd.f32 %v4883_v63, %v6725_v0  ;;  %v2823_v26 = vpop.f32.mrb[19].mxu0 }
 0x209   : > { %vm8177_vm10 = vmmov %vm8163_vm4  ;;  %v5069_v36 = vadd.f32 %v6725_v0, %v1636_v15  ;;  %v4884_v13 = vpop.f32.mrb[18].mxu1 }
 0x20a   : > { %v3875_v45 = vsel %vm8177_vm10, %v3832_v60, 0.0  ;;  %vm8178_vm2 = vmmov %vm8163_vm4  ;;  %v3773_v20 = vadd.f32 %v3772_v56, %v3771_v32  ;;  %v5071_v59 = vadd.f32 %v4884_v13, %v6725_v0  ;;  %v1639_v42 = vpop.f32.mrb[19].mxu1  ;;  %vm8184_vm4 = vcmp.ge.s32.totalorder %v6707_v24, 1 }
 0x20b   : > { %v3774_v4 = vsel %vm8178_vm2, %v3730_v31, 0.0  ;;  %vm7513_vm3 = vmand %vm7474_vm0, %vm3605_vm5  ;;  %vm8185_vm10 = vcmp.lt.s32.totalorder %v8134_v21, 288  ;;  %v3876_v44 = vadd.f32 %v3875_v45, %v3874_v55  ;;  %v5068_v3 = vadd.f32 %v5067_v27, %v5019_v23  ;;  %v4887_v15 = vpop.f32.mrb[20].mxu1  ;;  %v5023_v27 = vpop.f32.mrb[20].mxu0 }
 0x20c   : > { %vm7524_vm11 = vmand %vm3512_vm7, %vm3544_vm14  ;;  %v3775_v30 = vadd.f32 %v3774_v4, %v3773_v20  ;;  %v5070_v28 = vadd.f32 %v5069_v36, %v2820_v29  ;;  %vm8190_vm5 = vcmp.lt.s32.totalorder %v8142_v34, 288  ;;  %v5072_v46 = vadd.f32 %v5071_v59, %v5020_v52  ;;  %v1652_v36 = vpop.f32.mrb[21].mxu1  ;;  %v8217_v29 = vld [vmem:[#allocation25_spill] sm:$0xff] }
 0x20d   : > { %vm8183_vm0 = vmmov %vm8178_vm2  ;;  %vm8195_vm14 = vcmp.le.s32.totalorder %v6684_v40, 16  ;;  %v5073_v34 = vadd.f32 %v6725_v0, %v1639_v42  ;;  %v7562_v60 = vadd.s32 18, %v7483_v2  ;;  %v7621_v13 = vmul.u32 18, %v3306_v37  ;;  %v4888_v59 = vpop.f32.mrb[22].mxu1 }
 0x20e   : > { %v3877_v1 = vsel %vm8183_vm0, %v3833_v17, 0.0  ;;  %vm7535_vm2 = vmand %vm8185_vm10, %vm8184_vm4  ;;  %vm8189_vm0 = vcmp.ge.s32.totalorder %v6712_v54, 1  ;;  %v3733_v40 = vsel %vm7513_vm3, %v5070_v28, 0.0  ;;  %v5077_v11 = vadd.f32 %v6725_v0, %v1652_v36 }
 0x20f   : > { %vm7545_vm15 = vmand %vm8190_vm5, %vm8189_vm0  ;;  %v3878_v33 = vadd.f32 %v3877_v1, %v3876_v44  ;;  %vm3615_vm0 = vcmp.le.s32.totalorder %v6969_v18, 16  ;;  %v3836_v45 = vmul.f32 %v3733_v40, %v3733_v40  ;;  %v2836_v1 = vpop.f32.mrb[21].mxu0  ;;  %v5079_v21 = vadd.f32 %v4888_v59, %v6725_v0 }
 0x210   : > { %vm8194_vm7 = vmmov %vm8171_vm12  ;;  %v5024_v44 = vpop.f32.mrb[22].mxu0 }
 0x211   : > { %v3776_v49 = vsel %vm8194_vm7, %v3731_v39, 0.0  ;;  %vm7556_vm12 = vmand %vm7524_vm11, %vm8195_vm14  ;;  %v3735_v39 = vsel %vm7501_vm13, %v5068_v3, 0.0  ;;  %vm8200_vm11 = vcmp.le.s32.totalorder %v6707_v24, 16  ;;  %v5080_v32 = vadd.f32 %v5079_v21, %v5024_v44 }
 0x212   : > { %v3777_v31 = vadd.f32 %v3776_v49, %v3775_v30  ;;  %vm8198_vm5 = vmmov %vm8194_vm7  ;;  %v3838_v57 = vmul.f32 %v3735_v39, %v3735_v39  ;;  %v3736_v55 = vsel %vm7556_vm12, %v5072_v46, 0.0  ;;  %v1655_v30 = vpop.f32.mrb[23].mxu1  ;;  %v2839_v49 = vpop.f32.mrb[23].mxu0 }
 0x213   : > { %3940 = vst.msk [vmem:[%s7001_s10 + $0x90] sm:$0xff] %vm8198_vm5, %v5068_v3  ;;  %vm8199_vm7 = vmmov %vm8198_vm5 }
 0x214   : > { %3938 = vst.msk [vmem:[%s7001_s10 + $0x80] sm:$0xff] %vm8199_vm7, %v5070_v28  ;;  %vm7576_vm14 = vmand %vm7535_vm2, %vm8200_vm11  ;;  %vm8207_vm7 = vcmp.le.s32.totalorder %v6712_v54, 16  ;;  %vm3613_vm2 = vcmp.le.s32.totalorder %v7008_v62, 16 }
 0x215   : > { %vm8203_vm4 = vmmov %vm8198_vm5 }
 0x216   : > { %v3879_v63 = vsel %vm8203_vm4, %v3834_v35, 0.0  ;;  %vm8204_vm13 = vmmov %vm8203_vm4 }
 0x217   : > { %v3778_v22 = vsel %vm8204_vm13, %v3732_v38, 0.0  ;;  %vm8205_vm5 = vmmov %vm8203_vm4  ;;  %v3880_v17 = vadd.f32 %v3879_v63, %v3878_v33  ;;  %v5074_v38 = vadd.f32 %v5073_v34, %v2823_v26  ;;  %v5078_v34 = vadd.f32 %v5077_v11, %v2836_v1 }
 0x218   : > { %v3780_v19 = vsel %vm8205_vm5, %v3733_v40, 0.0  ;;  %vm8206_vm3 = vmmov %vm8203_vm4  ;;  %v3779_v23 = vadd.f32 %v3778_v22, %v3777_v31  ;;  %vm8211_vm4 = vcmp.lt.s32.totalorder %v8161_v8, 288  ;;  %vm3550_vm5 = vcmp.ge.s32.totalorder %v7288_v12, 1 }
 0x219   : > { %3941 = vst.msk [vmem:[%s7001_s10 + $0x98] sm:$0xff] %vm8206_vm3, %v5072_v46  ;;  %vm7590_vm10 = vmand %vm7545_vm15, %vm8207_vm7  ;;  %vm3518_vm15 = vcmp.lt.s32.totalorder %v6619_v51, 288  ;;  %v3883_v20 = vsel %vm8206_vm3, %v3836_v45, 0.0  ;;  %vm8214_vm7 = vcmp.lt.s32.totalorder %v8168_v5, 288  ;;  %v5075_v5 = vadd.f32 %v4887_v15, %v6725_v0 }
 0x21a   : > { %vm8210_vm11 = vmmov %vm8206_vm3  ;;  %v3781_v16 = vadd.f32 %v3780_v19, %v3779_v23  ;;  %v3839_v46 = vmul.f32 %v3736_v55, %v3736_v55  ;;  %v5081_v31 = vadd.f32 %v6725_v0, %v1655_v30 }
 0x21b   : > { %v3881_v4 = vsel %vm8210_vm11, %v3835_v6, 0.0  ;;  %vm7600_vm13 = vmand %vm8211_vm4, %vm3545_vm1  ;;  %v3734_v6 = vsel %vm7576_vm14, %v5074_v38, 0.0  ;;  %v5076_v26 = vadd.f32 %v5075_v5, %v5023_v27 }
 0x21c   : > { %vm7613_vm1 = vmand %vm8214_vm7, %vm3548_vm8  ;;  %v3882_v35 = vadd.f32 %v3881_v4, %v3880_v17  ;;  %v3837_v42 = vmul.f32 %v3734_v6, %v3734_v6  ;;  %vm8236_vm7 = vcmp.lt.s32.totalorder %v8188_v61, 288  ;;  %v5082_v45 = vadd.f32 %v5081_v31, %v2839_v49  ;;  %v8269_v49 = vld [vmem:[#allocation2_spill] sm:$0xff] }
 0x21d   : > { %vm8218_vm12 = vmmov %vm8206_vm3  ;;  %v3739_v22 = vsel %vm7590_vm10, %v5076_v26, 0.0 }
 0x21e   : > { %3939 = vst.msk [vmem:[%s7001_s10 + $0x88] sm:$0xff] %vm8218_vm12, %v5074_v38  ;;  %vm7632_vm8 = vmand %vm3514_vm6, %vm3546_vm9  ;;  %vm8223_vm12 = vcmp.le.s32.totalorder %v6754_v50, 16  ;;  %v3884_v3 = vadd.f32 %v3883_v20, %v3882_v35  ;;  %vm8226_vm6 = vcmp.le.s32.totalorder %v8169_v7, 16  ;;  %v4891_v38 = vpop.f32.mrb[24].mxu1  ;;  %v5027_v20 = vpop.f32.mrb[24].mxu0  ;;  %v3842_v36 = vmul.f32 %v3739_v22, %v3739_v22  ;;  %v8268_v50 = vld [vmem:[#allocation30_spill] sm:$0xff] }
 0x21f   : > { %vm8221_vm11 = vmmov %vm8206_vm3  ;;  %v1668_v27 = vpop.f32.mrb[25].mxu1 }
 0x220   : > { %v3784_v41 = vsel %vm8221_vm11, %v3735_v39, 0.0  ;;  %vm8222_vm14 = vmmov %vm8206_vm3  ;;  %v5085_v44 = vadd.f32 %v6725_v0, %v1668_v27 }
 0x221   : > { %v3782_v37 = vsel %vm8222_vm14, %v3734_v6, 0.0  ;;  %vm7645_vm4 = vmand %vm7600_vm13, %vm8223_vm12  ;;  %vm8230_vm14 = vcmp.le.s32.totalorder %v6912_v10, 16  ;;  %v2852_v6 = vpop.f32.mrb[25].mxu0 }
 0x222   : > { %v3783_v28 = vadd.f32 %v3782_v37, %v3781_v16  ;;  %vm7655_vm11 = vmand %vm7613_vm1, %vm8226_vm6  ;;  %vm3616_vm1 = vcmp.le.s32.totalorder %v7079_v58, 16  ;;  %v3737_v19 = vsel %vm7645_vm4, %v5078_v34, 0.0  ;;  %v5028_v37 = vpop.f32.mrb[26].mxu0 }
 0x223   : > { %vm8229_vm13 = vmmov %vm8206_vm3  ;;  %v3840_v23 = vmul.f32 %v3737_v19, %v3737_v19 }
 0x224   : > { %v3885_v56 = vsel %vm8229_vm13, %v3837_v42, 0.0  ;;  %vm7665_vm12 = vmand %vm7632_vm8, %vm8230_vm14  ;;  %v3785_v39 = vadd.f32 %v3784_v41, %v3783_v28  ;;  %vm8235_vm13 = vcmp.ge.s32.totalorder %v6969_v18, 1  ;;  %v4892_v18 = vpop.f32.mrb[26].mxu1  ;;  %v2855_v28 = vpop.f32.mrb[27].mxu0 }
 0x225   : > { %vm8233_vm6 = vmmov %vm8206_vm3  ;;  %v3886_v40 = vadd.f32 %v3885_v56, %v3884_v3  ;;  %v3738_v54 = vsel %vm7665_vm12, %v5082_v45, 0.0  ;;  %v1671_v42 = vpop.f32.mrb[27].mxu1  ;;  %v5087_v30 = vadd.f32 %v4892_v18, %v6725_v0 }
 0x226   : > { %v3887_v33 = vsel %vm8233_vm6, %v3838_v57, 0.0  ;;  %vm8234_vm9 = vmmov %vm8206_vm3  ;;  %v5083_v57 = vadd.f32 %v4891_v38, %v6725_v0  ;;  %v3841_v52 = vmul.f32 %v3738_v54, %v3738_v54  ;;  %v5089_v21 = vadd.f32 %v6725_v0, %v1671_v42 }
 0x227   : > { %3944 = vst.msk [vmem:[%s7001_s10 + $0xb0] sm:$0xff] %vm8234_vm9, %v5076_v26  ;;  %vm7677_vm3 = vmand %vm8236_vm7, %vm8235_vm13  ;;  %vm8241_vm9 = vcmp.ge.s32.totalorder %v7008_v62, 1  ;;  %vm3521_vm13 = vcmp.lt.s32.totalorder %v6691_v53, 288  ;;  %v3888_v24 = vadd.f32 %v3887_v33, %v3886_v40  ;;  %v5086_v33 = vadd.f32 %v5085_v44, %v2852_v6 }
 0x228   : > { %vm8239_vm8 = vmmov %vm8233_vm6  ;;  %v5084_v41 = vadd.f32 %v5083_v57, %v5027_v20  ;;  %v5090_v40 = vadd.f32 %v5089_v21, %v2855_v28 }
 0x229   : > { %v3786_v63 = vsel %vm8239_vm8, %v3736_v55, 0.0  ;;  %vm8240_vm14 = vmmov %vm8233_vm6  ;;  %vm8242_vm6 = vcmp.lt.s32.totalorder %v8193_v48, 288  ;;  %vm3553_vm8 = vcmp.ge.s32.totalorder %v7435_v14, 1  ;;  %v3740_v48 = vsel %vm7655_vm11, %v5080_v32, 0.0 }
 0x22a   : > { %3942 = vst.msk [vmem:[%s7001_s10 + $0xa0] sm:$0xff] %vm8240_vm14, %v5078_v34  ;;  %vm7692_vm7 = vmand %vm8242_vm6, %vm8241_vm9  ;;  %v3787_v4 = vadd.f32 %v3786_v63, %v3785_v39  ;;  %v3843_v1 = vmul.f32 %v3740_v48, %v3740_v48  ;;  %v5088_v39 = vadd.f32 %v5087_v30, %v5028_v37 }
 0x22b   : > { %vm8245_vm10 = vmmov %vm8240_vm14 }
 0x22c   : > { %v3788_v17 = vsel %vm8245_vm10, %v3737_v19, 0.0  ;;  %vm8246_vm4 = vmmov %vm8245_vm10 }
 0x22d   : > { %3945 = vst.msk [vmem:[%s7001_s10 + $0xb8] sm:$0xff] %vm8246_vm4, %v5080_v32  ;;  %vm8247_vm14 = vmmov %vm8246_vm4  ;;  %v3789_v8 = vadd.f32 %v3788_v17, %v3787_v4 }
 0x22e   : > { %v3889_v15 = vsel %vm8247_vm14, %v3839_v46, 0.0  ;;  %vm8248_vm9 = vmmov %vm8246_vm4  ;;  %v7764_v46 = vsub.s32 %v8269_v49, %v7621_v13 }
 0x22f   : > { %3943 = vst.msk [vmem:[%s7001_s10 + $0xa8] sm:$0xff] %vm8248_vm9, %v5082_v45  ;;  %vm7713_vm6 = vmand %vm7677_vm3, %vm3615_vm0  ;;  %v3890_v16 = vadd.f32 %v3889_v15, %v3888_v24  ;;  %vm3617_vm0 = vcmp.le.s32.totalorder %v7435_v14, 16  ;;  %v5031_v24 = vpop.f32.mrb[28].mxu0 }
 0x230   : > { %vm8251_vm11 = vmmov %vm8246_vm4  ;;  %v3743_v0 = vsel %vm7713_vm6, %v5084_v41, 0.0  ;;  %v2868_v15 = vpop.f32.mrb[29].mxu0  ;;  %v3309_v57 = vsub.s32 0, %v7764_v46 }
 0x231   : > { %v3891_v35 = vsel %vm8251_vm11, %v3840_v23, 0.0  ;;  %vm7722_vm12 = vmand %vm7692_vm7, %vm3613_vm2  ;;  %vm8257_vm2 = vcmp.ge.s32.totalorder %v7079_v58, 1  ;;  %vm8258_vm7 = vcmp.lt.s32.totalorder %v8217_v29, 288  ;;  %v3846_v45 = vmul.f32 %v3743_v0, %v3743_v0 }
 0x232   : > { %vm8254_vm3 = vmmov %vm8246_vm4  ;;  %v3892_v11 = vadd.f32 %v3891_v35, %v3890_v16  ;;  %v3741_v61 = vsel %vm7722_vm12, %v5086_v33, 0.0 }
 0x233   : > { %v3790_v59 = vsel %vm8254_vm3, %v3738_v54, 0.0  ;;  %vm7732_vm10 = vmand %vm3518_vm15, %vm3550_vm5  ;;  %vm3555_vm5 = vcmp.ge.s32.totalorder %v7293_v9, 1  ;;  %vm3300_vm15 = vcmp.lt.s32.totalorder %v8268_v50, 0  ;;  %v3844_v23 = vmul.f32 %v3741_v61, %v3741_v61 }
 0x234   : > { %v3791_v43 = vadd.f32 %v3790_v59, %v3789_v8  ;;  %vm7742_vm4 = vmand %vm8258_vm7, %vm8257_vm2  ;;  %vm8265_vm2 = vcmp.lt.s32.totalorder %v7483_v2, 0  ;;  %v5032_v8 = vpop.f32.mrb[30].mxu0 }
 0x235   : > { %vm8261_vm14 = vmmov %vm8254_vm3  ;;  %v2871_v18 = vpop.f32.mrb[31].mxu0 }
 0x236   : > { %v3792_v51 = vsel %vm8261_vm14, %v3739_v22, 0.0  ;;  %vm8262_vm9 = vmmov %vm8254_vm3  ;;  %v4895_v22 = vpop.f32.mrb[28].mxu1 }
 0x237   : > { %v3893_v26 = vsel %vm8262_vm9, %v3841_v52, 0.0  ;;  %vm8263_vm11 = vmmov %vm8254_vm3  ;;  %vm8264_vm3 = vcmp.ne.s32.totalorder %v7483_v2, 0  ;;  %v3793_v34 = vadd.f32 %v3792_v51, %v3791_v43  ;;  %v1684_v4 = vpop.f32.mrb[29].mxu1  ;;  %v3310_v51 = vsel %vm3300_vm15, %v3309_v57, %v7764_v46 }
 0x238   : > { %3948 = vst.msk [vmem:[%s7001_s10 + $0xd0] sm:$0xff] %vm8263_vm11, %v5084_v41  ;;  %vm7757_vm7 = vmand %vm8265_vm2, %vm8264_vm3  ;;  %v3894_v31 = vadd.f32 %v3893_v26, %v3892_v11  ;;  %vm3619_vm2 = vcmp.le.s32.totalorder %v7293_v9, 16  ;;  %v4896_v54 = vpop.f32.mrb[30].mxu1 }
 0x239   : > { %vm8270_vm14 = vmmov %vm8262_vm9  ;;  %vm8271_vm9 = vcmp.le.s32.totalorder %v7288_v12, 16  ;;  %v7792_v19 = vsel %vm7757_vm7, %v7562_v60, %v7483_v2  ;;  %v5438_v2 = vld [vmem:[%s7892_s2] ss:$0 sm:$0xff]  ;;  %v1687_v16 = vpop.f32.mrb[31].mxu1 }
 0x23a   : > { %v3895_v56 = vsel %vm8270_vm14, %v3842_v36, 0.0  ;;  %vm7773_vm11 = vmand %vm7732_vm10, %vm8271_vm9  ;;  %vm3524_vm10 = vcmp.lt.s32.totalorder %v6794_v25, 288  ;;  %v5091_v60 = vadd.f32 %v5438_v2, %v4895_v22  ;;  %v5093_v6 = vadd.f32 %v5438_v2, %v1684_v4 }
 0x23b   : > { %vm8274_vm3 = vmmov %vm8270_vm14  ;;  %v3896_v10 = vadd.f32 %v3895_v56, %v3894_v31  ;;  %v3742_v58 = vsel %vm7773_vm11, %v5090_v40, 0.0  ;;  %v5095_v5 = vadd.f32 %v5438_v2, %v4896_v54  ;;  %v5097_v11 = vadd.f32 %v5438_v2, %v1687_v16 }
 0x23c   : > { %v3794_v13 = vsel %vm8274_vm3, %v3740_v48, 0.0  ;;  %vm8275_vm14 = vmmov %vm8274_vm3  ;;  %3949 = vst.msk [vmem:[%s7001_s10 + $0xd8] sm:$0xff] %vm8274_vm3, %v5088_v39  ;;  %v3845_v36 = vmul.f32 %v3742_v58, %v3742_v58  ;;  %v5092_v53 = vadd.f32 %v5091_v60, %v5031_v24  ;;  %v5094_v42 = vadd.f32 %v5093_v6, %v2868_v15 }
 0x23d   : > { %v3897_v32 = vsel %vm8275_vm14, %v3843_v1, 0.0  ;;  %v3795_v12 = vadd.f32 %v3794_v13, %v3793_v34  ;;  %vm7784_vm6 = vmand %vm7742_vm4, %vm3616_vm1  ;;  %v5096_v62 = vadd.f32 %v5095_v5, %v5032_v8  ;;  %v5098_v28 = vadd.f32 %v5097_v11, %v2871_v18 }
 0x23e   : > { %vm8278_vm9 = vmmov %vm8274_vm3  ;;  %v3898_v38 = vadd.f32 %v3897_v32, %v3896_v10  ;;  %v3744_v55 = vsel %vm7784_vm6, %v5088_v39, 0.0  ;;  %v3458_v31 = vadd.s32 18, %v3310_v51 }
 0x23f   : > { %3946 = vst.msk [vmem:[%s7001_s10 + $0xc0] sm:$0xff] %vm8278_vm9, %v5086_v33  ;;  %vm8279_vm1 = vmmov %vm8274_vm3  ;;  %v3847_v37 = vmul.f32 %v3744_v55, %v3744_v55  ;;  %vm8289_vm3 = vcmp.lt.s32.totalorder %v6680_v47, 288 }
 0x240   : > { %3947 = vst.msk [vmem:[%s7001_s10 + $0xc8] sm:$0xff] %vm8279_vm1, %v5090_v40  ;;  %vm8280_vm4 = vmmov %vm8279_vm1 }
 0x241   : > { %v3796_v17 = vsel %vm8280_vm4, %v3741_v61, 0.0  ;;  %vm7813_vm12 = vmand %vm3521_vm13, %vm3553_vm8  ;;  %vm3556_vm4 = vcmp.ge.s32.totalorder %v7792_v19, 1 }
 0x242   : > { %v3797_v20 = vadd.f32 %v3796_v17, %v3795_v12  ;;  %vm8283_vm7 = vmmov %vm8279_vm1 }
 0x243   : > { %v3798_v27 = vsel %vm8283_vm7, %v3742_v58, 0.0  ;;  %vm8284_vm11 = vmmov %vm8279_vm1 }
 0x244   : > { %v3899_v35 = vsel %vm8284_vm11, %v3844_v23, 0.0  ;;  %vm8285_vm13 = vmmov %vm8279_vm1  ;;  %v3799_v52 = vadd.f32 %v3798_v27, %v3797_v20 }
 0x245   : > { %v3800_v1 = vsel %vm8285_vm13, %v3743_v0, 0.0  ;;  %v3900_v59 = vadd.f32 %v3899_v35, %v3898_v38  ;;  %vm8286_vm8 = vmmov %vm8279_vm1 }
 0x246   : > { %v3901_v41 = vsel %vm8286_vm8, %v3845_v36, 0.0  ;;  %vm3649_vm14 = vmand %vm7813_vm12, %vm3617_vm0  ;;  %v3801_v44 = vadd.f32 %v3800_v1, %v3799_v52  ;;  %vm3620_vm8 = vcmp.le.s32.totalorder %v7792_v19, 16 }
 0x247   : > { %vm8287_vm6 = vmmov %vm8279_vm1  ;;  %v3902_v30 = vadd.f32 %v3901_v41, %v3900_v59  ;;  %v3745_v3 = vsel %vm3649_vm14, %v5094_v42, 0.0  ;;  %vm3362_vm14 = vcmp.ne.s32.totalorder %v3310_v51, 0 }
 0x248   : > { %3952 = vst.msk [vmem:[%s7001_s10 + $0xf0] sm:$0xff] %vm8287_vm6, %v5092_v53  ;;  %vm8288_vm9 = vmmov %vm8279_vm1  ;;  %v3848_v56 = vmul.f32 %v3745_v3, %v3745_v3 }
 0x249   : > { %v3903_v43 = vsel %vm8288_vm9, %v3846_v45, 0.0  ;;  %vm3587_vm1 = vmand %vm8289_vm3, %vm3555_vm5  ;;  %vm3394_vm9 = vcmp.lt.s32.totalorder %v3310_v51, 0 }
 0x24a   : > { %vm8290_vm7 = vmmov %vm8287_vm6  ;;  %v3904_v26 = vadd.f32 %v3903_v43, %v3902_v30 }
 0x24b   : > { %v3802_v14 = vsel %vm8290_vm7, %v3744_v55, 0.0  ;;  %vm8291_vm0 = vmmov %vm8287_vm6 }
 0x24c   : > { %3950 = vst.msk [vmem:[%s7001_s10 + $0xe0] sm:$0xff] %vm8291_vm0, %v5094_v42  ;;  %vm8292_vm12 = vmmov %vm8291_vm0  ;;  %v3803_v21 = vadd.f32 %v3802_v14, %v3801_v44 }
 0x24d   : > { %3953 = vst.msk [vmem:[%s7001_s10 + $0xf8] sm:$0xff] %vm8292_vm12, %v5096_v62  ;;  %vm8293_vm11 = vmmov %vm8291_vm0 }
 0x24e   : > { %v3804_v47 = vsel %vm8293_vm11, %v3745_v3, 0.0  ;;  %vm8294_vm5 = vmmov %vm8291_vm0 }
 0x24f   : > { %v3905_v29 = vsel %vm8294_vm5, %v3847_v37, 0.0  ;;  %vm7848_vm13 = vmand %vm3587_vm1, %vm3619_vm2  ;;  %v3805_v34 = vadd.f32 %v3804_v47, %v3803_v21  ;;  %vm3522_vm1 = vcmp.lt.s32.totalorder %v8268_v50, 288 }
 0x250   : > { %vm8297_vm6 = vmmov %vm8291_vm0  ;;  %v3906_v46 = vadd.f32 %v3905_v29, %v3904_v26  ;;  %v3747_v13 = vsel %vm7848_vm13, %v5092_v53, 0.0 }
 0x251   : > { %3951 = vst.msk [vmem:[%s7001_s10 + $0xe8] sm:$0xff] %vm8297_vm6, %v5098_v28  ;;  %vm3588_vm15 = vmand %vm3524_vm10, %vm3556_vm4  ;;  %v3850_v39 = vmul.f32 %v3747_v13, %v3747_v13 }
 0x252   : > { %vm8298_vm3 = vmmov %vm8291_vm0 }
 0x253   : > { %v3907_v9 = vsel %vm8298_vm3, %v3848_v56, 0.0  ;;  %vm3426_vm2 = vmand %vm3394_vm9, %vm3362_vm14 }
 0x254   : > { %v3908_v0 = vadd.f32 %v3907_v9, %v3906_v46  ;;  %v3490_v7 = vsel %vm3426_vm2, %v3458_v31, %v3310_v51  ;;  %vm3652_vm7 = vmand %vm3588_vm15, %vm3620_vm8  ;;  %vm3818_vm15 = vcmask 24576  }
 0x255   : > { %vm3554_vm0 = vcmp.ge.s32.totalorder %v3490_v7, 1  ;;  %vm3618_vm12 = vcmp.le.s32.totalorder %v3490_v7, 16  ;;  %v3748_v25 = vsel %vm3652_vm7, %v5096_v62, 0.0  ;;  %vm8299_vm10 = vmmov %vm8298_vm3 }
 0x256   : > { %vm3586_vm11 = vmand %vm3522_vm1, %vm3554_vm0  ;;  %v3851_v12 = vmul.f32 %v3748_v25, %v3748_v25 }
 0x257   : > { %vm3650_vm5 = vmand %vm3586_vm11, %vm3618_vm12 }
 0x258   : > { %v3746_v33 = vsel %vm3650_vm5, %v5098_v28, 0.0  ;;  %vm8300_vm4 = vmmov %vm8298_vm3 }
 0x259   : > { %v3806_v40 = vsel %vm8299_vm10, %v3746_v33, 0.0  ;;  %v3849_v32 = vmul.f32 %v3746_v33, %v3746_v33  ;;  %v3808_v10 = vsel %vm8300_vm4, %v3747_v13, 0.0  ;;  %vm8301_vm8 = vmmov %vm8298_vm3 }
 0x25a   : > { %v3807_v50 = vadd.f32 %v3806_v40, %v3805_v34  ;;  %vm8302_vm13 = vmmov %vm8298_vm3 }
 0x25b   : > { %v3909_v63 = vsel %vm8301_vm8, %v3849_v32, 0.0  ;;  %v3911_v45 = vsel %vm8302_vm13, %v3850_v39, 0.0  ;;  %vm8303_vm14 = vmmov %vm8298_vm3 }
 0x25c   : > { %v3809_v22 = vadd.f32 %v3808_v10, %v3807_v50  ;;  %v3910_v19 = vadd.f32 %v3909_v63, %v3908_v0  ;;  %v3810_v61 = vsel %vm8303_vm14, %v3748_v25, 0.0  ;;  %vm8304_vm6 = vmmov %vm8298_vm3 }
 0x25d   : > { %v3913_v60 = vsel %vm8304_vm6, %v3851_v12, 0.0 }
 0x25e   : > { %v3811_v58 = vadd.f32 %v3810_v61, %v3809_v22  ;;  %v3912_v2 = vadd.f32 %v3911_v45, %v3910_v19 }
 0x260   : > { %v3812_v24 = vrot.slane %v3811_v58, 4  ;;  %v3914_v4 = vadd.f32 %v3913_v60, %v3912_v2 }
 0x262   : > { %v3813_v17 = vadd.f32 %v3812_v24, %v3811_v58  ;;  %v3915_v23 = vrot.slane %v3914_v4, 4 }
 0x264   : > { %v3814_v38 = vrot.slane %v3813_v17, 2  ;;  %v3916_v15 = vadd.f32 %v3915_v23, %v3914_v4 }
 0x266   : > { %v3815_v48 = vadd.f32 %v3814_v38, %v3813_v17  ;;  %v3917_v54 = vrot.slane %v3916_v15, 2 }
 0x268   : > { %v3816_v57 = vrot.slane %v3815_v48, 1  ;;  %v3918_v20 = vadd.f32 %v3917_v54, %v3916_v15 }
 0x26a   : > { %v3817_v55 = vadd.f32 %v3816_v57, %v3815_v48  ;;  %v3919_v27 = vrot.slane %v3918_v20, 1 }
 0x26c   : > { %3819 = vst.msk [vmem:[%s241_s25] sm:$0x1] %vm3818_vm15, %v3817_v55  ;;  %v3920_v36 = vadd.f32 %v3919_v27, %v3918_v20 }
 0x26e   : > { %3921 = vst.msk [vmem:[%s241_s25 + $0x1] sm:$0x1] %vm3818_vm15, %v3920_v36 }
 0x26f PF: > { %s15_s19 = sadd.s32 1, %s5477_s19   ;;  %s8305_s15 = smov %s5469_s17 }
 0x270   : > { %p12_p8 = scmp.ge.s32.totalorder %s15_s19, 6   ;;  %s8306_s16 = smov %s5473_s18 }
 0x271   : > { %s8307_s17 = smov %s8310_s20  ;;  %s8308_s18 = smov %s8314_s21 }
 0x272   :  { %14 = sbr.rel (!%p12_p8) target bundleno = 3 (0x3), region = 91 }

// kernel: double_conv_forward.6
= control target key start
LH: loop header
LB: loop body
LE: loop exit
PB: predicated region body
PF: predicated region fallthrough
CT: control target
= control target key end

     0   :  { %s5505_s15 = smov 0   ;;  %s5507_s16 = smov 0   ;;  %s7937_s0 = inlined_call_operand.vmem [shape: f32[2,550,4], index: 0, kind: input, shape index: {}]   ;;  %s7938_s1 = inlined_call_operand.vmem [shape: bf16[9,4,8], index: 1, kind: input, shape index: {}]   ;;  %s7939_s2 = inlined_call_operand.vmem [shape: f32[1,8], index: 2, kind: input, shape index: {}]   ;;  %s7940_s3 = inlined_call_operand.vmem [shape: f32[2,512,8], index: 3, kind: output, shape index: {0}]   ;;  %s7941_s4 = inlined_call_operand.vmem [shape: f32[2,2,2,8], index: 4, kind: output, shape index: {1}]  }
   0x1   :  { %s5509_s17 = smov 0   ;;  %s5511_s18 = smov 0  }
   0x2   :  { %s5513_s19 = smov 0  }
   0x3 LB: > { %s24_s20 = sadd.s32 1, %s5470_s17  ;;  %s27_s21 = sadd.s32 1, %s5474_s18  ;;  %s5478_s19 = sphi %s5513_s19, %s15_s19   ;;  %s5474_s18 = sphi %s5511_s18, %s8360_s18   ;;  %s5470_s17 = sphi %s5509_s17, %s8359_s17   ;;  %s5466_s16 = sphi %s5507_s16, %s8358_s16   ;;  %s5462_s15 = sphi %s5505_s15, %s8357_s15  }
   0x4   : > { %p25_p0 = scmp.ge.s32.totalorder %s24_s20, 2  ;;  %p4116_p1 = scmp.ge.s32.totalorder %s5478_s19, 1 }
   0x5   : > { %p181_p2 = scmp.lt.s32.totalorder %s5478_s19, 5 }
   0x6   : > { %s8362_s20 = smov (%p25_p0, %s24_s20), 0  ;;  %s8364_s21 = smov (!%p25_p0, %s27_s21), %s5474_s18 }
   0x7   : > { %p182_p3 = pnand %p4116_p1, %p181_p2  ;;  %p29_p4 = scmp.ge.s32.totalorder %s8364_s21, 2 }
   0x9   : > { %s8366_s21 = smov (%p29_p4, %s8364_s21), 0  ;;  %185 = sbr.rel (%p182_p3) target bundleno = 619 (0x26b), region = 32 }
  0x10   : > { %v300_v0 = vld [vmem:[%s7938_s1] sm:$0x3]  ;;  %vm350_vm0 = vcmask 1041408   ;;  %v5543_v1 = vld [vmem:[%s7938_s1 + $0x8] sm:$0x3]  ;;  %p219_p5 = scmp.lt.s32.totalorder %s5466_s16, 1 }
  0x11   : > { %5324 = vmatprep.subr.msk.bf16.mxu1 %vm350_vm0, %v300_v0  ;;  %v352_v2 = vsel %vm350_vm0, %v300_v0, 0  ;;  %5328 = vmatprep.subr.msk.bf16.mxu0 %vm350_vm0, %v5543_v1  ;;  %v5551_v3 = vsel %vm350_vm0, %v5543_v1, 0  ;;  %v4174_v4 = vld [vmem:[%s7938_s1 + $0x2] sm:$0x3]  ;;  %v4374_v5 = vld [vmem:[%s7938_s1 + $0xa] sm:$0x3] }
  0x12   : > { %4729 = vmatpush3.bf16.msra.mxu1 %v352_v2  ;;  %4865 = vmatpush3.bf16.msra.mxu0 %v5551_v3  ;;  %s8368_s16 = smov (!%p219_p5, %s5466_s16), 1  ;;  %s4123_s5 = sshll.u32 %s5462_s15, 8  ;;  %vm301_vm1 = vcmask 31744   ;;  %v648_v15 = vsel %vm350_vm0, %v4174_v4, 0  ;;  %v1832_v20 = vsel %vm350_vm0, %v4374_v5, 0 }
  0x13   : > { %5325 = vmatprep.subr.msk.bf16.mxu1 %vm350_vm0, %v4174_v4  ;;  %5330 = vmatprep.subr.msk.bf16.mxu0 %vm350_vm0, %v4374_v5  ;;  %s5334_s30 = smul.u32 552, %s8368_s16  ;;  %v5593_v26 = vld [vmem:[%s7938_s1 + $0xc] sm:$0x3]  ;;  %v5598_v27 = vld [vmem:[%s7938_s1 + $0x4] sm:$0x3]  ;;  %s4118_s27 = sshll.u32 %s5462_s15, 5 }
  0x14   : > { %p6803_p6 = scmp.lt.s32.totalorder %s4118_s27, 63  ;;  %p236_p7 = scmp.lt.s32.totalorder %s5462_s15, 1 }
  0x15   : > { %s223_s8 = scalar_lea.vmem %s7937_s0, %s5334_s30  ;;  %s4121_s13 = sshll.u32 %s8368_s16, 1 }
  0x16   : > { %s5571_s9 = scalar_lea.vmem %s223_s8, %s4123_s5  ;;  %s8370_s27 = smov (!%p6803_p6, %s4118_s27), 63 }
  0x17   : > { %v252_v6 = vld [vmem:[%s5571_s9] sm:$0xff]  ;;  %v253_v7 = vld [vmem:[%s5571_s9 + $0x8] sm:$0xff]  ;;  %v4292_v8 = vld [vmem:[%s5571_s9 + $0x13] sm:$0xff]  ;;  %s8372_s15 = smov (!%p236_p7, %s5462_s15), 1 }
  0x18   : > { %v284_v9 = vpack.c.bf16 %v253_v7, %v252_v6  ;;  %v4293_v10 = vld [vmem:[%s5571_s9 + $0x1b] sm:$0xff]  ;;  %v254_v11 = vld [vmem:[%s5571_s9 + $0x10] sm:$0xff]  ;;  %v4294_v16 = vld [vmem:[%s5571_s9 + $0x23] sm:$0xff]  ;;  %s239_s14 = sadd.s32 %s4121_s13, %s8372_s15 }
  0x19   : > { %v255_v12 = vld [vmem:[%s5571_s9 + $0x18] sm:$0xff]  ;;  %v1469_v13 = vpack.c.bf16 %v4293_v10, %v4292_v8  ;;  %v4295_v17 = vld [vmem:[%s5571_s9 + $0x2b] sm:$0xff]  ;;  %v256_v18 = vld [vmem:[%s5571_s9 + $0x20] sm:$0xff]  ;;  %s4122_s22 = sshll.u32 %s239_s14, 1 }
  0x1a   : > { %v285_v14 = vpack.c.bf16 %v255_v12, %v254_v11  ;;  %4730 = vmatprep.mubr.msk.bf16.mxu1 %vm301_vm1, %v284_v9  ;;  %v1470_v19 = vpack.c.bf16 %v4295_v17, %v4294_v16  ;;  %v257_v21 = vld [vmem:[%s5571_s9 + $0x28] sm:$0xff]  ;;  %v4296_v22 = vld [vmem:[%s5571_s9 + $0x33] sm:$0xff]  ;;  %v4297_v23 = vld [vmem:[%s5571_s9 + $0x3b] sm:$0xff]  ;;  %s241_s25 = scalar_lea.vmem %s7941_s4, %s4122_s22 }
  0x1b   : > { %4866 = vmatprep.mubr.msk.bf16.mxu0 %vm301_vm1, %v1469_v13  ;;  %v286_v24 = vpack.c.bf16 %v257_v21, %v256_v18  ;;  %v1471_v25 = vpack.c.bf16 %v4297_v23, %v4296_v22  ;;  %v258_v28 = vld [vmem:[%s5571_s9 + $0x30] sm:$0xff]  ;;  %v259_v29 = vld [vmem:[%s5571_s9 + $0x38] sm:$0xff]  ;;  %v4298_v30 = vld [vmem:[%s5571_s9 + $0x43] sm:$0xff] }
  0x1c   : > { %4731 = vmatmul.mubr.msk.bf16.vlgmr.msra.gmra.mrb[0].mxu1 %vm301_vm1, %v285_v14  ;;  %4867 = vmatmul.mubr.msk.bf16.vlgmr.msra.gmra.mrb[0].mxu0 %vm301_vm1, %v1470_v19  ;;  %v4299_v31 = vld [vmem:[%s5571_s9 + $0x4b] sm:$0xff]  ;;  %v260_v32 = vld [vmem:[%s5571_s9 + $0x40] sm:$0xff]  ;;  %v4300_v34 = vld [vmem:[%s5571_s9 + $0x53] sm:$0xff]  ;;  %v287_v36 = vpack.c.bf16 %v259_v29, %v258_v28  ;;  %v2128_v14 = vsel %vm350_vm0, %v5593_v26, 0 }
  0x1d   : > { %4763 = vmatpush3.bf16.msra.mxu1 %v648_v15  ;;  %4899 = vmatpush3.bf16.msra.mxu0 %v1832_v20  ;;  %v261_v33 = vld [vmem:[%s5571_s9 + $0x48] sm:$0xff]  ;;  %v4301_v35 = vld [vmem:[%s5571_s9 + $0x5b] sm:$0xff]  ;;  %v1472_v37 = vpack.c.bf16 %v4299_v31, %v4298_v30  ;;  %v262_v40 = vld [vmem:[%s5571_s9 + $0x50] sm:$0xff] }
  0x1e   : > { %4734 = vmatprep.mubr.msk.bf16.mxu1 %vm301_vm1, %v286_v24  ;;  %4870 = vmatprep.mubr.msk.bf16.mxu0 %vm301_vm1, %v1471_v25  ;;  %v288_v38 = vpack.c.bf16 %v261_v33, %v260_v32  ;;  %v1473_v39 = vpack.c.bf16 %v4301_v35, %v4300_v34  ;;  %v263_v41 = vld [vmem:[%s5571_s9 + $0x58] sm:$0xff]  ;;  %v4302_v42 = vld [vmem:[%s5571_s9 + $0x63] sm:$0xff]  ;;  %v4303_v43 = vld [vmem:[%s5571_s9 + $0x6b] sm:$0xff] }
  0x1f   : > { %5331 = vmatprep.subr.msk.bf16.mxu0 %vm350_vm0, %v5593_v26  ;;  %5326 = vmatprep.subr.msk.bf16.mxu1 %vm350_vm0, %v5598_v27  ;;  %v264_v44 = vld [vmem:[%s5571_s9 + $0x60] sm:$0xff]  ;;  %v265_v45 = vld [vmem:[%s5571_s9 + $0x68] sm:$0xff]  ;;  %v4304_v46 = vld [vmem:[%s5571_s9 + $0x73] sm:$0xff]  ;;  %v289_v48 = vpack.c.bf16 %v263_v41, %v262_v40  ;;  %v1474_v49 = vpack.c.bf16 %v4303_v43, %v4302_v42 }
  0x20   : > { %v4305_v47 = vld [vmem:[%s5571_s9 + $0x7b] sm:$0xff]  ;;  %v290_v50 = vpack.c.bf16 %v265_v45, %v264_v44  ;;  %v266_v52 = vld [vmem:[%s5571_s9 + $0x70] sm:$0xff]  ;;  %v4306_v54 = vld [vmem:[%s5571_s9 + $0x83] sm:$0xff] }
  0x21   : > { %v1475_v51 = vpack.c.bf16 %v4305_v47, %v4304_v46  ;;  %v267_v53 = vld [vmem:[%s5571_s9 + $0x78] sm:$0xff]  ;;  %v4307_v55 = vld [vmem:[%s5571_s9 + $0x8b] sm:$0xff]  ;;  %v268_v56 = vld [vmem:[%s5571_s9 + $0x80] sm:$0xff] }
  0x22   : > { %v269_v57 = vld [vmem:[%s5571_s9 + $0x88] sm:$0xff]  ;;  %v4342_v58 = vld [vmem:[%s5571_s9 + $0x14] sm:$0xff]  ;;  %v4343_v59 = vld [vmem:[%s5571_s9 + $0x1c] sm:$0xff]  ;;  %v291_v60 = vpack.c.bf16 %v267_v53, %v266_v52  ;;  %v1476_v61 = vpack.c.bf16 %v4307_v55, %v4306_v54 }
  0x23   : > { %v292_v62 = vpack.c.bf16 %v269_v57, %v268_v56  ;;  %v1765_v63 = vpack.c.bf16 %v4343_v59, %v4342_v58  ;;  %v270_v0 = vld [vmem:[%s5571_s9 + $0x90] sm:$0xff]  ;;  %v271_v2 = vld [vmem:[%s5571_s9 + $0x98] sm:$0xff]  ;;  %v4344_v4 = vld [vmem:[%s5571_s9 + $0x24] sm:$0xff] }
  0x24   : > { %4735 = vmatmul.mubr.msk.bf16.gmra.mrb[4].mxu1 %vm301_vm1, %v287_v36  ;;  %4871 = vmatmul.mubr.msk.bf16.gmra.mrb[4].mxu0 %vm301_vm1, %v1472_v37  ;;  %v4345_v5 = vld [vmem:[%s5571_s9 + $0x2c] sm:$0xff]  ;;  %v272_v6 = vld [vmem:[%s5571_s9 + $0xa0] sm:$0xff]  ;;  %v4346_v8 = vld [vmem:[%s5571_s9 + $0x34] sm:$0xff]  ;;  %v293_v10 = vpack.c.bf16 %v271_v2, %v270_v0 }
  0x25   : > { %4738 = vmatprep.mubr.msk.bf16.mxu1 %vm301_vm1, %v288_v38  ;;  %4874 = vmatprep.mubr.msk.bf16.mxu0 %vm301_vm1, %v1473_v39  ;;  %v273_v7 = vld [vmem:[%s5571_s9 + $0xa8] sm:$0xff]  ;;  %v4347_v9 = vld [vmem:[%s5571_s9 + $0x3c] sm:$0xff]  ;;  %v5651_v11 = vpack.c.bf16 %v4345_v5, %v4344_v4  ;;  %v274_v16 = vld [vmem:[%s5571_s9 + $0xb0] sm:$0xff] }
  0x26   : > { %v294_v12 = vpack.c.bf16 %v273_v7, %v272_v6  ;;  %v5653_v13 = vpack.c.bf16 %v4347_v9, %v4346_v8  ;;  %v5661_v15 = vld [vmem:[%s7938_s1 + $0xe] sm:$0x3]  ;;  %v275_v17 = vld [vmem:[%s5571_s9 + $0xb8] sm:$0xff]  ;;  %v4348_v18 = vld [vmem:[%s5571_s9 + $0x44] sm:$0xff] }
  0x27   : > { %v4349_v19 = vld [vmem:[%s5571_s9 + $0x4c] sm:$0xff]  ;;  %v276_v20 = vld [vmem:[%s5571_s9 + $0xc0] sm:$0xff]  ;;  %v4350_v22 = vld [vmem:[%s5571_s9 + $0x54] sm:$0xff]  ;;  %v295_v24 = vpack.c.bf16 %v275_v17, %v274_v16 }
  0x28   : > { %v277_v21 = vld [vmem:[%s5571_s9 + $0xc8] sm:$0xff]  ;;  %v4351_v23 = vld [vmem:[%s5571_s9 + $0x5c] sm:$0xff]  ;;  %v5678_v25 = vpack.c.bf16 %v4349_v19, %v4348_v18  ;;  %v278_v29 = vld [vmem:[%s5571_s9 + $0xd0] sm:$0xff] }
  0x29   : > { %v296_v26 = vpack.c.bf16 %v277_v21, %v276_v20  ;;  %v5680_v28 = vpack.c.bf16 %v4351_v23, %v4350_v22  ;;  %v279_v30 = vld [vmem:[%s5571_s9 + $0xd8] sm:$0xff]  ;;  %v4352_v31 = vld [vmem:[%s5571_s9 + $0x64] sm:$0xff]  ;;  %v4353_v32 = vld [vmem:[%s5571_s9 + $0x6c] sm:$0xff] }
  0x2a   : > { %v280_v33 = vld [vmem:[%s5571_s9 + $0xe0] sm:$0xff]  ;;  %v281_v34 = vld [vmem:[%s5571_s9 + $0xe8] sm:$0xff]  ;;  %v4354_v35 = vld [vmem:[%s5571_s9 + $0x74] sm:$0xff]  ;;  %v297_v37 = vpack.c.bf16 %v279_v30, %v278_v29  ;;  %v5696_v38 = vpack.c.bf16 %v4353_v32, %v4352_v31 }
  0x2b   : > { %v4355_v36 = vld [vmem:[%s5571_s9 + $0x7c] sm:$0xff]  ;;  %v298_v39 = vpack.c.bf16 %v281_v34, %v280_v33  ;;  %v282_v41 = vld [vmem:[%s5571_s9 + $0xf0] sm:$0xff]  ;;  %v4356_v43 = vld [vmem:[%s5571_s9 + $0x84] sm:$0xff] }
  0x2c   : > { %4739 = vmatmul.mubr.msk.bf16.gmra.mrb[8].mxu1 %vm301_vm1, %v289_v48  ;;  %4875 = vmatmul.mubr.msk.bf16.gmra.mrb[8].mxu0 %vm301_vm1, %v1474_v49  ;;  %v5698_v40 = vpack.c.bf16 %v4355_v36, %v4354_v35  ;;  %v283_v42 = vld [vmem:[%s5571_s9 + $0xf8] sm:$0xff]  ;;  %v4357_v44 = vld [vmem:[%s5571_s9 + $0x8c] sm:$0xff]  ;;  %v4142_v45 = vld [vmem:[%s5571_s9 + $0x1] sm:$0xff] }
  0x2d   : > { %4742 = vmatprep.mubr.msk.bf16.mxu1 %vm301_vm1, %v290_v50  ;;  %4878 = vmatprep.mubr.msk.bf16.mxu0 %vm301_vm1, %v1475_v51  ;;  %v4143_v46 = vld [vmem:[%s5571_s9 + $0x9] sm:$0xff]  ;;  %v4358_v47 = vld [vmem:[%s5571_s9 + $0x94] sm:$0xff]  ;;  %v4359_v48 = vld [vmem:[%s5571_s9 + $0x9c] sm:$0xff]  ;;  %v299_v49 = vpack.c.bf16 %v283_v42, %v282_v41  ;;  %v5714_v50 = vpack.c.bf16 %v4357_v44, %v4356_v43 }
  0x2e   : > { %v581_v51 = vpack.c.bf16 %v4143_v46, %v4142_v45  ;;  %v5716_v52 = vpack.c.bf16 %v4359_v48, %v4358_v47  ;;  %v4144_v53 = vld [vmem:[%s5571_s9 + $0x11] sm:$0xff]  ;;  %v4145_v54 = vld [vmem:[%s5571_s9 + $0x19] sm:$0xff]  ;;  %v4360_v55 = vld [vmem:[%s5571_s9 + $0xa4] sm:$0xff] }
  0x2f   : > { %v4361_v56 = vld [vmem:[%s5571_s9 + $0xac] sm:$0xff]  ;;  %v4146_v57 = vld [vmem:[%s5571_s9 + $0x21] sm:$0xff]  ;;  %v4362_v59 = vld [vmem:[%s5571_s9 + $0xb4] sm:$0xff] }
  0x30   : > { %v4147_v58 = vld [vmem:[%s5571_s9 + $0x29] sm:$0xff]  ;;  %v5742_v4 = vld [vmem:[%s7938_s1 + $0x6] sm:$0x3]  ;;  %v4148_v5 = vld [vmem:[%s5571_s9 + $0x31] sm:$0xff] }
  0x31   : > { %v583_v0 = vpack.c.bf16 %v4147_v58, %v4146_v57  ;;  %v4149_v6 = vld [vmem:[%s5571_s9 + $0x39] sm:$0xff]  ;;  %v4364_v7 = vld [vmem:[%s5571_s9 + $0xc4] sm:$0xff]  ;;  %v4152_v19 = vld [vmem:[%s5571_s9 + $0x51] sm:$0xff] }
  0x32   : > { %v4150_v8 = vld [vmem:[%s5571_s9 + $0x41] sm:$0xff]  ;;  %v4151_v9 = vld [vmem:[%s5571_s9 + $0x49] sm:$0xff]  ;;  %v4153_v20 = vld [vmem:[%s5571_s9 + $0x59] sm:$0xff] }
  0x33   : > { %v585_v17 = vpack.c.bf16 %v4151_v9, %v4150_v8  ;;  %v4368_v21 = vld [vmem:[%s5571_s9 + $0xe4] sm:$0xff]  ;;  %v4369_v22 = vld [vmem:[%s5571_s9 + $0xec] sm:$0xff]  ;;  %v4371_v29 = vld [vmem:[%s5571_s9 + $0xfc] sm:$0xff]  ;;  %v586_v30 = vpack.c.bf16 %v4153_v20, %v4152_v19 }
  0x34   : > { %4743 = vmatmul.mubr.msk.bf16.gmra.mrb[12].mxu1 %vm301_vm1, %v291_v60  ;;  %4879 = vmatmul.mubr.msk.bf16.gmra.mrb[12].mxu0 %vm301_vm1, %v1476_v61  ;;  %v4363_v60 = vld [vmem:[%s5571_s9 + $0xbc] sm:$0xff]  ;;  %v582_v61 = vpack.c.bf16 %v4145_v54, %v4144_v53  ;;  %v5777_v31 = vpack.c.bf16 %v4369_v22, %v4368_v21  ;;  %v4156_v34 = vld [vmem:[%s5571_s9 + $0x71] sm:$0xff]  ;;  %v4372_v36 = vld [vmem:[%s5571_s9 + $0x104] sm:$0xff]  ;;  %v2424_v53 = vsel %vm350_vm0, %v5661_v15, 0 }
  0x35   : > { %4746 = vmatprep.mubr.msk.bf16.mxu1 %vm301_vm1, %v292_v62  ;;  %4900 = vmatprep.mubr.msk.bf16.mxu0 %vm301_vm1, %v1765_v63  ;;  %v5732_v62 = vpack.c.bf16 %v4361_v56, %v4360_v55  ;;  %v944_v63 = vsel %vm350_vm0, %v5598_v27, 0  ;;  %v5736_v2 = vpack.c.bf16 %v4363_v60, %v4362_v59  ;;  %v4365_v27 = vld [vmem:[%s5571_s9 + $0xcc] sm:$0xff]  ;;  %v4154_v23 = vld [vmem:[%s5571_s9 + $0x61] sm:$0xff]  ;;  %v4157_v35 = vld [vmem:[%s5571_s9 + $0x79] sm:$0xff] }
  0x36   : > { %v5759_v16 = vpack.c.bf16 %v4365_v27, %v4364_v7  ;;  %v4159_v41 = vld [vmem:[%s5571_s9 + $0x89] sm:$0xff]  ;;  %v588_v42 = vpack.c.bf16 %v4157_v35, %v4156_v34  ;;  %v4160_v45 = vld [vmem:[%s5571_s9 + $0x91] sm:$0xff]  ;;  %v4161_v46 = vld [vmem:[%s5571_s9 + $0x99] sm:$0xff] }
  0x37   : > { %v4162_v47 = vld [vmem:[%s5571_s9 + $0xa1] sm:$0xff]  ;;  %v4163_v48 = vld [vmem:[%s5571_s9 + $0xa9] sm:$0xff]  ;;  %v4165_v55 = vld [vmem:[%s5571_s9 + $0xb9] sm:$0xff] }
  0x38   : > { %v5811_v54 = vld [vmem:[%s7938_s1 + $0x10] sm:$0x3]  ;;  %v4170_v59 = vld [vmem:[%s5571_s9 + $0xe1] sm:$0xff] }
  0x39   : > { %v4167_v56 = vld [vmem:[%s5571_s9 + $0xc9] sm:$0xff]  ;;  %v4195_v27 = vld [vmem:[%s5571_s9 + $0x1a] sm:$0xff] }
  0x3a   : > { %v4171_v60 = vld [vmem:[%s5571_s9 + $0xe9] sm:$0xff] }
  0x3b   : > { %v4197_v8 = vld [vmem:[%s5571_s9 + $0x2a] sm:$0xff]  ;;  %v4204_v19 = vld [vmem:[%s5571_s9 + $0x62] sm:$0xff] }
  0x3c   : > { %4747 = vmatmul.mubr.msk.bf16.gmra.mrb[16].mxu1 %vm301_vm1, %v293_v10  ;;  %4901 = vmatmul.mubr.msk.bf16.vlgmr.msra.gmra.mrb[0].mxu0 %vm301_vm1, %v5651_v11  ;;  %v4366_v10 = vld [vmem:[%s5571_s9 + $0xd4] sm:$0xff]  ;;  %v4205_v20 = vld [vmem:[%s5571_s9 + $0x6a] sm:$0xff] }
  0x3d   : > { %4750 = vmatprep.mubr.msk.bf16.mxu1 %vm301_vm1, %v294_v12  ;;  %4933 = vmatpush3.bf16.msra.mxu0 %v2128_v14  ;;  %v4367_v12 = vld [vmem:[%s5571_s9 + $0xdc] sm:$0xff]  ;;  %v584_v14 = vpack.c.bf16 %v4149_v6, %v4148_v5  ;;  %v4193_v5 = vld [vmem:[%s5571_s9 + $0xa] sm:$0xff]  ;;  %v5892_v22 = vpack.c.bf16 %v4205_v20, %v4204_v19 }
  0x3e   : > { %4904 = vmatprep.mubr.msk.bf16.mxu0 %vm301_vm1, %v5653_v13  ;;  %5332 = vmatprep.subr.msk.bf16.mxu0 %vm350_vm0, %v5661_v15  ;;  %v5761_v18 = vpack.c.bf16 %v4367_v12, %v4366_v10  ;;  %v4166_v15 = vld [vmem:[%s5571_s9 + $0xc1] sm:$0xff]  ;;  %v1240_v10 = vsel %vm350_vm0, %v5742_v4, 0 }
  0x3f   : > { %v593_v58 = vpack.c.bf16 %v4167_v56, %v4166_v15  ;;  %v4448_v15 = vld [vmem:[%s5571_s9 + $0x55] sm:$0xff]  ;;  %v4449_v56 = vld [vmem:[%s5571_s9 + $0x5d] sm:$0xff] }
  0x44   : > { %4751 = vmatmul.mubr.msk.bf16.gmra.mrb[20].mxu1 %vm301_vm1, %v295_v24  ;;  %4905 = vmatmul.mubr.msk.bf16.gmra.mrb[4].mxu0 %vm301_vm1, %v5678_v25  ;;  %v4155_v24 = vld [vmem:[%s5571_s9 + $0x69] sm:$0xff] }
  0x45   : > { %4754 = vmatprep.mubr.msk.bf16.mxu1 %vm301_vm1, %v296_v26  ;;  %4908 = vmatprep.mubr.msk.bf16.mxu0 %vm301_vm1, %v5680_v28  ;;  %v4370_v26 = vld [vmem:[%s5571_s9 + $0xf4] sm:$0xff]  ;;  %v587_v32 = vpack.c.bf16 %v4155_v24, %v4154_v23 }
  0x46   : > { %v5779_v33 = vpack.c.bf16 %v4371_v29, %v4370_v26  ;;  %v4207_v23 = vld [vmem:[%s5571_s9 + $0x7a] sm:$0xff]  ;;  %v4208_v29 = vld [vmem:[%s5571_s9 + $0x82] sm:$0xff] }
  0x47   : > { %v4422_v24 = vld [vmem:[%s5571_s9 + $0x114] sm:$0xff]  ;;  %v4423_v26 = vld [vmem:[%s5571_s9 + $0x11c] sm:$0xff] }
  0x48   : > { %v2076_v34 = vpack.c.bf16 %v4423_v26, %v4422_v24  ;;  %v4461_v24 = vld [vmem:[%s5571_s9 + $0xbd] sm:$0xff]  ;;  %v4462_v26 = vld [vmem:[%s5571_s9 + $0xc5] sm:$0xff] }
  0x4c   : > { %4755 = vmatmul.mubr.msk.bf16.gmra.mrb[24].mxu1 %vm301_vm1, %v297_v37  ;;  %4909 = vmatmul.mubr.msk.bf16.gmra.mrb[8].mxu0 %vm301_vm1, %v5696_v38  ;;  %v4373_v37 = vld [vmem:[%s5571_s9 + $0x10c] sm:$0xff] }
  0x4d   : > { %4758 = vmatprep.mubr.msk.bf16.mxu1 %vm301_vm1, %v298_v39  ;;  %4912 = vmatprep.mubr.msk.bf16.mxu0 %vm301_vm1, %v5698_v40  ;;  %v4158_v39 = vld [vmem:[%s5571_s9 + $0x81] sm:$0xff]  ;;  %v5793_v43 = vpack.c.bf16 %v4373_v37, %v4372_v36  ;;  %v4210_v37 = vld [vmem:[%s5571_s9 + $0x92] sm:$0xff] }
  0x4e   : > { %v589_v44 = vpack.c.bf16 %v4159_v41, %v4158_v39  ;;  %v4211_v39 = vld [vmem:[%s5571_s9 + $0x9a] sm:$0xff] }
  0x4f   : > { %v4444_v41 = vld [vmem:[%s5571_s9 + $0x35] sm:$0xff] }
  0x54   : > { %4759 = vmatmul.mubr.msk.bf16.gmra.mrb[28].mxu1 %vm301_vm1, %v299_v49  ;;  %4913 = vmatmul.mubr.msk.bf16.gmra.mrb[12].mxu0 %vm301_vm1, %v5714_v50  ;;  %v590_v49 = vpack.c.bf16 %v4161_v46, %v4160_v45  ;;  %v4446_v45 = vld [vmem:[%s5571_s9 + $0x45] sm:$0xff]  ;;  %v4447_v46 = vld [vmem:[%s5571_s9 + $0x4d] sm:$0xff] }
  0x55   : > { %4764 = vmatprep.mubr.msk.bf16.mxu1 %vm301_vm1, %v581_v51  ;;  %4916 = vmatprep.mubr.msk.bf16.mxu0 %vm301_vm1, %v5716_v52  ;;  %v591_v51 = vpack.c.bf16 %v4163_v48, %v4162_v47  ;;  %v5928_v47 = vpack.c.bf16 %v4211_v39, %v4210_v37 }
  0x5c   : > { %4765 = vmatmul.mubr.msk.bf16.vlgmr.msra.gmra.mrb[0].mxu1 %vm301_vm1, %v582_v61  ;;  %4917 = vmatmul.mubr.msk.bf16.gmra.mrb[16].mxu0 %vm301_vm1, %v5732_v62 }
  0x5d   : > { %4797 = vmatpush3.bf16.msra.mxu1 %v944_v63  ;;  %4768 = vmatprep.mubr.msk.bf16.mxu1 %vm301_vm1, %v583_v0  ;;  %v595_v63 = vpack.c.bf16 %v4171_v60, %v4170_v59  ;;  %v4173_v0 = vld [vmem:[%s5571_s9 + $0xf9] sm:$0xff]  ;;  %v2360_v59 = vpack.c.bf16 %v4449_v56, %v4448_v15  ;;  %v4500_v15 = vld [vmem:[%s5571_s9 + $0x66] sm:$0xff]  ;;  %v4501_v56 = vld [vmem:[%s5571_s9 + $0x6e] sm:$0xff] }
  0x5e   : > { %4920 = vmatprep.mubr.msk.bf16.mxu0 %vm301_vm1, %v5736_v2  ;;  %5327 = vmatprep.subr.msk.bf16.mxu1 %vm350_vm0, %v5742_v4  ;;  %v4200_v4 = vld [vmem:[%s5571_s9 + $0x42] sm:$0xff] }
  0x64   : > { %4769 = vmatmul.mubr.msk.bf16.gmra.mrb[4].mxu1 %vm301_vm1, %v584_v14  ;;  %4921 = vmatmul.mubr.msk.bf16.gmra.mrb[20].mxu0 %vm301_vm1, %v5759_v16  ;;  %v4201_v14 = vld [vmem:[%s5571_s9 + $0x4a] sm:$0xff] }
  0x65   : > { %4772 = vmatprep.mubr.msk.bf16.mxu1 %vm301_vm1, %v585_v17  ;;  %4924 = vmatprep.mubr.msk.bf16.mxu0 %vm301_vm1, %v5761_v18 }
  0x6c   : > { %4773 = vmatmul.mubr.msk.bf16.gmra.mrb[8].mxu1 %vm301_vm1, %v586_v30  ;;  %4925 = vmatmul.mubr.msk.bf16.gmra.mrb[24].mxu0 %vm301_vm1, %v5777_v31  ;;  %v4209_v30 = vld [vmem:[%s5571_s9 + $0x8a] sm:$0xff] }
  0x6d   : > { %4776 = vmatprep.mubr.msk.bf16.mxu1 %vm301_vm1, %v587_v32  ;;  %4928 = vmatprep.mubr.msk.bf16.mxu0 %vm301_vm1, %v5779_v33  ;;  %v4443_v32 = vld [vmem:[%s5571_s9 + $0x2d] sm:$0xff]  ;;  %v5912_v35 = vpack.c.bf16 %v4209_v30, %v4208_v29 }
  0x6e   : > { %v4463_v29 = vld [vmem:[%s5571_s9 + $0xcd] sm:$0xff] }
  0x74   : > { %4777 = vmatmul.mubr.msk.bf16.gmra.mrb[12].mxu1 %vm301_vm1, %v588_v42  ;;  %4929 = vmatmul.mubr.msk.bf16.gmra.mrb[28].mxu0 %vm301_vm1, %v5793_v43  ;;  %v4445_v42 = vld [vmem:[%s5571_s9 + $0x3d] sm:$0xff] }
  0x75   : > { %4780 = vmatprep.mubr.msk.bf16.mxu1 %vm301_vm1, %v589_v44  ;;  %4934 = vmatprep.mubr.msk.bf16.mxu0 %vm301_vm1, %v5651_v11  ;;  %v4164_v11 = vld [vmem:[%s5571_s9 + $0xb1] sm:$0xff]  ;;  %v2358_v48 = vpack.c.bf16 %v4445_v42, %v4444_v41 }
  0x76   : > { %v592_v57 = vpack.c.bf16 %v4165_v55, %v4164_v11  ;;  %v4213_v44 = vld [vmem:[%s5571_s9 + $0xaa] sm:$0xff]  ;;  %v4214_v11 = vld [vmem:[%s5571_s9 + $0xb2] sm:$0xff]  ;;  %v4215_v55 = vld [vmem:[%s5571_s9 + $0xba] sm:$0xff] }
  0x77   : > { %v4471_v41 = vld [vmem:[%s5571_s9 + $0x10d] sm:$0xff] }
  0x7c   : > { %4781 = vmatmul.mubr.msk.bf16.gmra.mrb[16].mxu1 %vm301_vm1, %v590_v49  ;;  %4935 = vmatmul.mubr.msk.bf16.vlgmr.msra.gmra.mrb[0].mxu0 %vm301_vm1, %v5653_v13  ;;  %v4168_v13 = vld [vmem:[%s5571_s9 + $0xd1] sm:$0xff] }
  0x7d   : > { %4784 = vmatprep.mubr.msk.bf16.mxu1 %vm301_vm1, %v591_v51  ;;  %4967 = vmatpush3.bf16.msra.mxu0 %v2424_v53  ;;  %v2359_v51 = vpack.c.bf16 %v4447_v46, %v4446_v45  ;;  %v2720_v53 = vsel %vm350_vm0, %v5811_v54, 0  ;;  %v4493_v45 = vld [vmem:[%s5571_s9 + $0x2e] sm:$0xff] }
  0x7e   : > { %4938 = vmatprep.mubr.msk.bf16.mxu0 %vm301_vm1, %v5678_v25  ;;  %5333 = vmatprep.subr.msk.bf16.mxu0 %vm350_vm0, %v5811_v54  ;;  %v4169_v25 = vld [vmem:[%s5571_s9 + $0xd9] sm:$0xff]  ;;  %v4216_v54 = vld [vmem:[%s5571_s9 + $0xc2] sm:$0xff] }
  0x7f   : > { %v594_v61 = vpack.c.bf16 %v4169_v25, %v4168_v13  ;;  %v4451_v13 = vld [vmem:[%s5571_s9 + $0x6d] sm:$0xff]  ;;  %v5948_v25 = vpack.c.bf16 %v4215_v55, %v4214_v11 }
  0x84   : > { %4785 = vmatmul.mubr.msk.bf16.gmra.mrb[20].mxu1 %vm301_vm1, %v592_v57  ;;  %4939 = vmatmul.mubr.msk.bf16.gmra.mrb[4].mxu0 %vm301_vm1, %v5680_v28  ;;  %v4172_v28 = vld [vmem:[%s5571_s9 + $0xf1] sm:$0xff] }
  0x85   : > { %4788 = vmatprep.mubr.msk.bf16.mxu1 %vm301_vm1, %v593_v58  ;;  %4942 = vmatprep.mubr.msk.bf16.mxu0 %vm301_vm1, %v5696_v38  ;;  %v4192_v38 = vld [vmem:[%s5571_s9 + $0x2] sm:$0xff]  ;;  %v596_v6 = vpack.c.bf16 %v4173_v0, %v4172_v28  ;;  %v4217_v57 = vld [vmem:[%s5571_s9 + $0xca] sm:$0xff]  ;;  %v4219_v28 = vld [vmem:[%s5571_s9 + $0xda] sm:$0xff] }
  0x86   : > { %v877_v7 = vpack.c.bf16 %v4193_v5, %v4192_v38  ;;  %v4450_v58 = vld [vmem:[%s5571_s9 + $0x65] sm:$0xff]  ;;  %v5950_v60 = vpack.c.bf16 %v4217_v57, %v4216_v54  ;;  %v4452_v0 = vld [vmem:[%s5571_s9 + $0x75] sm:$0xff]  ;;  %v4453_v38 = vld [vmem:[%s5571_s9 + $0x7d] sm:$0xff]  ;;  %v2657_v57 = vpack.c.bf16 %v4501_v56, %v4500_v15  ;;  %v2915_v15 = vlaneseq }
  0x87   : > { %v4220_v5 = vld [vmem:[%s5571_s9 + $0xe2] sm:$0xff] }
  0x88   : > { %v6115_v56 = vshrl.u32 %v2915_v15, 7 }
  0x8c   : > { %4789 = vmatmul.mubr.msk.bf16.gmra.mrb[24].mxu1 %vm301_vm1, %v594_v61  ;;  %4943 = vmatmul.mubr.msk.bf16.gmra.mrb[8].mxu0 %vm301_vm1, %v5698_v40  ;;  %v4194_v40 = vld [vmem:[%s5571_s9 + $0x12] sm:$0xff]  ;;  %v2361_v61 = vpack.c.bf16 %v4451_v13, %v4450_v58  ;;  %v4503_v58 = vld [vmem:[%s5571_s9 + $0x7e] sm:$0xff]  ;;  %v4504_v13 = vld [vmem:[%s5571_s9 + $0x86] sm:$0xff] }
  0x8d   : > { %4792 = vmatprep.mubr.msk.bf16.mxu1 %vm301_vm1, %v595_v63  ;;  %4946 = vmatprep.mubr.msk.bf16.mxu0 %vm301_vm1, %v5714_v50  ;;  %v4196_v50 = vld [vmem:[%s5571_s9 + $0x22] sm:$0xff]  ;;  %v5854_v9 = vpack.c.bf16 %v4195_v27, %v4194_v40  ;;  %v4218_v63 = vld [vmem:[%s5571_s9 + $0xd2] sm:$0xff] }
  0x8e   : > { %v5858_v12 = vpack.c.bf16 %v4197_v8, %v4196_v50  ;;  %v4455_v40 = vld [vmem:[%s5571_s9 + $0x8d] sm:$0xff]  ;;  %v5966_v27 = vpack.c.bf16 %v4219_v28, %v4218_v63  ;;  %v2362_v50 = vpack.c.bf16 %v4453_v38, %v4452_v0  ;;  %v4506_v28 = vld [vmem:[%s5571_s9 + $0x96] sm:$0xff]  ;;  %v4507_v0 = vld [vmem:[%s5571_s9 + $0x9e] sm:$0xff] }
  0x8f   : > { %v4273_v63 = vld [vmem:[%s5571_s9 + $0x10a] sm:$0xff]  ;;  %v4308_v38 = vld [vmem:[%s5571_s9 + $0x93] sm:$0xff] }
  0x94   : > { %4793 = vmatmul.mubr.msk.bf16.gmra.mrb[28].mxu1 %vm301_vm1, %v596_v6  ;;  %4947 = vmatmul.mubr.msk.bf16.gmra.mrb[12].mxu0 %vm301_vm1, %v5716_v52  ;;  %v4198_v52 = vld [vmem:[%s5571_s9 + $0x32] sm:$0xff]  ;;  %v4221_v6 = vld [vmem:[%s5571_s9 + $0xea] sm:$0xff] }
  0x95   : > { %4798 = vmatprep.mubr.msk.bf16.mxu1 %vm301_vm1, %v877_v7  ;;  %4950 = vmatprep.mubr.msk.bf16.mxu0 %vm301_vm1, %v5732_v62  ;;  %v4199_v62 = vld [vmem:[%s5571_s9 + $0x3a] sm:$0xff]  ;;  %v4454_v7 = vld [vmem:[%s5571_s9 + $0x85] sm:$0xff]  ;;  %v5968_v8 = vpack.c.bf16 %v4221_v6, %v4220_v5 }
  0x96   : > { %v5874_v17 = vpack.c.bf16 %v4199_v62, %v4198_v52  ;;  %v4222_v52 = vld [vmem:[%s5571_s9 + $0xf2] sm:$0xff]  ;;  %v4223_v62 = vld [vmem:[%s5571_s9 + $0xfa] sm:$0xff]  ;;  %v4508_v6 = vld [vmem:[%s5571_s9 + $0xa6] sm:$0xff] }
  0x97   : > { %v5982_v19 = vpack.c.bf16 %v4223_v62, %v4222_v52  ;;  %v4309_v5 = vld [vmem:[%s5571_s9 + $0x9b] sm:$0xff]  ;;  %v4311_v52 = vld [vmem:[%s5571_s9 + $0xab] sm:$0xff] }
  0x98   : > { %v4510_v62 = vld [vmem:[%s5571_s9 + $0xb6] sm:$0xff] }
  0x9c   : > { %4799 = vmatmul.mubr.msk.bf16.vlgmr.msra.gmra.mrb[0].mxu1 %vm301_vm1, %v5854_v9  ;;  %4951 = vmatmul.mubr.msk.bf16.gmra.mrb[16].mxu0 %vm301_vm1, %v5736_v2  ;;  %v5876_v2 = vpack.c.bf16 %v4201_v14, %v4200_v4  ;;  %v4456_v4 = vld [vmem:[%s5571_s9 + $0x95] sm:$0xff]  ;;  %v4457_v14 = vld [vmem:[%s5571_s9 + $0x9d] sm:$0xff] }
  0x9d   : > { %4831 = vmatpush3.bf16.msra.mxu1 %v1240_v10  ;;  %4802 = vmatprep.mubr.msk.bf16.mxu1 %vm301_vm1, %v5858_v12  ;;  %v2363_v10 = vpack.c.bf16 %v4455_v40, %v4454_v7  ;;  %v2364_v20 = vpack.c.bf16 %v4457_v14, %v4456_v4  ;;  %v4509_v7 = vld [vmem:[%s5571_s9 + $0xae] sm:$0xff]  ;;  %v4511_v4 = vld [vmem:[%s5571_s9 + $0xbe] sm:$0xff] }
  0x9e   : > { %4954 = vmatprep.mubr.msk.bf16.mxu0 %vm301_vm1, %v5759_v16  ;;  %5329 = vmatprep.subr.msk.bf16.mxu1 %vm350_vm0, %v5543_v1  ;;  %v4202_v16 = vld [vmem:[%s5571_s9 + $0x52] sm:$0xff]  ;;  %v4203_v1 = vld [vmem:[%s5571_s9 + $0x5a] sm:$0xff] }
  0x9f   : > { %v5890_v21 = vpack.c.bf16 %v4203_v1, %v4202_v16  ;;  %v4458_v16 = vld [vmem:[%s5571_s9 + $0xa5] sm:$0xff]  ;;  %v4459_v1 = vld [vmem:[%s5571_s9 + $0xad] sm:$0xff] }
  0xa0   : > { %v4312_v14 = vld [vmem:[%s5571_s9 + $0xb3] sm:$0xff] }
  0xa4   : > { %4803 = vmatmul.mubr.msk.bf16.gmra.mrb[4].mxu1 %vm301_vm1, %v5874_v17  ;;  %4955 = vmatmul.mubr.msk.bf16.gmra.mrb[20].mxu0 %vm301_vm1, %v5761_v18  ;;  %v4206_v18 = vld [vmem:[%s5571_s9 + $0x72] sm:$0xff] }
  0xa5   : > { %4806 = vmatprep.mubr.msk.bf16.mxu1 %vm301_vm1, %v5876_v2  ;;  %4958 = vmatprep.mubr.msk.bf16.mxu0 %vm301_vm1, %v5777_v31  ;;  %v4442_v31 = vld [vmem:[%s5571_s9 + $0x25] sm:$0xff] }
  0xa6   : > { %v2357_v36 = vpack.c.bf16 %v4443_v32, %v4442_v31  ;;  %v2367_v31 = vpack.c.bf16 %v4463_v29, %v4462_v26  ;;  %v4465_v32 = vld [vmem:[%s5571_s9 + $0xdd] sm:$0xff]  ;;  %v4315_v29 = vld [vmem:[%s5571_s9 + $0xcb] sm:$0xff] }
  0xa7   : > { %v4314_v26 = vld [vmem:[%s5571_s9 + $0xc3] sm:$0xff] }
  0xac   : > { %4807 = vmatmul.mubr.msk.bf16.gmra.mrb[8].mxu1 %vm301_vm1, %v5890_v21  ;;  %4959 = vmatmul.mubr.msk.bf16.gmra.mrb[24].mxu0 %vm301_vm1, %v5779_v33  ;;  %v5910_v33 = vpack.c.bf16 %v4207_v23, %v4206_v18  ;;  %v2365_v18 = vpack.c.bf16 %v4459_v1, %v4458_v16  ;;  %v4460_v23 = vld [vmem:[%s5571_s9 + $0xb5] sm:$0xff]  ;;  %v4512_v1 = vld [vmem:[%s5571_s9 + $0xc6] sm:$0xff] }
  0xad   : > { %4810 = vmatprep.mubr.msk.bf16.mxu1 %vm301_vm1, %v5892_v22  ;;  %4962 = vmatprep.mubr.msk.bf16.mxu0 %vm301_vm1, %v5793_v43  ;;  %v4212_v43 = vld [vmem:[%s5571_s9 + $0xa2] sm:$0xff]  ;;  %v2366_v30 = vpack.c.bf16 %v4461_v24, %v4460_v23 }
  0xae   : > { %v5930_v49 = vpack.c.bf16 %v4213_v44, %v4212_v43  ;;  %v4492_v44 = vld [vmem:[%s5571_s9 + $0x26] sm:$0xff]  ;;  %v4313_v16 = vld [vmem:[%s5571_s9 + $0xbb] sm:$0xff] }
  0xaf   : > { %v1479_v23 = vpack.c.bf16 %v4313_v16, %v4312_v14 }
  0xb4   : > { %4811 = vmatmul.mubr.msk.bf16.gmra.mrb[12].mxu1 %vm301_vm1, %v5910_v33  ;;  %4963 = vmatmul.mubr.msk.bf16.gmra.mrb[28].mxu0 %vm301_vm1, %v2076_v34  ;;  %v4466_v34 = vld [vmem:[%s5571_s9 + $0xe5] sm:$0xff] }
  0xb5   : > { %4814 = vmatprep.mubr.msk.bf16.mxu1 %vm301_vm1, %v5912_v35  ;;  %4968 = vmatprep.mubr.msk.bf16.mxu0 %vm301_vm1, %v2357_v36  ;;  %v4467_v36 = vld [vmem:[%s5571_s9 + $0xed] sm:$0xff] }
  0xb6   : > { %v2369_v39 = vpack.c.bf16 %v4467_v36, %v4466_v34  ;;  %v4516_v34 = vld [vmem:[%s5571_s9 + $0xe6] sm:$0xff]  ;;  %v4517_v36 = vld [vmem:[%s5571_s9 + $0xee] sm:$0xff] }
  0xbc   : > { %4815 = vmatmul.mubr.msk.bf16.gmra.mrb[16].mxu1 %vm301_vm1, %v5928_v47  ;;  %4969 = vmatmul.mubr.msk.bf16.vlgmr.msra.gmra.mrb[0].mxu0 %vm301_vm1, %v2358_v48  ;;  %v2653_v48 = vpack.c.bf16 %v4493_v45, %v4492_v44  ;;  %v4520_v44 = vld [vmem:[%s5571_s9 + $0x106] sm:$0xff]  ;;  %v4521_v45 = vld [vmem:[%s5571_s9 + $0x10e] sm:$0xff] }
  0xbd   : > { %4818 = vmatprep.mubr.msk.bf16.mxu1 %vm301_vm1, %v5930_v49  ;;  %5001 = vmatpush3.bf16.msra.mxu0 %v2720_v53  ;;  %v4497_v53 = vld [vmem:[%s5571_s9 + $0x4e] sm:$0xff] }
  0xbe   : > { %4972 = vmatprep.mubr.msk.bf16.mxu0 %vm301_vm1, %v2359_v51  ;;  %v4496_v51 = vld [vmem:[%s5571_s9 + $0x46] sm:$0xff] }
  0xbf   : > { %v2655_v55 = vpack.c.bf16 %v4497_v53, %v4496_v51  ;;  %v4322_v51 = vld [vmem:[%s5571_s9 + $0x103] sm:$0xff]  ;;  %v4323_v53 = vld [vmem:[%s5571_s9 + $0x10b] sm:$0xff] }
  0xc4   : > { %4819 = vmatmul.mubr.msk.bf16.gmra.mrb[20].mxu1 %vm301_vm1, %v5948_v25  ;;  %4973 = vmatmul.mubr.msk.bf16.gmra.mrb[4].mxu0 %vm301_vm1, %v2360_v59 }
  0xc5   : > { %4822 = vmatprep.mubr.msk.bf16.mxu1 %vm301_vm1, %v5950_v60  ;;  %4976 = vmatprep.mubr.msk.bf16.mxu0 %vm301_vm1, %v2361_v61 }
  0xcc   : > { %4823 = vmatmul.mubr.msk.bf16.gmra.mrb[24].mxu1 %vm301_vm1, %v5966_v27  ;;  %4977 = vmatmul.mubr.msk.bf16.gmra.mrb[8].mxu0 %vm301_vm1, %v2362_v50  ;;  %v1477_v50 = vpack.c.bf16 %v4309_v5, %v4308_v38  ;;  %v2923_v5 = vadd.s32 56, %v6115_v56 }
  0xcd   : > { %4826 = vmatprep.mubr.msk.bf16.mxu1 %vm301_vm1, %v5968_v8  ;;  %4980 = vmatprep.mubr.msk.bf16.mxu0 %vm301_vm1, %v2363_v10  ;;  %v4310_v10 = vld [vmem:[%s5571_s9 + $0xa3] sm:$0xff] }
  0xd4   : > { %4827 = vmatmul.mubr.msk.bf16.gmra.mrb[28].mxu1 %vm301_vm1, %v5982_v19  ;;  %4981 = vmatmul.mubr.msk.bf16.gmra.mrb[12].mxu0 %vm301_vm1, %v2364_v20  ;;  %v1478_v20 = vpack.c.bf16 %v4311_v52, %v4310_v10 }
  0xd5   : > { %4832 = vmatprep.mubr.msk.bf16.mxu1 %vm301_vm1, %v5854_v9  ;;  %4984 = vmatprep.mubr.msk.bf16.mxu0 %vm301_vm1, %v2365_v18  ;;  %v4464_v9 = vld [vmem:[%s5571_s9 + $0xd5] sm:$0xff]  ;;  %v2662_v18 = vpack.c.bf16 %v4511_v4, %v4510_v62 }
  0xd6   : > { %v2368_v37 = vpack.c.bf16 %v4465_v32, %v4464_v9  ;;  %v4316_v9 = vld [vmem:[%s5571_s9 + $0xd3] sm:$0xff]  ;;  %v4317_v32 = vld [vmem:[%s5571_s9 + $0xdb] sm:$0xff] }
  0xdc   : > { %4833 = vmatmul.mubr.msk.bf16.vlgmr.msra.gmra.mrb[0].mxu1 %vm301_vm1, %v5858_v12  ;;  %4985 = vmatmul.mubr.msk.bf16.gmra.mrb[16].mxu0 %vm301_vm1, %v2366_v30  ;;  %v4469_v12 = vld [vmem:[%s5571_s9 + $0xfd] sm:$0xff] }
  0xdd   : > { %5035 = vmatpush3.bf16.msra.mxu1 %v5551_v3  ;;  %4836 = vmatprep.mubr.msk.bf16.mxu1 %vm301_vm1, %v5874_v17  ;;  %v4468_v3 = vld [vmem:[%s5571_s9 + $0xf5] sm:$0xff]  ;;  %v4470_v17 = vld [vmem:[%s5571_s9 + $0x105] sm:$0xff] }
  0xde   : > { %4988 = vmatprep.mubr.msk.bf16.mxu0 %vm301_vm1, %v2367_v31  ;;  %v2370_v42 = vpack.c.bf16 %v4469_v12, %v4468_v3  ;;  %v2371_v43 = vpack.c.bf16 %v4471_v41, %v4470_v17  ;;  %v4514_v30 = vld [vmem:[%s5571_s9 + $0xd6] sm:$0xff]  ;;  %v4515_v31 = vld [vmem:[%s5571_s9 + $0xde] sm:$0xff]  ;;  %v1481_v3 = vpack.c.bf16 %v4317_v32, %v4316_v9  ;;  %v2665_v12 = vpack.c.bf16 %v4517_v36, %v4516_v34  ;;  %v4319_v41 = vld [vmem:[%s5571_s9 + $0xeb] sm:$0xff] }
  0xdf   : > { %v4318_v17 = vld [vmem:[%s5571_s9 + $0xe3] sm:$0xff]  ;;  %v2921_v32 = vadd.s32 40, %v6115_v56  ;;  %v2926_v36 = vadd.s32 80, %v6115_v56 }
  0xe4   : > { %4837 = vmatmul.mubr.msk.bf16.gmra.mrb[4].mxu1 %vm301_vm1, %v5876_v2  ;;  %4989 = vmatmul.mubr.msk.bf16.gmra.mrb[20].mxu0 %vm301_vm1, %v2368_v37  ;;  %v4472_v2 = vld [vmem:[%s5571_s9 + $0x115] sm:$0xff]  ;;  %v1480_v37 = vpack.c.bf16 %v4315_v29, %v4314_v26 }
  0xe5   : > { %4840 = vmatprep.mubr.msk.bf16.mxu1 %vm301_vm1, %v5890_v21  ;;  %4992 = vmatprep.mubr.msk.bf16.mxu0 %vm301_vm1, %v2369_v39  ;;  %v4473_v21 = vld [vmem:[%s5571_s9 + $0x11d] sm:$0xff]  ;;  %v2664_v39 = vpack.c.bf16 %v4515_v31, %v4514_v30 }
  0xe6   : > { %v2372_v46 = vpack.c.bf16 %v4473_v21, %v4472_v2  ;;  %v4320_v2 = vld [vmem:[%s5571_s9 + $0xf3] sm:$0xff]  ;;  %v4321_v21 = vld [vmem:[%s5571_s9 + $0xfb] sm:$0xff] }
  0xec   : > { %4841 = vmatmul.mubr.msk.bf16.gmra.mrb[8].mxu1 %vm301_vm1, %v5892_v22  ;;  %4993 = vmatmul.mubr.msk.bf16.gmra.mrb[24].mxu0 %vm301_vm1, %v2370_v42  ;;  %v4494_v22 = vld [vmem:[%s5571_s9 + $0x36] sm:$0xff] }
  0xed   : > { %4844 = vmatprep.mubr.msk.bf16.mxu1 %vm301_vm1, %v5910_v33  ;;  %4996 = vmatprep.mubr.msk.bf16.mxu0 %vm301_vm1, %v2371_v43  ;;  %v4495_v33 = vld [vmem:[%s5571_s9 + $0x3e] sm:$0xff]  ;;  %v4518_v42 = vld [vmem:[%s5571_s9 + $0xf6] sm:$0xff] }
  0xee   : > { %v2654_v11 = vpack.c.bf16 %v4495_v33, %v4494_v22  ;;  %v4519_v43 = vld [vmem:[%s5571_s9 + $0xfe] sm:$0xff]  ;;  %v1483_v22 = vpack.c.bf16 %v4321_v21, %v4320_v2  ;;  %v2667_v33 = vpack.c.bf16 %v4521_v45, %v4520_v44 }
  0xf4   : > { %4845 = vmatmul.mubr.msk.bf16.gmra.mrb[12].mxu1 %vm301_vm1, %v5912_v35  ;;  %4997 = vmatmul.mubr.msk.bf16.gmra.mrb[28].mxu0 %vm301_vm1, %v2372_v46  ;;  %v4498_v35 = vld [vmem:[%s5571_s9 + $0x56] sm:$0xff]  ;;  %v1482_v46 = vpack.c.bf16 %v4319_v41, %v4318_v17 }
  0xf5   : > { %4848 = vmatprep.mubr.msk.bf16.mxu1 %vm301_vm1, %v5928_v47  ;;  %5002 = vmatprep.mubr.msk.bf16.mxu0 %vm301_vm1, %v2653_v48  ;;  %v4499_v47 = vld [vmem:[%s5571_s9 + $0x5e] sm:$0xff]  ;;  %v2666_v48 = vpack.c.bf16 %v4519_v43, %v4518_v42 }
  0xf6   : > { %v2656_v54 = vpack.c.bf16 %v4499_v47, %v4498_v35  ;;  %v1484_v35 = vpack.c.bf16 %v4323_v53, %v4322_v51 }
  0xfc   : > { %4849 = vmatmul.mubr.msk.bf16.gmra.mrb[16].mxu1 %vm301_vm1, %v5930_v49  ;;  %5003 = vmatmul.mubr.msk.bf16.vlgmr.msra.gmra.mrb[0].mxu0 %vm301_vm1, %v2654_v11  ;;  %v4502_v49 = vld [vmem:[%s5571_s9 + $0x76] sm:$0xff] }
  0xfd   : > { %4852 = vmatprep.mubr.msk.bf16.mxu1 %vm301_vm1, %v5948_v25  ;;  %5006 = vmatprep.mubr.msk.bf16.mxu0 %vm301_vm1, %v2655_v55  ;;  %v4505_v25 = vld [vmem:[%s5571_s9 + $0x8e] sm:$0xff]  ;;  %v2658_v59 = vpack.c.bf16 %v4503_v58, %v4502_v49  ;;  %v4522_v11 = vld [vmem:[%s5571_s9 + $0x116] sm:$0xff]  ;;  %v4523_v55 = vld [vmem:[%s5571_s9 + $0x11e] sm:$0xff] }
  0xfe   : > { %v2659_v61 = vpack.c.bf16 %v4505_v25, %v4504_v13  ;;  %v2668_v47 = vpack.c.bf16 %v4523_v55, %v4522_v11  ;;  %v2919_v13 = vadd.s32 24, %v6115_v56  ;;  %v2917_v25 = vadd.s32 8, %v6115_v56 }
 0x104   : > { %4853 = vmatmul.mubr.msk.bf16.gmra.mrb[20].mxu1 %vm301_vm1, %v5950_v60  ;;  %5007 = vmatmul.mubr.msk.bf16.gmra.mrb[4].mxu0 %vm301_vm1, %v2656_v54  ;;  %v4272_v60 = vld [vmem:[%s5571_s9 + $0x102] sm:$0xff]  ;;  %v2918_v54 = vadd.s32 16, %v6115_v56 }
 0x105   : > { %4856 = vmatprep.mubr.msk.bf16.mxu1 %vm301_vm1, %v5966_v27  ;;  %5010 = vmatprep.mubr.msk.bf16.mxu0 %vm301_vm1, %v2657_v57  ;;  %v1188_v40 = vpack.c.bf16 %v4273_v63, %v4272_v60  ;;  %v2660_v27 = vpack.c.bf16 %v4507_v0, %v4506_v28  ;;  %v6120_v57 = vstv %s4123_s5  ;;  %v2922_v28 = vadd.s32 48, %v6115_v56  ;;  %s4119_s5 = sshll.u32 %s8368_s16, 6 }
 0x106   : > { %v6123_v49 = vadd.s32 %v6120_v57, %v2918_v54  ;;  %v6127_v58 = vadd.s32 %v6120_v57, %v6115_v56  ;;  %v6134_v60 = vadd.s32 %v6120_v57, %v2919_v13  ;;  %v6137_v63 = vadd.s32 %v6120_v57, %v2917_v25  ;;  %s6951_s6 = sadd.s32 %s4119_s5, %s8370_s27 }
 0x107   : > { %v2920_v0 = vadd.s32 32, %v6115_v56  ;;  %v6156_v52 = vadd.s32 %v6120_v57, %v2923_v5  ;;  %v6189_v43 = vadd.s32 %v6120_v57, %v2921_v32  ;;  %v6193_v44 = vadd.s32 %v6120_v57, %v2926_v36  ;;  %s4120_s7 = sshll.u32 %s6951_s6, 3 }
 0x108   : > { %vm3003_vm2 = vcmp.lt.s32.totalorder %v6123_v49, 0  ;;  %v2924_v25 = vadd.s32 64, %v6115_v56  ;;  %vm2981_vm3 = vcmp.lt.s32.totalorder %v6127_v58, 0  ;;  %vm3014_vm4 = vcmp.lt.s32.totalorder %v6134_v60, 0  ;;  %s7077_s10 = scalar_lea.vmem %s7940_s3, %s4120_s7 }
 0x109   : > { %v3092_v51 = vsub.s32 0, %v6193_v44  ;;  %vm2992_vm7 = vcmp.lt.s32.totalorder %v6137_v63, 0  ;;  %vm3058_vm12 = vcmp.lt.s32.totalorder %v6156_v52, 0 }
 0x10c   : > { %4857 = vmatmul.mubr.msk.bf16.gmra.mrb[24].mxu1 %vm301_vm1, %v5968_v8  ;;  %5011 = vmatmul.mubr.msk.bf16.gmra.mrb[8].mxu0 %vm301_vm1, %v2658_v59  ;;  %v2661_v8 = vpack.c.bf16 %v4509_v7, %v4508_v6  ;;  %v3004_v59 = vsub.s32 0, %v6123_v49  ;;  %v3015_v7 = vsub.s32 0, %v6134_v60 }
 0x10d   : > { %4860 = vmatprep.mubr.msk.bf16.mxu1 %vm301_vm1, %v5982_v19  ;;  %5014 = vmatprep.mubr.msk.bf16.mxu0 %vm301_vm1, %v2659_v61  ;;  %v4513_v19 = vld [vmem:[%s5571_s9 + $0xce] sm:$0xff]  ;;  %v2982_v61 = vsub.s32 0, %v6127_v58 }
 0x10e   : > { %v2663_v24 = vpack.c.bf16 %v4513_v19, %v4512_v1  ;;  %v4543_v38 = vmin.u32 %v3004_v59, %v6123_v49  ;;  %v4544_v14 = vmin.u32 %v3015_v7, %v6134_v60  ;;  %v6208_v59 = vmin.u32 %v3092_v51, %v6193_v44 }
 0x10f   : > { %v4541_v6 = vmin.u32 %v2982_v61, %v6127_v58  ;;  %v2927_v61 = vadd.s32 88, %v6115_v56 }
 0x111   : > { %v6158_v62 = vmul.u32.u64.low 3817748708, %v4541_v6  ;;  %v6159_v4 = vmul.u32.u64.high 3817748708, %v4541_v6, %v6158_v62 }
 0x112   : > { %v6220_v62 = vadd.s32 %v6120_v57, %v2924_v25 }
 0x113   : > { %v2987_v34 = vshrl.u32 %v6159_v4, 4  ;;  %v2925_v4 = vadd.s32 72, %v6115_v56 }
 0x114   : > { %4861 = vmatmul.mubr.msk.bf16.gmra.mrb[28].mxu1 %vm301_vm1, %v1188_v40  ;;  %5015 = vmatmul.mubr.msk.bf16.gmra.mrb[12].mxu0 %vm301_vm1, %v2660_v27  ;;  %v2993_v40 = vsub.s32 0, %v6137_v63  ;;  %v6147_v27 = vadd.s32 %v6120_v57, %v2922_v28  ;;  %v3070_v32 = vsub.s32 0, %v6220_v62 }
 0x115   : > { %4882 = vmatprep.mubr.msk.bf16.mxu1 %vm301_vm1, %v1477_v50  ;;  %5018 = vmatprep.mubr.msk.bf16.mxu0 %vm301_vm1, %v2661_v8  ;;  %v6150_v50 = vadd.s32 %v6120_v57, %v2920_v0  ;;  %v6152_v8 = vmul.u32.u64.low 3817748708, %v4543_v38  ;;  %v6153_v10 = vmul.u32.u64.high 3817748708, %v4543_v38, %v6152_v8  ;;  %v2988_v2 = vmul.u32 18, %v2987_v34 }
 0x116   : > { %v4542_v16 = vmin.u32 %v2993_v40, %v6137_v63  ;;  %v3048_v1 = vsub.s32 0, %v6147_v27  ;;  %v6242_v34 = vadd.s32 %v6120_v57, %v2925_v4  ;;  %vm3047_vm10 = vcmp.lt.s32.totalorder %v6147_v27, 0 }
 0x117   : > { %v3026_v19 = vsub.s32 0, %v6150_v50  ;;  %v3009_v31 = vshrl.u32 %v6153_v10, 4  ;;  %vm3025_vm11 = vcmp.lt.s32.totalorder %v6150_v50, 0 }
 0x118   : > { %v4547_v29 = vmin.u32 %v3048_v1, %v6147_v27  ;;  %v6228_v1 = vadd.s32 %v6120_v57, %v2927_v61  ;;  %7990 = vst [vmem:[#allocation3_spill] sm:$0xff] %v6242_v34 }
 0x119   : > { %v4545_v30 = vmin.u32 %v3026_v19, %v6150_v50  ;;  %v3010_v17 = vmul.u32 18, %v3009_v31  ;;  %v2930_v19 = vadd.s32 112, %v6115_v56 }
 0x11a   : > { %7989 = vst [vmem:[#allocation2_spill] sm:$0xff] %v6228_v1 }
 0x11c   : > { %4883 = vmatmul.mubr.msk.bf16.vlgmr.msra.gmra.mrb[16].mxu1 %vm301_vm1, %v1478_v20  ;;  %5019 = vmatmul.mubr.msk.bf16.gmra.mrb[16].mxu0 %vm301_vm1, %v2662_v18  ;;  %v3059_v20 = vsub.s32 0, %v6156_v52 }
 0x11d   : > { %4886 = vmatprep.mubr.msk.bf16.mxu1 %vm301_vm1, %v1479_v23  ;;  %5022 = vmatprep.mubr.msk.bf16.mxu0 %vm301_vm1, %v2663_v24  ;;  %v6166_v18 = vmul.u32.u64.low 3817748708, %v4544_v14  ;;  %v6167_v23 = vmul.u32.u64.high 3817748708, %v4544_v14, %v6166_v18  ;;  %v6169_v24 = vmul.u32.u64.low 3817748708, %v4542_v16  ;;  %v6170_v26 = vmul.u32.u64.high 3817748708, %v4542_v16, %v6169_v24 }
 0x11e   : > { %v4548_v9 = vmin.u32 %v3059_v20, %v6156_v52  ;;  %v2928_v18 = vadd.s32 96, %v6115_v56 }
 0x11f   : > { %v3020_v21 = vshrl.u32 %v6167_v23, 4  ;;  %v2998_v45 = vshrl.u32 %v6170_v26, 4 }
 0x120   : > { %v6185_v41 = vmul.u32.u64.low 3817748708, %v4548_v9  ;;  %v6186_v42 = vmul.u32.u64.high 3817748708, %v4548_v9, %v6185_v41 }
 0x121   : > { %v2999_v53 = vmul.u32 18, %v2998_v45  ;;  %v6261_v41 = vmin.u32 %v3070_v32, %v6220_v62 }
 0x123   : > { %v3000_v28 = vsub.s32 %v4542_v16, %v2999_v53 }
 0x124   : > { %4887 = vmatmul.mubr.msk.bf16.gmra.mrb[20].mxu1 %vm301_vm1, %v1480_v37  ;;  %5023 = vmatmul.mubr.msk.bf16.gmra.mrb[20].mxu0 %vm301_vm1, %v2664_v39  ;;  %v6179_v37 = vmul.u32.u64.low 3817748708, %v4547_v29  ;;  %v6180_v39 = vmul.u32.u64.high 3817748708, %v4547_v29, %v6179_v37 }
 0x125   : > { %4890 = vmatprep.mubr.msk.bf16.mxu1 %vm301_vm1, %v1481_v3  ;;  %5026 = vmatprep.mubr.msk.bf16.mxu0 %vm301_vm1, %v2665_v12  ;;  %v6182_v3 = vmul.u32.u64.low 3817748708, %v4545_v30  ;;  %v6183_v12 = vmul.u32.u64.high 3817748708, %v4545_v30, %v6182_v3  ;;  %v3001_v20 = vsub.s32 0, %v3000_v28  ;;  %v3103_v37 = vsub.s32 0, %v6228_v1 }
 0x126   : > { %v3053_v11 = vshrl.u32 %v6180_v39, 4 }
 0x127   : > { %v3031_v55 = vshrl.u32 %v6183_v12, 4 }
 0x128   : > { %v3054_v0 = vmul.u32 18, %v3053_v11 }
 0x12a   : > { %v3055_v23 = vsub.s32 %v4547_v29, %v3054_v0  ;;  %v6249_v29 = vadd.s32 %v6120_v57, %v2930_v19  ;;  %v2935_v19 = vadd.s32 152, %v6115_v56 }
 0x12c   : > { %4891 = vmatmul.mubr.msk.bf16.gmra.mrb[24].mxu1 %vm301_vm1, %v1482_v46  ;;  %5027 = vmatmul.mubr.msk.bf16.gmra.mrb[24].mxu0 %vm301_vm1, %v2666_v48  ;;  %v3011_v46 = vsub.s32 %v4543_v38, %v3010_v17  ;;  %v3037_v48 = vsub.s32 0, %v6189_v43  ;;  %v3032_v38 = vmul.u32 18, %v3031_v55  ;;  %7991 = vst [vmem:[#allocation4_spill] sm:$0xff] %v6249_v29  ;;  %v3056_v39 = vsub.s32 0, %v3055_v23 }
 0x12d   : > { %4894 = vmatprep.mubr.msk.bf16.mxu1 %vm301_vm1, %v1483_v22  ;;  %5030 = vmatprep.mubr.msk.bf16.mxu0 %vm301_vm1, %v2667_v33  ;;  %v2989_v22 = vsub.s32 %v4541_v6, %v2988_v2  ;;  %v3021_v33 = vmul.u32 18, %v3020_v21  ;;  %v2931_v2 = vadd.s32 120, %v6115_v56 }
 0x12e   : > { %v6202_v15 = vmin.u32 %v3037_v48, %v6189_v43  ;;  %v3033_v24 = vsub.s32 %v4545_v30, %v3032_v38  ;;  %v6251_v30 = vsel %vm2992_vm7, %v3001_v20, %v3000_v28  ;;  %v3136_v48 = vsub.s32 0, %v6249_v29 }
 0x12f   : > { %v2990_v54 = vsub.s32 0, %v2989_v22  ;;  %v3022_v13 = vsub.s32 %v4544_v14, %v3021_v33  ;;  %v6224_v14 = vmul.u32.u64.low 3817748708, %v6208_v59  ;;  %v6225_v16 = vmul.u32.u64.high 3817748708, %v6208_v59, %v6224_v14 }
 0x130   : > { %v6214_v7 = vmul.u32.u64.low 3817748708, %v6202_v15  ;;  %v6215_v40 = vmul.u32.u64.high 3817748708, %v6202_v15, %v6214_v7  ;;  %v3034_v3 = vsub.s32 0, %v3033_v24  ;;  %vm3334_vm15 = vcmp.ne.s32.totalorder %v6251_v30, 0 }
 0x131   : > { %v6217_v8 = vsel %vm2981_vm3, %v2990_v54, %v2989_v22  ;;  %v3023_v10 = vsub.s32 0, %v3022_v13  ;;  %v3097_v45 = vshrl.u32 %v6225_v16, 4  ;;  %v3057_v33 = vsel %vm3047_vm10, %v3056_v39, %v3055_v23 }
 0x132   : > { %vm3333_vm8 = vcmp.ne.s32.totalorder %v6217_v8, 0  ;;  %vm3365_vm9 = vcmp.lt.s32.totalorder %v6217_v8, 0  ;;  %v3042_v17 = vshrl.u32 %v6215_v40, 4  ;;  %v3429_v21 = vadd.s32 18, %v6217_v8 }
 0x133   : > { %v6245_v36 = vsel %vm3014_vm4, %v3023_v10, %v3022_v13  ;;  %v3035_v51 = vsel %vm3025_vm11, %v3034_v3, %v3033_v24  ;;  %v6287_v54 = vadd.s32 %v6120_v57, %v2931_v2  ;;  %v3098_v13 = vmul.u32 18, %v3097_v45  ;;  %vm6313_vm3 = vmand %vm3365_vm9, %vm3333_vm8 }
 0x134   : > { %4895 = vmatmul.mubr.msk.bf16.gmra.mrb[28].mxu1 %vm301_vm1, %v1484_v35  ;;  %5031 = vmatmul.mubr.msk.bf16.gmra.mrb[28].mxu0 %vm301_vm1, %v2668_v47  ;;  %v3012_v35 = vsub.s32 0, %v3011_v46  ;;  %v3064_v47 = vshrl.u32 %v6186_v42, 4  ;;  %v3081_v42 = vsub.s32 0, %v6242_v34  ;;  %vm3336_vm13 = vcmp.ne.s32.totalorder %v6245_v36, 0 }
 0x135   : > { %vm3368_vm14 = vcmp.lt.s32.totalorder %v6245_v36, 0  ;;  %v3043_v11 = vmul.u32 18, %v3042_v17  ;;  %7993 = vst [vmem:[#allocation6_spill] sm:$0xff] %v6287_v54  ;;  %v6294_v28 = vmin.u32 %v3136_v48, %v6249_v29  ;;  %vm3366_vm1 = vcmp.lt.s32.totalorder %v6251_v30, 0 }
 0x136   : > { %v6211_v5 = vsel %vm3003_vm2, %v3012_v35, %v3011_v46  ;;  %v3065_v6 = vmul.u32 18, %v3064_v47  ;;  %v6268_v46 = vmin.u32 %v3103_v37, %v6228_v1  ;;  %v6284_v47 = vmin.u32 %v3081_v42, %v6242_v34  ;;  %vm6321_vm10 = vmand %vm3368_vm14, %vm3336_vm13 }
 0x137   : > { %vm3335_vm5 = vcmp.ne.s32.totalorder %v6211_v5, 0  ;;  %vm3367_vm6 = vcmp.lt.s32.totalorder %v6211_v5, 0  ;;  %v6237_v31 = vadd.s32 18, %v6211_v5  ;;  %vm3339_vm2 = vcmp.ne.s32.totalorder %v3057_v33, 0  ;;  %vm6333_vm8 = vmand %vm3366_vm1, %vm3334_vm15 }
 0x138   : > { %v3066_v26 = vsub.s32 %v4548_v9, %v3065_v6  ;;  %v6256_v9 = vadd.s32 %v6120_v57, %v2928_v18  ;;  %v6280_v55 = vmul.u32.u64.low 3817748708, %v6261_v41  ;;  %v6281_v35 = vmul.u32.u64.high 3817748708, %v6261_v41, %v6280_v55  ;;  %vm6300_vm0 = vmand %vm3367_vm6, %vm3335_vm5 }
 0x139   : > { %v6290_v25 = vmul.u32.u64.low 3817748708, %v6268_v46  ;;  %v6291_v61 = vmul.u32.u64.high 3817748708, %v6268_v46, %v6290_v25  ;;  %v2929_v6 = vadd.s32 104, %v6115_v56  ;;  %vm3371_vm4 = vcmp.lt.s32.totalorder %v3057_v33, 0 }
 0x13a   : > { %7992 = vst [vmem:[#allocation5_spill] sm:$0xff] %v6256_v9  ;;  %v3067_v12 = vsub.s32 0, %v3066_v26  ;;  %v3114_v22 = vsub.s32 0, %v6256_v9  ;;  %vm3337_vm5 = vcmp.ne.s32.totalorder %v3035_v51, 0  ;;  %vm3369_vm6 = vcmp.lt.s32.totalorder %v3035_v51, 0  ;;  %vm6345_vm11 = vmand %vm3371_vm4, %vm3339_vm2 }
 0x13b   : > { %v3044_v10 = vsub.s32 %v6202_v15, %v3043_v11  ;;  %v6327_v4 = vmul.u32.u64.low 3817748708, %v6284_v47  ;;  %v6328_v14 = vmul.u32.u64.high 3817748708, %v6284_v47, %v6327_v4  ;;  %v3147_v16 = vsub.s32 0, %v6287_v54 }
 0x13c   : > { %v3068_v53 = vsel %vm3058_vm12, %v3067_v12, %v3066_v26  ;;  %v6306_v38 = vmin.u32 %v3114_v22, %v6256_v9  ;;  %v3099_v20 = vsub.s32 %v6208_v59, %v3098_v13  ;;  %v3432_v15 = vadd.s32 18, %v6245_v36  ;;  %vm6359_vm12 = vmand %vm3369_vm6, %vm3337_vm5 }
 0x13d   : > { %vm3340_vm7 = vcmp.ne.s32.totalorder %v3068_v53, 0  ;;  %vm3372_vm9 = vcmp.lt.s32.totalorder %v3068_v53, 0  ;;  %v6339_v18 = vmul.u32.u64.low 3817748708, %v6294_v28  ;;  %v6340_v23 = vmul.u32.u64.high 3817748708, %v6294_v28, %v6339_v18 }
 0x13e   : > { %v6350_v26 = vmul.u32.u64.low 3817748708, %v6306_v38  ;;  %v6351_v32 = vmul.u32.u64.high 3817748708, %v6306_v38, %v6350_v26  ;;  %v6354_v37 = vadd.s32 %v6120_v57, %v2929_v6  ;;  %v3430_v59 = vadd.s32 18, %v6251_v30  ;;  %vm6370_vm13 = vmand %vm3372_vm9, %vm3340_vm7 }
 0x13f   : > { %v3435_v39 = vadd.s32 18, %v3057_v33  ;;  %v3433_v12 = vadd.s32 18, %v3035_v51  ;;  %v3436_v17 = vadd.s32 18, %v3068_v53  ;;  %v6367_v42 = vsel %vm6300_vm0, %v6237_v31, %v6211_v5 }
 0x140   : > { %8004 = vst [vmem:[#allocation7_spill] sm:$0xff] %v6354_v37  ;;  %v3045_v45 = vsub.s32 0, %v3044_v10  ;;  %v3075_v48 = vshrl.u32 %v6281_v35, 4  ;;  %v6376_v22 = vmin.u32 %v3147_v16, %v6287_v54  ;;  %v6381_v11 = vsel %vm6313_vm3, %v3429_v21, %v6217_v8 }
 0x141   : > { %vm3036_vm14 = vcmp.lt.s32.totalorder %v6189_v43, 0  ;;  %v3100_v5 = vsub.s32 0, %v3099_v20  ;;  %v3108_v31 = vshrl.u32 %v6291_v61, 4  ;;  %v6388_v55 = vsel %vm6321_vm10, %v3432_v15, %v6245_v36 }
 0x142   : > { %vm3091_vm15 = vcmp.lt.s32.totalorder %v6193_v44, 0  ;;  %v3125_v35 = vsub.s32 0, %v6354_v37  ;;  %v2934_v13 = vadd.s32 144, %v6115_v56  ;;  %v6396_v8 = vsel %vm6333_vm8, %v3430_v59, %v6251_v30 }
 0x143   : > { %v6400_v21 = vsel %vm6345_vm11, %v3435_v39, %v3057_v33  ;;  %v6404_v25 = vsel %vm6359_vm12, %v3433_v12, %v3035_v51  ;;  %v6408_v36 = vsel %vm6370_vm13, %v3436_v17, %v3068_v53  ;;  %v3046_v61 = vsel %vm3036_vm14, %v3045_v45, %v3044_v10 }
 0x144   : > { %v3076_v0 = vmul.u32 18, %v3075_v48  ;;  %v6411_v6 = vmul.u32.u64.low 3817748708, %v6376_v22  ;;  %v6412_v7 = vmul.u32.u64.high 3817748708, %v6376_v22, %v6411_v6  ;;  %v3101_v30 = vsel %vm3091_vm15, %v3100_v5, %v3099_v20 }
 0x145   : > { %vm3069_vm0 = vcmp.lt.s32.totalorder %v6220_v62, 0  ;;  %v3109_v40 = vmul.u32 18, %v3108_v31  ;;  %v3086_v33 = vshrl.u32 %v6328_v14, 4  ;;  %v3141_v4 = vshrl.u32 %v6340_v23, 4 }
 0x146   : > { %vm3102_vm1 = vcmp.lt.s32.totalorder %v6228_v1, 0  ;;  %v3119_v51 = vshrl.u32 %v6351_v32, 4  ;;  %v6420_v53 = vmin.u32 %v3125_v35, %v6354_v37  ;;  %v6423_v10 = vadd.s32 %v6120_v57, %v2934_v13 }
 0x147   : > { %vm3338_vm2 = vcmp.ne.s32.totalorder %v3046_v61, 0  ;;  %vm3370_vm3 = vcmp.lt.s32.totalorder %v3046_v61, 0  ;;  %v2932_v16 = vadd.s32 128, %v6115_v56  ;;  %v3434_v20 = vadd.s32 18, %v3046_v61 }
 0x148   : > { %8009 = vst [vmem:[#allocation8_spill] sm:$0xff] %v6423_v10  ;;  %vm3343_vm4 = vcmp.ne.s32.totalorder %v3101_v30, 0  ;;  %v3077_v14 = vsub.s32 %v6261_v41, %v3076_v0  ;;  %v2933_v18 = vadd.s32 136, %v6115_v56  ;;  %vm3375_vm5 = vcmp.lt.s32.totalorder %v3101_v30, 0  ;;  %vm3402_vm6 = vmand %vm3370_vm3, %vm3338_vm2 }
 0x149   : > { %v3110_v23 = vsub.s32 %v6268_v46, %v3109_v40  ;;  %v3087_v15 = vmul.u32 18, %v3086_v33  ;;  %v3142_v24 = vmul.u32 18, %v3141_v4  ;;  %v3180_v39 = vsub.s32 0, %v6423_v10  ;;  %vm3407_vm10 = vmand %vm3375_vm5, %vm3343_vm4 }
 0x14a   : > { %v3120_v26 = vmul.u32 18, %v3119_v51  ;;  %v6431_v32 = vmul.u32.u64.low 3817748708, %v6420_v53  ;;  %v6432_v59 = vmul.u32.u64.high 3817748708, %v6420_v53, %v6431_v32  ;;  %v3439_v3 = vadd.s32 18, %v3101_v30 }
 0x14b   : > { %vm3080_vm7 = vcmp.lt.s32.totalorder %v6242_v34, 0  ;;  %v6439_v41 = vadd.s32 %v6120_v57, %v2932_v16  ;;  %v6442_v46 = vadd.s32 %v6120_v57, %v2935_v19  ;;  %v3078_v12 = vsub.s32 0, %v3077_v14 }
 0x14c   : > { %v3152_v17 = vshrl.u32 %v6412_v7, 4  ;;  %v6447_v2 = vadd.s32 %v6120_v57, %v2933_v18  ;;  %v2938_v45 = vadd.s32 176, %v6115_v56  ;;  %v3111_v48 = vsub.s32 0, %v3110_v23 }
 0x14d   : > { %8010 = vst [vmem:[#allocation9_spill] sm:$0xff] %v6439_v41  ;;  %8011 = vst [vmem:[#allocation10_spill] sm:$0xff] %v6442_v46  ;;  %v3088_v5 = vsub.s32 %v6284_v47, %v3087_v15  ;;  %v3143_v31 = vsub.s32 %v6294_v28, %v3142_v24  ;;  %v2936_v35 = vadd.s32 160, %v6115_v56  ;;  %v6453_v13 = vsel %vm3402_vm6, %v3434_v20, %v3046_v61 }
 0x14e   : > { %8012 = vst [vmem:[#allocation11_spill] sm:$0xff] %v6447_v2  ;;  %vm3135_vm8 = vcmp.lt.s32.totalorder %v6249_v29, 0  ;;  %v3121_v0 = vsub.s32 %v6306_v38, %v3120_v26  ;;  %v6458_v6 = vmin.u32 %v3180_v39, %v6423_v10  ;;  %v6460_v7 = vsel %vm3407_vm10, %v3439_v3, %v3101_v30 }
 0x14f   : > { %vm3113_vm9 = vcmp.lt.s32.totalorder %v6256_v9, 0  ;;  %v3158_v40 = vsub.s32 0, %v6439_v41  ;;  %v3191_v47 = vsub.s32 0, %v6442_v46  ;;  %v3079_v28 = vsel %vm3069_vm0, %v3078_v12, %v3077_v14 }
 0x150   : > { %v3153_v61 = vmul.u32 18, %v3152_v17  ;;  %v3169_v33 = vsub.s32 0, %v6447_v2  ;;  %v6469_v4 = vadd.s32 %v6120_v57, %v2938_v45  ;;  %v3112_v38 = vsel %vm3102_vm1, %v3111_v48, %v3110_v23 }
 0x151   : > { %v3089_v30 = vsub.s32 0, %v3088_v5  ;;  %v3144_v51 = vsub.s32 0, %v3143_v31  ;;  %vm3146_vm11 = vcmp.lt.s32.totalorder %v6287_v54, 0  ;;  %v6475_v16 = vadd.s32 %v6120_v57, %v2936_v35 }
 0x152   : > { %8013 = vst [vmem:[#allocation12_spill] sm:$0xff] %v6469_v4  ;;  %v3122_v19 = vsub.s32 0, %v3121_v0  ;;  %v3130_v20 = vshrl.u32 %v6432_v59, 4  ;;  %v6479_v14 = vmul.u32.u64.low 3817748708, %v6458_v6  ;;  %v6480_v18 = vmul.u32.u64.high 3817748708, %v6458_v6, %v6479_v14 }
 0x153   : > { %8014 = vst [vmem:[#allocation13_spill] sm:$0xff] %v6475_v16  ;;  %vm3341_vm12 = vcmp.ne.s32.totalorder %v3079_v28, 0  ;;  %vm3373_vm13 = vcmp.lt.s32.totalorder %v3079_v28, 0  ;;  %v6483_v15 = vmin.u32 %v3158_v40, %v6439_v41  ;;  %v6486_v23 = vmin.u32 %v3191_v47, %v6442_v46 }
 0x154   : > { %v3437_v24 = vadd.s32 18, %v3079_v28  ;;  %v3154_v26 = vsub.s32 %v6376_v22, %v3153_v61  ;;  %v6490_v32 = vmin.u32 %v3169_v33, %v6447_v2  ;;  %v3224_v59 = vsub.s32 0, %v6469_v4  ;;  %vm3405_vm0 = vmand %vm3373_vm13, %vm3341_vm12 }
 0x155   : > { %vm3344_vm14 = vcmp.ne.s32.totalorder %v3112_v38, 0  ;;  %vm3376_vm15 = vcmp.lt.s32.totalorder %v3112_v38, 0  ;;  %v3202_v39 = vsub.s32 0, %v6475_v16  ;;  %v2939_v3 = vadd.s32 184, %v6115_v56 }
 0x156   : > { %v3090_v12 = vsel %vm3080_vm7, %v3089_v30, %v3088_v5  ;;  %v3145_v17 = vsel %vm3135_vm8, %v3144_v51, %v3143_v31  ;;  %v3123_v22 = vsel %vm3113_vm9, %v3122_v19, %v3121_v0  ;;  %v3131_v45 = vmul.u32 18, %v3130_v20  ;;  %vm3408_vm3 = vmand %vm3376_vm15, %vm3344_vm14 }
 0x157   : > { %v6502_v48 = vmul.u32.u64.low 3817748708, %v6483_v15  ;;  %v6503_v35 = vmul.u32.u64.high 3817748708, %v6483_v15, %v6502_v48  ;;  %v6506_v40 = vmul.u32.u64.low 3817748708, %v6486_v23  ;;  %v6507_v47 = vmul.u32.u64.high 3817748708, %v6486_v23, %v6506_v40 }
 0x158   : > { %v3155_v61 = vsub.s32 0, %v3154_v26  ;;  %v6510_v33 = vmul.u32.u64.low 3817748708, %v6490_v32  ;;  %v6511_v14 = vmul.u32.u64.high 3817748708, %v6490_v32, %v6510_v33  ;;  %v6514_v5 = vmin.u32 %v3224_v59, %v6469_v4 }
 0x159   : > { %v6516_v31 = vsel %vm3405_vm0, %v3437_v24, %v3079_v28  ;;  %v3440_v0 = vadd.s32 18, %v3112_v38  ;;  %v6519_v30 = vmin.u32 %v3202_v39, %v6475_v16  ;;  %v6522_v51 = vadd.s32 %v6120_v57, %v2939_v3 }
 0x15a   : > { %8015 = vst [vmem:[#allocation14_spill] sm:$0xff] %v6516_v31  ;;  %vm3342_vm1 = vcmp.ne.s32.totalorder %v3090_v12, 0  ;;  %vm3374_vm2 = vcmp.lt.s32.totalorder %v3090_v12, 0  ;;  %v3438_v19 = vadd.s32 18, %v3090_v12  ;;  %v3185_v20 = vshrl.u32 %v6480_v18, 4 }
 0x15b   : > { %8016 = vst [vmem:[#allocation15_spill] sm:$0xff] %v6522_v51  ;;  %vm3347_vm4 = vcmp.ne.s32.totalorder %v3145_v17, 0  ;;  %vm3379_vm5 = vcmp.lt.s32.totalorder %v3145_v17, 0  ;;  %vm3345_vm6 = vcmp.ne.s32.totalorder %v3123_v22, 0  ;;  %v3132_v28 = vsub.s32 %v6420_v53, %v3131_v45  ;;  %vm6535_vm10 = vmand %vm3374_vm2, %vm3342_vm1 }
 0x15c   : > { %vm3377_vm7 = vcmp.lt.s32.totalorder %v3123_v22, 0  ;;  %v3156_v24 = vsel %vm3146_vm11, %v3155_v61, %v3154_v26  ;;  %v6531_v59 = vmul.u32.u64.low 3817748708, %v6514_v5  ;;  %v6532_v39 = vmul.u32.u64.high 3817748708, %v6514_v5, %v6531_v59  ;;  %vm6548_vm8 = vmand %vm3379_vm5, %vm3347_vm4 }
 0x15d   : > { %v6540_v18 = vmul.u32.u64.low 3817748708, %v6519_v30  ;;  %v6541_v48 = vmul.u32.u64.high 3817748708, %v6519_v30, %v6540_v18  ;;  %v3235_v40 = vsub.s32 0, %v6522_v51  ;;  %v2937_v53 = vadd.s32 168, %v6115_v56  ;;  %vm6553_vm9 = vmand %vm3377_vm7, %vm3345_vm6 }
 0x15e   : > { %v6545_v45 = vsel %vm3408_vm3, %v3440_v0, %v3112_v38  ;;  %v3443_v61 = vadd.s32 18, %v3145_v17  ;;  %v3441_v33 = vadd.s32 18, %v3123_v22  ;;  %v3186_v59 = vmul.u32 18, %v3185_v20 }
 0x15f   : > { %8019 = vst [vmem:[#allocation16_spill] sm:$0xff] %v6545_v45  ;;  %v3133_v18 = vsub.s32 0, %v3132_v28  ;;  %v3163_v9 = vshrl.u32 %v6503_v35, 4  ;;  %v3196_v29 = vshrl.u32 %v6507_v47, 4  ;;  %v2942_v38 = vadd.s32 208, %v6115_v56 }
 0x160   : > { %vm3348_vm11 = vcmp.ne.s32.totalorder %v3156_v24, 0  ;;  %vm3380_vm12 = vcmp.lt.s32.totalorder %v3156_v24, 0  ;;  %vm3124_vm13 = vcmp.lt.s32.totalorder %v6354_v37, 0  ;;  %v3174_v0 = vshrl.u32 %v6511_v14, 4 }
 0x161   : > { %v6564_v20 = vsel %vm6535_vm10, %v3438_v19, %v3090_v12  ;;  %vm3179_vm14 = vcmp.lt.s32.totalorder %v6423_v10, 0  ;;  %v6568_v34 = vmin.u32 %v3235_v40, %v6522_v51  ;;  %v6571_v35 = vadd.s32 %v6120_v57, %v2937_v53  ;;  %vm3412_vm15 = vmand %vm3380_vm12, %vm3348_vm11 }
 0x162   : > { %8024 = vst [vmem:[#allocation17_spill] sm:$0xff] %v6564_v20  ;;  %v6575_v47 = vsel %vm6548_vm8, %v3443_v61, %v3145_v17  ;;  %v6579_v37 = vsel %vm6553_vm9, %v3441_v33, %v3123_v22  ;;  %v3444_v14 = vadd.s32 18, %v3156_v24  ;;  %v3187_v12 = vsub.s32 %v6458_v6, %v3186_v59 }
 0x163   : > { %8025 = vst [vmem:[#allocation18_spill] sm:$0xff] %v6571_v35  ;;  %8026 = vst [vmem:[#allocation19_spill] sm:$0xff] %v6575_v47  ;;  %v3134_v19 = vsel %vm3124_vm13, %v3133_v18, %v3132_v28  ;;  %v3164_v3 = vmul.u32 18, %v3163_v9  ;;  %v3197_v20 = vmul.u32 18, %v3196_v29  ;;  %v6583_v40 = vadd.s32 %v6120_v57, %v2942_v38 }
 0x164   : > { %8027 = vst [vmem:[#allocation20_spill] sm:$0xff] %v6579_v37  ;;  %v3175_v53 = vmul.u32 18, %v3174_v0  ;;  %v6586_v45 = vmul.u32.u64.low 3817748708, %v6568_v34  ;;  %v6587_v26 = vmul.u32.u64.high 3817748708, %v6568_v34, %v6586_v45  ;;  %v2940_v17 = vadd.s32 192, %v6115_v56 }
 0x165   : > { %8028 = vst [vmem:[#allocation21_spill] sm:$0xff] %v6583_v40  ;;  %vm3157_vm0 = vcmp.lt.s32.totalorder %v6439_v41, 0  ;;  %v3229_v54 = vshrl.u32 %v6532_v39, 4  ;;  %v3207_v6 = vshrl.u32 %v6541_v48, 4  ;;  %v3213_v22 = vsub.s32 0, %v6571_v35 }
 0x166   : > { %v2943_v29 = vadd.s32 216, %v6115_v56  ;;  %v6595_v9 = vsel %vm3412_vm15, %v3444_v14, %v3156_v24  ;;  %v3188_v28 = vsub.s32 0, %v3187_v12  ;;  %vm3190_vm1 = vcmp.lt.s32.totalorder %v6442_v46, 0 }
 0x167   : > { %8029 = vst [vmem:[#allocation22_spill] sm:$0xff] %v6595_v9  ;;  %vm3168_vm2 = vcmp.lt.s32.totalorder %v6447_v2, 0  ;;  %vm3346_vm3 = vcmp.ne.s32.totalorder %v3134_v19, 0  ;;  %vm3378_vm4 = vcmp.lt.s32.totalorder %v3134_v19, 0  ;;  %v6600_v45 = vmin.u32 %v3213_v22, %v6571_v35 }
 0x168   : > { %v3268_v39 = vsub.s32 0, %v6583_v40  ;;  %v3165_v48 = vsub.s32 %v6483_v15, %v3164_v3  ;;  %v3198_v61 = vsub.s32 %v6486_v23, %v3197_v20  ;;  %v3176_v33 = vsub.s32 %v6490_v32, %v3175_v53  ;;  %vm6632_vm5 = vmand %vm3378_vm4, %vm3346_vm3 }
 0x169   : > { %v6607_v24 = vadd.s32 %v6120_v57, %v2940_v17  ;;  %v3230_v59 = vmul.u32 18, %v3229_v54  ;;  %v3208_v18 = vmul.u32 18, %v3207_v6  ;;  %v6613_v0 = vadd.s32 %v6120_v57, %v2943_v29 }
 0x16a   : > { %v6610_v38 = vmin.u32 %v3268_v39, %v6583_v40  ;;  %v3189_v14 = vsel %vm3179_vm14, %v3188_v28, %v3187_v12  ;;  %v3240_v15 = vshrl.u32 %v6587_v26, 4  ;;  %v2941_v17 = vadd.s32 200, %v6115_v56 }
 0x16b   : > { %8030 = vst [vmem:[#allocation23_spill] sm:$0xff] %v6607_v24  ;;  %8031 = vst [vmem:[#allocation24_spill] sm:$0xff] %v6613_v0  ;;  %v6619_v23 = vmul.u32.u64.low 3817748708, %v6600_v45  ;;  %v6620_v20 = vmul.u32.u64.high 3817748708, %v6600_v45, %v6619_v23  ;;  %v3246_v53 = vsub.s32 0, %v6607_v24  ;;  %v3442_v54 = vadd.s32 18, %v3134_v19 }
 0x16c   : > { %v6623_v32 = vmul.u32.u64.low 3817748708, %v6610_v38  ;;  %v6624_v3 = vmul.u32.u64.high 3817748708, %v6610_v38, %v6623_v32  ;;  %v3166_v6 = vsub.s32 0, %v3165_v48  ;;  %v3199_v22 = vsub.s32 0, %v3198_v61 }
 0x16d   : > { %v3177_v29 = vsub.s32 0, %v3176_v33  ;;  %v3231_v26 = vsub.s32 %v6514_v5, %v3230_v59  ;;  %v3209_v28 = vsub.s32 %v6519_v30, %v3208_v18  ;;  %v6639_v23 = vmin.u32 %v3246_v53, %v6607_v24 }
 0x16e   : > { %v3279_v32 = vsub.s32 0, %v6613_v0  ;;  %vm3351_vm6 = vcmp.ne.s32.totalorder %v3189_v14, 0  ;;  %vm3383_vm7 = vcmp.lt.s32.totalorder %v3189_v14, 0  ;;  %vm3223_vm10 = vcmp.lt.s32.totalorder %v6469_v4, 0 }
 0x16f   : > { %v3241_v9 = vmul.u32 18, %v3240_v15  ;;  %vm3201_vm8 = vcmp.lt.s32.totalorder %v6475_v16, 0  ;;  %v6649_v5 = vmul.u32.u64.low 3817748708, %v6639_v23  ;;  %v6650_v59 = vmul.u32.u64.high 3817748708, %v6639_v23, %v6649_v5  ;;  %vm3415_vm9 = vmand %vm3383_vm7, %vm3351_vm6 }
 0x170   : > { %v6653_v30 = vadd.s32 %v6120_v57, %v2941_v17  ;;  %v6659_v53 = vsel %vm6632_vm5, %v3442_v54, %v3134_v19  ;;  %v3447_v47 = vadd.s32 18, %v3189_v14  ;;  %v3167_v15 = vsel %vm3157_vm0, %v3166_v6, %v3165_v48 }
 0x171   : > { %v6664_v1 = vmin.u32 %v3279_v32, %v6613_v0  ;;  %v3200_v5 = vsel %vm3190_vm1, %v3199_v22, %v3198_v61  ;;  %v6671_v17 = vsel %vm3168_vm2, %v3177_v29, %v3176_v33  ;;  %v3232_v31 = vsub.s32 0, %v3231_v26 }
 0x172   : > { %v3210_v12 = vsub.s32 0, %v3209_v28  ;;  %v3242_v19 = vsub.s32 %v6568_v34, %v3241_v9  ;;  %v3218_v54 = vshrl.u32 %v6620_v20, 4  ;;  %vm3349_vm11 = vcmp.ne.s32.totalorder %v3167_v15, 0 }
 0x173   : > { %v6676_v48 = vmul.u32.u64.low 3817748708, %v6664_v1  ;;  %v6677_v6 = vmul.u32.u64.high 3817748708, %v6664_v1, %v6676_v48  ;;  %vm3381_vm12 = vcmp.lt.s32.totalorder %v3167_v15, 0  ;;  %v3273_v32 = vshrl.u32 %v6624_v3, 4 }
 0x174   : > { %v3257_v61 = vsub.s32 0, %v6653_v30  ;;  %v6681_v22 = vsel %vm3415_vm9, %v3447_v47, %v3189_v14  ;;  %v3445_v33 = vadd.s32 18, %v3167_v15  ;;  %vm3234_vm13 = vcmp.lt.s32.totalorder %v6522_v51, 0  ;;  %vm6693_vm1 = vmand %vm3381_vm12, %vm3349_vm11 }
 0x175   : > { %8034 = vst [vmem:[#allocation25_spill] sm:$0xff] %v6681_v22  ;;  %v3251_v29 = vshrl.u32 %v6650_v59, 4  ;;  %vm3352_vm14 = vcmp.ne.s32.totalorder %v3200_v5, 0  ;;  %vm3384_vm15 = vcmp.lt.s32.totalorder %v3200_v5, 0  ;;  %vm3350_vm0 = vcmp.ne.s32.totalorder %v6671_v17, 0 }
 0x176   : > { %v3233_v9 = vsel %vm3223_vm10, %v3232_v31, %v3231_v26  ;;  %v6699_v14 = vsel %vm3201_vm8, %v3210_v12, %v3209_v28  ;;  %v3243_v3 = vsub.s32 0, %v3242_v19  ;;  %v3219_v59 = vmul.u32 18, %v3218_v54  ;;  %vm6721_vm8 = vmand %vm3384_vm15, %vm3352_vm14 }
 0x177   : > { %v3284_v48 = vshrl.u32 %v6677_v6, 4  ;;  %vm3382_vm2 = vcmp.lt.s32.totalorder %v6671_v17, 0  ;;  %v3274_v31 = vmul.u32 18, %v3273_v32  ;;  %v6706_v26 = vmin.u32 %v3257_v61, %v6653_v30 }
 0x178   : > { %v2946_v4 = vadd.s32 240, %v6115_v56  ;;  %vm3495_vm3 = vcmp.lt.s32.totalorder %v6123_v49, 288  ;;  %vm3527_vm4 = vcmp.ge.s32.totalorder %v6367_v42, 1  ;;  %v3448_v28 = vadd.s32 18, %v3200_v5 }
 0x179   : > { %vm3355_vm5 = vcmp.ne.s32.totalorder %v3233_v9, 0  ;;  %vm3387_vm6 = vcmp.lt.s32.totalorder %v3233_v9, 0  ;;  %v3252_v12 = vmul.u32 18, %v3251_v29  ;;  %vm3493_vm7 = vcmp.lt.s32.totalorder %v6127_v58, 288 }
 0x17a   : > { %vm3525_vm10 = vcmp.ge.s32.totalorder %v6381_v11, 1  ;;  %v6717_v54 = vsel %vm6693_vm1, %v3445_v33, %v3167_v15  ;;  %v3446_v32 = vadd.s32 18, %v6671_v17  ;;  %v3451_v61 = vadd.s32 18, %v3233_v9  ;;  %vm6733_vm1 = vmand %vm3382_vm2, %vm3350_vm0 }
 0x17b   : > { %8037 = vst [vmem:[#allocation26_spill] sm:$0xff] %v6717_v54  ;;  %vm3353_vm9 = vcmp.ne.s32.totalorder %v6699_v14, 0  ;;  %vm3528_vm12 = vcmp.ge.s32.totalorder %v6388_v55, 1  ;;  %vm3385_vm14 = vcmp.lt.s32.totalorder %v6699_v14, 0  ;;  %v3244_v33 = vsel %vm3234_vm13, %v3243_v3, %v3242_v19  ;;  %vm6744_vm11 = vmand %vm3387_vm6, %vm3355_vm5 }
 0x17c   : > { %v3220_v29 = vsub.s32 %v6600_v45, %v3219_v59  ;;  %v3285_v47 = vmul.u32 18, %v3284_v48  ;;  %vm3591_vm15 = vcmp.le.s32.totalorder %v6367_v42, 16  ;;  %v3275_v54 = vsub.s32 %v6610_v38, %v3274_v31 }
 0x17d   : > { %v6750_v41 = vmul.u32.u64.low 3817748708, %v6706_v26  ;;  %v6751_v22 = vmul.u32.u64.high 3817748708, %v6706_v26, %v6750_v41  ;;  %v6754_v51 = vadd.s32 %v6120_v57, %v2946_v4  ;;  %vm3589_vm13 = vcmp.le.s32.totalorder %v6381_v11, 16  ;;  %v6773_v4 = vld [vmem:[%s7939_s2] ss:$0 sm:$0xff] }
 0x17e   : > { %v6759_v45 = vsel %vm6721_vm8, %v3448_v28, %v3200_v5  ;;  %v3253_v19 = vsub.s32 %v6639_v23, %v3252_v12  ;;  %v2944_v3 = vadd.s32 224, %v6115_v56  ;;  %v2947_v59 = vadd.s32 248, %v6115_v56  ;;  %vm6790_vm8 = vmand %vm3385_vm14, %vm3353_vm9 }
 0x17f   : > { %8044 = vst [vmem:[#allocation27_spill] sm:$0xff] %v6759_v45  ;;  %vm3592_vm0 = vcmp.le.s32.totalorder %v6388_v55, 16  ;;  %v3449_v41 = vadd.s32 18, %v6699_v14  ;;  %vm3356_vm2 = vcmp.ne.s32.totalorder %v3244_v33, 0  ;;  %vm3388_vm5 = vcmp.lt.s32.totalorder %v3244_v33, 0 }
 0x180   : > { %vm3212_vm6 = vcmp.lt.s32.totalorder %v6571_v35, 0  ;;  %v6780_v5 = vsel %vm6733_vm1, %v3446_v32, %v6671_v17  ;;  %v6784_v48 = vsel %vm6744_vm11, %v3451_v61, %v3233_v9  ;;  %v3221_v28 = vsub.s32 0, %v3220_v29  ;;  %vm6809_vm9 = vmand %vm3388_vm5, %vm3356_vm2 }
 0x181   : > { %8045 = vst [vmem:[#allocation28_spill] sm:$0xff] %v6780_v5  ;;  %8046 = vst [vmem:[#allocation29_spill] sm:$0xff] %v6784_v48  ;;  %v3286_v12 = vsub.s32 %v6664_v1, %v3285_v47  ;;  %v3452_v15 = vadd.s32 18, %v3244_v33  ;;  %vm3267_vm1 = vcmp.lt.s32.totalorder %v6583_v40, 0  ;;  %v3276_v17 = vsub.s32 0, %v3275_v54 }
 0x182   : > { %v3312_v16 = vsub.s32 0, %v6754_v51  ;;  %v3254_v1 = vsub.s32 0, %v3253_v19  ;;  %v3262_v61 = vshrl.u32 %v6751_v22, 4  ;;  %v6815_v47 = vadd.s32 %v6120_v57, %v2944_v3 }
 0x183   : > { %v6818_v48 = vadd.s32 %v6120_v57, %v2947_v59  ;;  %v6827_v45 = vsel %vm6790_vm8, %v3449_v41, %v6699_v14  ;;  %vm3245_vm11 = vcmp.lt.s32.totalorder %v6607_v24, 0  ;;  %vm3278_vm14 = vcmp.lt.s32.totalorder %v6613_v0, 0  ;;  %vm6853_vm8 = vmand %vm3495_vm3, %vm3527_vm4  ;;  %v8090_v24 = vld [vmem:[#allocation16_spill] sm:$0xff] }
 0x184   : > { %8052 = vst [vmem:[#allocation30_spill] sm:$0xff] %v6827_v45  ;;  %v3287_v14 = vsub.s32 0, %v3286_v12  ;;  %vm3499_vm2 = vcmp.lt.s32.totalorder %v6147_v27, 288  ;;  %vm3531_vm5 = vcmp.ge.s32.totalorder %v6400_v21, 1  ;;  %vm6877_vm3 = vmand %vm3493_vm7, %vm3525_vm10  ;;  %v6889_v41 = vsel %vm3245_vm11, %v3254_v1, %v3253_v19  ;;  %v8116_v27 = vld [vmem:[#allocation4_spill] sm:$0xff] }
 0x185   : > { %v3263_v31 = vmul.u32 18, %v3262_v61  ;;  %vm8058_vm7 = vcmp.lt.s32.totalorder %v6134_v60, 288  ;;  %vm3389_vm4 = vcmp.lt.s32.totalorder %v6889_v41, 0 }
 0x186   : > { %vm6899_vm10 = vmand %vm8058_vm7, %vm3528_vm12  ;;  %v6925_v32 = vsel %vm3278_vm14, %v3287_v14, %v3286_v12  ;;  %vm3357_vm7 = vcmp.ne.s32.totalorder %v6889_v41, 0 }
 0x187   : > { %vm6917_vm12 = vmand %vm6853_vm8, %vm3591_vm15  ;;  %v3264_v14 = vsub.s32 %v6706_v26, %v3263_v31  ;;  %vm3360_vm8 = vcmp.ne.s32.totalorder %v6925_v32, 0 }
 0x188   : > { %vm6939_vm15 = vmand %vm6877_vm3, %vm3589_vm13 }
 0x189   : > { %vm6957_vm13 = vmand %vm6899_vm10, %vm3592_vm0  ;;  %vm3503_vm0 = vcmp.lt.s32.totalorder %v6193_v44, 288  ;;  %vm3535_vm10 = vcmp.ge.s32.totalorder %v6460_v7, 1  ;;  %v3265_v40 = vsub.s32 0, %v3264_v14 }
 0x1af   : > { %v6628_v39 = vpop.f32.mrb[0].mxu1 }
 0x1b0   : > { %v6642_v10 = vpop.f32.mrb[1].mxu1  ;;  %v6822_v5 = vadd.f32 %v6628_v39, %v6773_v4  ;;  %v6843_v39 = vsel %vm3212_vm6, %v3221_v28, %v3220_v29  ;;  %v3290_v29 = vsub.s32 0, %v6815_v47  ;;  %v3323_v28 = vsub.s32 0, %v6818_v48 }
 0x1b1   : > { %v6645_v37 = vpop.f32.mrb[2].mxu1  ;;  %v6833_v22 = vadd.f32 %v6773_v4, %v6642_v10  ;;  %v6861_v10 = vsel %vm6809_vm9, %v3452_v15, %v3244_v33  ;;  %v6885_v33 = vsel %vm3267_vm1, %v3276_v17, %v3275_v54  ;;  %vm3354_vm9 = vcmp.ne.s32.totalorder %v6843_v39, 0 }
 0x1b2   : > { %v6655_v18 = vpop.f32.mrb[3].mxu1  ;;  %v6837_v3 = vadd.f32 %v6645_v37, %v6773_v4  ;;  %8055 = vst [vmem:[#allocation31_spill] sm:$0xff] %v6861_v10  ;;  %vm3386_vm11 = vcmp.lt.s32.totalorder %v6843_v39, 0  ;;  %v6928_v1 = vmin.u32 %v3290_v29, %v6815_v47  ;;  %v6931_v42 = vmin.u32 %v3323_v28, %v6818_v48 }
 0x1b3   : > { %v6847_v59 = vadd.f32 %v6773_v4, %v6655_v18  ;;  %v6864_v18 = vmin.u32 %v3312_v16, %v6754_v51  ;;  %v3450_v16 = vadd.s32 18, %v6843_v39  ;;  %vm3359_vm14 = vcmp.ne.s32.totalorder %v6885_v33, 0  ;;  %vm6979_vm3 = vmand %vm3386_vm11, %vm3354_vm9 }
 0x1b4   : > { %vm3391_vm1 = vcmp.lt.s32.totalorder %v6885_v33, 0  ;;  %v6965_v29 = vmul.u32.u64.low 3817748708, %v6928_v1  ;;  %v6966_v49 = vmul.u32.u64.high 3817748708, %v6928_v1, %v6965_v29  ;;  %v2945_v28 = vadd.s32 232, %v6115_v56  ;;  %vm7019_vm11 = vmand %vm3389_vm4, %vm3357_vm7 }
 0x1b5   : > { %v6908_v54 = vmul.u32.u64.low 3817748708, %v6864_v18  ;;  %v6909_v19 = vmul.u32.u64.high 3817748708, %v6864_v18, %v6908_v54  ;;  %v3455_v31 = vadd.s32 18, %v6885_v33  ;;  %vm3392_vm6 = vcmp.lt.s32.totalorder %v6925_v32, 0  ;;  %vm6996_vm9 = vmand %vm3391_vm1, %vm3359_vm14 }
 0x1b6   : > { %v7002_v54 = vmul.u32.u64.low 3817748708, %v6931_v42  ;;  %v7003_v29 = vmul.u32.u64.high 3817748708, %v6931_v42, %v7002_v54  ;;  %vm3594_vm14 = vcmp.le.s32.totalorder %v6453_v13, 16  ;;  %vm7035_vm1 = vmand %vm3392_vm6, %vm3360_vm8  ;;  %v7040_v10 = vadd.s32 %v6120_v57, %v2945_v28 }
 0x1b7   : > { %v6685_v34 = vpop.f32.mrb[4].mxu1  ;;  %v3317_v15 = vshrl.u32 %v6909_v19, 4  ;;  %v3453_v54 = vadd.s32 18, %v6889_v41  ;;  %vm8075_vm4 = vcmp.ge.s32.totalorder %v6396_v8, 1  ;;  %vm8076_vm7 = vcmp.lt.s32.totalorder %v6137_v63, 288 }
 0x1b8   : > { %v6690_v20 = vpop.f32.mrb[5].mxu1  ;;  %v6971_v55 = vadd.f32 %v6685_v34, %v6773_v4  ;;  %vm3311_vm8 = vcmp.lt.s32.totalorder %v6754_v51, 0  ;;  %v3295_v57 = vshrl.u32 %v6966_v49, 4  ;;  %v8089_v34 = vld [vmem:[#allocation2_spill] sm:$0xff] }
 0x1b9   : > { %v6702_v2 = vpop.f32.mrb[6].mxu1  ;;  %v6988_v56 = vadd.f32 %v6773_v4, %v6690_v20  ;;  %v3318_v35 = vmul.u32 18, %v3317_v15 }
 0x1ba   : > { %v6709_v46 = vpop.f32.mrb[7].mxu1  ;;  %v7007_v20 = vadd.f32 %v6702_v2, %v6773_v4  ;;  %v3456_v2 = vadd.s32 18, %v6925_v32 }
 0x1bb   : > { %v7011_v0 = vadd.f32 %v6773_v4, %v6709_v46  ;;  %v7029_v46 = vsel %vm6979_vm3, %v3450_v16, %v6843_v39  ;;  %vm7050_vm3 = vmand %vm8076_vm7, %vm8075_vm4  ;;  %v7058_v16 = vsel %vm6996_vm9, %v3455_v31, %v6885_v33  ;;  %vm8081_vm4 = vcmp.ge.s32.totalorder %v6404_v25, 1  ;;  %v8085_v31 = vld [vmem:[#allocation14_spill] sm:$0xff]  ;;  %v8106_v39 = vld [vmem:[#allocation17_spill] sm:$0xff] }
 0x1bc   : > { %vm7083_vm9 = vmand %vm3499_vm2, %vm3531_vm5  ;;  %vm8082_vm7 = vcmp.lt.s32.totalorder %v6150_v50, 288  ;;  %vm8091_vm2 = vcmp.lt.s32.totalorder %v6653_v30, 0 }
 0x1bd   : > { %vm7097_vm6 = vmand %vm8082_vm7, %vm8081_vm4  ;;  %vm8086_vm4 = vcmp.le.s32.totalorder %v6396_v8, 16 }
 0x1be   : > { %vm7122_vm7 = vmand %vm7050_vm3, %vm8086_vm4  ;;  %vm8092_vm3 = vcmask 64512   ;;  %vm8093_vm4 = vcmp.le.s32.totalorder %v6400_v21, 16 }
 0x1bf   : > { %v6764_v38 = vpop.f32.mrb[8].mxu1 }
 0x1c0   : > { %v6775_v23 = vpop.f32.mrb[9].mxu1  ;;  %v7044_v45 = vadd.f32 %v6764_v38, %v6773_v4 }
 0x1c1   : > { %v6795_v6 = vpop.f32.mrb[10].mxu1  ;;  %v7064_v38 = vadd.f32 %v6773_v4, %v6775_v23 }
 0x1c2   : > { %v6799_v9 = vpop.f32.mrb[11].mxu1  ;;  %v7068_v63 = vadd.f32 %v6795_v6, %v6773_v4  ;;  %v3319_v6 = vsub.s32 %v6864_v18, %v3318_v35  ;;  %v7106_v35 = vsel %vm7019_vm11, %v3453_v54, %v6889_v41  ;;  %vm8096_vm11 = vmmov %vm8092_vm3  ;;  %v3328_v54 = vshrl.u32 %v7003_v29, 4 }
 0x1c3   : > { %v7072_v28 = vadd.f32 %v6773_v4, %v6799_v9 }
 0x1c7   : > { %v6892_v58 = vpop.f32.mrb[12].mxu1 }
 0x1c8   : > { %v6911_v17 = vpop.f32.mrb[13].mxu1  ;;  %v7090_v9 = vadd.f32 %v6892_v58, %v6773_v4 }
 0x1c9   : > { %v6933_v61 = vpop.f32.mrb[14].mxu1  ;;  %v7115_v50 = vadd.f32 %v6773_v4, %v6911_v17  ;;  %v7130_v17 = vsel %vm8091_vm2, %v3265_v40, %v3264_v14  ;;  %vm7146_vm2 = vmand %vm7083_vm9, %vm8093_vm4  ;;  %v3296_v14 = vmul.u32 18, %v3295_v57  ;;  %vm8102_vm4 = vcmp.lt.s32.totalorder %v6156_v52, 288 }
 0x1ca   : > { %v6948_v12 = vpop.f32.mrb[15].mxu1  ;;  %vm3358_vm9 = vcmp.ne.s32.totalorder %v7130_v17, 0  ;;  %vm3390_vm5 = vcmp.lt.s32.totalorder %v7130_v17, 0  ;;  %v3454_v57 = vadd.s32 18, %v7130_v17 }
 0x1cb   : > { %v7302_v40 = vadd.f32 %v6773_v4, %v6948_v12 }
 0x1cf   : > { %v5004_v33 = vpop.f32.mrb[0].mxu0 }
 0x1d0   : > { %v5037_v49 = vadd.f32 %v6822_v5, %v5004_v33  ;;  %v2756_v26 = vpop.f32.mrb[1].mxu0  ;;  %v7111_v5 = vsel %vm7035_vm1, %v3456_v2, %v6925_v32  ;;  %v3301_v32 = vsub.s32 0, %v7040_v10 }
 0x1d1   : > { %v5039_v18 = vadd.f32 %v6833_v22, %v2756_v26  ;;  %v5005_v58 = vpop.f32.mrb[2].mxu0  ;;  %v7135_v22 = vadd.f32 %v6933_v61, %v6773_v4 }
 0x1d2   : > { %v3719_v8 = vsel %vm6917_vm12, %v5037_v49, 0.0  ;;  %3925 = vst.msk [vmem:[%s7077_s10 + $0x10] sm:$0xff] %vm8092_vm3, %v5037_v49  ;;  %v5041_v15 = vadd.f32 %v6837_v3, %v5005_v58  ;;  %v2759_v19 = vpop.f32.mrb[3].mxu0  ;;  %vm8097_vm12 = vcmp.le.s32.totalorder %v6404_v25, 16  ;;  %v3320_v3 = vsub.s32 0, %v3319_v6 }
 0x1d3   : > { %v3717_v61 = vsel %vm6939_vm15, %v5039_v18, 0.0  ;;  %3923 = vst.msk [vmem:[%s7077_s10] sm:$0xff] %vm8096_vm11, %v5039_v18  ;;  %v5043_v60 = vadd.f32 %v6847_v59, %v2759_v19  ;;  %vm7159_vm3 = vmand %vm7097_vm6, %vm8097_vm12  ;;  %v8105_v59 = vld [vmem:[#allocation3_spill] sm:$0xff]  ;;  %v3823_v11 = vmul.f32 %v3719_v8, %v3719_v8  ;;  %v7196_v33 = vmin.u32 %v3301_v32, %v7040_v10 }
 0x1d4   : > { %v3821_v37 = vmul.f32 %v3717_v61, %v3717_v61  ;;  %v3720_v2 = vsel %vm6957_vm13, %v5041_v15, 0.0  ;;  %vm8100_vm15 = vmmov %vm8096_vm11  ;;  %vm8101_vm11 = vcmp.ge.s32.totalorder %v6408_v36, 1  ;;  %v8117_v18 = vld [vmem:[#allocation19_spill] sm:$0xff]  ;;  %v7211_v58 = vsub.s32 %v6928_v1, %v3296_v14 }
 0x1d5   : > { %3926 = vst.msk [vmem:[%s7077_s10 + $0x18] sm:$0xff] %vm8100_vm15, %v5041_v15  ;;  %vm7173_vm1 = vmand %vm8102_vm4, %vm8101_vm11  ;;  %v3718_v29 = vsel %vm7122_vm7, %v5043_v60, 0.0  ;;  %vm8109_vm11 = vcmp.lt.s32.totalorder %v6189_v43, 288  ;;  %v3824_v41 = vmul.f32 %v3720_v2, %v3720_v2  ;;  %v7224_v19 = vsel %vm3311_vm8, %v3320_v3, %v3319_v6  ;;  %v8126_v3 = vld [vmem:[#allocation5_spill] sm:$0xff] }
 0x1d6   : > { %vm8107_vm13 = vmmov %vm8100_vm15  ;;  %vm8108_vm15 = vcmp.ge.s32.totalorder %v6453_v13, 1  ;;  %v3822_v26 = vmul.f32 %v3718_v29, %v3718_v29  ;;  %v7227_v1 = vmul.u32 18, %v3328_v54  ;;  %v8127_v54 = vld [vmem:[#allocation20_spill] sm:$0xff]  ;;  %v3298_v12 = vsub.s32 0, %v7211_v58 }
 0x1d7   : > { %3924 = vst.msk [vmem:[%s7077_s10 + $0x8] sm:$0xff] %vm8107_vm13, %v5043_v60  ;;  %vm7189_vm4 = vmand %vm8109_vm11, %vm8108_vm15  ;;  %v5008_v15 = vpop.f32.mrb[4].mxu0  ;;  %vm8121_vm15 = vcmask 64512  }
 0x1d8   : > { %vm8112_vm12 = vmmov %vm8107_vm13  ;;  %v3753_v14 = vsel %vm8121_vm15, %v3719_v8, 0.0  ;;  %v5045_v60 = vadd.f32 %v6971_v55, %v5008_v15  ;;  %v2772_v25 = vpop.f32.mrb[5].mxu0  ;;  %v3459_v15 = vadd.s32 18, %v7224_v19 }
 0x1d9   : > { %v3750_v23 = vsel %vm8112_vm12, %v3717_v61, 0.0  ;;  %vm8113_vm7 = vmmov %vm8112_vm12  ;;  %vm8118_vm12 = vcmp.le.s32.totalorder %v6408_v36, 16  ;;  %v5009_v55 = vpop.f32.mrb[6].mxu0 }
 0x1da   : > { %v3751_v49 = vsel %vm8113_vm7, %v3718_v29, 0.0  ;;  %vm7204_vm13 = vmand %vm3503_vm0, %vm3535_vm10  ;;  %vm3598_vm0 = vcmp.le.s32.totalorder %v8106_v39, 16  ;;  %vm3538_vm10 = vcmp.ge.s32.totalorder %v6659_v53, 1 }
 0x1db   : > { %v3752_v32 = vadd.f32 %v3751_v49, %v3750_v23  ;;  %vm7217_vm7 = vmand %vm7173_vm1, %vm8118_vm12  ;;  %v5047_v23 = vadd.f32 %v6988_v56, %v2772_v25  ;;  %v2775_v49 = vpop.f32.mrb[7].mxu0  ;;  %v8133_v56 = vld [vmem:[#allocation6_spill] sm:$0xff] }
 0x1dc   : > { %vm8122_vm11 = vmmov %vm8121_vm15  ;;  %vm8138_vm15 = vcmp.ge.s32.totalorder %v8085_v31, 1 }
 0x1dd   : > { %v3853_v36 = vsel %vm8122_vm11, %v3821_v37, 0.0  ;;  %vm8123_vm6 = vmmov %vm8122_vm11  ;;  %v3754_v37 = vadd.f32 %v3753_v14, %v3752_v32  ;;  %v3755_v52 = vsel %vm8122_vm11, %v3720_v2, 0.0  ;;  %v3721_v43 = vsel %vm7159_vm3, %v5047_v23, 0.0 }
 0x1de   : > { %v3854_v61 = vsel %vm8123_vm6, %v3822_v26, 0.0  ;;  %vm7237_vm8 = vmand %vm7189_vm4, %vm3594_vm14  ;;  %v8134_v26 = vld [vmem:[#allocation22_spill] sm:$0xff]  ;;  %vm8139_vm4 = vcmp.lt.s32.totalorder %v6220_v62, 288  ;;  %v3757_v21 = vsel %vm8122_vm11, %v3721_v43, 0.0 }
 0x1df   : > { %vm8128_vm12 = vmmov %vm8123_vm6  ;;  %v3855_v29 = vadd.f32 %v3854_v61, %v3853_v36  ;;  %vm8129_vm6 = vcmp.le.s32.totalorder %v6460_v7, 16  ;;  %v3756_v14 = vadd.f32 %v3755_v52, %v3754_v37  ;;  %v3825_v36 = vmul.f32 %v3721_v43, %v3721_v43  ;;  %v8147_v61 = vld [vmem:[#allocation7_spill] sm:$0xff]  ;;  %v5012_v52 = vpop.f32.mrb[8].mxu0 }
 0x1e0   : > { %v3856_v8 = vsel %vm8128_vm12, %v3823_v11, 0.0  ;;  %vm7249_vm14 = vmand %vm7204_vm13, %vm8129_vm6  ;;  %v5049_v11 = vadd.f32 %v7007_v20, %v5009_v55  ;;  %vm3363_vm6 = vcmp.ne.s32.totalorder %v7224_v19, 0  ;;  %v3858_v20 = vsel %vm8122_vm11, %v3824_v41, 0.0  ;;  %v2788_v7 = vpop.f32.mrb[9].mxu0 }
 0x1e1   : > { %vm8132_vm1 = vmmov %vm8122_vm11  ;;  %v3857_v2 = vadd.f32 %v3856_v8, %v3855_v29  ;;  %v3723_v41 = vsel %vm7146_vm2, %v5045_v60, 0.0  ;;  %vm3604_vm2 = vcmp.le.s32.totalorder %v8134_v26, 16  ;;  %v3758_v8 = vadd.f32 %v3757_v21, %v3756_v14  ;;  %v5013_v21 = vpop.f32.mrb[10].mxu0 }
 0x1e2   : > { %3929 = vst.msk [vmem:[%s7077_s10 + $0x30] sm:$0xff] %vm8132_vm1, %v5045_v60  ;;  %vm7264_vm13 = vmand %vm3390_vm5, %vm3358_vm9  ;;  %vm3395_vm1 = vcmp.lt.s32.totalorder %v7224_v19, 0  ;;  %vm3506_vm9 = vcmp.lt.s32.totalorder %v8147_v61, 288  ;;  %v3724_v29 = vsel %vm7217_vm7, %v5049_v11, 0.0  ;;  %v5055_v14 = vadd.f32 %v7064_v38, %v2788_v7  ;;  %v2791_v62 = vpop.f32.mrb[11].mxu0 }
 0x1e3   : > { %vm8137_vm12 = vmmov %vm8122_vm11  ;;  %v3859_v60 = vadd.f32 %v3858_v20, %v3857_v2  ;;  %v8161_v20 = vld [vmem:[#allocation8_spill] sm:$0xff]  ;;  %v8162_v2 = vld [vmem:[#allocation25_spill] sm:$0xff]  ;;  %v5057_v38 = vadd.f32 %v7068_v63, %v5013_v21  ;;  %v5059_v13 = vadd.f32 %v7072_v28, %v2791_v62 }
 0x1e4   : > { %3927 = vst.msk [vmem:[%s7077_s10 + $0x20] sm:$0xff] %vm8137_vm12, %v5047_v23  ;;  %vm7279_vm5 = vmand %vm8139_vm4, %vm8138_vm15  ;;  %vm8143_vm12 = vcmp.ge.s32.totalorder %v8090_v24, 1  ;;  %vm8144_vm15 = vcmp.lt.s32.totalorder %v8089_v34, 288  ;;  %v7308_v34 = vsel %vm7264_vm13, %v3454_v57, %v7130_v17  ;;  %v5051_v23 = vadd.f32 %v7011_v0, %v2775_v49  ;;  %v8204_v21 = vld [vmem:[#allocation29_spill] sm:$0xff]  ;;  %v8229_v28 = vld [vmem:[#allocation31_spill] sm:$0xff] }
 0x1e5   : > { %vm8142_vm3 = vmmov %vm8122_vm11  ;;  %vm8150_vm13 = vcmp.le.s32.totalorder %v8085_v31, 16  ;;  %v3827_v57 = vmul.f32 %v3723_v41, %v3723_v41  ;;  %v7341_v0 = vmul.u32.u64.low 3817748708, %v7196_v33  ;;  %v7342_v31 = vmul.u32.u64.high 3817748708, %v7196_v33, %v7341_v0 }
 0x1e6   : > { %3930 = vst.msk [vmem:[%s7077_s10 + $0x38] sm:$0xff] %vm8142_vm3, %v5049_v11  ;;  %vm7294_vm4 = vmand %vm8144_vm15, %vm8143_vm12  ;;  %v3860_v37 = vsel %vm8142_vm3, %v3825_v36, 0.0  ;;  %v3722_v11 = vsel %vm7237_vm8, %v5051_v23, 0.0  ;;  %v5053_v49 = vadd.f32 %v7044_v45, %v5012_v52  ;;  %v7366_v45 = vsub.s32 %v6931_v42, %v7227_v1  ;;  %v8169_v42 = vld [vmem:[#allocation26_spill] sm:$0xff]  ;;  %v8198_v0 = vld [vmem:[#allocation28_spill] sm:$0xff] }
 0x1e7   : > { %vm7314_vm11 = vmand %vm3395_vm1, %vm3363_vm6  ;;  %v3861_v55 = vadd.f32 %v3860_v37, %v3859_v60  ;;  %vm8153_vm6 = vcmp.ge.s32.totalorder %v8106_v39, 1  ;;  %vm8154_vm1 = vcmp.lt.s32.totalorder %v8105_v59, 288  ;;  %v3826_v32 = vmul.f32 %v3722_v11, %v3722_v11 }
 0x1e8   : > { %vm7327_vm12 = vmand %vm7279_vm5, %vm8150_vm13  ;;  %v7362_v6 = vsel %vm7314_vm11, %v3459_v15, %v7224_v19  ;;  %v8168_v19 = vld [vmem:[#allocation9_spill] sm:$0xff]  ;;  %v3727_v37 = vsel %vm7249_vm14, %v5053_v49, 0.0  ;;  %vm8188_vm14 = vcmp.ge.s32.totalorder %v8134_v26, 1 }
 0x1e9   : > { %vm7335_vm15 = vmand %vm8154_vm1, %vm8153_vm6  ;;  %v3725_v39 = vsel %vm7327_vm12, %v5055_v14, 0.0  ;;  %vm8183_vm12 = vcmp.le.s32.totalorder %v8117_v18, 16 }
 0x1ea   : > { %vm8157_vm5 = vmmov %vm8142_vm3  ;;  %vm8158_vm3 = vcmp.le.s32.totalorder %v8090_v24, 16  ;;  %v3828_v24 = vmul.f32 %v3724_v29, %v3724_v29 }
 0x1eb   : > { %3928 = vst.msk [vmem:[%s7077_s10 + $0x28] sm:$0xff] %vm8157_vm5, %v5051_v23  ;;  %vm7353_vm13 = vmand %vm7294_vm4, %vm8158_vm3  ;;  %vm8164_vm4 = vcmp.ge.s32.totalorder %v8117_v18, 1 }
 0x1ec   : > { %vm8163_vm8 = vmmov %vm8157_vm5  ;;  %vm8165_vm5 = vcmp.lt.s32.totalorder %v8116_v27, 288 }
 0x1ed   : > { %v3759_v43 = vsel %vm8163_vm8, %v3722_v11, 0.0  ;;  %vm7374_vm3 = vmand %vm8165_vm5, %vm8164_vm4  ;;  %vm8174_vm5 = vcmp.lt.s32.totalorder %v6815_v47, 0 }
 0x1ee   : > { %vm8170_vm1 = vmmov %vm8163_vm8  ;;  %v3760_v15 = vadd.f32 %v3759_v43, %v3758_v8  ;;  %v7395_v60 = vsel %vm8174_vm5, %v3298_v12, %v7211_v58  ;;  %vm3607_vm5 = vcmp.le.s32.totalorder %v8162_v2, 16  ;;  %v5016_v43 = vpop.f32.mrb[12].mxu0 }
 0x1ef   : > { %v3761_v1 = vsel %vm8170_vm1, %v3723_v41, 0.0  ;;  %vm8171_vm8 = vmmov %vm8170_vm1  ;;  %v3864_v41 = vsel %vm8170_vm1, %v3827_v57, 0.0  ;;  %v8192_v57 = vld [vmem:[#allocation10_spill] sm:$0xff]  ;;  %v3457_v11 = vadd.s32 18, %v7395_v60  ;;  %v5061_v62 = vadd.f32 %v7090_v9, %v5016_v43 }
 0x1f0   : > { %3933 = vst.msk [vmem:[%s7077_s10 + $0x50] sm:$0xff] %vm8171_vm8, %v5053_v49  ;;  %vm7388_vm4 = vmand %vm7335_vm15, %vm3598_vm0  ;;  %vm8178_vm0 = vcmp.ge.s32.totalorder %v8127_v54, 1  ;;  %vm8179_vm15 = vcmp.lt.s32.totalorder %v8126_v3, 288  ;;  %v3762_v58 = vadd.f32 %v3761_v1, %v3760_v15  ;;  %v3831_v49 = vmul.f32 %v3727_v37, %v3727_v37 }
 0x1f1   : > { %vm8175_vm8 = vmmov %vm8170_vm1 }
 0x1f2   : > { %v3763_v25 = vsel %vm8175_vm8, %v3724_v29, 0.0  ;;  %vm8176_vm11 = vmmov %vm8170_vm1  ;;  %v3829_v29 = vmul.f32 %v3725_v39, %v3725_v39 }
 0x1f3   : > { %v3862_v63 = vsel %vm8176_vm11, %v3826_v32, 0.0  ;;  %vm8177_vm6 = vmmov %vm8170_vm1  ;;  %v3764_v44 = vadd.f32 %v3763_v25, %v3762_v58  ;;  %v3331_v25 = vsub.s32 0, %v7366_v45  ;;  %v8232_v32 = vld [vmem:[#allocation18_spill] sm:$0xff] }
 0x1f4   : > { %3931 = vst.msk [vmem:[%s7077_s10 + $0x40] sm:$0xff] %vm8177_vm6, %v5055_v14  ;;  %vm7408_vm7 = vmand %vm8179_vm15, %vm8178_vm0  ;;  %v3863_v12 = vadd.f32 %v3862_v63, %v3861_v55  ;;  %vm8189_vm15 = vcmp.lt.s32.totalorder %v8133_v56, 288  ;;  %v8193_v55 = vld [vmem:[#allocation27_spill] sm:$0xff]  ;;  %v8203_v14 = vld [vmem:[#allocation12_spill] sm:$0xff]  ;;  %v3306_v63 = vshrl.u32 %v7342_v31, 4 }
 0x1f5   : > { %vm8182_vm11 = vmmov %vm8170_vm1  ;;  %v8197_v56 = vld [vmem:[#allocation11_spill] sm:$0xff] }
 0x1f6   : > { %3934 = vst.msk [vmem:[%s7077_s10 + $0x58] sm:$0xff] %vm8182_vm11, %v5057_v38  ;;  %vm7421_vm6 = vmand %vm7374_vm3, %vm8183_vm12  ;;  %v3865_v52 = vadd.f32 %v3864_v41, %v3863_v12  ;;  %vm3393_vm3 = vcmp.lt.s32.totalorder %v7395_v60, 0  ;;  %vm8199_vm12 = vcmask 64512  }
 0x1f7   : > { %vm8186_vm8 = vmmov %vm8170_vm1  ;;  %v3868_v7 = vsel %vm8199_vm12, %v3829_v29, 0.0 }
 0x1f8   : > { %v3866_v23 = vsel %vm8186_vm8, %v3828_v24, 0.0  ;;  %vm8187_vm0 = vmmov %vm8170_vm1  ;;  %vm3361_vm1 = vcmp.ne.s32.totalorder %v7395_v60, 0  ;;  %vm8194_vm8 = vcmp.le.s32.totalorder %v8127_v54, 16  ;;  %v3728_v54 = vsel %vm7353_vm13, %v5057_v38, 0.0  ;;  %v2804_v38 = vpop.f32.mrb[13].mxu0 }
 0x1f9   : > { %v3765_v17 = vsel %vm8187_vm0, %v3725_v39, 0.0  ;;  %vm7433_vm11 = vmand %vm8189_vm15, %vm8188_vm14  ;;  %vm3542_vm15 = vcmp.ge.s32.totalorder %v8198_v0, 1  ;;  %v3726_v24 = vsel %vm7388_vm4, %v5059_v13, 0.0  ;;  %v3867_v36 = vadd.f32 %v3866_v23, %v3865_v52  ;;  %v5017_v41 = vpop.f32.mrb[14].mxu0 }
 0x1fa   : > { %vm7444_vm0 = vmand %vm7408_vm7, %vm8194_vm8  ;;  %v3766_v59 = vadd.f32 %v3765_v17, %v3764_v44  ;;  %v3830_v15 = vmul.f32 %v3726_v24, %v3726_v24  ;;  %v5063_v27 = vadd.f32 %v7115_v50, %v2804_v38  ;;  %v5065_v8 = vadd.f32 %v7135_v22, %v5017_v41  ;;  %v2807_v58 = vpop.f32.mrb[15].mxu0  ;;  %v8247_v17 = vld [vmem:[#allocation21_spill] sm:$0xff] }
 0x1fb   : > { %vm8200_vm7 = vmmov %vm8199_vm12  ;;  %v3869_v9 = vadd.f32 %v3868_v7, %v3867_v36  ;;  %v3832_v23 = vmul.f32 %v3728_v54, %v3728_v54  ;;  %vm8225_vm14 = vcmp.lt.s32.totalorder %v8168_v19, 288  ;;  %v3731_v36 = vsel %vm7421_vm6, %v5061_v62, 0.0  ;;  %v5020_v61 = vpop.f32.mrb[16].mxu0 }
 0x1fc   : > { %3932 = vst.msk [vmem:[%s7077_s10 + $0x48] sm:$0xff] %vm8200_vm7, %v5059_v13  ;;  %vm7463_vm8 = vmand %vm3506_vm9, %vm3538_vm10  ;;  %v3769_v29 = vsel %vm8200_vm7, %v3727_v37, 0.0  ;;  %v3729_v22 = vsel %vm7444_vm0, %v5063_v27, 0.0  ;;  %vm8216_vm10 = vcmp.ge.s32.totalorder %v8162_v2, 1  ;;  %v8220_v37 = vld [vmem:[#allocation13_spill] sm:$0xff]  ;;  %v8221_v13 = vld [vmem:[#allocation30_spill] sm:$0xff] }
 0x1fd   : > { %vm8205_vm13 = vmmov %vm8200_vm7  ;;  %v3833_v43 = vmul.f32 %v3729_v22, %v3729_v22 }
 0x1fe   : > { %v3767_v1 = vsel %vm8205_vm13, %v3726_v24, 0.0  ;;  %vm7474_vm4 = vmand %vm7433_vm11, %vm3604_vm2  ;;  %vm8211_vm13 = vcmp.le.s32.totalorder %v6659_v53, 16  ;;  %v5067_v53 = vadd.f32 %v7302_v40, %v2807_v58  ;;  %v3835_v58 = vmul.f32 %v3731_v36, %v3731_v36 }
 0x1ff   : > { %vm7487_vm2 = vmand %vm3393_vm3, %vm3361_vm1  ;;  %v3768_v39 = vadd.f32 %v3767_v1, %v3766_v59 }
 0x200   : > { %vm8210_vm11 = vmmov %vm8200_vm7 }
 0x201   : > { %v3870_v50 = vsel %vm8210_vm11, %v3830_v15, 0.0  ;;  %vm7499_vm1 = vmand %vm7463_vm8, %vm8211_vm13  ;;  %vm8217_vm8 = vcmp.lt.s32.totalorder %v8161_v20, 288  ;;  %v3770_v52 = vadd.f32 %v3769_v29, %v3768_v39  ;;  %v8228_v20 = vld [vmem:[#allocation15_spill] sm:$0xff] }
 0x202   : > { %vm8214_vm9 = vmmov %vm8200_vm7  ;;  %v3871_v44 = vadd.f32 %v3870_v50, %v3869_v9  ;;  %v3730_v19 = vsel %vm7499_vm1, %v5067_v53, 0.0  ;;  %v2820_v50 = vpop.f32.mrb[17].mxu0 }
 0x203   : > { %3937 = vst.msk [vmem:[%s7077_s10 + $0x70] sm:$0xff] %vm8214_vm9, %v5061_v62  ;;  %vm8215_vm11 = vmmov %vm8200_vm7  ;;  %vm3513_vm7 = vcmp.lt.s32.totalorder %v8220_v37, 288  ;;  %vm3545_vm9 = vcmp.ge.s32.totalorder %v8221_v13, 1  ;;  %v3834_v62 = vmul.f32 %v3730_v19, %v3730_v19 }
 0x204   : > { %3935 = vst.msk [vmem:[%s7077_s10 + $0x60] sm:$0xff] %vm8215_vm11, %v5063_v27  ;;  %vm7516_vm13 = vmand %vm8217_vm8, %vm8216_vm10  ;;  %vm3548_vm8 = vcmp.ge.s32.totalorder %v8229_v28, 1  ;;  %vm3546_vm10 = vcmp.ge.s32.totalorder %v7029_v46, 1 }
 0x205   : > { %vm8222_vm3 = vmmov %vm8215_vm11  ;;  %vm8224_vm11 = vcmp.ge.s32.totalorder %v8169_v42, 1 }
 0x206   : > { %v3872_v18 = vsel %vm8222_vm3, %v3831_v49, 0.0  ;;  %vm8223_vm0 = vmmov %vm8222_vm3  ;;  %v7538_v49 = vsel %vm7487_vm2, %v3457_v11, %v7395_v60  ;;  %v3732_v11 = vsel %vm7474_vm4, %v5065_v8, 0.0  ;;  %vm8237_vm4 = vcmp.le.s32.totalorder %v8169_v42, 16 }
 0x207   : > { %3938 = vst.msk [vmem:[%s7077_s10 + $0x78] sm:$0xff] %vm8223_vm0, %v5065_v8  ;;  %vm7529_vm12 = vmand %vm8225_vm14, %vm8224_vm11  ;;  %v3773_v24 = vsel %vm8223_vm0, %v3729_v22, 0.0  ;;  %v3873_v59 = vadd.f32 %v3872_v18, %v3871_v44  ;;  %v3876_v3 = vsel %vm8223_vm0, %v3833_v43, 0.0  ;;  %v3836_v12 = vmul.f32 %v3732_v11, %v3732_v11  ;;  %v5021_v22 = vpop.f32.mrb[18].mxu0 }
 0x208   : > { %vm8230_vm3 = vmmov %vm8223_vm0 }
 0x209   : > { %v3771_v7 = vsel %vm8230_vm3, %v3728_v54, 0.0  ;;  %vm8231_vm14 = vmmov %vm8223_vm0  ;;  %v4884_v54 = vpop.f32.mrb[16].mxu1 }
 0x20a   : > { %3936 = vst.msk [vmem:[%s7077_s10 + $0x68] sm:$0xff] %vm8231_vm14, %v5067_v53  ;;  %v3772_v60 = vadd.f32 %v3771_v7, %v3770_v52  ;;  %vm7556_vm2 = vmand %vm7516_vm13, %vm3607_vm5  ;;  %v1636_v27 = vpop.f32.mrb[17].mxu1  ;;  %v5068_v9 = vadd.f32 %v4884_v54, %v6773_v4  ;;  %vm8240_vm13 = vcmp.ge.s32.totalorder %v8193_v55, 1  ;;  %v2823_v7 = vpop.f32.mrb[19].mxu0 }
 0x20b   : > { %vm8235_vm3 = vmmov %vm8223_vm0  ;;  %v5070_v39 = vadd.f32 %v6773_v4, %v1636_v27  ;;  %v4885_v8 = vpop.f32.mrb[18].mxu1 }
 0x20c   : > { %v3874_v15 = vsel %vm8235_vm3, %v3832_v23, 0.0  ;;  %vm8236_vm6 = vmmov %vm8223_vm0  ;;  %v3774_v41 = vadd.f32 %v3773_v24, %v3772_v60  ;;  %vm8241_vm3 = vcmp.lt.s32.totalorder %v8192_v57, 288  ;;  %v5072_v23 = vadd.f32 %v4885_v8, %v6773_v4  ;;  %v1639_v53 = vpop.f32.mrb[19].mxu1  ;;  %v8252_v24 = vld [vmem:[#allocation23_spill] sm:$0xff]  ;;  %v8276_v8 = vld [vmem:[#allocation24_spill] sm:$0xff] }
 0x20d   : > { %v3775_v38 = vsel %vm8236_vm6, %v3730_v19, 0.0  ;;  %vm7568_vm14 = vmand %vm7529_vm12, %vm8237_vm4  ;;  %v3875_v26 = vadd.f32 %v3874_v15, %v3873_v59  ;;  %v3878_v29 = vsel %vm8236_vm6, %v3834_v62, 0.0  ;;  %vm8244_vm4 = vcmp.lt.s32.totalorder %v8197_v56, 288  ;;  %v4888_v2 = vpop.f32.mrb[20].mxu1 }
 0x20e   : > { %vm7579_vm0 = vmand %vm8241_vm3, %vm8240_vm13  ;;  %v3776_v52 = vadd.f32 %v3775_v38, %v3774_v41  ;;  %v5069_v44 = vadd.f32 %v5068_v9, %v5020_v61  ;;  %v5071_v40 = vadd.f32 %v5070_v39, %v2820_v50  ;;  %vm8248_vm6 = vcmp.ge.s32.totalorder %v8204_v21, 1  ;;  %v5024_v39 = vpop.f32.mrb[20].mxu0  ;;  %v1652_v50 = vpop.f32.mrb[21].mxu1 }
 0x20f   : > { %vm7590_vm5 = vmand %vm8244_vm4, %vm3542_vm15  ;;  %v3877_v18 = vadd.f32 %v3876_v3, %v3875_v26  ;;  %vm8249_vm12 = vcmp.lt.s32.totalorder %v8203_v14, 288  ;;  %vm8253_vm13 = vcmask 64512   ;;  %v5073_v19 = vadd.f32 %v5072_v23, %v5021_v22  ;;  %v2836_v23 = vpop.f32.mrb[21].mxu0  ;;  %v4889_v22 = vpop.f32.mrb[22].mxu1 }
 0x210   : > { %vm7600_vm1 = vmand %vm8249_vm12, %vm8248_vm6  ;;  %v3777_v43 = vsel %vm8253_vm13, %v3731_v36, 0.0  ;;  %vm8254_vm3 = vcmp.le.s32.totalorder %v8193_v55, 16  ;;  %v5074_v14 = vadd.f32 %v6773_v4, %v1639_v53  ;;  %vm8257_vm12 = vcmp.lt.s32.totalorder %v6818_v48, 0  ;;  %3941 = vst.msk [vmem:[%s7077_s10 + $0x90] sm:$0xff] %vm8253_vm13, %v5069_v44 }
 0x211   : > { %vm7611_vm11 = vmand %vm7579_vm0, %vm8254_vm3  ;;  %v7621_v60 = vsel %vm8257_vm12, %v3331_v25, %v7366_v45  ;;  %v3778_v36 = vadd.f32 %v3777_v43, %v3776_v52  ;;  %v3879_v54 = vadd.f32 %v3878_v29, %v3877_v18  ;;  %v3735_v55 = vsel %vm7556_vm2, %v5069_v44, 0.0 }
 0x212   : > { %v3733_v15 = vsel %vm7568_vm14, %v5071_v40, 0.0  ;;  %vm8258_vm0 = vmmov %vm8253_vm13  ;;  %vm8259_vm3 = vcmp.le.s32.totalorder %v8198_v0, 16  ;;  %vm3615_vm12 = vcmp.le.s32.totalorder %v7058_v16, 16  ;;  %v3839_v41 = vmul.f32 %v3735_v55, %v3735_v55 }
 0x213   : > { %3939 = vst.msk [vmem:[%s7077_s10 + $0x80] sm:$0xff] %vm8258_vm0, %v5071_v40  ;;  %vm7635_vm6 = vmand %vm7590_vm5, %vm8259_vm3  ;;  %v3837_v38 = vmul.f32 %v3733_v15, %v3733_v15  ;;  %vm3613_vm5 = vcmp.le.s32.totalorder %v7106_v35, 16  ;;  %v3736_v9 = vsel %vm7611_vm11, %v5073_v19, 0.0  ;;  %v7679_v42 = vadd.s32 18, %v7621_v60  ;;  %v5025_v40 = vpop.f32.mrb[22].mxu0 }
 0x214   : > { %vm8262_vm15 = vmmov %vm8258_vm0  ;;  %v5078_v44 = vadd.f32 %v6773_v4, %v1652_v50  ;;  %v5080_v59 = vadd.f32 %v4889_v22, %v6773_v4 }
 0x215   : > { %v3880_v45 = vsel %vm8262_vm15, %v3835_v58, 0.0  ;;  %vm8263_vm2 = vmmov %vm8258_vm0 }
 0x216   : > { %v3779_v25 = vsel %vm8263_vm2, %v3732_v11, 0.0  ;;  %vm8264_vm13 = vmmov %vm8258_vm0  ;;  %v3881_v61 = vadd.f32 %v3880_v45, %v3879_v54  ;;  %v5075_v11 = vadd.f32 %v5074_v14, %v2823_v7  ;;  %v1655_v7 = vpop.f32.mrb[23].mxu1  ;;  %v2839_v14 = vpop.f32.mrb[23].mxu0 }
 0x217   : > { %v3781_v1 = vsel %vm8264_vm13, %v3733_v15, 0.0  ;;  %vm8265_vm14 = vmmov %vm8258_vm0  ;;  %vm8266_vm0 = vcmp.le.s32.totalorder %v8204_v21, 16  ;;  %v3780_v27 = vadd.f32 %v3779_v25, %v3778_v36  ;;  %v3840_v36 = vmul.f32 %v3736_v9, %v3736_v9  ;;  %v5028_v50 = vpop.f32.mrb[24].mxu0 }
 0x218   : > { %3942 = vst.msk [vmem:[%s7077_s10 + $0x98] sm:$0xff] %vm8265_vm14, %v5073_v19  ;;  %vm7649_vm4 = vmand %vm7600_vm1, %vm8266_vm0  ;;  %vm3518_vm1 = vcmp.lt.s32.totalorder %v6653_v30, 288  ;;  %vm8273_vm14 = vcmp.lt.s32.totalorder %v8228_v20, 288  ;;  %v3734_v29 = vsel %vm7635_vm6, %v5075_v11, 0.0  ;;  %v5076_v20 = vadd.f32 %v4888_v2, %v6773_v4  ;;  %v2852_v22 = vpop.f32.mrb[25].mxu0 }
 0x219   : > { %vm8269_vm3 = vmmov %vm8263_vm2  ;;  %vm3550_vm2 = vcmp.ge.s32.totalorder %v7308_v34, 1  ;;  %v3782_v58 = vadd.f32 %v3781_v1, %v3780_v27  ;;  %v3838_v52 = vmul.f32 %v3734_v29, %v3734_v29  ;;  %v5082_v15 = vadd.f32 %v6773_v4, %v1655_v7 }
 0x21a   : > { %v3882_v62 = vsel %vm8269_vm3, %v3836_v12, 0.0  ;;  %vm7659_vm15 = vmand %vm3513_vm7, %vm3545_vm9  ;;  %v5077_v19 = vadd.f32 %v5076_v20, %v5024_v39  ;;  %v5081_v1 = vadd.f32 %v5080_v59, %v5025_v40 }
 0x21b   : > { %vm8272_vm13 = vmmov %vm8269_vm3  ;;  %v3883_v12 = vadd.f32 %v3882_v62, %v3881_v61  ;;  %v5083_v27 = vadd.f32 %v5082_v15, %v2839_v14 }
 0x21c   : > { %v3884_v26 = vsel %vm8272_vm13, %v3837_v38, 0.0  ;;  %vm7672_vm7 = vmand %vm8273_vm14, %vm3548_vm8  ;;  %vm8278_vm8 = vcmp.lt.s32.totalorder %v8232_v32, 288  ;;  %vm8296_vm14 = vcmp.lt.s32.totalorder %v8247_v17, 288  ;;  %v3739_v62 = vsel %vm7649_vm4, %v5077_v19, 0.0  ;;  %v5029_v32 = vpop.f32.mrb[26].mxu0 }
 0x21d   : > { %vm8277_vm11 = vmmov %vm8269_vm3  ;;  %v3885_v56 = vadd.f32 %v3884_v26, %v3883_v12  ;;  %v3843_v12 = vmul.f32 %v3739_v62, %v3739_v62 }
 0x21e   : > { %3940 = vst.msk [vmem:[%s7077_s10 + $0x88] sm:$0xff] %vm8277_vm11, %v5075_v11  ;;  %vm7690_vm3 = vmand %vm8278_vm8, %vm3546_vm10 }
 0x21f   : > { %vm8281_vm9 = vmmov %vm8277_vm11  ;;  %vm8283_vm11 = vcmp.le.s32.totalorder %v8221_v13, 16  ;;  %v2855_v13 = vpop.f32.mrb[27].mxu0 }
 0x220   : > { %v3785_v57 = vsel %vm8281_vm9, %v3735_v55, 0.0  ;;  %vm8282_vm6 = vmmov %vm8281_vm9  ;;  %vm8286_vm9 = vcmp.le.s32.totalorder %v8229_v28, 16  ;;  %v5079_v55 = vadd.f32 %v5078_v44, %v2836_v23 }
 0x221   : > { %v3783_v18 = vsel %vm8282_vm6, %v3734_v29, 0.0  ;;  %vm7703_vm0 = vmand %vm7659_vm15, %vm8283_vm11 }
 0x222   : > { %v3784_v43 = vadd.f32 %v3783_v18, %v3782_v58  ;;  %vm7713_vm8 = vmand %vm7672_vm7, %vm8286_vm9  ;;  %vm3616_vm7 = vcmp.le.s32.totalorder %v7111_v5, 16  ;;  %v3737_v61 = vsel %vm7703_vm0, %v5079_v55, 0.0 }
 0x223   : > { %vm8289_vm15 = vmmov %vm8282_vm6  ;;  %vm8290_vm6 = vcmp.le.s32.totalorder %v7029_v46, 16  ;;  %v3841_v21 = vmul.f32 %v3737_v61, %v3737_v61 }
 0x224   : > { %v3886_v54 = vsel %vm8289_vm15, %v3838_v52, 0.0  ;;  %vm7723_vm11 = vmand %vm7690_vm3, %vm8290_vm6  ;;  %v3786_v45 = vadd.f32 %v3785_v57, %v3784_v43  ;;  %vm8295_vm15 = vcmp.ge.s32.totalorder %v7058_v16, 1 }
 0x225   : > { %vm8293_vm9 = vmmov %vm8272_vm13  ;;  %v3887_v25 = vadd.f32 %v3886_v54, %v3885_v56 }
 0x226   : > { %v3888_v3 = vsel %vm8293_vm9, %v3839_v41, 0.0  ;;  %vm8294_vm10 = vmmov %vm8293_vm9  ;;  %v4892_v41 = vpop.f32.mrb[24].mxu1 }
 0x227   : > { %3945 = vst.msk [vmem:[%s7077_s10 + $0xb0] sm:$0xff] %vm8294_vm10, %v5077_v19  ;;  %vm7735_vm13 = vmand %vm8296_vm14, %vm8295_vm15  ;;  %vm8301_vm10 = vcmp.ge.s32.totalorder %v7106_v35, 1  ;;  %vm3521_vm15 = vcmp.lt.s32.totalorder %v6815_v47, 288  ;;  %v3889_v0 = vadd.f32 %v3888_v3, %v3887_v25  ;;  %v5084_v39 = vadd.f32 %v4892_v41, %v6773_v4  ;;  %v1668_v58 = vpop.f32.mrb[25].mxu1 }
 0x228   : > { %vm8299_vm3 = vmmov %vm8293_vm9  ;;  %vm8302_vm9 = vcmp.lt.s32.totalorder %v8252_v24, 288  ;;  %v3740_v24 = vsel %vm7713_vm8, %v5081_v1, 0.0  ;;  %v4893_v16 = vpop.f32.mrb[26].mxu1  ;;  %v5086_v43 = vadd.f32 %v6773_v4, %v1668_v58 }
 0x229   : > { %v3787_v38 = vsel %vm8299_vm3, %v3736_v9, 0.0  ;;  %vm8300_vm6 = vmmov %vm8299_vm3  ;;  %vm3553_vm3 = vcmp.ge.s32.totalorder %v7538_v49, 1  ;;  %v3738_v9 = vsel %vm7723_vm11, %v5083_v27, 0.0  ;;  %v3844_v57 = vmul.f32 %v3740_v24, %v3740_v24  ;;  %v1671_v40 = vpop.f32.mrb[27].mxu1 }
 0x22a   : > { %3943 = vst.msk [vmem:[%s7077_s10 + $0xa0] sm:$0xff] %vm8300_vm6, %v5079_v55  ;;  %vm7750_vm14 = vmand %vm8302_vm9, %vm8301_vm10  ;;  %v3788_v11 = vadd.f32 %v3787_v38, %v3786_v45  ;;  %v3842_v52 = vmul.f32 %v3738_v9, %v3738_v9  ;;  %v5085_v44 = vadd.f32 %v5084_v39, %v5028_v50  ;;  %v5088_v19 = vadd.f32 %v4893_v16, %v6773_v4 }
 0x22b   : > { %vm8305_vm4 = vmmov %vm8300_vm6  ;;  %v5087_v31 = vadd.f32 %v5086_v43, %v2852_v22 }
 0x22c   : > { %v3789_v2 = vsel %vm8305_vm4, %v3737_v61, 0.0  ;;  %vm8306_vm0 = vmmov %vm8305_vm4 }
 0x22d   : > { %3946 = vst.msk [vmem:[%s7077_s10 + $0xb8] sm:$0xff] %vm8306_vm0, %v5081_v1  ;;  %vm8307_vm6 = vmmov %vm8306_vm0  ;;  %v3790_v29 = vadd.f32 %v3789_v2, %v3788_v11 }
 0x22e   : > { %v3890_v26 = vsel %vm8307_vm6, %v3840_v36, 0.0  ;;  %vm8308_vm10 = vmmov %vm8306_vm0  ;;  %v3793_v30 = vsel %vm8307_vm6, %v3739_v62, 0.0  ;;  %v5090_v36 = vadd.f32 %v6773_v4, %v1671_v40  ;;  %v4896_v62 = vpop.f32.mrb[28].mxu1 }
 0x22f   : > { %3944 = vst.msk [vmem:[%s7077_s10 + $0xa8] sm:$0xff] %vm8308_vm10, %v5083_v27  ;;  %vm7771_vm9 = vmand %vm7735_vm13, %vm3615_vm12  ;;  %v3891_v20 = vadd.f32 %v3890_v26, %v3889_v0  ;;  %vm3617_vm12 = vcmp.le.s32.totalorder %v7538_v49, 16  ;;  %vm8323_vm10 = vcmp.ne.s32.totalorder %v7621_v60, 0  ;;  %v5032_v0 = vpop.f32.mrb[28].mxu0  ;;  %v1684_v11 = vpop.f32.mrb[29].mxu1 }
 0x230   : > { %vm8311_vm8 = vmmov %vm8306_vm0  ;;  %v3743_v3 = vsel %vm7771_vm9, %v5085_v44, 0.0  ;;  %v5091_v25 = vadd.f32 %v5090_v36, %v2855_v13  ;;  %vm3555_vm9 = vcmp.ge.s32.totalorder %v7362_v6, 1  ;;  %v2868_v26 = vpop.f32.mrb[29].mxu0 }
 0x231   : > { %v3892_v23 = vsel %vm8311_vm8, %v3841_v21, 0.0  ;;  %vm7780_vm11 = vmand %vm7750_vm14, %vm3613_vm5  ;;  %vm8317_vm5 = vcmp.ge.s32.totalorder %v7111_v5, 1  ;;  %vm8318_vm14 = vcmp.lt.s32.totalorder %v8276_v8, 288  ;;  %vm8324_vm8 = vcmp.lt.s32.totalorder %v7621_v60, 0 }
 0x232   : > { %vm8314_vm13 = vmmov %vm8306_vm0  ;;  %v3893_v7 = vadd.f32 %v3892_v23, %v3891_v20  ;;  %v3307_v8 = vmul.u32 18, %v3306_v63  ;;  %v5089_v63 = vadd.f32 %v5088_v19, %v5029_v32  ;;  %v3847_v27 = vmul.f32 %v3743_v3, %v3743_v3 }
 0x233   : > { %v3791_v18 = vsel %vm8314_vm13, %v3738_v9, 0.0  ;;  %vm7790_vm4 = vmand %vm3518_vm1, %vm3550_vm2  ;;  %v3741_v17 = vsel %vm7780_vm11, %v5087_v31, 0.0  ;;  %v4897_v9 = vpop.f32.mrb[30].mxu1 }
 0x234   : > { %v3792_v56 = vadd.f32 %v3791_v18, %v3790_v29  ;;  %vm7800_vm0 = vmand %vm8318_vm14, %vm8317_vm5  ;;  %vm8328_vm14 = vcmp.le.s32.totalorder %v7308_v34, 16  ;;  %v3845_v21 = vmul.f32 %v3741_v17, %v3741_v17  ;;  %v3308_v39 = vsub.s32 %v7196_v33, %v3307_v8  ;;  %v5033_v29 = vpop.f32.mrb[30].mxu0  ;;  %v1687_v20 = vpop.f32.mrb[31].mxu1 }
 0x235   : > { %vm8321_vm1 = vmmov %vm8307_vm6  ;;  %v2871_v16 = vpop.f32.mrb[31].mxu0 }
 0x236   : > { %v3894_v14 = vsel %vm8321_vm1, %v3842_v52, 0.0  ;;  %vm8322_vm2 = vmmov %vm8321_vm1  ;;  %v3794_v15 = vadd.f32 %v3793_v30, %v3792_v56  ;;  %v3795_v45 = vsel %vm8321_vm1, %v3740_v24, 0.0  ;;  %3950 = vst.msk [vmem:[%s7077_s10 + $0xd8] sm:$0xff] %vm8321_vm1, %v5089_v63  ;;  %v3309_v13 = vsub.s32 0, %v3308_v39 }
 0x237   : > { %3949 = vst.msk [vmem:[%s7077_s10 + $0xd0] sm:$0xff] %vm8322_vm2, %v5085_v44  ;;  %vm7813_vm13 = vmand %vm8324_vm8, %vm8323_vm10  ;;  %v3895_v28 = vadd.f32 %v3894_v14, %v3893_v7  ;;  %vm3523_vm2 = vcmp.lt.s32.totalorder %v6754_v51, 288  ;;  %vm3300_vm10 = vcmp.lt.s32.totalorder %v7040_v10, 0 }
 0x238   : > { %vm8327_vm5 = vmmov %vm8321_vm1  ;;  %v3796_v46 = vadd.f32 %v3795_v45, %v3794_v15  ;;  %v7847_v61 = vsel %vm7813_vm13, %v7679_v42, %v7621_v60  ;;  %v5439_v60 = vld [vmem:[%s7939_s2] ss:$0 sm:$0xff] }
 0x239   : > { %v3896_v55 = vsel %vm8327_vm5, %v3843_v12, 0.0  ;;  %vm7826_vm6 = vmand %vm7790_vm4, %vm8328_vm14  ;;  %vm3524_vm5 = vcmp.lt.s32.totalorder %v6818_v48, 288  ;;  %v5092_v42 = vadd.f32 %v5439_v60, %v4896_v62  ;;  %v5094_v22 = vadd.f32 %v5439_v60, %v1684_v11 }
 0x23a   : > { %vm8331_vm8 = vmmov %vm8321_vm1  ;;  %v3897_v1 = vadd.f32 %v3896_v55, %v3895_v28  ;;  %v3742_v5 = vsel %vm7826_vm6, %v5091_v25, 0.0  ;;  %v5096_v53 = vadd.f32 %v5439_v60, %v4897_v9  ;;  %v5098_v35 = vadd.f32 %v5439_v60, %v1687_v20 }
 0x23b   : > { %v3898_v34 = vsel %vm8331_vm8, %v3844_v57, 0.0  ;;  %vm7839_vm4 = vmand %vm7800_vm0, %vm3616_vm7  ;;  %v3846_v12 = vmul.f32 %v3742_v5, %v3742_v5  ;;  %v5093_v47 = vadd.f32 %v5092_v42, %v5032_v0  ;;  %v5095_v32 = vadd.f32 %v5094_v22, %v2868_v26 }
 0x23c   : > { %vm8334_vm14 = vmmov %vm8321_vm1  ;;  %v3899_v41 = vadd.f32 %v3898_v34, %v3897_v1  ;;  %v3744_v37 = vsel %vm7839_vm4, %v5089_v63, 0.0  ;;  %v5097_v40 = vadd.f32 %v5096_v53, %v5033_v29  ;;  %v5099_v49 = vadd.f32 %v5098_v35, %v2871_v16 }
 0x23d   : > { %3947 = vst.msk [vmem:[%s7077_s10 + $0xc0] sm:$0xff] %vm8334_vm14, %v5087_v31  ;;  %vm8335_vm7 = vmmov %vm8321_vm1  ;;  %v3848_v44 = vmul.f32 %v3744_v37, %v3744_v37  ;;  %v3310_v55 = vsel %vm3300_vm10, %v3309_v13, %v3308_v39  ;;  %vm3522_vm10 = vcmp.lt.s32.totalorder %v7040_v10, 288 }
 0x23e   : > { %3948 = vst.msk [vmem:[%s7077_s10 + $0xc8] sm:$0xff] %vm8335_vm7, %v5091_v25  ;;  %vm8336_vm0 = vmmov %vm8321_vm1  ;;  %vm3556_vm1 = vcmp.ge.s32.totalorder %v7847_v61, 1 }
 0x23f   : > { %v3797_v2 = vsel %vm8336_vm0, %v3741_v17, 0.0  ;;  %vm7868_vm11 = vmand %vm3521_vm15, %vm3553_vm3  ;;  %3951 = vst.msk [vmem:[%s7077_s10 + $0xe0] sm:$0xff] %vm8336_vm0, %v5095_v32 }
 0x240   : > { %v3798_v50 = vadd.f32 %v3797_v2, %v3796_v46  ;;  %vm8339_vm13 = vmmov %vm8336_vm0 }
 0x241   : > { %v3799_v58 = vsel %vm8339_vm13, %v3742_v5, 0.0  ;;  %vm8340_vm6 = vmmov %vm8336_vm0 }
 0x242   : > { %v3900_v23 = vsel %vm8340_vm6, %v3845_v21, 0.0  ;;  %vm8341_vm15 = vmmov %vm8336_vm0  ;;  %v3800_v18 = vadd.f32 %v3799_v58, %v3798_v50 }
 0x243   : > { %v3801_v57 = vsel %vm8341_vm15, %v3743_v3, 0.0  ;;  %v3901_v33 = vadd.f32 %v3900_v23, %v3899_v41  ;;  %vm8342_vm3 = vmmov %vm8336_vm0  ;;  %vm3619_vm15 = vcmp.le.s32.totalorder %v7362_v6, 16  ;;  %v3458_v6 = vadd.s32 18, %v3310_v55 }
 0x244   : > { %v3902_v52 = vsel %vm8342_vm3, %v3846_v12, 0.0  ;;  %vm3649_vm8 = vmand %vm7868_vm11, %vm3617_vm12  ;;  %v3802_v56 = vadd.f32 %v3801_v57, %v3800_v18 }
 0x245   : > { %vm8343_vm4 = vmmov %vm8336_vm0  ;;  %v3903_v43 = vadd.f32 %v3902_v52, %v3901_v33  ;;  %v3745_v59 = vsel %vm3649_vm8, %v5095_v32, 0.0 }
 0x246   : > { %3953 = vst.msk [vmem:[%s7077_s10 + $0xf0] sm:$0xff] %vm8343_vm4, %v5093_v47  ;;  %vm8344_vm14 = vmmov %vm8336_vm0  ;;  %v3849_v8 = vmul.f32 %v3745_v59, %v3745_v59  ;;  %vm3362_vm4 = vcmp.ne.s32.totalorder %v3310_v55, 0 }
 0x247   : > { %v3904_v7 = vsel %vm8344_vm14, %v3847_v27, 0.0  ;;  %vm8345_vm7 = vmmov %vm8336_vm0  ;;  %vm3394_vm14 = vcmp.lt.s32.totalorder %v3310_v55, 0 }
 0x248   : > { %v3803_v19 = vsel %vm8345_vm7, %v3744_v37, 0.0  ;;  %vm8346_vm13 = vmmov %vm8336_vm0  ;;  %v3905_v30 = vadd.f32 %v3904_v7, %v3903_v43 }
 0x249   : > { %3954 = vst.msk [vmem:[%s7077_s10 + $0xf8] sm:$0xff] %vm8346_vm13, %v5097_v40  ;;  %v3804_v14 = vadd.f32 %v3803_v19, %v3802_v56  ;;  %vm8347_vm12 = vmmov %vm8336_vm0 }
 0x24a   : > { %v3805_v36 = vsel %vm8347_vm12, %v3745_v59, 0.0  ;;  %vm8348_vm11 = vmmov %vm8336_vm0 }
 0x24b   : > { %v3906_v54 = vsel %vm8348_vm11, %v3848_v44, 0.0  ;;  %vm3587_vm6 = vmand %vm3523_vm2, %vm3555_vm9  ;;  %v3806_v15 = vadd.f32 %v3805_v36, %v3804_v14  ;;  %vm3620_vm2 = vcmp.le.s32.totalorder %v7847_v61, 16 }
 0x24c   : > { %vm8349_vm3 = vmmov %vm8336_vm0  ;;  %v3907_v28 = vadd.f32 %v3906_v54, %v3905_v30 }
 0x24d   : > { %3952 = vst.msk [vmem:[%s7077_s10 + $0xe8] sm:$0xff] %vm8349_vm3, %v5099_v49  ;;  %vm3588_vm8 = vmand %vm3524_vm5, %vm3556_vm1 }
 0x24e   : > { %vm8350_vm7 = vmmov %vm8336_vm0 }
 0x24f   : > { %v3908_v51 = vsel %vm8350_vm7, %v3849_v8, 0.0  ;;  %vm3426_vm9 = vmand %vm3394_vm14, %vm3362_vm4 }
 0x250   : > { %vm3651_vm0 = vmand %vm3587_vm6, %vm3619_vm15  ;;  %v3909_v3 = vadd.f32 %v3908_v51, %v3907_v28  ;;  %v3490_v4 = vsel %vm3426_vm9, %v3458_v6, %v3310_v55 }
 0x251   : > { %vm3652_vm13 = vmand %vm3588_vm8, %vm3620_vm2  ;;  %vm3554_vm12 = vcmp.ge.s32.totalorder %v3490_v4, 1  ;;  %vm3618_vm11 = vcmp.le.s32.totalorder %v3490_v4, 16  ;;  %v3747_v45 = vsel %vm3651_vm0, %v5093_v47, 0.0 }
 0x252   : > { %vm3586_vm3 = vmand %vm3522_vm10, %vm3554_vm12  ;;  %v3748_v48 = vsel %vm3652_vm13, %v5097_v40, 0.0  ;;  %v3851_v63 = vmul.f32 %v3747_v45, %v3747_v45 }
 0x253   : > { %vm3650_vm5 = vmand %vm3586_vm3, %vm3618_vm11  ;;  %v3852_v10 = vmul.f32 %v3748_v48, %v3748_v48 }
 0x254   : > { %v3746_v31 = vsel %vm3650_vm5, %v5099_v49, 0.0  ;;  %vm8351_vm1 = vmmov %vm8350_vm7  ;;  %vm3819_vm7 = vcmask 57344  }
 0x255   : > { %v3807_v25 = vsel %vm8351_vm1, %v3746_v31, 0.0  ;;  %v3850_v34 = vmul.f32 %v3746_v31, %v3746_v31  ;;  %vm8352_vm6 = vmmov %vm8351_vm1 }
 0x256   : > { %v3808_v1 = vadd.f32 %v3807_v25, %v3806_v15  ;;  %v3809_v46 = vsel %vm8352_vm6, %v3747_v45, 0.0  ;;  %vm8353_vm15 = vmmov %vm8351_vm1 }
 0x257   : > { %v3910_v38 = vsel %vm8353_vm15, %v3850_v34, 0.0  ;;  %vm8354_vm8 = vmmov %vm8351_vm1 }
 0x258   : > { %v3810_v62 = vadd.f32 %v3809_v46, %v3808_v1  ;;  %v3911_v61 = vadd.f32 %v3910_v38, %v3909_v3  ;;  %v3912_v27 = vsel %vm8354_vm8, %v3851_v63, 0.0  ;;  %vm8355_vm4 = vmmov %vm8351_vm1 }
 0x259   : > { %v3811_v17 = vsel %vm8355_vm4, %v3748_v48, 0.0  ;;  %vm8356_vm14 = vmmov %vm8351_vm1 }
 0x25a   : > { %v3812_v5 = vadd.f32 %v3811_v17, %v3810_v62  ;;  %v3913_v60 = vadd.f32 %v3912_v27, %v3911_v61  ;;  %v3914_v42 = vsel %vm8356_vm14, %v3852_v10, 0.0 }
 0x25c   : > { %v3813_v0 = vrot.slane %v3812_v5, 4  ;;  %v3915_v11 = vadd.f32 %v3914_v42, %v3913_v60 }
 0x25e   : > { %v3814_v2 = vadd.f32 %v3813_v0, %v3812_v5  ;;  %v3916_v21 = vrot.slane %v3915_v11, 4 }
 0x260   : > { %v3815_v41 = vrot.slane %v3814_v2, 2  ;;  %v3917_v26 = vadd.f32 %v3916_v21, %v3915_v11 }
 0x262   : > { %v3816_v24 = vadd.f32 %v3815_v41, %v3814_v2  ;;  %v3918_v9 = vrot.slane %v3917_v26, 2 }
 0x264   : > { %v3817_v39 = vrot.slane %v3816_v24, 1  ;;  %v3919_v50 = vadd.f32 %v3918_v9, %v3917_v26 }
 0x266   : > { %v3818_v37 = vadd.f32 %v3817_v39, %v3816_v24  ;;  %v3920_v58 = vrot.slane %v3919_v50, 1 }
 0x268   : > { %3820 = vst.msk [vmem:[%s241_s25] sm:$0x1] %vm3819_vm7, %v3818_v37  ;;  %v3921_v12 = vadd.f32 %v3920_v58, %v3919_v50 }
 0x26a   : > { %3922 = vst.msk [vmem:[%s241_s25 + $0x1] sm:$0x1] %vm3819_vm7, %v3921_v12 }
 0x26b PF: > { %s15_s19 = sadd.s32 1, %s5478_s19   ;;  %s8357_s15 = smov %s5470_s17 }
 0x26c   : > { %p12_p8 = scmp.ge.s32.totalorder %s15_s19, 6   ;;  %s8358_s16 = smov %s5474_s18 }
 0x26d   : > { %s8359_s17 = smov %s8362_s20  ;;  %s8360_s18 = smov %s8366_s21 }
 0x26e   :  { %14 = sbr.rel (!%p12_p8) target bundleno = 3 (0x3), region = 91 }

</bundles_post_ra>
